<compile_context>
chip_gen: v7x
topology: tpu7x:2x2x1
jax: 0.10.0
libtpu: 0.0.40
codegen_flags: <defaults>
</compile_context>

<pallas_src>
import functools

import jax
import jax.numpy as jnp
from jax import lax
from jax.experimental import pallas as pl
from jax.experimental.pallas import tpu as pltpu

EPS = 1e-5  # PyTorch BatchNorm3d default eps


def _fold_lanes(v, reps, c):
    """(1, reps*c) -> (1, c): sum the `reps` consecutive groups of `c` lanes."""
    acc = v[:, 0:c]
    for r in range(1, reps):
        acc = acc + v[:, r * c:(r + 1) * c]
    return acc


def _spread_lanes(v, reps):
    """(1, c) -> (1, reps*c): tile a per-channel row vector along lanes."""
    return jnp.concatenate([v] * reps, axis=1)


def _fused_kernel(x_ref, g1_ref, b1_ref, w1bd_ref, g2_ref, b2_ref,
                  wband_ref, cb2_ref, o_ref, y_scr, z_scr,
                  *, n, d, h, w, cin, cmid, cout):
    """Fused BN1 -> ReLU -> conv1x1 -> BN2 -> ReLU -> conv3x3x3 (pad=1)."""
    dh = d * h
    wc_mid = w * cmid
    wc_out = w * cout
    inv_count = 1.0 / float(n * d * h * w)

    # ---------------- BN1 statistics (two-pass, centered form) --------------
    x_all = x_ref[...]                                    # (n*d*h, w*cin) tiny
    cs1 = jnp.sum(x_all, axis=0, keepdims=True)           # (1, w*cin)
    mean1 = _fold_lanes(cs1, w, cin) * inv_count          # (1, cin)
    xc = x_all - _spread_lanes(mean1, w)
    cq1 = jnp.sum(xc * xc, axis=0, keepdims=True)
    var1 = _fold_lanes(cq1, w, cin) * inv_count           # biased variance
    scale1 = g1_ref[...] * lax.rsqrt(var1 + EPS)
    shift1 = b1_ref[...] - mean1 * scale1
    scale1_sp = _spread_lanes(scale1, w)
    shift1_sp = _spread_lanes(shift1, w)

    # -------- pass A: BN1 affine -> ReLU -> 1x1x1 conv, per-batch chunks ----
    # Each chunk's conv1 output lands directly in y_scr (aligned stores) while
    # the per-column sum for BN2's mean is accumulated, so the full
    # intermediate is never live in registers.  conv1's bias is omitted: a
    # constant per-channel shift cancels under BN2's batch-mean subtraction.
    cs2 = jnp.zeros((1, wc_mid), jnp.float32)
    for b in range(n):                                    # n is small & static
        x_b = x_ref[b * dh:(b + 1) * dh, :]               # (d*h, w*cin)
        xr_b = jnp.maximum(x_b * scale1_sp + shift1_sp, 0.0)
        y_b = jnp.dot(xr_b.astype(jnp.bfloat16), w1bd_ref[...],
                      preferred_element_type=jnp.float32)  # (d*h, w*cmid) f32
        y_scr[b] = y_b
        cs2 = cs2 + jnp.sum(y_b, axis=0, keepdims=True)
    mean2 = _fold_lanes(cs2, w, cmid) * inv_count          # (1, cmid)
    mean2_sp = _spread_lanes(mean2, w)

    # -------- pass B: centered (numerically robust) variance for BN2 --------
    cq2 = jnp.zeros((1, wc_mid), jnp.float32)
    for b in range(n):
        yc = y_scr[b] - mean2_sp
        cq2 = cq2 + jnp.sum(yc * yc, axis=0, keepdims=True)
    var2 = _fold_lanes(cq2, w, cmid) * inv_count
    scale2 = g2_ref[...] * lax.rsqrt(var2 + EPS)
    shift2 = b2_ref[...] - mean2 * scale2
    scale2_sp = _spread_lanes(scale2, w)
    shift2_sp = _spread_lanes(shift2, w)

    # -------- zero only the halo border of z_scr (interior is overwritten) --
    zplane = jnp.zeros((1, n, h + 2, wc_mid), jnp.float32)
    z_scr[0:1, :, :, :] = zplane                          # d = -1 plane
    z_scr[d + 1:d + 2, :, :, :] = zplane                  # d = D  plane
    zrow = jnp.zeros((d, n, 1, wc_mid), jnp.float32)
    z_scr[1:1 + d, :, 0:1, :] = zrow                      # h = -1 rows
    z_scr[1:1 + d, :, h + 1:h + 2, :] = zrow              # h = H  rows

    # -------- pass C: BN2 affine -> ReLU, written into the halo interior ----
    for b in range(n):
        z_b = jnp.maximum(y_scr[b] * scale2_sp + shift2_sp, 0.0)
        z_scr[1:1 + d, b:b + 1, 1:1 + h, :] = z_b.reshape(d, 1, h, wc_mid)

    # -------- stage 2: 3x3x3 conv (padding=1) straight out of the halo ------
    # kw taps + W zero-padding are folded into the banded weight; the scratch
    # layout (d+2, n, h+2, w*cmid) lets ONE shifted read per (kd, kh) tap
    # produce the (n*d*h, w*cmid) slab for all batches, so each tap is a
    # single bf16 MXU matmul with M = n*d*h rows.
    acc = jnp.zeros((n * dh, wc_out), jnp.float32)
    for kd in range(3):
        for kh in range(3):
            slab = z_scr[kd:kd + d, :, kh:kh + h, :].reshape(n * dh, wc_mid)
            acc = acc + jnp.dot(slab.astype(jnp.bfloat16), wband_ref[kd, kh],
                                preferred_element_type=jnp.float32)
    # conv2 bias added once, after the 9-tap accumulation.
    o_ref[...] = acc + jnp.broadcast_to(cb2_ref[...], (n * dh, wc_out))


def dense_block_layer(x_ncdhw, params):
    """Pallas implementation of DenseBlockLayer.forward.  x: (N, C, D, H, W)."""
    g1, b1, w1, cb1, g2, b2, w2, cb2 = params
    del cb1  # cancels exactly under training-mode BN2's mean subtraction
    n, cin, d, h, w = x_ncdhw.shape
    cmid = w1.shape[1]
    cout = w2.shape[-1]
    dh = d * h

    # TODO(synk): for production sizes, accept/emit NDHWC and write the concat
    # target directly (second output / input_output_aliases) so this transpose
    # and the jnp.concatenate below stop costing extra HBM passes.
    x_cols = jnp.transpose(x_ncdhw, (0, 2, 3, 4, 1)).reshape(n * dh, w * cin)

    # ---- trace-time weight restructuring (tiny XLA ops on weights only) ----
    # Block-diagonal 1x1x1 weight (w*cin, w*cmid), bf16 for the MXU.
    w1bd = jnp.kron(jnp.eye(w, dtype=w1.dtype), w1).astype(jnp.bfloat16)
    # Banded 3x3x3 weight: band[kd, kh, wi*cmid+ci, wo*cout+co]
    #   = w2[kd, kh, wi-wo+1, ci, co] if 0 <= wi-wo+1 < 3 else 0.
    # TODO(synk): wband scales as 9*W^2*cmid*cout; for production W on v7x
    # (64 MiB VMEM) add a W-tile grid axis or handle kw via pltpu.roll.
    sel = jnp.stack([jnp.eye(w, k=1 - kw, dtype=w2.dtype) for kw in range(3)])
    wband = jnp.einsum('kab,dekcf->deacbf', sel, w2).reshape(
        3, 3, w * cmid, w * cout).astype(jnp.bfloat16)
    cb2_cols = jnp.tile(cb2.reshape(1, cout), (1, w)).astype(jnp.float32)
    row = lambda v: v.reshape(1, -1).astype(jnp.float32)

    kernel = functools.partial(_fused_kernel, n=n, d=d, h=h, w=w,
                               cin=cin, cmid=cmid, cout=cout)

    # TODO(synk): for production D/H/W, add a "parallel" grid axis over batch /
    # d-tiles with a two-pass partial-sum BN so both v7x TensorCores are used
    # and a single VMEM block no longer has to hold the whole batch.
    fused = pl.pallas_call(
        kernel,
        out_shape=jax.ShapeDtypeStruct((n * dh, w * cout), jnp.float32),
        grid=(1,),
        in_specs=[
            pl.BlockSpec((n * dh, w * cin), lambda i: (0, 0)),          # x
            pl.BlockSpec((1, cin), lambda i: (0, 0)),                   # g1
            pl.BlockSpec((1, cin), lambda i: (0, 0)),                   # b1
            pl.BlockSpec((w * cin, w * cmid), lambda i: (0, 0)),        # w1bd
            pl.BlockSpec((1, cmid), lambda i: (0, 0)),                  # g2
            pl.BlockSpec((1, cmid), lambda i: (0, 0)),                  # b2
            pl.BlockSpec((3, 3, w * cmid, w * cout),
                         lambda i: (0, 0, 0, 0)),                       # wband
            pl.BlockSpec((1, w * cout), lambda i: (0, 0)),              # cb2
        ],
        out_specs=pl.BlockSpec((n * dh, w * cout), lambda i: (0, 0)),
        scratch_shapes=[
            pltpu.VMEM((n, dh, w * cmid), jnp.float32),                 # y_scr
            pltpu.VMEM((d + 2, n, h + 2, w * cmid), jnp.float32),       # z_scr
        ],
        compiler_params=pltpu.CompilerParams(
            dimension_semantics=("arbitrary",),
            vmem_limit_bytes=32 * 1024 * 1024),
    )
    o = fused(x_cols, row(g1), row(b1), w1bd, row(g2), row(b2), wband,
              cb2_cols)

    # Rows of o are ordered (d, n, h); columns are (w, cout).
    y_ncdhw = jnp.transpose(o.reshape(d, n, h, w, cout), (1, 4, 0, 2, 3))
    return jnp.concatenate([x_ncdhw, y_ncdhw], axis=1)    # torch.cat(dim=1)


def reference(x_ncdhw, params):
    """Pure-JAX reference matching the PyTorch forward (training-mode BN)."""
    g1, b1, w1, cb1, g2, b2, w2, cb2 = params
    x = jnp.transpose(x_ncdhw, (0, 2, 3, 4, 1))

    def bn(v, g, b):
        m = jnp.mean(v, axis=(0, 1, 2, 3), keepdims=True)
        var = jnp.mean(jnp.square(v - m), axis=(0, 1, 2, 3), keepdims=True)
        return (v - m) * lax.rsqrt(var + EPS) * g + b

    hdn = jnp.maximum(bn(x, g1, b1), 0.0)
    hdn = jnp.einsum('ndhwc,ce->ndhwe', hdn, w1) + cb1
    hdn = jnp.maximum(bn(hdn, g2, b2), 0.0)
    out = lax.conv_general_dilated(
        hdn, w2, window_strides=(1, 1, 1), padding='SAME',
        dimension_numbers=('NDHWC', 'DHWIO', 'NDHWC')) + cb2
    out_ncdhw = jnp.transpose(out, (0, 4, 1, 2, 3))
    return jnp.concatenate([x_ncdhw, out_ncdhw], axis=1)


if __name__ == "__main__":
    N, Cin, D, H, W = 2, 4, 8, 8, 8
    filters, bottleneck = 16, 4
    Cmid, Cout = filters * bottleneck, filters  # 64, 16

    key = jax.random.PRNGKey(0)
    ks = jax.random.split(key, 9)
    g1 = 1.0 + 0.1 * jax.random.normal(ks[0], (Cin,), jnp.float32)
    b1 = 0.1 * jax.random.normal(ks[1], (Cin,), jnp.float32)
    w1 = jax.random.normal(ks[2], (Cin, Cmid), jnp.float32) / jnp.sqrt(float(Cin))
    cb1 = 0.1 * jax.random.normal(ks[3], (Cmid,), jnp.float32)
    g2 = 1.0 + 0.1 * jax.random.normal(ks[4], (Cmid,), jnp.float32)
    b2 = 0.1 * jax.random.normal(ks[5], (Cmid,), jnp.float32)
    w2 = jax.random.normal(ks[6], (3, 3, 3, Cmid, Cout), jnp.float32) / jnp.sqrt(27.0 * Cmid)
    cb2 = 0.1 * jax.random.normal(ks[7], (Cout,), jnp.float32)
    x = jax.random.normal(ks[8], (N, Cin, D, H, W), jnp.float32)

    params = (g1, b1, w1, cb1, g2, b2, w2, cb2)

    out = jax.jit(dense_block_layer)(x, params)
    out = jax.block_until_ready(out)

    ref = reference(x, params)
    assert out.shape == (N, Cin + Cout, D, H, W), out.shape
    err = float(jnp.max(jnp.abs(out - ref)))
    assert jnp.allclose(out, ref, rtol=2e-2, atol=2e-2), f"max abs err = {err}"
    print("KERNEL_OK")
</pallas_src>

<mosaic_0001>
module attributes {stable_mosaic.version = 11 : i64} {
  func.func @_fused_kernel(%arg0: i32, %arg1: memref<128x32xf32, #tpu.memory_space<vmem>>, %arg2: memref<1x4xf32, #tpu.memory_space<vmem>>, %arg3: memref<1x4xf32, #tpu.memory_space<vmem>>, %arg4: memref<32x512xbf16, #tpu.memory_space<vmem>>, %arg5: memref<1x64xf32, #tpu.memory_space<vmem>>, %arg6: memref<1x64xf32, #tpu.memory_space<vmem>>, %arg7: memref<3x3x512x128xbf16, #tpu.memory_space<vmem>>, %arg8: memref<1x128xf32, #tpu.memory_space<vmem>>, %arg9: memref<128x128xf32, #tpu.memory_space<vmem>>, %arg10: memref<2x64x512xf32, #tpu.memory_space<vmem>>, %arg11: memref<10x2x10x512xf32, #tpu.memory_space<vmem>>) attributes {dimension_semantics = [#tpu.dimension_semantics<arbitrary>], iteration_bounds = array<i64: 1>, scalar_prefetch = 0 : i64, scratch_operands = 2 : i64, tpu.core_type = #tpu.core_type<tc>, window_params = [{pipeline_mode = #tpu.pipeline_mode<synchronous>, transform_indices = @transform_0, window_bounds = array<i64: 128, 32>}, {pipeline_mode = #tpu.pipeline_mode<synchronous>, transform_indices = @transform_1, window_bounds = array<i64: 1, 4>}, {pipeline_mode = #tpu.pipeline_mode<synchronous>, transform_indices = @transform_2, window_bounds = array<i64: 1, 4>}, {pipeline_mode = #tpu.pipeline_mode<synchronous>, transform_indices = @transform_3, window_bounds = array<i64: 32, 512>}, {pipeline_mode = #tpu.pipeline_mode<synchronous>, transform_indices = @transform_4, window_bounds = array<i64: 1, 64>}, {pipeline_mode = #tpu.pipeline_mode<synchronous>, transform_indices = @transform_5, window_bounds = array<i64: 1, 64>}, {pipeline_mode = #tpu.pipeline_mode<synchronous>, transform_indices = @transform_6, window_bounds = array<i64: 3, 3, 512, 128>}, {pipeline_mode = #tpu.pipeline_mode<synchronous>, transform_indices = @transform_7, window_bounds = array<i64: 1, 128>}, {pipeline_mode = #tpu.pipeline_mode<synchronous>, transform_indices = @transform_8, window_bounds = array<i64: 128, 128>}]} {
    %c0 = arith.constant 0 : index
    %c0_0 = arith.constant 0 : index
    %0 = vector.load %arg1[%c0, %c0_0] : memref<128x32xf32, #tpu.memory_space<vmem>>, vector<128x32xf32>
    %cst = arith.constant dense<0.000000e+00> : vector<32xf32>
    %1 = vector.multi_reduction <add>, %0, %cst [0] : vector<128x32xf32> to vector<32xf32>
    %2 = vector.shape_cast %1 : vector<32xf32> to vector<1x32xf32>
    %3 = vector.extract_strided_slice %2 {offsets = [0, 0], sizes = [1, 4], strides = [1, 1]} : vector<1x32xf32> to vector<1x4xf32>
    %4 = vector.extract_strided_slice %2 {offsets = [0, 4], sizes = [1, 4], strides = [1, 1]} : vector<1x32xf32> to vector<1x4xf32>
    %5 = arith.addf %3, %4 : vector<1x4xf32>
    %6 = vector.extract_strided_slice %2 {offsets = [0, 8], sizes = [1, 4], strides = [1, 1]} : vector<1x32xf32> to vector<1x4xf32>
    %7 = arith.addf %5, %6 : vector<1x4xf32>
    %8 = vector.extract_strided_slice %2 {offsets = [0, 12], sizes = [1, 4], strides = [1, 1]} : vector<1x32xf32> to vector<1x4xf32>
    %9 = arith.addf %7, %8 : vector<1x4xf32>
    %10 = vector.extract_strided_slice %2 {offsets = [0, 16], sizes = [1, 4], strides = [1, 1]} : vector<1x32xf32> to vector<1x4xf32>
    %11 = arith.addf %9, %10 : vector<1x4xf32>
    %12 = vector.extract_strided_slice %2 {offsets = [0, 20], sizes = [1, 4], strides = [1, 1]} : vector<1x32xf32> to vector<1x4xf32>
    %13 = arith.addf %11, %12 : vector<1x4xf32>
    %14 = vector.extract_strided_slice %2 {offsets = [0, 24], sizes = [1, 4], strides = [1, 1]} : vector<1x32xf32> to vector<1x4xf32>
    %15 = arith.addf %13, %14 : vector<1x4xf32>
    %16 = vector.extract_strided_slice %2 {offsets = [0, 28], sizes = [1, 4], strides = [1, 1]} : vector<1x32xf32> to vector<1x4xf32>
    %17 = arith.addf %15, %16 : vector<1x4xf32>
    %cst_1 = arith.constant 9.765625E-4 : f32
    %18 = vector.broadcast %cst_1 : f32 to vector<1x4xf32>
    %19 = arith.mulf %17, %18 : vector<1x4xf32>
    %20 = tpu.concatenate %19, %19, %19, %19, %19, %19, %19, %19 in 1 : vector<1x4xf32>, vector<1x4xf32>, vector<1x4xf32>, vector<1x4xf32>, vector<1x4xf32>, vector<1x4xf32>, vector<1x4xf32>, vector<1x4xf32> -> vector<1x32xf32>
    %21 = vector.broadcast %20 : vector<1x32xf32> to vector<128x32xf32>
    %22 = arith.subf %0, %21 : vector<128x32xf32>
    %23 = arith.mulf %22, %22 : vector<128x32xf32>
    %cst_2 = arith.constant dense<0.000000e+00> : vector<32xf32>
    %24 = vector.multi_reduction <add>, %23, %cst_2 [0] : vector<128x32xf32> to vector<32xf32>
    %25 = vector.shape_cast %24 : vector<32xf32> to vector<1x32xf32>
    %26 = vector.extract_strided_slice %25 {offsets = [0, 0], sizes = [1, 4], strides = [1, 1]} : vector<1x32xf32> to vector<1x4xf32>
    %27 = vector.extract_strided_slice %25 {offsets = [0, 4], sizes = [1, 4], strides = [1, 1]} : vector<1x32xf32> to vector<1x4xf32>
    %28 = arith.addf %26, %27 : vector<1x4xf32>
    %29 = vector.extract_strided_slice %25 {offsets = [0, 8], sizes = [1, 4], strides = [1, 1]} : vector<1x32xf32> to vector<1x4xf32>
    %30 = arith.addf %28, %29 : vector<1x4xf32>
    %31 = vector.extract_strided_slice %25 {offsets = [0, 12], sizes = [1, 4], strides = [1, 1]} : vector<1x32xf32> to vector<1x4xf32>
    %32 = arith.addf %30, %31 : vector<1x4xf32>
    %33 = vector.extract_strided_slice %25 {offsets = [0, 16], sizes = [1, 4], strides = [1, 1]} : vector<1x32xf32> to vector<1x4xf32>
    %34 = arith.addf %32, %33 : vector<1x4xf32>
    %35 = vector.extract_strided_slice %25 {offsets = [0, 20], sizes = [1, 4], strides = [1, 1]} : vector<1x32xf32> to vector<1x4xf32>
    %36 = arith.addf %34, %35 : vector<1x4xf32>
    %37 = vector.extract_strided_slice %25 {offsets = [0, 24], sizes = [1, 4], strides = [1, 1]} : vector<1x32xf32> to vector<1x4xf32>
    %38 = arith.addf %36, %37 : vector<1x4xf32>
    %39 = vector.extract_strided_slice %25 {offsets = [0, 28], sizes = [1, 4], strides = [1, 1]} : vector<1x32xf32> to vector<1x4xf32>
    %40 = arith.addf %38, %39 : vector<1x4xf32>
    %cst_3 = arith.constant 9.765625E-4 : f32
    %41 = vector.broadcast %cst_3 : f32 to vector<1x4xf32>
    %42 = arith.mulf %40, %41 : vector<1x4xf32>
    %c0_4 = arith.constant 0 : index
    %c0_5 = arith.constant 0 : index
    %43 = vector.load %arg2[%c0_4, %c0_5] : memref<1x4xf32, #tpu.memory_space<vmem>>, vector<1x4xf32>
    %cst_6 = arith.constant 9.99999974E-6 : f32
    %44 = vector.broadcast %cst_6 : f32 to vector<1x4xf32>
    %45 = arith.addf %42, %44 : vector<1x4xf32>
    %46 = math.rsqrt %45 : vector<1x4xf32>
    %47 = arith.mulf %43, %46 : vector<1x4xf32>
    %c0_7 = arith.constant 0 : index
    %c0_8 = arith.constant 0 : index
    %48 = vector.load %arg3[%c0_7, %c0_8] : memref<1x4xf32, #tpu.memory_space<vmem>>, vector<1x4xf32>
    %49 = arith.mulf %19, %47 : vector<1x4xf32>
    %50 = arith.subf %48, %49 : vector<1x4xf32>
    %51 = tpu.concatenate %47, %47, %47, %47, %47, %47, %47, %47 in 1 : vector<1x4xf32>, vector<1x4xf32>, vector<1x4xf32>, vector<1x4xf32>, vector<1x4xf32>, vector<1x4xf32>, vector<1x4xf32>, vector<1x4xf32> -> vector<1x32xf32>
    %52 = tpu.concatenate %50, %50, %50, %50, %50, %50, %50, %50 in 1 : vector<1x4xf32>, vector<1x4xf32>, vector<1x4xf32>, vector<1x4xf32>, vector<1x4xf32>, vector<1x4xf32>, vector<1x4xf32>, vector<1x4xf32> -> vector<1x32xf32>
    %cst_9 = arith.constant 0.000000e+00 : f32
    %53 = vector.broadcast %cst_9 : f32 to vector<1x512xf32>
    %c0_10 = arith.constant 0 : index
    %c0_11 = arith.constant 0 : index
    %54 = vector.load %arg1[%c0_10, %c0_11] : memref<128x32xf32, #tpu.memory_space<vmem>>, vector<64x32xf32>
    %55 = vector.broadcast %51 : vector<1x32xf32> to vector<64x32xf32>
    %56 = arith.mulf %54, %55 : vector<64x32xf32>
    %57 = vector.broadcast %52 : vector<1x32xf32> to vector<64x32xf32>
    %58 = arith.addf %56, %57 : vector<64x32xf32>
    %cst_12 = arith.constant 0.000000e+00 : f32
    %59 = vector.broadcast %cst_12 : f32 to vector<64x32xf32>
    %60 = arith.maximumf %58, %59 : vector<64x32xf32>
    %61 = arith.truncf %60 : vector<64x32xf32> to vector<64x32xbf16>
    %c0_13 = arith.constant 0 : index
    %c0_14 = arith.constant 0 : index
    %62 = vector.load %arg4[%c0_13, %c0_14] : memref<32x512xbf16, #tpu.memory_space<vmem>>, vector<32x512xbf16>
    %cst_15 = arith.constant dense<0.000000e+00> : vector<64x512xf32>
    %63 = tpu.matmul %61, %62, %cst_15 {dimension_numbers = #tpu.dot_dimension_numbers<[1], [0], [0], [1], [0, 0, 1, 1], [], []>} : vector<64x32xbf16>, vector<32x512xbf16>, vector<64x512xf32> -> vector<64x512xf32>
    %c0_16 = arith.constant 0 : index
    %c0_17 = arith.constant 0 : index
    %c0_18 = arith.constant 0 : index
    %64 = vector.load %arg10[%c0_16, %c0_17, %c0_18] : memref<2x64x512xf32, #tpu.memory_space<vmem>>, vector<1x64x512xf32>
    %65 = vector.shape_cast %64 : vector<1x64x512xf32> to vector<64x512xf32>
    %66 = vector.shape_cast %63 : vector<64x512xf32> to vector<1x64x512xf32>
    tpu.vector_store %arg10[%c0_16, %c0_17, %c0_18], %66 {strides = array<i32>} : memref<2x64x512xf32, #tpu.memory_space<vmem>>, vector<1x64x512xf32>,
    %cst_19 = arith.constant dense<0.000000e+00> : vector<512xf32>
    %67 = vector.multi_reduction <add>, %63, %cst_19 [0] : vector<64x512xf32> to vector<512xf32>
    %68 = vector.shape_cast %67 : vector<512xf32> to vector<1x512xf32>
    %69 = arith.addf %53, %68 : vector<1x512xf32>
    %c64 = arith.constant 64 : index
    %c0_20 = arith.constant 0 : index
    %70 = vector.load %arg1[%c64, %c0_20] : memref<128x32xf32, #tpu.memory_space<vmem>>, vector<64x32xf32>
    %71 = vector.broadcast %51 : vector<1x32xf32> to vector<64x32xf32>
    %72 = arith.mulf %70, %71 : vector<64x32xf32>
    %73 = vector.broadcast %52 : vector<1x32xf32> to vector<64x32xf32>
    %74 = arith.addf %72, %73 : vector<64x32xf32>
    %cst_21 = arith.constant 0.000000e+00 : f32
    %75 = vector.broadcast %cst_21 : f32 to vector<64x32xf32>
    %76 = arith.maximumf %74, %75 : vector<64x32xf32>
    %77 = arith.truncf %76 : vector<64x32xf32> to vector<64x32xbf16>
    %c0_22 = arith.constant 0 : index
    %c0_23 = arith.constant 0 : index
    %78 = vector.load %arg4[%c0_22, %c0_23] : memref<32x512xbf16, #tpu.memory_space<vmem>>, vector<32x512xbf16>
    %cst_24 = arith.constant dense<0.000000e+00> : vector<64x512xf32>
    %79 = tpu.matmul %77, %78, %cst_24 {dimension_numbers = #tpu.dot_dimension_numbers<[1], [0], [0], [1], [0, 0, 1, 1], [], []>} : vector<64x32xbf16>, vector<32x512xbf16>, vector<64x512xf32> -> vector<64x512xf32>
    %c1 = arith.constant 1 : index
    %c0_25 = arith.constant 0 : index
    %c0_26 = arith.constant 0 : index
    %80 = vector.load %arg10[%c1, %c0_25, %c0_26] : memref<2x64x512xf32, #tpu.memory_space<vmem>>, vector<1x64x512xf32>
    %81 = vector.shape_cast %80 : vector<1x64x512xf32> to vector<64x512xf32>
    %82 = vector.shape_cast %79 : vector<64x512xf32> to vector<1x64x512xf32>
    tpu.vector_store %arg10[%c1, %c0_25, %c0_26], %82 {strides = array<i32>} : memref<2x64x512xf32, #tpu.memory_space<vmem>>, vector<1x64x512xf32>,
    %cst_27 = arith.constant dense<0.000000e+00> : vector<512xf32>
    %83 = vector.multi_reduction <add>, %79, %cst_27 [0] : vector<64x512xf32> to vector<512xf32>
    %84 = vector.shape_cast %83 : vector<512xf32> to vector<1x512xf32>
    %85 = arith.addf %69, %84 : vector<1x512xf32>
    %86 = vector.extract_strided_slice %85 {offsets = [0, 0], sizes = [1, 64], strides = [1, 1]} : vector<1x512xf32> to vector<1x64xf32>
    %87 = vector.extract_strided_slice %85 {offsets = [0, 64], sizes = [1, 64], strides = [1, 1]} : vector<1x512xf32> to vector<1x64xf32>
    %88 = arith.addf %86, %87 : vector<1x64xf32>
    %89 = vector.extract_strided_slice %85 {offsets = [0, 128], sizes = [1, 64], strides = [1, 1]} : vector<1x512xf32> to vector<1x64xf32>
    %90 = arith.addf %88, %89 : vector<1x64xf32>
    %91 = vector.extract_strided_slice %85 {offsets = [0, 192], sizes = [1, 64], strides = [1, 1]} : vector<1x512xf32> to vector<1x64xf32>
    %92 = arith.addf %90, %91 : vector<1x64xf32>
    %93 = vector.extract_strided_slice %85 {offsets = [0, 256], sizes = [1, 64], strides = [1, 1]} : vector<1x512xf32> to vector<1x64xf32>
    %94 = arith.addf %92, %93 : vector<1x64xf32>
    %95 = vector.extract_strided_slice %85 {offsets = [0, 320], sizes = [1, 64], strides = [1, 1]} : vector<1x512xf32> to vector<1x64xf32>
    %96 = arith.addf %94, %95 : vector<1x64xf32>
    %97 = vector.extract_strided_slice %85 {offsets = [0, 384], sizes = [1, 64], strides = [1, 1]} : vector<1x512xf32> to vector<1x64xf32>
    %98 = arith.addf %96, %97 : vector<1x64xf32>
    %99 = vector.extract_strided_slice %85 {offsets = [0, 448], sizes = [1, 64], strides = [1, 1]} : vector<1x512xf32> to vector<1x64xf32>
    %100 = arith.addf %98, %99 : vector<1x64xf32>
    %cst_28 = arith.constant 9.765625E-4 : f32
    %101 = vector.broadcast %cst_28 : f32 to vector<1x64xf32>
    %102 = arith.mulf %100, %101 : vector<1x64xf32>
    %103 = tpu.concatenate %102, %102, %102, %102, %102, %102, %102, %102 in 1 : vector<1x64xf32>, vector<1x64xf32>, vector<1x64xf32>, vector<1x64xf32>, vector<1x64xf32>, vector<1x64xf32>, vector<1x64xf32>, vector<1x64xf32> -> vector<1x512xf32>
    %cst_29 = arith.constant 0.000000e+00 : f32
    %104 = vector.broadcast %cst_29 : f32 to vector<1x512xf32>
    %c0_30 = arith.constant 0 : index
    %c0_31 = arith.constant 0 : index
    %c0_32 = arith.constant 0 : index
    %105 = vector.load %arg10[%c0_30, %c0_31, %c0_32] : memref<2x64x512xf32, #tpu.memory_space<vmem>>, vector<1x64x512xf32>
    %106 = vector.shape_cast %105 : vector<1x64x512xf32> to vector<64x512xf32>
    %107 = vector.broadcast %103 : vector<1x512xf32> to vector<64x512xf32>
    %108 = arith.subf %106, %107 : vector<64x512xf32>
    %109 = arith.mulf %108, %108 : vector<64x512xf32>
    %cst_33 = arith.constant dense<0.000000e+00> : vector<512xf32>
    %110 = vector.multi_reduction <add>, %109, %cst_33 [0] : vector<64x512xf32> to vector<512xf32>
    %111 = vector.shape_cast %110 : vector<512xf32> to vector<1x512xf32>
    %112 = arith.addf %104, %111 : vector<1x512xf32>
    %c1_34 = arith.constant 1 : index
    %c0_35 = arith.constant 0 : index
    %c0_36 = arith.constant 0 : index
    %113 = vector.load %arg10[%c1_34, %c0_35, %c0_36] : memref<2x64x512xf32, #tpu.memory_space<vmem>>, vector<1x64x512xf32>
    %114 = vector.shape_cast %113 : vector<1x64x512xf32> to vector<64x512xf32>
    %115 = vector.broadcast %103 : vector<1x512xf32> to vector<64x512xf32>
    %116 = arith.subf %114, %115 : vector<64x512xf32>
    %117 = arith.mulf %116, %116 : vector<64x512xf32>
    %cst_37 = arith.constant dense<0.000000e+00> : vector<512xf32>
    %118 = vector.multi_reduction <add>, %117, %cst_37 [0] : vector<64x512xf32> to vector<512xf32>
    %119 = vector.shape_cast %118 : vector<512xf32> to vector<1x512xf32>
    %120 = arith.addf %112, %119 : vector<1x512xf32>
    %121 = vector.extract_strided_slice %120 {offsets = [0, 0], sizes = [1, 64], strides = [1, 1]} : vector<1x512xf32> to vector<1x64xf32>
    %122 = vector.extract_strided_slice %120 {offsets = [0, 64], sizes = [1, 64], strides = [1, 1]} : vector<1x512xf32> to vector<1x64xf32>
    %123 = arith.addf %121, %122 : vector<1x64xf32>
    %124 = vector.extract_strided_slice %120 {offsets = [0, 128], sizes = [1, 64], strides = [1, 1]} : vector<1x512xf32> to vector<1x64xf32>
    %125 = arith.addf %123, %124 : vector<1x64xf32>
    %126 = vector.extract_strided_slice %120 {offsets = [0, 192], sizes = [1, 64], strides = [1, 1]} : vector<1x512xf32> to vector<1x64xf32>
    %127 = arith.addf %125, %126 : vector<1x64xf32>
    %128 = vector.extract_strided_slice %120 {offsets = [0, 256], sizes = [1, 64], strides = [1, 1]} : vector<1x512xf32> to vector<1x64xf32>
    %129 = arith.addf %127, %128 : vector<1x64xf32>
    %130 = vector.extract_strided_slice %120 {offsets = [0, 320], sizes = [1, 64], strides = [1, 1]} : vector<1x512xf32> to vector<1x64xf32>
    %131 = arith.addf %129, %130 : vector<1x64xf32>
    %132 = vector.extract_strided_slice %120 {offsets = [0, 384], sizes = [1, 64], strides = [1, 1]} : vector<1x512xf32> to vector<1x64xf32>
    %133 = arith.addf %131, %132 : vector<1x64xf32>
    %134 = vector.extract_strided_slice %120 {offsets = [0, 448], sizes = [1, 64], strides = [1, 1]} : vector<1x512xf32> to vector<1x64xf32>
    %135 = arith.addf %133, %134 : vector<1x64xf32>
    %cst_38 = arith.constant 9.765625E-4 : f32
    %136 = vector.broadcast %cst_38 : f32 to vector<1x64xf32>
    %137 = arith.mulf %135, %136 : vector<1x64xf32>
    %c0_39 = arith.constant 0 : index
    %c0_40 = arith.constant 0 : index
    %138 = vector.load %arg5[%c0_39, %c0_40] : memref<1x64xf32, #tpu.memory_space<vmem>>, vector<1x64xf32>
    %cst_41 = arith.constant 9.99999974E-6 : f32
    %139 = vector.broadcast %cst_41 : f32 to vector<1x64xf32>
    %140 = arith.addf %137, %139 : vector<1x64xf32>
    %141 = math.rsqrt %140 : vector<1x64xf32>
    %142 = arith.mulf %138, %141 : vector<1x64xf32>
    %c0_42 = arith.constant 0 : index
    %c0_43 = arith.constant 0 : index
    %143 = vector.load %arg6[%c0_42, %c0_43] : memref<1x64xf32, #tpu.memory_space<vmem>>, vector<1x64xf32>
    %144 = arith.mulf %102, %142 : vector<1x64xf32>
    %145 = arith.subf %143, %144 : vector<1x64xf32>
    %146 = tpu.concatenate %142, %142, %142, %142, %142, %142, %142, %142 in 1 : vector<1x64xf32>, vector<1x64xf32>, vector<1x64xf32>, vector<1x64xf32>, vector<1x64xf32>, vector<1x64xf32>, vector<1x64xf32>, vector<1x64xf32> -> vector<1x512xf32>
    %147 = tpu.concatenate %145, %145, %145, %145, %145, %145, %145, %145 in 1 : vector<1x64xf32>, vector<1x64xf32>, vector<1x64xf32>, vector<1x64xf32>, vector<1x64xf32>, vector<1x64xf32>, vector<1x64xf32>, vector<1x64xf32> -> vector<1x512xf32>
    %cst_44 = arith.constant 0.000000e+00 : f32
    %148 = vector.broadcast %cst_44 : f32 to vector<1x2x10x512xf32>
    %c0_45 = arith.constant 0 : index
    %c0_46 = arith.constant 0 : index
    %c0_47 = arith.constant 0 : index
    %c0_48 = arith.constant 0 : index
    %149 = vector.load %arg11[%c0_45, %c0_46, %c0_47, %c0_48] : memref<10x2x10x512xf32, #tpu.memory_space<vmem>>, vector<1x2x10x512xf32>
    tpu.vector_store %arg11[%c0_45, %c0_46, %c0_47, %c0_48], %148 {strides = array<i32>} : memref<10x2x10x512xf32, #tpu.memory_space<vmem>>, vector<1x2x10x512xf32>,
    %c9 = arith.constant 9 : index
    %c0_49 = arith.constant 0 : index
    %c0_50 = arith.constant 0 : index
    %c0_51 = arith.constant 0 : index
    %150 = vector.load %arg11[%c9, %c0_49, %c0_50, %c0_51] : memref<10x2x10x512xf32, #tpu.memory_space<vmem>>, vector<1x2x10x512xf32>
    tpu.vector_store %arg11[%c9, %c0_49, %c0_50, %c0_51], %148 {strides = array<i32>} : memref<10x2x10x512xf32, #tpu.memory_space<vmem>>, vector<1x2x10x512xf32>,
    %cst_52 = arith.constant 0.000000e+00 : f32
    %151 = vector.broadcast %cst_52 : f32 to vector<8x2x1x512xf32>
    %c1_53 = arith.constant 1 : index
    %c0_54 = arith.constant 0 : index
    %c0_55 = arith.constant 0 : index
    %c0_56 = arith.constant 0 : index
    %152 = vector.load %arg11[%c1_53, %c0_54, %c0_55, %c0_56] : memref<10x2x10x512xf32, #tpu.memory_space<vmem>>, vector<8x2x1x512xf32>
    tpu.vector_store %arg11[%c1_53, %c0_54, %c0_55, %c0_56], %151 {strides = array<i32>} : memref<10x2x10x512xf32, #tpu.memory_space<vmem>>, vector<8x2x1x512xf32>,
    %c1_57 = arith.constant 1 : index
    %c0_58 = arith.constant 0 : index
    %c9_59 = arith.constant 9 : index
    %c0_60 = arith.constant 0 : index
    %153 = vector.load %arg11[%c1_57, %c0_58, %c9_59, %c0_60] : memref<10x2x10x512xf32, #tpu.memory_space<vmem>>, vector<8x2x1x512xf32>
    tpu.vector_store %arg11[%c1_57, %c0_58, %c9_59, %c0_60], %151 {strides = array<i32>} : memref<10x2x10x512xf32, #tpu.memory_space<vmem>>, vector<8x2x1x512xf32>,
    %c0_61 = arith.constant 0 : index
    %c0_62 = arith.constant 0 : index
    %c0_63 = arith.constant 0 : index
    %154 = vector.load %arg10[%c0_61, %c0_62, %c0_63] : memref<2x64x512xf32, #tpu.memory_space<vmem>>, vector<1x64x512xf32>
    %155 = vector.shape_cast %154 : vector<1x64x512xf32> to vector<64x512xf32>
    %156 = vector.broadcast %146 : vector<1x512xf32> to vector<64x512xf32>
    %157 = arith.mulf %155, %156 : vector<64x512xf32>
    %158 = vector.broadcast %147 : vector<1x512xf32> to vector<64x512xf32>
    %159 = arith.addf %157, %158 : vector<64x512xf32>
    %cst_64 = arith.constant 0.000000e+00 : f32
    %160 = vector.broadcast %cst_64 : f32 to vector<64x512xf32>
    %161 = arith.maximumf %159, %160 : vector<64x512xf32>
    %162 = vector.shape_cast %161 : vector<64x512xf32> to vector<8x1x8x512xf32>
    %c1_65 = arith.constant 1 : index
    %c0_66 = arith.constant 0 : index
    %c1_67 = arith.constant 1 : index
    %c0_68 = arith.constant 0 : index
    %163 = vector.load %arg11[%c1_65, %c0_66, %c1_67, %c0_68] : memref<10x2x10x512xf32, #tpu.memory_space<vmem>>, vector<8x1x8x512xf32>
    tpu.vector_store %arg11[%c1_65, %c0_66, %c1_67, %c0_68], %162 {strides = array<i32>} : memref<10x2x10x512xf32, #tpu.memory_space<vmem>>, vector<8x1x8x512xf32>,
    %c1_69 = arith.constant 1 : index
    %c0_70 = arith.constant 0 : index
    %c0_71 = arith.constant 0 : index
    %164 = vector.load %arg10[%c1_69, %c0_70, %c0_71] : memref<2x64x512xf32, #tpu.memory_space<vmem>>, vector<1x64x512xf32>
    %165 = vector.shape_cast %164 : vector<1x64x512xf32> to vector<64x512xf32>
    %166 = vector.broadcast %146 : vector<1x512xf32> to vector<64x512xf32>
    %167 = arith.mulf %165, %166 : vector<64x512xf32>
    %168 = vector.broadcast %147 : vector<1x512xf32> to vector<64x512xf32>
    %169 = arith.addf %167, %168 : vector<64x512xf32>
    %cst_72 = arith.constant 0.000000e+00 : f32
    %170 = vector.broadcast %cst_72 : f32 to vector<64x512xf32>
    %171 = arith.maximumf %169, %170 : vector<64x512xf32>
    %172 = vector.shape_cast %171 : vector<64x512xf32> to vector<8x1x8x512xf32>
    %c1_73 = arith.constant 1 : index
    %c1_74 = arith.constant 1 : index
    %c1_75 = arith.constant 1 : index
    %c0_76 = arith.constant 0 : index
    %173 = vector.load %arg11[%c1_73, %c1_74, %c1_75, %c0_76] : memref<10x2x10x512xf32, #tpu.memory_space<vmem>>, vector<8x1x8x512xf32>
    tpu.vector_store %arg11[%c1_73, %c1_74, %c1_75, %c0_76], %172 {strides = array<i32>} : memref<10x2x10x512xf32, #tpu.memory_space<vmem>>, vector<8x1x8x512xf32>,
    %cst_77 = arith.constant 0.000000e+00 : f32
    %174 = vector.broadcast %cst_77 : f32 to vector<128x128xf32>
    %c0_78 = arith.constant 0 : index
    %c0_79 = arith.constant 0 : index
    %c0_80 = arith.constant 0 : index
    %c0_81 = arith.constant 0 : index
    %175 = vector.load %arg11[%c0_78, %c0_79, %c0_80, %c0_81] : memref<10x2x10x512xf32, #tpu.memory_space<vmem>>, vector<8x2x8x512xf32>
    %176 = vector.shape_cast %175 : vector<8x2x8x512xf32> to vector<128x512xf32>
    %177 = arith.truncf %176 : vector<128x512xf32> to vector<128x512xbf16>
    %c0_82 = arith.constant 0 : index
    %c0_83 = arith.constant 0 : index
    %c0_84 = arith.constant 0 : index
    %c0_85 = arith.constant 0 : index
    %178 = vector.load %arg7[%c0_82, %c0_83, %c0_84, %c0_85] : memref<3x3x512x128xbf16, #tpu.memory_space<vmem>>, vector<1x1x512x128xbf16>
    %179 = vector.shape_cast %178 : vector<1x1x512x128xbf16> to vector<512x128xbf16>
    %cst_86 = arith.constant dense<0.000000e+00> : vector<128x128xf32>
    %180 = tpu.matmul %177, %179, %cst_86 {dimension_numbers = #tpu.dot_dimension_numbers<[1], [0], [0], [1], [0, 0, 1, 1], [], []>} : vector<128x512xbf16>, vector<512x128xbf16>, vector<128x128xf32> -> vector<128x128xf32>
    %181 = arith.addf %174, %180 : vector<128x128xf32>
    %c0_87 = arith.constant 0 : index
    %c0_88 = arith.constant 0 : index
    %c1_89 = arith.constant 1 : index
    %c0_90 = arith.constant 0 : index
    %182 = vector.load %arg11[%c0_87, %c0_88, %c1_89, %c0_90] : memref<10x2x10x512xf32, #tpu.memory_space<vmem>>, vector<8x2x8x512xf32>
    %183 = vector.shape_cast %182 : vector<8x2x8x512xf32> to vector<128x512xf32>
    %184 = arith.truncf %183 : vector<128x512xf32> to vector<128x512xbf16>
    %c0_91 = arith.constant 0 : index
    %c1_92 = arith.constant 1 : index
    %c0_93 = arith.constant 0 : index
    %c0_94 = arith.constant 0 : index
    %185 = vector.load %arg7[%c0_91, %c1_92, %c0_93, %c0_94] : memref<3x3x512x128xbf16, #tpu.memory_space<vmem>>, vector<1x1x512x128xbf16>
    %186 = vector.shape_cast %185 : vector<1x1x512x128xbf16> to vector<512x128xbf16>
    %cst_95 = arith.constant dense<0.000000e+00> : vector<128x128xf32>
    %187 = tpu.matmul %184, %186, %cst_95 {dimension_numbers = #tpu.dot_dimension_numbers<[1], [0], [0], [1], [0, 0, 1, 1], [], []>} : vector<128x512xbf16>, vector<512x128xbf16>, vector<128x128xf32> -> vector<128x128xf32>
    %188 = arith.addf %181, %187 : vector<128x128xf32>
    %c0_96 = arith.constant 0 : index
    %c0_97 = arith.constant 0 : index
    %c2 = arith.constant 2 : index
    %c0_98 = arith.constant 0 : index
    %189 = vector.load %arg11[%c0_96, %c0_97, %c2, %c0_98] : memref<10x2x10x512xf32, #tpu.memory_space<vmem>>, vector<8x2x8x512xf32>
    %190 = vector.shape_cast %189 : vector<8x2x8x512xf32> to vector<128x512xf32>
    %191 = arith.truncf %190 : vector<128x512xf32> to vector<128x512xbf16>
    %c0_99 = arith.constant 0 : index
    %c2_100 = arith.constant 2 : index
    %c0_101 = arith.constant 0 : index
    %c0_102 = arith.constant 0 : index
    %192 = vector.load %arg7[%c0_99, %c2_100, %c0_101, %c0_102] : memref<3x3x512x128xbf16, #tpu.memory_space<vmem>>, vector<1x1x512x128xbf16>
    %193 = vector.shape_cast %192 : vector<1x1x512x128xbf16> to vector<512x128xbf16>
    %cst_103 = arith.constant dense<0.000000e+00> : vector<128x128xf32>
    %194 = tpu.matmul %191, %193, %cst_103 {dimension_numbers = #tpu.dot_dimension_numbers<[1], [0], [0], [1], [0, 0, 1, 1], [], []>} : vector<128x512xbf16>, vector<512x128xbf16>, vector<128x128xf32> -> vector<128x128xf32>
    %195 = arith.addf %188, %194 : vector<128x128xf32>
    %c1_104 = arith.constant 1 : index
    %c0_105 = arith.constant 0 : index
    %c0_106 = arith.constant 0 : index
    %c0_107 = arith.constant 0 : index
    %196 = vector.load %arg11[%c1_104, %c0_105, %c0_106, %c0_107] : memref<10x2x10x512xf32, #tpu.memory_space<vmem>>, vector<8x2x8x512xf32>
    %197 = vector.shape_cast %196 : vector<8x2x8x512xf32> to vector<128x512xf32>
    %198 = arith.truncf %197 : vector<128x512xf32> to vector<128x512xbf16>
    %c1_108 = arith.constant 1 : index
    %c0_109 = arith.constant 0 : index
    %c0_110 = arith.constant 0 : index
    %c0_111 = arith.constant 0 : index
    %199 = vector.load %arg7[%c1_108, %c0_109, %c0_110, %c0_111] : memref<3x3x512x128xbf16, #tpu.memory_space<vmem>>, vector<1x1x512x128xbf16>
    %200 = vector.shape_cast %199 : vector<1x1x512x128xbf16> to vector<512x128xbf16>
    %cst_112 = arith.constant dense<0.000000e+00> : vector<128x128xf32>
    %201 = tpu.matmul %198, %200, %cst_112 {dimension_numbers = #tpu.dot_dimension_numbers<[1], [0], [0], [1], [0, 0, 1, 1], [], []>} : vector<128x512xbf16>, vector<512x128xbf16>, vector<128x128xf32> -> vector<128x128xf32>
    %202 = arith.addf %195, %201 : vector<128x128xf32>
    %c1_113 = arith.constant 1 : index
    %c0_114 = arith.constant 0 : index
    %c1_115 = arith.constant 1 : index
    %c0_116 = arith.constant 0 : index
    %203 = vector.load %arg11[%c1_113, %c0_114, %c1_115, %c0_116] : memref<10x2x10x512xf32, #tpu.memory_space<vmem>>, vector<8x2x8x512xf32>
    %204 = vector.shape_cast %203 : vector<8x2x8x512xf32> to vector<128x512xf32>
    %205 = arith.truncf %204 : vector<128x512xf32> to vector<128x512xbf16>
    %c1_117 = arith.constant 1 : index
    %c1_118 = arith.constant 1 : index
    %c0_119 = arith.constant 0 : index
    %c0_120 = arith.constant 0 : index
    %206 = vector.load %arg7[%c1_117, %c1_118, %c0_119, %c0_120] : memref<3x3x512x128xbf16, #tpu.memory_space<vmem>>, vector<1x1x512x128xbf16>
    %207 = vector.shape_cast %206 : vector<1x1x512x128xbf16> to vector<512x128xbf16>
    %cst_121 = arith.constant dense<0.000000e+00> : vector<128x128xf32>
    %208 = tpu.matmul %205, %207, %cst_121 {dimension_numbers = #tpu.dot_dimension_numbers<[1], [0], [0], [1], [0, 0, 1, 1], [], []>} : vector<128x512xbf16>, vector<512x128xbf16>, vector<128x128xf32> -> vector<128x128xf32>
    %209 = arith.addf %202, %208 : vector<128x128xf32>
    %c1_122 = arith.constant 1 : index
    %c0_123 = arith.constant 0 : index
    %c2_124 = arith.constant 2 : index
    %c0_125 = arith.constant 0 : index
    %210 = vector.load %arg11[%c1_122, %c0_123, %c2_124, %c0_125] : memref<10x2x10x512xf32, #tpu.memory_space<vmem>>, vector<8x2x8x512xf32>
    %211 = vector.shape_cast %210 : vector<8x2x8x512xf32> to vector<128x512xf32>
    %212 = arith.truncf %211 : vector<128x512xf32> to vector<128x512xbf16>
    %c1_126 = arith.constant 1 : index
    %c2_127 = arith.constant 2 : index
    %c0_128 = arith.constant 0 : index
    %c0_129 = arith.constant 0 : index
    %213 = vector.load %arg7[%c1_126, %c2_127, %c0_128, %c0_129] : memref<3x3x512x128xbf16, #tpu.memory_space<vmem>>, vector<1x1x512x128xbf16>
    %214 = vector.shape_cast %213 : vector<1x1x512x128xbf16> to vector<512x128xbf16>
    %cst_130 = arith.constant dense<0.000000e+00> : vector<128x128xf32>
    %215 = tpu.matmul %212, %214, %cst_130 {dimension_numbers = #tpu.dot_dimension_numbers<[1], [0], [0], [1], [0, 0, 1, 1], [], []>} : vector<128x512xbf16>, vector<512x128xbf16>, vector<128x128xf32> -> vector<128x128xf32>
    %216 = arith.addf %209, %215 : vector<128x128xf32>
    %c2_131 = arith.constant 2 : index
    %c0_132 = arith.constant 0 : index
    %c0_133 = arith.constant 0 : index
    %c0_134 = arith.constant 0 : index
    %217 = vector.load %arg11[%c2_131, %c0_132, %c0_133, %c0_134] : memref<10x2x10x512xf32, #tpu.memory_space<vmem>>, vector<8x2x8x512xf32>
    %218 = vector.shape_cast %217 : vector<8x2x8x512xf32> to vector<128x512xf32>
    %219 = arith.truncf %218 : vector<128x512xf32> to vector<128x512xbf16>
    %c2_135 = arith.constant 2 : index
    %c0_136 = arith.constant 0 : index
    %c0_137 = arith.constant 0 : index
    %c0_138 = arith.constant 0 : index
    %220 = vector.load %arg7[%c2_135, %c0_136, %c0_137, %c0_138] : memref<3x3x512x128xbf16, #tpu.memory_space<vmem>>, vector<1x1x512x128xbf16>
    %221 = vector.shape_cast %220 : vector<1x1x512x128xbf16> to vector<512x128xbf16>
    %cst_139 = arith.constant dense<0.000000e+00> : vector<128x128xf32>
    %222 = tpu.matmul %219, %221, %cst_139 {dimension_numbers = #tpu.dot_dimension_numbers<[1], [0], [0], [1], [0, 0, 1, 1], [], []>} : vector<128x512xbf16>, vector<512x128xbf16>, vector<128x128xf32> -> vector<128x128xf32>
    %223 = arith.addf %216, %222 : vector<128x128xf32>
    %c2_140 = arith.constant 2 : index
    %c0_141 = arith.constant 0 : index
    %c1_142 = arith.constant 1 : index
    %c0_143 = arith.constant 0 : index
    %224 = vector.load %arg11[%c2_140, %c0_141, %c1_142, %c0_143] : memref<10x2x10x512xf32, #tpu.memory_space<vmem>>, vector<8x2x8x512xf32>
    %225 = vector.shape_cast %224 : vector<8x2x8x512xf32> to vector<128x512xf32>
    %226 = arith.truncf %225 : vector<128x512xf32> to vector<128x512xbf16>
    %c2_144 = arith.constant 2 : index
    %c1_145 = arith.constant 1 : index
    %c0_146 = arith.constant 0 : index
    %c0_147 = arith.constant 0 : index
    %227 = vector.load %arg7[%c2_144, %c1_145, %c0_146, %c0_147] : memref<3x3x512x128xbf16, #tpu.memory_space<vmem>>, vector<1x1x512x128xbf16>
    %228 = vector.shape_cast %227 : vector<1x1x512x128xbf16> to vector<512x128xbf16>
    %cst_148 = arith.constant dense<0.000000e+00> : vector<128x128xf32>
    %229 = tpu.matmul %226, %228, %cst_148 {dimension_numbers = #tpu.dot_dimension_numbers<[1], [0], [0], [1], [0, 0, 1, 1], [], []>} : vector<128x512xbf16>, vector<512x128xbf16>, vector<128x128xf32> -> vector<128x128xf32>
    %230 = arith.addf %223, %229 : vector<128x128xf32>
    %c2_149 = arith.constant 2 : index
    %c0_150 = arith.constant 0 : index
    %c2_151 = arith.constant 2 : index
    %c0_152 = arith.constant 0 : index
    %231 = vector.load %arg11[%c2_149, %c0_150, %c2_151, %c0_152] : memref<10x2x10x512xf32, #tpu.memory_space<vmem>>, vector<8x2x8x512xf32>
    %232 = vector.shape_cast %231 : vector<8x2x8x512xf32> to vector<128x512xf32>
    %233 = arith.truncf %232 : vector<128x512xf32> to vector<128x512xbf16>
    %c2_153 = arith.constant 2 : index
    %c2_154 = arith.constant 2 : index
    %c0_155 = arith.constant 0 : index
    %c0_156 = arith.constant 0 : index
    %234 = vector.load %arg7[%c2_153, %c2_154, %c0_155, %c0_156] : memref<3x3x512x128xbf16, #tpu.memory_space<vmem>>, vector<1x1x512x128xbf16>
    %235 = vector.shape_cast %234 : vector<1x1x512x128xbf16> to vector<512x128xbf16>
    %cst_157 = arith.constant dense<0.000000e+00> : vector<128x128xf32>
    %236 = tpu.matmul %233, %235, %cst_157 {dimension_numbers = #tpu.dot_dimension_numbers<[1], [0], [0], [1], [0, 0, 1, 1], [], []>} : vector<128x512xbf16>, vector<512x128xbf16>, vector<128x128xf32> -> vector<128x128xf32>
    %237 = arith.addf %230, %236 : vector<128x128xf32>
    %c0_158 = arith.constant 0 : index
    %c0_159 = arith.constant 0 : index
    %238 = vector.load %arg8[%c0_158, %c0_159] : memref<1x128xf32, #tpu.memory_space<vmem>>, vector<1x128xf32>
    %239 = vector.shape_cast %238 : vector<1x128xf32> to vector<1x128xf32>
    %240 = vector.broadcast %239 : vector<1x128xf32> to vector<128x128xf32>
    %241 = arith.addf %237, %240 : vector<128x128xf32>
    %c0_160 = arith.constant 0 : index
    %c0_161 = arith.constant 0 : index
    %242 = vector.load %arg9[%c0_160, %c0_161] : memref<128x128xf32, #tpu.memory_space<vmem>>, vector<128x128xf32>
    tpu.vector_store %arg9[%c0_160, %c0_161], %241 {strides = array<i32>} : memref<128x128xf32, #tpu.memory_space<vmem>>, vector<128x128xf32>,
    return
  }
  func.func @transform_0(%arg0: i32) -> (i32, i32) {
    %c0_i32 = arith.constant 0 : i32
    %c0_i32_0 = arith.constant 0 : i32
    %c0_i32_1 = arith.constant 0 : i32
    return %c0_i32, %c0_i32_0 : i32, i32
  }
  func.func @transform_1(%arg0: i32) -> (i32, i32) {
    %c0_i32 = arith.constant 0 : i32
    %c0_i32_0 = arith.constant 0 : i32
    %c0_i32_1 = arith.constant 0 : i32
    return %c0_i32, %c0_i32_0 : i32, i32
  }
  func.func @transform_2(%arg0: i32) -> (i32, i32) {
    %c0_i32 = arith.constant 0 : i32
    %c0_i32_0 = arith.constant 0 : i32
    %c0_i32_1 = arith.constant 0 : i32
    return %c0_i32, %c0_i32_0 : i32, i32
  }
  func.func @transform_3(%arg0: i32) -> (i32, i32) {
    %c0_i32 = arith.constant 0 : i32
    %c0_i32_0 = arith.constant 0 : i32
    %c0_i32_1 = arith.constant 0 : i32
    return %c0_i32, %c0_i32_0 : i32, i32
  }
  func.func @transform_4(%arg0: i32) -> (i32, i32) {
    %c0_i32 = arith.constant 0 : i32
    %c0_i32_0 = arith.constant 0 : i32
    %c0_i32_1 = arith.constant 0 : i32
    return %c0_i32, %c0_i32_0 : i32, i32
  }
  func.func @transform_5(%arg0: i32) -> (i32, i32) {
    %c0_i32 = arith.constant 0 : i32
    %c0_i32_0 = arith.constant 0 : i32
    %c0_i32_1 = arith.constant 0 : i32
    return %c0_i32, %c0_i32_0 : i32, i32
  }
  func.func @transform_6(%arg0: i32) -> (i32, i32, i32, i32) {
    %c0_i32 = arith.constant 0 : i32
    %c0_i32_0 = arith.constant 0 : i32
    %c0_i32_1 = arith.constant 0 : i32
    %c0_i32_2 = arith.constant 0 : i32
    %c0_i32_3 = arith.constant 0 : i32
    return %c0_i32, %c0_i32_0, %c0_i32_1, %c0_i32_2 : i32, i32, i32, i32
  }
  func.func @transform_7(%arg0: i32) -> (i32, i32) {
    %c0_i32 = arith.constant 0 : i32
    %c0_i32_0 = arith.constant 0 : i32
    %c0_i32_1 = arith.constant 0 : i32
    return %c0_i32, %c0_i32_0 : i32, i32
  }
  func.func @transform_8(%arg0: i32) -> (i32, i32) {
    %c0_i32 = arith.constant 0 : i32
    %c0_i32_0 = arith.constant 0 : i32
    %c0_i32_1 = arith.constant 0 : i32
    return %c0_i32, %c0_i32_0 : i32, i32
  }
}

</mosaic_0001>

<bundles_post_ra>
// kernel: dense_block_layer.1
= control target key start
LH: loop header
LB: loop body
LE: loop exit
PB: predicated region body
PF: predicated region fallthrough
CT: control target
= control target key end

     0   :  { %vm46_vm0 = vcmask 261120   ;;  %s12199_s15 = smov 124   ;;  %s12201_s16 = smov 120   ;;  %vm136_vm1 = vcmask 31744   ;;  %vm138_vm2 = vcmask 64512   ;;  %vm140_vm3 = vcmask 97280   ;;  %s19133_s0 = inlined_call_operand.vmem [shape: f32[128,32], index: 0, kind: input, shape index: {}]   ;;  %s19134_s1 = inlined_call_operand.vmem [shape: f32[1,4], index: 1, kind: input, shape index: {}]   ;;  %s19135_s2 = inlined_call_operand.vmem [shape: f32[1,4], index: 2, kind: input, shape index: {}]   ;;  %s19136_s3 = inlined_call_operand.vmem [shape: bf16[32,512], index: 3, kind: input, shape index: {}]   ;;  %s19137_s6 = inlined_call_operand.vmem [shape: bf16[3,3,512,128], index: 6, kind: input, shape index: {}]   ;;  %s19138_s4 = inlined_call_operand.vmem [shape: f32[1,64], index: 4, kind: input, shape index: {}]   ;;  %s19139_s5 = inlined_call_operand.vmem [shape: f32[1,64], index: 5, kind: input, shape index: {}]   ;;  %s19140_s7 = inlined_call_operand.vmem [shape: f32[1,128], index: 7, kind: input, shape index: {}]   ;;  %s19141_s8 = inlined_call_operand.vmem [shape: f32[128,128], index: 8, kind: output, shape index: {}]  }
   0x1   :  { %v12264_v0 = vld [vmem:[%s19133_s0] sm:$0xff]  ;;  %v12269_v1 = vld [vmem:[%s19133_s0 + $0x8] sm:$0xff]  ;;  %v12274_v2 = vld [vmem:[%s19133_s0 + $0x10] sm:$0xff]  ;;  %s12202_s17 = smov 112   ;;  %s12203_s18 = smov 108   ;;  %vm142_vm4 = vcmask 130048  }
   0x2   :  { %v12279_v3 = vld [vmem:[%s19133_s0 + $0x18] sm:$0xff]  ;;  %v47_v4 = vsel %vm46_vm0, %v12264_v0, 0.0  ;;  %v48_v5 = vsel %vm46_vm0, %v12269_v1, 0.0  ;;  %v50_v6 = vsel %vm46_vm0, %v12274_v2, 0.0  ;;  %v12290_v7 = vld [vmem:[%s19133_s0 + $0x20] sm:$0xff]  ;;  %v12297_v10 = vld [vmem:[%s19133_s0 + $0x28] sm:$0xff] }
   0x3   :  { %v49_v8 = vadd.f32 %v48_v5, %v47_v4  ;;  %v52_v9 = vsel %vm46_vm0, %v12279_v3, 0.0  ;;  %v54_v12 = vsel %vm46_vm0, %v12290_v7, 0.0  ;;  %v12304_v13 = vld [vmem:[%s19133_s0 + $0x30] sm:$0xff]  ;;  %v56_v15 = vsel %vm46_vm0, %v12297_v10, 0.0  ;;  %v12311_v16 = vld [vmem:[%s19133_s0 + $0x38] sm:$0xff]  ;;  %v12318_v19 = vld [vmem:[%s19133_s0 + $0x40] sm:$0xff] }
   0x4   :  { %v58_v18 = vsel %vm46_vm0, %v12304_v13, 0.0  ;;  %v60_v21 = vsel %vm46_vm0, %v12311_v16, 0.0  ;;  %v12325_v22 = vld [vmem:[%s19133_s0 + $0x48] sm:$0xff]  ;;  %v62_v24 = vsel %vm46_vm0, %v12318_v19, 0.0  ;;  %v12332_v25 = vld [vmem:[%s19133_s0 + $0x50] sm:$0xff]  ;;  %v12339_v28 = vld [vmem:[%s19133_s0 + $0x58] sm:$0xff] }
   0x5   :  { %v51_v11 = vadd.f32 %v50_v6, %v49_v8  ;;  %v64_v27 = vsel %vm46_vm0, %v12325_v22, 0.0  ;;  %v66_v30 = vsel %vm46_vm0, %v12332_v25, 0.0  ;;  %v12346_v31 = vld [vmem:[%s19133_s0 + $0x60] sm:$0xff]  ;;  %v68_v33 = vsel %vm46_vm0, %v12339_v28, 0.0  ;;  %v12353_v34 = vld [vmem:[%s19133_s0 + $0x68] sm:$0xff]  ;;  %v12360_v37 = vld [vmem:[%s19133_s0 + $0x70] sm:$0xff] }
   0x6   :  { %v70_v36 = vsel %vm46_vm0, %v12346_v31, 0.0  ;;  %v72_v39 = vsel %vm46_vm0, %v12353_v34, 0.0  ;;  %v12367_v40 = vld [vmem:[%s19133_s0 + $0x78] sm:$0xff]  ;;  %v74_v42 = vsel %vm46_vm0, %v12360_v37, 0.0  ;;  %s12200_s0 = smov 116   ;;  %s12204_s19 = smov 104  }
   0x7   :  { %v53_v14 = vadd.f32 %v52_v9, %v51_v11  ;;  %v76_v44 = vsel %vm46_vm0, %v12367_v40, 0.0  ;;  %s12205_s20 = smov 100   ;;  %s12206_s21 = smov 8   ;;  %vm144_vm5 = vcmask 162816   ;;  %vm146_vm6 = vcmask 195584  }
   0x8   :  { %s12207_s22 = smov 4   ;;  %s12208_s23 = smov 16   ;;  %vm148_vm7 = vcmask 228352   ;;  %vm1015_vm8 = vcmask 523264   ;;  %vm2508_vm10 = vcmask 1046528   ;;  %vm3890_vm11 = vcmask 1045504  }
   0x9   :  { %v55_v17 = vadd.f32 %v54_v12, %v53_v14  ;;  %s12209_s24 = smov 12   ;;  %s12210_s25 = smov 24   ;;  %v19142_v14 = vlaneseq }
   0xa   :  { %s12211_s26 = smov 20   ;;  %s12212_s27 = smov 28  }
   0xb   :  { %v57_v20 = vadd.f32 %v56_v15, %v55_v17 }
   0xd   :  { %v59_v23 = vadd.f32 %v58_v18, %v57_v20 }
   0xf   :  { %v61_v26 = vadd.f32 %v60_v21, %v59_v23  ;;  %v151_v21 = vshrl.u32 %v19142_v14, 7 }
  0x11   :  { %v63_v29 = vadd.f32 %v62_v24, %v61_v26 }
  0x13   :  { %v65_v32 = vadd.f32 %v64_v27, %v63_v29  ;;  %v12403_v29 = vsub.s32 0, %v151_v21 }
  0x15   :  { %v67_v35 = vadd.f32 %v66_v30, %v65_v32  ;;  %19322 = vst [vmem:[#allocation4_spill] sm:$0xff] %v12403_v29 }
  0x17   :  { %v69_v38 = vadd.f32 %v68_v33, %v67_v35 }
  0x19   :  { %v71_v41 = vadd.f32 %v70_v36, %v69_v38 }
  0x1b   :  { %v73_v43 = vadd.f32 %v72_v39, %v71_v41 }
  0x1d   :  { %v75_v45 = vadd.f32 %v74_v42, %v73_v43 }
  0x1f   :  { %v77_v46 = vadd.f32 %v76_v44, %v75_v45 }
  0x21   :  { %v78_v47 = vrot.slane %v77_v46, 4 }
  0x23   :  { %v79_v48 = vadd.f32 %v78_v47, %v77_v46 }
  0x25   :  { %v80_v49 = vrot.slane %v79_v48, 2 }
  0x27   :  { %v81_v50 = vadd.f32 %v80_v49, %v79_v48 }
  0x29   :  { %v82_v51 = vrot.slane %v81_v50, 1 }
  0x2b   :  { %v83_v52 = vadd.f32 %v82_v51, %v81_v50 }
  0x2d   :  { %85 = vrot.lane.b32.xlu0 %v83_v52, %s12199_s15  ;;  %93 = vrot.lane.b32.xlu1 %v83_v52, %s12200_s0 }
  0x31   :  { %89 = vrot.lane.b32.xlu0 %v83_v52, %s12201_s16  ;;  %97 = vrot.lane.b32.xlu1 %v83_v52, %s12202_s17 }
  0x35   :  { %101 = vrot.lane.b32.xlu0 %v83_v52, %s12203_s18  ;;  %105 = vrot.lane.b32.xlu1 %v83_v52, %s12204_s19 }
  0x39   :  { %109 = vrot.lane.b32.xlu0 %v83_v52, %s12205_s20 }
  0x9f   :  { %v86_v53 = vpop.permute.xlu0 %85  ;;  %v94_v54 = vpop.permute.xlu1 %93 }
  0xa0   :  { %v88_v55 = vadd.f32 %v86_v53, %v83_v52 }
  0xa3   :  { %v90_v56 = vpop.permute.xlu0 %89  ;;  %v98_v57 = vpop.permute.xlu1 %97 }
  0xa4   :  { %v92_v58 = vadd.f32 %v90_v56, %v88_v55 }
  0xa6   :  { %v96_v59 = vadd.f32 %v94_v54, %v92_v58 }
  0xa7   :  { %v102_v60 = vpop.permute.xlu0 %101  ;;  %v106_v62 = vpop.permute.xlu1 %105 }
  0xa8   :  { %v100_v61 = vadd.f32 %v98_v57, %v96_v59 }
  0xaa   :  { %v104_v63 = vadd.f32 %v102_v60, %v100_v61 }
  0xab   :  { %v110_v4 = vpop.permute.xlu0 %109 }
  0xac   :  { %v108_v5 = vadd.f32 %v106_v62, %v104_v63 }
  0xae   :  { %v112_v6 = vadd.f32 %v110_v4, %v108_v5 }
  0xb0   :  { %v12380_v8 = vmul.f32 0.0009765625, %v112_v6 }
  0xb2   :  { %118 = vrot.lane.b32.xlu0 %v12380_v8, %s12206_s21  ;;  %115 = vrot.lane.b32.xlu1 %v12380_v8, %s12207_s22 }
  0xb6   :  { %124 = vrot.lane.b32.xlu0 %v12380_v8, %s12208_s23  ;;  %121 = vrot.lane.b32.xlu1 %v12380_v8, %s12209_s24 }
  0xba   :  { %130 = vrot.lane.b32.xlu0 %v12380_v8, %s12210_s25  ;;  %127 = vrot.lane.b32.xlu1 %v12380_v8, %s12211_s26 }
  0xbe   :  { %133 = vrot.lane.b32.xlu1 %v12380_v8, %s12212_s27 }
 0x124   :  { %v119_v9 = vpop.permute.xlu0 %118  ;;  %v116_v11 = vpop.permute.xlu1 %115 }
 0x125   :  { %v137_v12 = vsel %vm136_vm1, %v12380_v8, %v116_v11 }
 0x126   :  { %v139_v17 = vsel %vm138_vm2, %v137_v12, %v119_v9 }
 0x128   :  { %v125_v15 = vpop.permute.xlu0 %124  ;;  %v122_v18 = vpop.permute.xlu1 %121 }
 0x129   :  { %v141_v20 = vsel %vm140_vm3, %v139_v17, %v122_v18 }
 0x12a   :  { %v143_v23 = vsel %vm142_vm4, %v141_v20, %v125_v15 }
 0x12c   :  { %v128_v24 = vpop.permute.xlu1 %127  ;;  %v131_v26 = vpop.permute.xlu0 %130 }
 0x12d   :  { %v145_v27 = vsel %vm144_vm5, %v143_v23, %v128_v24 }
 0x12e   :  { %v147_v30 = vsel %vm146_vm6, %v145_v27, %v131_v26 }
 0x130   :  { %v134_v32 = vpop.permute.xlu1 %133 }
 0x131   :  { %v149_v33 = vsel %vm148_vm7, %v147_v30, %v134_v32 }
 0x132   :  { %v153_v35 = vrot.slane %v149_v33, %v12403_v29 }
 0x134   :  { %v154_v36 = vsub.f32 %v12264_v0, %v153_v35  ;;  %v155_v38 = vsub.f32 %v12269_v1, %v153_v35  ;;  %v156_v39 = vsub.f32 %v12274_v2, %v153_v35  ;;  %v157_v41 = vsub.f32 %v12279_v3, %v153_v35 }
 0x135   :  { %v158_v44 = vsub.f32 %v12290_v7, %v153_v35  ;;  %v159_v46 = vsub.f32 %v12297_v10, %v153_v35  ;;  %v160_v51 = vsub.f32 %v12304_v13, %v153_v35  ;;  %v161_v55 = vsub.f32 %v12311_v16, %v153_v35 }
 0x136   :  { %v170_v42 = vmul.f32 %v154_v36, %v154_v36  ;;  %v171_v43 = vmul.f32 %v155_v38, %v155_v38  ;;  %v172_v45 = vmul.f32 %v156_v39, %v156_v39  ;;  %v173_v47 = vmul.f32 %v157_v41, %v157_v41 }
 0x137   :  { %v174_v52 = vmul.f32 %v158_v44, %v158_v44  ;;  %v175_v56 = vmul.f32 %v159_v46, %v159_v46  ;;  %v162_v59 = vsub.f32 %v12318_v19, %v153_v35  ;;  %v176_v60 = vmul.f32 %v160_v51, %v160_v51 }
 0x138   :  { %v186_v48 = vsel %vm46_vm0, %v170_v42, 0.0  ;;  %v187_v49 = vsel %vm46_vm0, %v171_v43, 0.0  ;;  %v189_v53 = vsel %vm46_vm0, %v172_v45, 0.0  ;;  %v191_v57 = vsel %vm46_vm0, %v173_v47, 0.0 }
 0x139   :  { %v188_v50 = vadd.f32 %v187_v49, %v186_v48  ;;  %v193_v61 = vsel %vm46_vm0, %v174_v52, 0.0  ;;  %v163_v63 = vsub.f32 %v12325_v22, %v153_v35  ;;  %v177_v4 = vmul.f32 %v161_v55, %v161_v55 }
 0x13a   :  { %v195_v5 = vsel %vm46_vm0, %v175_v56, 0.0  ;;  %v164_v9 = vsub.f32 %v12332_v25, %v153_v35  ;;  %v178_v11 = vmul.f32 %v162_v59, %v162_v59  ;;  %v197_v12 = vsel %vm46_vm0, %v176_v60, 0.0 }
 0x13b   :  { %v190_v54 = vadd.f32 %v189_v53, %v188_v50  ;;  %v165_v17 = vsub.f32 %v12339_v28, %v153_v35  ;;  %v179_v18 = vmul.f32 %v163_v63, %v163_v63  ;;  %v199_v20 = vsel %vm46_vm0, %v177_v4, 0.0 }
 0x13c   :  { %v166_v23 = vsub.f32 %v12346_v31, %v153_v35  ;;  %v180_v24 = vmul.f32 %v164_v9, %v164_v9  ;;  %v201_v26 = vsel %vm46_vm0, %v178_v11, 0.0  ;;  %v167_v30 = vsub.f32 %v12353_v34, %v153_v35 }
 0x13d   :  { %v192_v58 = vadd.f32 %v191_v57, %v190_v54  ;;  %v181_v32 = vmul.f32 %v165_v17, %v165_v17  ;;  %v203_v33 = vsel %vm46_vm0, %v179_v18, 0.0  ;;  %v168_v38 = vsub.f32 %v12360_v37, %v153_v35 }
 0x13e   :  { %v182_v39 = vmul.f32 %v166_v23, %v166_v23  ;;  %v205_v41 = vsel %vm46_vm0, %v180_v24, 0.0  ;;  %v169_v43 = vsub.f32 %v12367_v40, %v153_v35  ;;  %v183_v44 = vmul.f32 %v167_v30, %v167_v30 }
 0x13f   :  { %v194_v62 = vadd.f32 %v193_v61, %v192_v58  ;;  %v207_v45 = vsel %vm46_vm0, %v181_v32, 0.0  ;;  %v184_v47 = vmul.f32 %v168_v38, %v168_v38 }
 0x140   :  { %v209_v48 = vsel %vm46_vm0, %v182_v39, 0.0  ;;  %v185_v50 = vmul.f32 %v169_v43, %v169_v43  ;;  %v211_v51 = vsel %vm46_vm0, %v183_v44, 0.0  ;;  %v12472_v43 = vld [vmem:[%s19136_s3] ss:$16 sps:$4 sm:$0xff]   ;;  %v11896_v44 = vld [vmem:[%s19136_s3 + $0xc] ss:$16 sps:$4 sm:$0xff]  }
 0x141   :  { %v196_v6 = vadd.f32 %v195_v5, %v194_v62  ;;  %v213_v53 = vsel %vm46_vm0, %v184_v47, 0.0  ;;  %495 = vmatprep.subr.bf16.mxu1 %v11896_v44  ;;  %v12493_v47 = vld [vmem:[%s19136_s3 + $0x20] ss:$16 sps:$4 sm:$0xff]  }
 0x142   :  { %v215_v55 = vsel %vm46_vm0, %v185_v50, 0.0 }
 0x143   :  { %v198_v15 = vadd.f32 %v197_v12, %v196_v6 }
 0x145   :  { %v200_v21 = vadd.f32 %v199_v20, %v198_v15 }
 0x147   :  { %v202_v27 = vadd.f32 %v201_v26, %v200_v21 }
 0x149   :  { %v204_v36 = vadd.f32 %v203_v33, %v202_v27  ;;  %v253_v27 = vld [vmem:[%s19134_s1] sm:$0x1] }
 0x14a   :  { %v257_v33 = vld [vmem:[%s19135_s2] sm:$0x1] }
 0x14b   :  { %v206_v42 = vadd.f32 %v205_v41, %v204_v36 }
 0x14d   :  { %v208_v46 = vadd.f32 %v207_v45, %v206_v42  ;;  %v12213_v42 = vmov 0   ;;  %v12482_v45 = vld [vmem:[%s19136_s3 + $0x8] ss:$16 sps:$4 sm:$0xff]  }
 0x14e   :  { %454 = vmatprep.mubr.bf16.mxu0 %v12213_v42  ;;  %527 = vmatprep.mubr.bf16.mxu1 %v12213_v42 }
 0x14f   :  { %v210_v49 = vadd.f32 %v209_v48, %v208_v46  ;;  %v12487_v46 = vld [vmem:[%s19136_s3 + $0x24] ss:$16 sps:$4 sm:$0xff]   ;;  %496 = vmatpush1.bf16.msra.mxu1 %v12482_v45  ;;  %v11902_v48 = vld [vmem:[%s19136_s3 + $0x2c] ss:$16 sps:$4 sm:$0xff]  }
 0x150   :  { %497 = vmatprep.subr.bf16.mxu1 %v11902_v48 }
 0x151   :  { %v212_v52 = vadd.f32 %v211_v51, %v210_v49  ;;  %v12503_v49 = vld [vmem:[%s19136_s3 + $0x28] ss:$16 sps:$4 sm:$0xff]  }
 0x153   :  { %v214_v54 = vadd.f32 %v213_v53, %v212_v52  ;;  %498 = vmatpush1.bf16.msra.mxu1 %v12503_v49 }
 0x154   :  { %825 = vmatprep.subr.bf16.mxu1 %v11896_v44 }
 0x155   :  { %v216_v56 = vadd.f32 %v215_v55, %v214_v54 }
 0x157   :  { %v217_v57 = vrot.slane %v216_v56, 4 }
 0x159   :  { %v218_v35 = vadd.f32 %v217_v57, %v216_v56 }
 0x15b   :  { %v219_v58 = vrot.slane %v218_v35, 2 }
 0x15d   :  { %v220_v59 = vadd.f32 %v219_v58, %v218_v35 }
 0x15f   :  { %v221_v60 = vrot.slane %v220_v59, 1 }
 0x161   :  { %v222_v61 = vadd.f32 %v221_v60, %v220_v59 }
 0x163   :  { %228 = vrot.lane.b32.xlu1 %v222_v61, %s12201_s16  ;;  %224 = vrot.lane.b32.xlu0 %v222_v61, %s12199_s15 }
 0x167   :  { %236 = vrot.lane.b32.xlu1 %v222_v61, %s12202_s17  ;;  %232 = vrot.lane.b32.xlu0 %v222_v61, %s12200_s0 }
 0x16b   :  { %244 = vrot.lane.b32.xlu1 %v222_v61, %s12204_s19  ;;  %240 = vrot.lane.b32.xlu0 %v222_v61, %s12203_s18 }
 0x16f   :  { %248 = vrot.lane.b32.xlu0 %v222_v61, %s12205_s20 }
 0x1d5   :  { %v229_v62 = vpop.permute.xlu1 %228  ;;  %v225_v63 = vpop.permute.xlu0 %224 }
 0x1d6   :  { %v227_v4 = vadd.f32 %v225_v63, %v222_v61 }
 0x1d8   :  { %v231_v5 = vadd.f32 %v229_v62, %v227_v4 }
 0x1d9   :  { %v237_v6 = vpop.permute.xlu1 %236  ;;  %v233_v9 = vpop.permute.xlu0 %232 }
 0x1da   :  { %v235_v11 = vadd.f32 %v233_v9, %v231_v5 }
 0x1dc   :  { %v239_v12 = vadd.f32 %v237_v6, %v235_v11 }
 0x1dd   :  { %v241_v15 = vpop.permute.xlu0 %240  ;;  %v245_v18 = vpop.permute.xlu1 %244 }
 0x1de   :  { %v243_v17 = vadd.f32 %v241_v15, %v239_v12 }
 0x1e0   :  { %v247_v20 = vadd.f32 %v245_v18, %v243_v17 }
 0x1e1   :  { %v249_v21 = vpop.permute.xlu0 %248 }
 0x1e2   :  { %v251_v23 = vadd.f32 %v249_v21, %v247_v20 }
 0x1e4   :  { %v252_v24 = vmul.f32 0.0009765625, %v251_v23 }
 0x1e6   :  { %v254_v26 = vadd.f32 1e-05, %v252_v24 }
 0x1e8   :  { %12193 = vrsqrt.f32 %v254_v26 }
 0x1f2   :  { %v12194_v30 = vpop.eup %12193 }
 0x1f3   :  { %v256_v32 = vmul.f32 %v12194_v30, %v253_v27 }
 0x1f5   :  { %v258_v36 = vmul.f32 %v256_v32, %v12380_v8  ;;  %v264_v38 = vrot.slane %v256_v32, %v12403_v29  ;;  %v11893_v8 = vld [vmem:[%s19136_s3 + $0x4] ss:$16 sps:$4 sm:$0xff]   ;;  %s12214_s3 = smov 64  }
 0x1f6   :  { %422 = vmatprep.subr.bf16.mxu0 %v11893_v8 }
 0x1f7   :  { %v259_v39 = vsub.f32 %v257_v33, %v258_v36  ;;  %268 = vrot.lane.b32.xlu0 %v264_v38, %s12206_s21  ;;  %265 = vrot.lane.b32.xlu1 %v264_v38, %s12207_s22 }
 0x1f8   :  { %423 = vmatpush1.bf16.msra.mxu0 %v12472_v43 }
 0x1f9   :  { %v297_v41 = vrot.slane %v259_v39, %v12403_v29  ;;  %424 = vmatprep.subr.bf16.mxu0 %v12487_v46 }
 0x1fb   :  { %271 = vrot.lane.b32.xlu1 %v264_v38, %s12209_s24  ;;  %298 = vrot.lane.b32.xlu0 %v297_v41, %s12207_s22 }
 0x1fc   :  { %425 = vmatpush1.bf16.msra.mxu0 %v12493_v47 }
 0x1fd   :  { %752 = vmatprep.subr.bf16.mxu0 %v11893_v8 }
 0x1ff   :  { %274 = vrot.lane.b32.xlu1 %v264_v38, %s12208_s23  ;;  %301 = vrot.lane.b32.xlu0 %v297_v41, %s12206_s21 }
 0x203   :  { %277 = vrot.lane.b32.xlu1 %v264_v38, %s12211_s26  ;;  %304 = vrot.lane.b32.xlu0 %v297_v41, %s12209_s24 }
 0x207   :  { %280 = vrot.lane.b32.xlu1 %v264_v38, %s12210_s25  ;;  %307 = vrot.lane.b32.xlu0 %v297_v41, %s12208_s23 }
 0x20b   :  { %283 = vrot.lane.b32.xlu1 %v264_v38, %s12212_s27  ;;  %310 = vrot.lane.b32.xlu0 %v297_v41, %s12211_s26 }
 0x20f   :  { %313 = vrot.lane.b32.xlu1 %v297_v41, %s12210_s25  ;;  %316 = vrot.lane.b32.xlu0 %v297_v41, %s12212_s27 }
 0x269   :  { %v269_v50 = vpop.permute.xlu0 %268  ;;  %v266_v51 = vpop.permute.xlu1 %265 }
 0x26a   :  { %v286_v35 = vsel %vm136_vm1, %v256_v32, %v266_v51 }
 0x26b   :  { %v287_v58 = vsel %vm138_vm2, %v286_v35, %v269_v50 }
 0x26d   :  { %v272_v52 = vpop.permute.xlu1 %271  ;;  %v299_v53 = vpop.permute.xlu0 %298 }
 0x26e   :  { %v288_v61 = vsel %vm140_vm3, %v287_v58, %v272_v52  ;;  %v319_v4 = vsel %vm136_vm1, %v259_v39, %v299_v53 }
 0x271   :  { %v275_v54 = vpop.permute.xlu1 %274  ;;  %v302_v55 = vpop.permute.xlu0 %301 }
 0x272   :  { %v289_v62 = vsel %vm142_vm4, %v288_v61, %v275_v54  ;;  %v320_v11 = vsel %vm138_vm2, %v319_v4, %v302_v55 }
 0x275   :  { %v278_v56 = vpop.permute.xlu1 %277  ;;  %v305_v57 = vpop.permute.xlu0 %304 }
 0x276   :  { %v290_v63 = vsel %vm144_vm5, %v289_v62, %v278_v56  ;;  %v321_v15 = vsel %vm140_vm3, %v320_v11, %v305_v57 }
 0x279   :  { %v281_v59 = vpop.permute.xlu1 %280  ;;  %v308_v60 = vpop.permute.xlu0 %307 }
 0x27a   :  { %v291_v5 = vsel %vm146_vm6, %v290_v63, %v281_v59  ;;  %v322_v17 = vsel %vm142_vm4, %v321_v15, %v308_v60 }
 0x27d   :  { %v284_v6 = vpop.permute.xlu1 %283  ;;  %v311_v9 = vpop.permute.xlu0 %310 }
 0x27e   :  { %v292_v12 = vsel %vm148_vm7, %v291_v5, %v284_v6  ;;  %v323_v20 = vsel %vm144_vm5, %v322_v17, %v311_v9 }
 0x27f   :  { %v12523_v18 = vrot.slane %v292_v12, %v12403_v29 }
 0x281   :  { %v314_v21 = vpop.permute.xlu1 %313  ;;  %v317_v23 = vpop.permute.xlu0 %316  ;;  %v330_v30 = vmul.f32 %v12523_v18, %v12264_v0  ;;  %v331_v32 = vmul.f32 %v12523_v18, %v12269_v1  ;;  %v332_v41 = vmul.f32 %v12523_v18, %v12274_v2  ;;  %v333_v8 = vmul.f32 %v12523_v18, %v12279_v3 }
 0x282   :  { %v324_v24 = vsel %vm146_vm6, %v323_v20, %v314_v21  ;;  %v334_v3 = vmul.f32 %v12523_v18, %v12290_v7  ;;  %v335_v51 = vmul.f32 %v12523_v18, %v12297_v10  ;;  %v336_v10 = vmul.f32 %v12523_v18, %v12304_v13 }
 0x283   :  { %v325_v26 = vsel %vm148_vm7, %v324_v24, %v317_v23  ;;  %v664_v13 = vmul.f32 %v12523_v18, %v12318_v19  ;;  %v666_v19 = vmul.f32 %v12523_v18, %v12332_v25  ;;  %v668_v25 = vmul.f32 %v12523_v18, %v12346_v31 }
 0x284   :  { %v12529_v27 = vrot.slane %v325_v26, %v12403_v29  ;;  %v670_v31 = vmul.f32 %v12523_v18, %v12360_v37 }
 0x286   :  { %v342_v33 = vadd.f32 %v12529_v27, %v330_v30  ;;  %v343_v36 = vadd.f32 %v12529_v27, %v331_v32  ;;  %v344_v50 = vadd.f32 %v12529_v27, %v332_v41  ;;  %v345_v0 = vadd.f32 %v12529_v27, %v333_v8 }
 0x287   :  { %v346_v52 = vadd.f32 %v12529_v27, %v334_v3  ;;  %v347_v53 = vadd.f32 %v12529_v27, %v335_v51  ;;  %v672_v57 = vadd.f32 %v664_v13, %v12529_v27  ;;  %v674_v61 = vadd.f32 %v666_v19, %v12529_v27 }
 0x288   :  { %v350_v38 = vmax.f32 %v342_v33, 0.0  ;;  %v351_v39 = vmax.f32 %v343_v36, 0.0  ;;  %v352_v1 = vmax.f32 %v344_v50, 0.0  ;;  %v353_v2 = vmax.f32 %v345_v0, 0.0 }
 0x289   :  { %v354_v7 = vmax.f32 %v346_v52, 0.0  ;;  %v680_v58 = vmax.f32 %v672_v57, 0.0  ;;  %v682_v63 = vmax.f32 %v674_v61, 0.0  ;;  %v676_v6 = vadd.f32 %v668_v25, %v12529_v27 }
 0x28a   :  { %v358_v44 = vpack.c.bf16 %v351_v39, %v350_v38  ;;  %v678_v17 = vadd.f32 %v670_v31, %v12529_v27 }
 0x28b   :  { %v684_v11 = vmax.f32 %v676_v6, 0.0 }
 0x28c   :  { %9899 = vmatmul.mubr.msk.bf16.vlgmr.msra.gmra.mrb[0].mxu0 %vm46_vm0, %v358_v44  ;;  %9903 = vmatmul.mubr.msk.bf16.vlgmr.msra.gmra.mrb[0].mxu1 %vm46_vm0, %v358_v44  ;;  %v686_v21 = vmax.f32 %v678_v17, 0.0 }
 0x28d   :  { %753 = vmatpush1.bf16.msra.mxu0 %v12472_v43  ;;  %464 = vmatprep.mubr.bf16.mxu0 %v12213_v42  ;;  %v359_v43 = vpack.c.bf16 %v353_v2, %v352_v1 }
 0x28e   :  { %537 = vmatprep.mubr.bf16.mxu1 %v12213_v42  ;;  %826 = vmatpush1.bf16.msra.mxu1 %v12482_v45  ;;  %v355_v45 = vmax.f32 %v347_v53, 0.0 }
 0x28f   :  { %754 = vmatprep.subr.bf16.mxu0 %v12487_v46  ;;  %827 = vmatprep.subr.bf16.mxu1 %v11902_v48  ;;  %v337_v46 = vmul.f32 %v12523_v18, %v12311_v16  ;;  %v348_v48 = vadd.f32 %v12529_v27, %v336_v10  ;;  %v665_v16 = vmul.f32 %v12523_v18, %v12325_v22 }
 0x290   :  { %v667_v22 = vmul.f32 %v12523_v18, %v12339_v28  ;;  %v669_v28 = vmul.f32 %v12523_v18, %v12353_v34  ;;  %v671_v34 = vmul.f32 %v12523_v18, %v12367_v40 }
 0x291   :  { %755 = vmatpush1.bf16.msra.mxu0 %v12493_v47  ;;  %v360_v47 = vpack.c.bf16 %v355_v45, %v354_v7  ;;  %v356_v54 = vmax.f32 %v348_v48, 0.0  ;;  %v673_v35 = vadd.f32 %v665_v16, %v12529_v27 }
 0x292   :  { %828 = vmatpush1.bf16.msra.mxu1 %v12503_v49  ;;  %v349_v49 = vadd.f32 %v12529_v27, %v337_v46  ;;  %v675_v62 = vadd.f32 %v667_v22, %v12529_v27  ;;  %v677_v9 = vadd.f32 %v669_v28, %v12529_v27  ;;  %v679_v20 = vadd.f32 %v671_v34, %v12529_v27 }
 0x293   :  { %v681_v59 = vmax.f32 %v673_v35, 0.0 }
 0x294   :  { %9900 = vmatmul.mubr.msk.bf16.gmra.mrb[4].mxu0 %vm46_vm0, %v359_v43  ;;  %9904 = vmatmul.mubr.msk.bf16.gmra.mrb[4].mxu1 %vm46_vm0, %v359_v43  ;;  %v357_v55 = vmax.f32 %v349_v49, 0.0  ;;  %v683_v4 = vmax.f32 %v675_v62, 0.0  ;;  %v685_v12 = vmax.f32 %v677_v9, 0.0  ;;  %v687_v23 = vmax.f32 %v679_v20, 0.0 }
 0x295   :  { %474 = vmatprep.mubr.bf16.mxu0 %v12213_v42  ;;  %547 = vmatprep.mubr.bf16.mxu1 %v12213_v42  ;;  %v688_v60 = vpack.c.bf16 %v681_v59, %v680_v58 }
 0x296   :  { %v361_v56 = vpack.c.bf16 %v357_v55, %v356_v54  ;;  %v689_v5 = vpack.c.bf16 %v683_v4, %v682_v63  ;;  %v690_v15 = vpack.c.bf16 %v685_v12, %v684_v11  ;;  %v691_v24 = vpack.c.bf16 %v687_v23, %v686_v21 }
 0x29c   :  { %9901 = vmatmul.mubr.msk.bf16.gmra.mrb[8].mxu0 %vm46_vm0, %v360_v47  ;;  %9905 = vmatmul.mubr.msk.bf16.gmra.mrb[8].mxu1 %vm46_vm0, %v360_v47 }
 0x29d   :  { %484 = vmatprep.mubr.bf16.mxu0 %v12213_v42  ;;  %557 = vmatprep.mubr.bf16.mxu1 %v12213_v42 }
 0x2a4   :  { %9902 = vmatmul.mubr.msk.bf16.gmra.mrb[12].mxu0 %vm46_vm0, %v361_v56  ;;  %9906 = vmatmul.mubr.msk.bf16.gmra.mrb[12].mxu1 %vm46_vm0, %v361_v56 }
 0x2a5   :  { %784 = vmatprep.mubr.bf16.mxu0 %v12213_v42  ;;  %857 = vmatprep.mubr.bf16.mxu1 %v12213_v42 }
 0x2ac   :  { %9915 = vmatmul.mubr.msk.bf16.vlgmr.msra.gmra.mrb[16].mxu0 %vm46_vm0, %v688_v60  ;;  %9919 = vmatmul.mubr.msk.bf16.vlgmr.msra.gmra.mrb[16].mxu1 %vm46_vm0, %v688_v60 }
 0x2ad   :  { %794 = vmatprep.mubr.bf16.mxu0 %v12213_v42  ;;  %867 = vmatprep.mubr.bf16.mxu1 %v12213_v42 }
 0x2b4   :  { %9916 = vmatmul.mubr.msk.bf16.gmra.mrb[20].mxu0 %vm46_vm0, %v689_v5  ;;  %9920 = vmatmul.mubr.msk.bf16.gmra.mrb[20].mxu1 %vm46_vm0, %v689_v5 }
 0x2b5   :  { %804 = vmatprep.mubr.bf16.mxu0 %v12213_v42  ;;  %877 = vmatprep.mubr.bf16.mxu1 %v12213_v42 }
 0x2bc   :  { %9917 = vmatmul.mubr.msk.bf16.gmra.mrb[24].mxu0 %vm46_vm0, %v690_v15  ;;  %9921 = vmatmul.mubr.msk.bf16.gmra.mrb[24].mxu1 %vm46_vm0, %v690_v15 }
 0x2bd   :  { %814 = vmatprep.mubr.bf16.mxu0 %v12213_v42  ;;  %887 = vmatprep.mubr.bf16.mxu1 %v12213_v42 }
 0x2c4   :  { %9918 = vmatmul.mubr.msk.bf16.gmra.mrb[28].mxu0 %vm46_vm0, %v691_v24  ;;  %9922 = vmatmul.mubr.msk.bf16.gmra.mrb[28].mxu1 %vm46_vm0, %v691_v24 }
 0x35f   :  { %v12614_v37 = vpop.f32.mrb[0].mxu0  ;;  %v12616_v40 = vpop.f32.mrb[0].mxu1 }
 0x360   :  { %19323 = vst [vmem:[#allocation5_spill] sm:$0xff] %v12614_v37  ;;  %19324 = vst [vmem:[#allocation6_spill] sm:$0xff] %v12616_v40  ;;  %v12618_v18 = vpop.f32.mrb[1].mxu0  ;;  %v12620_v26 = vpop.f32.mrb[1].mxu1 }
 0x361   :  { %19325 = vst [vmem:[#allocation7_spill] sm:$0xff] %v12618_v18  ;;  %19326 = vst [vmem:[#allocation8_spill] sm:$0xff] %v12620_v26  ;;  %v12622_v27 = vpop.f32.mrb[2].mxu0  ;;  %v12624_v30 = vpop.f32.mrb[2].mxu1 }
 0x362   :  { %19327 = vst [vmem:[#allocation9_spill] sm:$0xff] %v12622_v27  ;;  %19328 = vst [vmem:[#allocation10_spill] sm:$0xff] %v12624_v30  ;;  %v600_v42 = vadd.f32 %v12622_v27, %v12614_v37  ;;  %v626_v32 = vadd.f32 %v12624_v30, %v12616_v40  ;;  %v12630_v33 = vpop.f32.mrb[3].mxu0  ;;  %v12632_v36 = vpop.f32.mrb[3].mxu1 }
 0x363   :  { %19329 = vst [vmem:[#allocation11_spill] sm:$0xff] %v12630_v33  ;;  %19330 = vst [vmem:[#allocation12_spill] sm:$0xff] %v12632_v36  ;;  %v613_v38 = vadd.f32 %v12630_v33, %v12618_v18  ;;  %v639_v39 = vadd.f32 %v12632_v36, %v12620_v26 }
 0x367   :  { %v12638_v41 = vpop.f32.mrb[4].mxu0  ;;  %v12640_v8 = vpop.f32.mrb[4].mxu1 }
 0x368   :  { %19331 = vst [vmem:[#allocation13_spill] sm:$0xff] %v12638_v41  ;;  %19332 = vst [vmem:[#allocation14_spill] sm:$0xff] %v12640_v8  ;;  %v601_v44 = vadd.f32 %v600_v42, %v12638_v41  ;;  %v627_v50 = vadd.f32 %v626_v32, %v12640_v8  ;;  %v12644_v0 = vpop.f32.mrb[5].mxu0  ;;  %v12646_v1 = vpop.f32.mrb[5].mxu1 }
 0x369   :  { %19333 = vst [vmem:[#allocation15_spill] sm:$0xff] %v12644_v0  ;;  %19334 = vst [vmem:[#allocation16_spill] sm:$0xff] %v12646_v1  ;;  %v614_v2 = vadd.f32 %v613_v38, %v12644_v0  ;;  %v640_v3 = vadd.f32 %v639_v39, %v12646_v1  ;;  %v12650_v51 = vpop.f32.mrb[6].mxu0  ;;  %v12652_v43 = vpop.f32.mrb[6].mxu1 }
 0x36a   :  { %19335 = vst [vmem:[#allocation17_spill] sm:$0xff] %v12650_v51  ;;  %19336 = vst [vmem:[#allocation18_spill] sm:$0xff] %v12652_v43  ;;  %v602_v52 = vadd.f32 %v601_v44, %v12650_v51  ;;  %v628_v53 = vadd.f32 %v627_v50, %v12652_v43  ;;  %v12656_v7 = vpop.f32.mrb[7].mxu0  ;;  %v12658_v45 = vpop.f32.mrb[7].mxu1 }
 0x36b   :  { %19337 = vst [vmem:[#allocation19_spill] sm:$0xff] %v12656_v7  ;;  %19338 = vst [vmem:[#allocation20_spill] sm:$0xff] %v12658_v45  ;;  %v615_v10 = vadd.f32 %v614_v2, %v12656_v7  ;;  %v641_v46 = vadd.f32 %v640_v3, %v12658_v45 }
 0x36f   :  { %v12662_v47 = vpop.f32.mrb[8].mxu0  ;;  %v12664_v48 = vpop.f32.mrb[8].mxu1 }
 0x370   :  { %19339 = vst [vmem:[#allocation21_spill] sm:$0xff] %v12662_v47  ;;  %19340 = vst [vmem:[#allocation22_spill] sm:$0xff] %v12664_v48  ;;  %v603_v49 = vadd.f32 %v602_v52, %v12662_v47  ;;  %v629_v54 = vadd.f32 %v628_v53, %v12664_v48  ;;  %v12668_v55 = vpop.f32.mrb[9].mxu0  ;;  %v12670_v13 = vpop.f32.mrb[9].mxu1 }
 0x371   :  { %19341 = vst [vmem:[#allocation23_spill] sm:$0xff] %v12668_v55  ;;  %19342 = vst [vmem:[#allocation24_spill] sm:$0xff] %v12670_v13  ;;  %v616_v16 = vadd.f32 %v615_v10, %v12668_v55  ;;  %v642_v56 = vadd.f32 %v641_v46, %v12670_v13  ;;  %v12674_v57 = vpop.f32.mrb[10].mxu0  ;;  %v12676_v35 = vpop.f32.mrb[10].mxu1 }
 0x372   :  { %19343 = vst [vmem:[#allocation25_spill] sm:$0xff] %v12674_v57  ;;  %19344 = vst [vmem:[#allocation26_spill] sm:$0xff] %v12676_v35  ;;  %v604_v58 = vadd.f32 %v603_v49, %v12674_v57  ;;  %v630_v59 = vadd.f32 %v629_v54, %v12676_v35  ;;  %v12680_v19 = vpop.f32.mrb[11].mxu0  ;;  %v12682_v22 = vpop.f32.mrb[11].mxu1 }
 0x373   :  { %19345 = vst [vmem:[#allocation27_spill] sm:$0xff] %v12680_v19  ;;  %19346 = vst [vmem:[#allocation28_spill] sm:$0xff] %v12682_v22  ;;  %v617_v60 = vadd.f32 %v616_v16, %v12680_v19  ;;  %v643_v61 = vadd.f32 %v642_v56, %v12682_v22 }
 0x377   :  { %v12686_v62 = vpop.f32.mrb[12].mxu0  ;;  %v12688_v63 = vpop.f32.mrb[12].mxu1 }
 0x378   :  { %19347 = vst [vmem:[#allocation29_spill] sm:$0xff] %v12686_v62  ;;  %19348 = vst [vmem:[#allocation30_spill] sm:$0xff] %v12688_v63  ;;  %v605_v4 = vadd.f32 %v604_v58, %v12686_v62  ;;  %v631_v25 = vadd.f32 %v630_v59, %v12688_v63  ;;  %v12692_v28 = vpop.f32.mrb[13].mxu0  ;;  %v12694_v5 = vpop.f32.mrb[13].mxu1 }
 0x379   :  { %19349 = vst [vmem:[#allocation31_spill] sm:$0xff] %v12692_v28  ;;  %19350 = vst [vmem:[#allocation32_spill] sm:$0xff] %v12694_v5  ;;  %v618_v6 = vadd.f32 %v617_v60, %v12692_v28  ;;  %v644_v9 = vadd.f32 %v643_v61, %v12694_v5  ;;  %v12698_v11 = vpop.f32.mrb[14].mxu0  ;;  %v12700_v12 = vpop.f32.mrb[14].mxu1 }
 0x37a   :  { %19351 = vst [vmem:[#allocation33_spill] sm:$0xff] %v12698_v11  ;;  %19352 = vst [vmem:[#allocation34_spill] sm:$0xff] %v12700_v12  ;;  %v606_v31 = vadd.f32 %v605_v4, %v12698_v11  ;;  %v632_v34 = vadd.f32 %v631_v25, %v12700_v12  ;;  %v12704_v15 = vpop.f32.mrb[15].mxu0  ;;  %v12706_v17 = vpop.f32.mrb[15].mxu1 }
 0x37b   :  { %19353 = vst [vmem:[#allocation35_spill] sm:$0xff] %v12704_v15  ;;  %19354 = vst [vmem:[#allocation36_spill] sm:$0xff] %v12706_v17  ;;  %v619_v20 = vadd.f32 %v618_v6, %v12704_v15  ;;  %v645_v21 = vadd.f32 %v644_v9, %v12706_v17 }
 0x37f   :  { %v12710_v23 = vpop.f32.mrb[16].mxu0  ;;  %v12712_v24 = vpop.f32.mrb[16].mxu1 }
 0x380   :  { %19355 = vst [vmem:[#allocation37_spill] sm:$0xff] %v12710_v23  ;;  %19356 = vst [vmem:[#allocation38_spill] sm:$0xff] %v12712_v24  ;;  %v12714_v42 = vpop.f32.mrb[17].mxu0  ;;  %v12716_v32 = vpop.f32.mrb[17].mxu1 }
 0x381   :  { %19357 = vst [vmem:[#allocation39_spill] sm:$0xff] %v12714_v42  ;;  %19358 = vst [vmem:[#allocation40_spill] sm:$0xff] %v12716_v32  ;;  %v12718_v38 = vpop.f32.mrb[18].mxu0  ;;  %v12720_v39 = vpop.f32.mrb[18].mxu1 }
 0x382   :  { %19359 = vst [vmem:[#allocation41_spill] sm:$0xff] %v12718_v38  ;;  %19360 = vst [vmem:[#allocation42_spill] sm:$0xff] %v12720_v39  ;;  %v931_v44 = vadd.f32 %v12718_v38, %v12710_v23  ;;  %v957_v50 = vadd.f32 %v12720_v39, %v12712_v24  ;;  %v12726_v2 = vpop.f32.mrb[19].mxu0  ;;  %v12728_v3 = vpop.f32.mrb[19].mxu1 }
 0x383   :  { %19361 = vst [vmem:[#allocation43_spill] sm:$0xff] %v12726_v2  ;;  %19362 = vst [vmem:[#allocation44_spill] sm:$0xff] %v12728_v3  ;;  %v944_v52 = vadd.f32 %v12726_v2, %v12714_v42  ;;  %v970_v53 = vadd.f32 %v12728_v3, %v12716_v32 }
 0x387   :  { %v12734_v10 = vpop.f32.mrb[20].mxu0  ;;  %v12736_v46 = vpop.f32.mrb[20].mxu1 }
 0x388   :  { %19363 = vst [vmem:[#allocation45_spill] sm:$0xff] %v12734_v10  ;;  %19364 = vst [vmem:[#allocation46_spill] sm:$0xff] %v12736_v46  ;;  %v932_v49 = vadd.f32 %v931_v44, %v12734_v10  ;;  %v958_v54 = vadd.f32 %v957_v50, %v12736_v46  ;;  %v12740_v16 = vpop.f32.mrb[21].mxu0  ;;  %v12742_v56 = vpop.f32.mrb[21].mxu1 }
 0x389   :  { %19365 = vst [vmem:[#allocation47_spill] sm:$0xff] %v12740_v16  ;;  %19366 = vst [vmem:[#allocation48_spill] sm:$0xff] %v12742_v56  ;;  %v945_v58 = vadd.f32 %v944_v52, %v12740_v16  ;;  %v971_v59 = vadd.f32 %v970_v53, %v12742_v56  ;;  %v12746_v60 = vpop.f32.mrb[22].mxu0  ;;  %v12748_v61 = vpop.f32.mrb[22].mxu1  ;;  %v646_v16 = vrot.slane %v645_v21, 4 }
 0x38a   :  { %19367 = vst [vmem:[#allocation49_spill] sm:$0xff] %v12746_v60  ;;  %19368 = vst [vmem:[#allocation50_spill] sm:$0xff] %v12748_v61  ;;  %v933_v4 = vadd.f32 %v932_v49, %v12746_v60  ;;  %v959_v25 = vadd.f32 %v958_v54, %v12748_v61  ;;  %v12752_v6 = vpop.f32.mrb[23].mxu0  ;;  %v12754_v9 = vpop.f32.mrb[23].mxu1 }
 0x38b   :  { %19369 = vst [vmem:[#allocation51_spill] sm:$0xff] %v12752_v6  ;;  %19370 = vst [vmem:[#allocation52_spill] sm:$0xff] %v12754_v9  ;;  %v946_v44 = vadd.f32 %v945_v58, %v12752_v6  ;;  %v972_v50 = vadd.f32 %v971_v59, %v12754_v9  ;;  %v607_v59 = vrot.slane %v606_v31, 4  ;;  %v633_v9 = vrot.slane %v632_v34, 4 }
 0x38f   :  { %v12758_v14 = vpop.f32.mrb[24].mxu0  ;;  %v12760_v52 = vpop.f32.mrb[24].mxu1 }
 0x390   :  { %19371 = vst [vmem:[#allocation53_spill] sm:$0xff] %v12758_v14  ;;  %19372 = vst [vmem:[#allocation54_spill] sm:$0xff] %v12760_v52  ;;  %v934_v53 = vadd.f32 %v933_v4, %v12758_v14  ;;  %v960_v56 = vadd.f32 %v959_v25, %v12760_v52  ;;  %v12764_v46 = vpop.f32.mrb[25].mxu0  ;;  %v12766_v49 = vpop.f32.mrb[25].mxu1  ;;  %v620_v52 = vrot.slane %v619_v20, 4 }
 0x391   :  { %19373 = vst [vmem:[#allocation55_spill] sm:$0xff] %v12764_v46  ;;  %19374 = vst [vmem:[#allocation56_spill] sm:$0xff] %v12766_v49  ;;  %v947_v54 = vadd.f32 %v946_v44, %v12764_v46  ;;  %v973_v61 = vadd.f32 %v972_v50, %v12766_v49  ;;  %v12770_v60 = vpop.f32.mrb[26].mxu0  ;;  %v12772_v58 = vpop.f32.mrb[26].mxu1  ;;  %v608_v49 = vadd.f32 %v607_v59, %v606_v31 }
 0x392   :  { %19375 = vst [vmem:[#allocation57_spill] sm:$0xff] %v12770_v60  ;;  %19376 = vst [vmem:[#allocation58_spill] sm:$0xff] %v12772_v58  ;;  %v935_v6 = vadd.f32 %v934_v53, %v12770_v60  ;;  %v961_v4 = vadd.f32 %v960_v56, %v12772_v58  ;;  %v12776_v14 = vpop.f32.mrb[27].mxu0  ;;  %v12778_v25 = vpop.f32.mrb[27].mxu1  ;;  %v634_v46 = vadd.f32 %v633_v9, %v632_v34 }
 0x393   :  { %19377 = vst [vmem:[#allocation59_spill] sm:$0xff] %v12776_v14  ;;  %19378 = vst [vmem:[#allocation60_spill] sm:$0xff] %v12778_v25  ;;  %v948_v44 = vadd.f32 %v947_v54, %v12776_v14  ;;  %v974_v50 = vadd.f32 %v973_v61, %v12778_v25  ;;  %v621_v39 = vadd.f32 %v620_v52, %v619_v20 }
 0x394   :  { %v647_v53 = vadd.f32 %v646_v16, %v645_v21  ;;  %v635_v52 = vrot.slane %v634_v46, 2 }
 0x397   :  { %v12782_v10 = vpop.f32.mrb[28].mxu0  ;;  %v12784_v3 = vpop.f32.mrb[28].mxu1 }
 0x398   :  { %19379 = vst [vmem:[#allocation61_spill] sm:$0xff] %v12782_v10  ;;  %19380 = vst [vmem:[#allocation62_spill] sm:$0xff] %v12784_v3  ;;  %v936_v56 = vadd.f32 %v935_v6, %v12782_v10  ;;  %v962_v58 = vadd.f32 %v961_v4, %v12784_v3  ;;  %v12788_v60 = vpop.f32.mrb[29].mxu0  ;;  %v12790_v2 = vpop.f32.mrb[29].mxu1  ;;  %v609_v6 = vrot.slane %v608_v49, 2 }
 0x399   :  { %19381 = vst [vmem:[#allocation63_spill] sm:$0xff] %v12788_v60  ;;  %19382 = vst [vmem:[#allocation64_spill] sm:$0xff] %v12790_v2  ;;  %v949_v54 = vadd.f32 %v948_v44, %v12788_v60  ;;  %v975_v61 = vadd.f32 %v974_v50, %v12790_v2  ;;  %v12794_v31 = vpop.f32.mrb[30].mxu0  ;;  %v12796_v34 = vpop.f32.mrb[30].mxu1  ;;  %v622_v44 = vrot.slane %v621_v39, 2  ;;  %v648_v50 = vrot.slane %v647_v53, 2 }
 0x39a   :  { %19383 = vst [vmem:[#allocation65_spill] sm:$0xff] %v12794_v31  ;;  %19384 = vst [vmem:[#allocation66_spill] sm:$0xff] %v12796_v34  ;;  %v937_v9 = vadd.f32 %v936_v56, %v12794_v31  ;;  %v963_v20 = vadd.f32 %v962_v58, %v12796_v34  ;;  %v12800_v21 = vpop.f32.mrb[31].mxu0  ;;  %v12802_v16 = vpop.f32.mrb[31].mxu1  ;;  %v610_v25 = vadd.f32 %v609_v6, %v608_v49 }
 0x39b   :  { %19385 = vst [vmem:[#allocation67_spill] sm:$0xff] %v12800_v21  ;;  %19386 = vst [vmem:[#allocation68_spill] sm:$0xff] %v12802_v16  ;;  %v950_v59 = vadd.f32 %v949_v54, %v12800_v21  ;;  %v976_v4 = vadd.f32 %v975_v61, %v12802_v16  ;;  %v636_v31 = vadd.f32 %v635_v52, %v634_v46 }
 0x39c   :  { %v938_v2 = vrot.slane %v937_v9, 4  ;;  %v964_v3 = vrot.slane %v963_v20, 4  ;;  %v623_v34 = vadd.f32 %v622_v44, %v621_v39  ;;  %v649_v38 = vadd.f32 %v648_v50, %v647_v53 }
 0x39d   :  { %v951_v60 = vrot.slane %v950_v59, 4  ;;  %v977_v10 = vrot.slane %v976_v4, 4  ;;  %v611_v21 = vrot.slane %v610_v25, 1  ;;  %v637_v16 = vrot.slane %v636_v31, 1 }
 0x39e   :  { %v939_v56 = vadd.f32 %v938_v2, %v937_v9  ;;  %v965_v58 = vadd.f32 %v964_v3, %v963_v20  ;;  %v624_v12 = vrot.slane %v623_v34, 1  ;;  %v650_v11 = vrot.slane %v649_v38, 1 }
 0x39f   :  { %v952_v14 = vadd.f32 %v951_v60, %v950_v59  ;;  %v978_v32 = vadd.f32 %v977_v10, %v976_v4  ;;  %v612_v39 = vadd.f32 %v611_v21, %v610_v25  ;;  %v638_v53 = vadd.f32 %v637_v16, %v636_v31 }
 0x3a0   :  { %v940_v24 = vrot.slane %v939_v56, 2  ;;  %v966_v42 = vrot.slane %v965_v58, 2  ;;  %v625_v9 = vadd.f32 %v624_v12, %v623_v34  ;;  %v651_v6 = vadd.f32 %v650_v11, %v649_v38 }
 0x3a1   :  { %v953_v23 = vrot.slane %v952_v14, 2  ;;  %v979_v54 = vrot.slane %v978_v32, 2 }
 0x3a2   :  { %v941_v61 = vadd.f32 %v940_v24, %v939_v56  ;;  %v967_v17 = vadd.f32 %v966_v42, %v965_v58 }
 0x3a3   :  { %v954_v15 = vadd.f32 %v953_v23, %v952_v14  ;;  %v980_v5 = vadd.f32 %v979_v54, %v978_v32 }
 0x3a4   :  { %v942_v49 = vrot.slane %v941_v61, 1  ;;  %v968_v2 = vrot.slane %v967_v17, 1 }
 0x3a5   :  { %v955_v46 = vrot.slane %v954_v15, 1  ;;  %v981_v3 = vrot.slane %v980_v5, 1 }
 0x3a6   :  { %v943_v60 = vadd.f32 %v942_v49, %v941_v61  ;;  %v969_v10 = vadd.f32 %v968_v2, %v967_v17 }
 0x3a7   :  { %v956_v20 = vadd.f32 %v955_v46, %v954_v15  ;;  %v982_v52 = vadd.f32 %v981_v3, %v980_v5 }
 0x3a8   :  { %v983_v59 = vadd.f32 %v943_v60, %v612_v39  ;;  %v985_v24 = vadd.f32 %v969_v10, %v638_v53 }
 0x3a9   :  { %v984_v4 = vadd.f32 %v956_v20, %v625_v9  ;;  %v986_v42 = vadd.f32 %v982_v52, %v651_v6 }
 0x3aa   :  { %988 = vrot.lane.b32.xlu1 %v983_v59, %s12214_s3 }
 0x3ab   :  { %994 = vrot.lane.b32.xlu0 %v984_v4, %s12214_s3 }
 0x3ae   :  { %1000 = vrot.lane.b32.xlu1 %v985_v24, %s12214_s3 }
 0x3af   :  { %1006 = vrot.lane.b32.xlu0 %v986_v42, %s12214_s3 }
 0x41c   :  { %v989_v14 = vpop.permute.xlu1 %988 }
 0x41d   :  { %v991_v23 = vadd.f32 %v989_v14, %v983_v59  ;;  %v995_v12 = vpop.permute.xlu0 %994 }
 0x41f   :  { %v992_v17 = vadd.f32 %v991_v23, %v984_v4 }
 0x420   :  { %v1001_v5 = vpop.permute.xlu1 %1000 }
 0x421   :  { %v997_v15 = vadd.f32 %v995_v12, %v992_v17  ;;  %v1007_v25 = vpop.permute.xlu0 %1006 }
 0x423   :  { %v998_v11 = vadd.f32 %v997_v15, %v985_v24 }
 0x425   :  { %v1003_v32 = vadd.f32 %v1001_v5, %v998_v11  ;;  %v19388_v5 = vld [vmem:[#allocation32_spill] sm:$0xff] }
 0x427   :  { %v1004_v38 = vadd.f32 %v1003_v32, %v986_v42 }
 0x429   :  { %v1009_v31 = vadd.f32 %v1007_v25, %v1004_v38  ;;  %v19389_v38 = vld [vmem:[#allocation33_spill] sm:$0xff] }
 0x42b   :  { %v12810_v34 = vmul.f32 0.0009765625, %v1009_v31  ;;  %v19390_v31 = vld [vmem:[#allocation35_spill] sm:$0xff] }
 0x42d   :  { %19387 = vst [vmem:[#allocation69_spill] sm:$0xff] %v12810_v34  ;;  %1012 = vrot.lane.b32.xlu1 %v12810_v34, %s12214_s3 }
 0x49f   :  { %v1013_v21 = vpop.permute.xlu1 %1012 }
 0x4a0   :  { %v1016_v16 = vsel %vm1015_vm8, %v12810_v34, %v1013_v21 }
 0x4a1   :  { %v12817_v44 = vrot.slane %v1016_v16, %v12403_v29  ;;  %v19391_v16 = vld [vmem:[#allocation34_spill] sm:$0xff] }
 0x4a3   :  { %v12821_v50 = vsub.f32 %v12614_v37, %v12817_v44  ;;  %v1054_v56 = vsub.f32 %v12618_v18, %v12817_v44  ;;  %v12827_v58 = vsub.f32 %v12616_v40, %v12817_v44  ;;  %v12831_v54 = vsub.f32 %v12620_v26, %v12817_v44 }
 0x4a4   :  { %v12835_v61 = vsub.f32 %v12622_v27, %v12817_v44  ;;  %v1058_v49 = vsub.f32 %v12630_v33, %v12817_v44  ;;  %v12841_v2 = vsub.f32 %v12624_v30, %v12817_v44  ;;  %v12845_v46 = vsub.f32 %v12632_v36, %v12817_v44 }
 0x4a5   :  { %v12849_v3 = vsub.f32 %v12638_v41, %v12817_v44  ;;  %v1062_v39 = vsub.f32 %v12644_v0, %v12817_v44  ;;  %v12855_v60 = vsub.f32 %v12640_v8, %v12817_v44  ;;  %v12859_v53 = vsub.f32 %v12646_v1, %v12817_v44 }
 0x4a6   :  { %v12863_v10 = vsub.f32 %v12650_v51, %v12817_v44  ;;  %v1066_v9 = vsub.f32 %v12656_v7, %v12817_v44  ;;  %v12869_v20 = vsub.f32 %v12652_v43, %v12817_v44  ;;  %v12873_v6 = vsub.f32 %v12658_v45, %v12817_v44 }
 0x4a7   :  { %v12877_v52 = vsub.f32 %v12662_v47, %v12817_v44  ;;  %v1070_v59 = vsub.f32 %v12668_v55, %v12817_v44  ;;  %v12883_v24 = vsub.f32 %v12664_v48, %v12817_v44  ;;  %v12887_v4 = vsub.f32 %v12670_v13, %v12817_v44 }
 0x4a8   :  { %v12891_v42 = vsub.f32 %v12674_v57, %v12817_v44  ;;  %v1074_v14 = vsub.f32 %v12680_v19, %v12817_v44  ;;  %v12897_v23 = vsub.f32 %v12676_v35, %v12817_v44  ;;  %v12901_v17 = vsub.f32 %v12682_v22, %v12817_v44 }
 0x4a9   :  { %v12905_v12 = vsub.f32 %v12686_v62, %v12817_v44  ;;  %v1078_v15 = vsub.f32 %v12692_v28, %v12817_v44  ;;  %v12911_v11 = vsub.f32 %v12688_v63, %v12817_v44  ;;  %v12915_v32 = vsub.f32 %v19388_v5, %v12817_v44  ;;  %v19392_v28 = vld [vmem:[#allocation36_spill] sm:$0xff]  ;;  %v19393_v63 = vld [vmem:[#allocation37_spill] sm:$0xff]  ;;  %v19394_v5 = vld [vmem:[#allocation39_spill] sm:$0xff] }
 0x4aa   :  { %v12919_v25 = vsub.f32 %v19389_v38, %v12817_v44  ;;  %v1082_v21 = vsub.f32 %v19390_v31, %v12817_v44  ;;  %v12925_v62 = vsub.f32 %v19391_v16, %v12817_v44  ;;  %v12929_v22 = vsub.f32 %v19392_v28, %v12817_v44  ;;  %v19395_v38 = vld [vmem:[#allocation38_spill] sm:$0xff]  ;;  %v19396_v31 = vld [vmem:[#allocation40_spill] sm:$0xff]  ;;  %v19397_v16 = vld [vmem:[#allocation41_spill] sm:$0xff] }
 0x4ab   :  { %v12933_v35 = vsub.f32 %v19393_v63, %v12817_v44  ;;  %v1206_v19 = vsub.f32 %v19394_v5, %v12817_v44  ;;  %v12939_v57 = vsub.f32 %v19395_v38, %v12817_v44  ;;  %v12943_v13 = vsub.f32 %v19396_v31, %v12817_v44  ;;  %v19398_v28 = vld [vmem:[#allocation43_spill] sm:$0xff]  ;;  %v19399_v63 = vld [vmem:[#allocation42_spill] sm:$0xff]  ;;  %v19401_v5 = vld [vmem:[#allocation44_spill] sm:$0xff] }
 0x4ac   :  { %v12947_v48 = vsub.f32 %v19397_v16, %v12817_v44  ;;  %v1210_v55 = vsub.f32 %v19398_v28, %v12817_v44  ;;  %v12953_v47 = vsub.f32 %v19399_v63, %v12817_v44  ;;  %v12957_v45 = vsub.f32 %v19401_v5, %v12817_v44  ;;  %v19403_v38 = vld [vmem:[#allocation45_spill] sm:$0xff]  ;;  %v19405_v31 = vld [vmem:[#allocation47_spill] sm:$0xff]  ;;  %v19406_v16 = vld [vmem:[#allocation46_spill] sm:$0xff] }
 0x4ad   :  { %v12961_v43 = vsub.f32 %v19403_v38, %v12817_v44  ;;  %v1214_v7 = vsub.f32 %v19405_v31, %v12817_v44  ;;  %v12967_v51 = vsub.f32 %v19406_v16, %v12817_v44  ;;  %v19408_v28 = vld [vmem:[#allocation48_spill] sm:$0xff]  ;;  %v19410_v63 = vld [vmem:[#allocation49_spill] sm:$0xff]  ;;  %v19412_v5 = vld [vmem:[#allocation51_spill] sm:$0xff] }
 0x4ae   :  { %19400 = vst [vmem:[#allocation70_spill] sm:$0xff] %v12953_v47  ;;  %19402 = vst [vmem:[#allocation71_spill] sm:$0xff] %v12957_v45  ;;  %v12971_v1 = vsub.f32 %v19408_v28, %v12817_v44  ;;  %v12975_v8 = vsub.f32 %v19410_v63, %v12817_v44  ;;  %v1218_v0 = vsub.f32 %v19412_v5, %v12817_v44  ;;  %v19413_v38 = vld [vmem:[#allocation50_spill] sm:$0xff]  ;;  %v19415_v31 = vld [vmem:[#allocation52_spill] sm:$0xff] }
 0x4af   :  { %19404 = vst [vmem:[#allocation72_spill] sm:$0xff] %v12961_v43  ;;  %19407 = vst [vmem:[#allocation73_spill] sm:$0xff] %v12967_v51  ;;  %v12981_v41 = vsub.f32 %v19413_v38, %v12817_v44  ;;  %v12985_v36 = vsub.f32 %v19415_v31, %v12817_v44  ;;  %v19417_v16 = vld [vmem:[#allocation53_spill] sm:$0xff]  ;;  %v19419_v28 = vld [vmem:[#allocation55_spill] sm:$0xff]  ;;  %v1114_v51 = vmul.f32 %v1082_v21, %v1082_v21 }
 0x4b0   :  { %19409 = vst [vmem:[#allocation74_spill] sm:$0xff] %v12971_v1  ;;  %19411 = vst [vmem:[#allocation75_spill] sm:$0xff] %v12975_v8  ;;  %v12989_v30 = vsub.f32 %v19417_v16, %v12817_v44  ;;  %v1222_v33 = vsub.f32 %v19419_v28, %v12817_v44  ;;  %v19420_v63 = vld [vmem:[#allocation54_spill] sm:$0xff]  ;;  %v19422_v5 = vld [vmem:[#allocation56_spill] sm:$0xff]  ;;  %v1110_v1 = vmul.f32 %v1078_v15, %v1078_v15 }
 0x4b1   :  { %19414 = vst [vmem:[#allocation76_spill] sm:$0xff] %v12981_v41  ;;  %19416 = vst [vmem:[#allocation77_spill] sm:$0xff] %v12985_v36  ;;  %v12995_v27 = vsub.f32 %v19420_v63, %v12817_v44  ;;  %v12999_v26 = vsub.f32 %v19422_v5, %v12817_v44  ;;  %v19424_v38 = vld [vmem:[#allocation57_spill] sm:$0xff]  ;;  %v19426_v31 = vld [vmem:[#allocation59_spill] sm:$0xff]  ;;  %v1094_v36 = vmul.f32 %v1062_v39, %v1062_v39 }
 0x4b2   :  { %19418 = vst [vmem:[#allocation78_spill] sm:$0xff] %v12989_v30  ;;  %v13003_v40 = vsub.f32 %v19424_v38, %v12817_v44  ;;  %v1226_v18 = vsub.f32 %v19426_v31, %v12817_v44  ;;  %v19427_v16 = vld [vmem:[#allocation58_spill] sm:$0xff]  ;;  %v19429_v28 = vld [vmem:[#allocation60_spill] sm:$0xff]  ;;  %v19431_v63 = vld [vmem:[#allocation61_spill] sm:$0xff]  ;;  %v1090_v30 = vmul.f32 %v1058_v49, %v1058_v49  ;;  %v1106_v41 = vmul.f32 %v1074_v14, %v1074_v14 }
 0x4b3   :  { %19421 = vst [vmem:[#allocation79_spill] sm:$0xff] %v12995_v27  ;;  %19423 = vst [vmem:[#allocation80_spill] sm:$0xff] %v12999_v26  ;;  %v13009_v37 = vsub.f32 %v19427_v16, %v12817_v44  ;;  %v13013_v34 = vsub.f32 %v19429_v28, %v12817_v44  ;;  %v13017_v29 = vsub.f32 %v19431_v63, %v12817_v44  ;;  %v19433_v5 = vld [vmem:[#allocation63_spill] sm:$0xff]  ;;  %v19434_v38 = vld [vmem:[#allocation62_spill] sm:$0xff] }
 0x4b4   :  { %19425 = vst [vmem:[#allocation81_spill] sm:$0xff] %v13003_v40  ;;  %v1230_v26 = vsub.f32 %v19433_v5, %v12817_v44  ;;  %v13023_v40 = vsub.f32 %v19434_v38, %v12817_v44  ;;  %v19436_v31 = vld [vmem:[#allocation64_spill] sm:$0xff]  ;;  %v19438_v16 = vld [vmem:[#allocation65_spill] sm:$0xff]  ;;  %v19440_v28 = vld [vmem:[#allocation67_spill] sm:$0xff]  ;;  %v1086_v5 = vmul.f32 %v1054_v56, %v1054_v56  ;;  %v1250_v43 = vmul.f32 %v1218_v0, %v1218_v0 }
 0x4b5   :  { %19428 = vst [vmem:[#allocation82_spill] sm:$0xff] %v13009_v37  ;;  %19430 = vst [vmem:[#allocation83_spill] sm:$0xff] %v13013_v34  ;;  %v13027_v27 = vsub.f32 %v19436_v31, %v12817_v44  ;;  %v13031_v37 = vsub.f32 %v19438_v16, %v12817_v44  ;;  %v1234_v34 = vsub.f32 %v19440_v28, %v12817_v44  ;;  %v19441_v63 = vld [vmem:[#allocation66_spill] sm:$0xff]  ;;  %v19443_v38 = vld [vmem:[#allocation68_spill] sm:$0xff] }
 0x4b6   :  { %19432 = vst [vmem:[#allocation84_spill] sm:$0xff] %v13017_v29  ;;  %19435 = vst [vmem:[#allocation85_spill] sm:$0xff] %v13023_v40  ;;  %v13037_v29 = vsub.f32 %v19441_v63, %v12817_v44  ;;  %v13041_v40 = vsub.f32 %v19443_v38, %v12817_v44  ;;  %v1098_v31 = vmul.f32 %v1066_v9, %v1066_v9  ;;  %v19449_v14 = vld [vmem:[#allocation72_spill] sm:$0xff] }
 0x4b7   :  { %19437 = vst [vmem:[#allocation86_spill] sm:$0xff] %v13027_v27  ;;  %19439 = vst [vmem:[#allocation87_spill] sm:$0xff] %v13031_v37  ;;  %v1102_v27 = vmul.f32 %v1070_v59, %v1070_v59  ;;  %v1130_v8 = vadd.f32 %v1090_v30, %v1086_v5  ;;  %v1238_v16 = vmul.f32 %v1206_v19, %v1206_v19  ;;  %v19452_v15 = vld [vmem:[#allocation75_spill] sm:$0xff] }
 0x4b8   :  { %19442 = vst [vmem:[#allocation88_spill] sm:$0xff] %v13037_v29  ;;  %v1242_v37 = vmul.f32 %v1210_v55, %v1210_v55  ;;  %v1246_v28 = vmul.f32 %v1214_v7, %v1214_v7  ;;  %v1254_v63 = vmul.f32 %v1222_v33, %v1222_v33  ;;  %v1258_v29 = vmul.f32 %v1226_v18, %v1226_v18 }
 0x4b9   :  { %v1131_v45 = vadd.f32 %v1130_v8, %v1094_v36  ;;  %v1262_v49 = vmul.f32 %v1230_v26, %v1230_v26  ;;  %v1266_v47 = vmul.f32 %v1234_v34, %v1234_v34  ;;  %v1085_v44 = vmul.f32 %v12821_v50, %v12821_v50 }
 0x4ba   :  { %v1282_v56 = vadd.f32 %v1242_v37, %v1238_v16  ;;  %v1087_v39 = vmul.f32 %v12827_v58, %v12827_v58  ;;  %v1088_v55 = vmul.f32 %v12831_v54, %v12831_v54  ;;  %v1089_v0 = vmul.f32 %v12835_v61, %v12835_v61  ;;  %v19456_v16 = vld [vmem:[#allocation79_spill] sm:$0xff] }
 0x4bb   :  { %v1132_v9 = vadd.f32 %v1131_v45, %v1098_v31  ;;  %v1091_v18 = vmul.f32 %v12841_v2, %v12841_v2  ;;  %v1092_v37 = vmul.f32 %v12845_v46, %v12845_v46  ;;  %v1093_v26 = vmul.f32 %v12849_v3, %v12849_v3  ;;  %v19455_v31 = vld [vmem:[#allocation78_spill] sm:$0xff] }
 0x4bc   :  { %v1283_v30 = vadd.f32 %v1282_v56, %v1246_v28  ;;  %v13059_v33 = vmul.f32 %v12855_v60, %v12855_v60  ;;  %v1096_v7 = vmul.f32 %v12859_v53, %v12859_v53  ;;  %v13065_v45 = vmul.f32 %v12863_v10, %v12863_v10 }
 0x4bd   :  { %v1133_v36 = vadd.f32 %v1132_v9, %v1102_v27  ;;  %v13069_v19 = vmul.f32 %v12869_v20, %v12869_v20  ;;  %v13073_v28 = vmul.f32 %v12873_v6, %v12873_v6  ;;  %v13077_v34 = vmul.f32 %v12877_v52, %v12877_v52  ;;  %v19457_v9 = vld [vmem:[#allocation80_spill] sm:$0xff] }
 0x4be   :  { %v1284_v8 = vadd.f32 %v1283_v30, %v1250_v43  ;;  %v13081_v27 = vmul.f32 %v12883_v24, %v12883_v24  ;;  %v13085_v58 = vmul.f32 %v12887_v4, %v12887_v4  ;;  %v13089_v54 = vmul.f32 %v12891_v42, %v12891_v42  ;;  %v19448_v42 = vld [vmem:[#allocation71_spill] sm:$0xff] }
 0x4bf   :  { %v1134_v43 = vadd.f32 %v1133_v36, %v1106_v41  ;;  %v13093_v61 = vmul.f32 %v12897_v23, %v12897_v23  ;;  %v13097_v2 = vmul.f32 %v12901_v17, %v12901_v17  ;;  %v13101_v41 = vmul.f32 %v12905_v12, %v12905_v12  ;;  %v19450_v23 = vld [vmem:[#allocation73_spill] sm:$0xff]  ;;  %v19451_v12 = vld [vmem:[#allocation74_spill] sm:$0xff] }
 0x4c0   :  { %v1285_v50 = vadd.f32 %v1284_v8, %v1254_v63  ;;  %v13105_v63 = vmul.f32 %v12911_v11, %v12911_v11  ;;  %v13109_v60 = vmul.f32 %v12915_v32, %v12915_v32  ;;  %v13113_v53 = vmul.f32 %v12919_v25, %v12919_v25  ;;  %v19453_v11 = vld [vmem:[#allocation76_spill] sm:$0xff]  ;;  %v19454_v32 = vld [vmem:[#allocation77_spill] sm:$0xff] }
 0x4c1   :  { %v1135_v46 = vadd.f32 %v1134_v43, %v1110_v1  ;;  %v13117_v10 = vmul.f32 %v12925_v62, %v12925_v62  ;;  %v13121_v20 = vmul.f32 %v12929_v22, %v12929_v22  ;;  %v1237_v1 = vmul.f32 %v12933_v35, %v12933_v35  ;;  %v19447_v62 = vld [vmem:[#allocation70_spill] sm:$0xff]  ;;  %v19458_v36 = vld [vmem:[#allocation81_spill] sm:$0xff] }
 0x4c2   :  { %v1286_v3 = vadd.f32 %v1285_v50, %v1258_v29  ;;  %19444 = vst [vmem:[#allocation89_spill] sm:$0xff] %v13113_v53  ;;  %v1239_v29 = vmul.f32 %v12939_v57, %v12939_v57  ;;  %v1240_v59 = vmul.f32 %v12943_v13, %v12943_v13  ;;  %v1241_v24 = vmul.f32 %v12947_v48, %v12947_v48  ;;  %v19459_v43 = vld [vmem:[#allocation82_spill] sm:$0xff] }
 0x4c3   :  { %19445 = vst [vmem:[#allocation90_spill] sm:$0xff] %v13117_v10  ;;  %19446 = vst [vmem:[#allocation91_spill] sm:$0xff] %v13121_v20  ;;  %v1136_v6 = vadd.f32 %v1135_v46, %v1114_v51  ;;  %v1243_v4 = vmul.f32 %v19447_v62, %v19447_v62  ;;  %v1244_v22 = vmul.f32 %v19448_v42, %v19448_v42  ;;  %v19460_v46 = vld [vmem:[#allocation83_spill] sm:$0xff]  ;;  %v19462_v42 = vld [vmem:[#allocation85_spill] sm:$0xff] }
 0x4c4   :  { %v1287_v52 = vadd.f32 %v1286_v3, %v1262_v49  ;;  %v1245_v35 = vmul.f32 %v19449_v14, %v19449_v14  ;;  %v1247_v57 = vmul.f32 %v19450_v23, %v19450_v23  ;;  %v1248_v13 = vmul.f32 %v19451_v12, %v19451_v12 }
 0x4c5   :  { %v1137_v51 = vrot.slane %v1136_v6, 4  ;;  %v1249_v48 = vmul.f32 %v19452_v15, %v19452_v15  ;;  %v1251_v5 = vmul.f32 %v19453_v11, %v19453_v11  ;;  %v1252_v25 = vmul.f32 %v19454_v32, %v19454_v32 }
 0x4c6   :  { %v1288_v17 = vadd.f32 %v1287_v52, %v1266_v47  ;;  %v1253_v21 = vmul.f32 %v19455_v31, %v19455_v31  ;;  %v1255_v56 = vmul.f32 %v19456_v16, %v19456_v16  ;;  %v1256_v30 = vmul.f32 %v19457_v9, %v19457_v9  ;;  %v19461_v52 = vld [vmem:[#allocation84_spill] sm:$0xff] }
 0x4c7   :  { %v1138_v49 = vadd.f32 %v1137_v51, %v1136_v6  ;;  %v1257_v8 = vmul.f32 %v19458_v36, %v19458_v36  ;;  %v1259_v50 = vmul.f32 %v19459_v43, %v19459_v43  ;;  %v1260_v3 = vmul.f32 %v19460_v46, %v19460_v46  ;;  %v19463_v51 = vld [vmem:[#allocation86_spill] sm:$0xff] }
 0x4c8   :  { %v1289_v47 = vrot.slane %v1288_v17, 4  ;;  %v1261_v62 = vmul.f32 %v19461_v52, %v19461_v52  ;;  %v1263_v14 = vmul.f32 %v19462_v42, %v19462_v42  ;;  %v1264_v12 = vmul.f32 %v19463_v51, %v19463_v51 }
 0x4c9   :  { %v1139_v6 = vrot.slane %v1138_v49, 2  ;;  %v1117_v15 = vadd.f32 %v1089_v0, %v1085_v44  ;;  %v1269_v11 = vadd.f32 %v1241_v24, %v1237_v1  ;;  %v1143_v32 = vadd.f32 %v1091_v18, %v1087_v39 }
 0x4ca   :  { %v1290_v23 = vadd.f32 %v1289_v47, %v1288_v17  ;;  %v1156_v31 = vadd.f32 %v1092_v37, %v1088_v55  ;;  %v1295_v16 = vadd.f32 %v1243_v4, %v1239_v29  ;;  %v1308_v46 = vadd.f32 %v1244_v22, %v1240_v59  ;;  %v19465_v22 = vld [vmem:[#allocation88_spill] sm:$0xff] }
 0x4cb   :  { %v1140_v9 = vadd.f32 %v1139_v6, %v1138_v49  ;;  %v1118_v43 = vadd.f32 %v1117_v15, %v1093_v26  ;;  %v1270_v38 = vadd.f32 %v1269_v11, %v1245_v35  ;;  %v1144_v52 = vadd.f32 %v1143_v32, %v13059_v33 }
 0x4cc   :  { %v1291_v36 = vrot.slane %v1290_v23, 2  ;;  %v1157_v10 = vadd.f32 %v1156_v31, %v1096_v7  ;;  %v1296_v20 = vadd.f32 %v1295_v16, %v1247_v57  ;;  %v1309_v47 = vadd.f32 %v1308_v46, %v1248_v13 }
 0x4cd   :  { %v1141_v42 = vrot.slane %v1140_v9, 1  ;;  %v1119_v17 = vadd.f32 %v1118_v43, %v13065_v45  ;;  %v1271_v51 = vadd.f32 %v1270_v38, %v1249_v48  ;;  %v1145_v39 = vadd.f32 %v1144_v52, %v13069_v19  ;;  %v19464_v45 = vld [vmem:[#allocation87_spill] sm:$0xff] }
 0x4ce   :  { %v1292_v53 = vadd.f32 %v1291_v36, %v1290_v23  ;;  %v1158_v44 = vadd.f32 %v1157_v10, %v13073_v28  ;;  %v1297_v55 = vadd.f32 %v1296_v20, %v1251_v5  ;;  %v1310_v26 = vadd.f32 %v1309_v47, %v1252_v25 }
 0x4cf   :  { %v1142_v0 = vadd.f32 %v1141_v42, %v1140_v9  ;;  %v1120_v37 = vadd.f32 %v1119_v17, %v13077_v34  ;;  %v1272_v7 = vadd.f32 %v1271_v51, %v1253_v21  ;;  %v1146_v1 = vadd.f32 %v1145_v39, %v13081_v27  ;;  %v19467_v21 = vld [vmem:[#allocation91_spill] sm:$0xff] }
 0x4d0   :  { %v1293_v18 = vrot.slane %v1292_v53, 1  ;;  %v1159_v33 = vadd.f32 %v1158_v44, %v13085_v58  ;;  %v1298_v29 = vadd.f32 %v1297_v55, %v1255_v56  ;;  %v1265_v38 = vmul.f32 %v19464_v45, %v19464_v45 }
 0x4d1   :  { %v1121_v28 = vadd.f32 %v1120_v37, %v13089_v54  ;;  %v1311_v10 = vadd.f32 %v1310_v26, %v1256_v30  ;;  %v1273_v19 = vadd.f32 %v1272_v7, %v1257_v8  ;;  %v1147_v24 = vadd.f32 %v1146_v1, %v13093_v61 }
 0x4d2   :  { %v1294_v59 = vadd.f32 %v1293_v18, %v1292_v53  ;;  %v1160_v20 = vadd.f32 %v1159_v33, %v13097_v2  ;;  %v1299_v34 = vadd.f32 %v1298_v29, %v1259_v50  ;;  %v1267_v58 = vmul.f32 %v19465_v22, %v19465_v22  ;;  %v19466_v2 = vld [vmem:[#allocation89_spill] sm:$0xff] }
 0x4d3   :  { %v1122_v27 = vadd.f32 %v1121_v28, %v13101_v41  ;;  %v1312_v53 = vadd.f32 %v1311_v10, %v1260_v3  ;;  %v1274_v35 = vadd.f32 %v1273_v19, %v1261_v62  ;;  %v1148_v54 = vadd.f32 %v1147_v24, %v13105_v63  ;;  %v19468_v41 = vld [vmem:[#allocation90_spill] sm:$0xff]  ;;  %v11905_v10 = vld [vmem:[%s19137_s6 + $0x140] sm:$0xff]   ;;  %v11910_v22 = vld [vmem:[%s19137_s6 + $0x1c8] sm:$0xff]  }
 0x4d4   :  { %v13177_v4 = vadd.f32 %v1294_v59, %v1142_v0  ;;  %v1161_v57 = vadd.f32 %v1160_v20, %v13109_v60  ;;  %v1300_v13 = vadd.f32 %v1299_v34, %v1263_v14  ;;  %v1268_v61 = vmul.f32 %v13041_v40, %v13041_v40  ;;  %v11906_v19 = vld [vmem:[%s19137_s6 + $0x1c0] sm:$0xff]   ;;  %10724 = vmatprep.subr.bf16.mxu0 %v11905_v10  ;;  %v11909_v34 = vld [vmem:[%s19137_s6 + $0x148] sm:$0xff]  }
 0x4d5   :  { %v1123_v48 = vadd.f32 %v1122_v27, %v19466_v2  ;;  %v1313_v5 = vadd.f32 %v1312_v53, %v1264_v12  ;;  %v1275_v25 = vadd.f32 %v1274_v35, %v1265_v38  ;;  %v1149_v49 = vadd.f32 %v1148_v54, %v19468_v41  ;;  %v11907_v20 = vld [vmem:[%s19137_s6 + $0x100] sm:$0xff]   ;;  %10788 = vmatprep.subr.bf16.mxu1 %v11906_v19  ;;  %v11912_v27 = vld [vmem:[%s19137_s6 + $0x188] sm:$0xff]   ;;  %v11913_v53 = vld [vmem:[%s19137_s6 + $0x150] sm:$0xff]  }
 0x4d6   :  { %1332 = vrot.lane.b32.xlu1 %v13177_v4, %s12214_s3  ;;  %v1162_v56 = vadd.f32 %v1161_v57, %v19467_v21  ;;  %v1301_v30 = vadd.f32 %v1300_v13, %v1267_v58  ;;  %v11908_v24 = vld [vmem:[%s19137_s6 + $0x180] sm:$0xff]   ;;  %10725 = vmatpush3.bf16.msra.mxu0 %v11907_v20  ;;  %v11911_v58 = vld [vmem:[%s19137_s6 + $0x108] sm:$0xff]   ;;  %v11914_v35 = vld [vmem:[%s19137_s6 + $0x1d0] sm:$0xff]  }
 0x4d7   :  { %v1124_v8 = vrot.slane %v1123_v48, 4  ;;  %v1314_v60 = vadd.f32 %v1313_v5, %v1268_v61  ;;  %v1276_v50 = vrot.slane %v1275_v25, 4  ;;  %v1150_v3 = vrot.slane %v1149_v49, 4  ;;  %10789 = vmatpush3.bf16.msra.mxu1 %v11908_v24  ;;  %10726 = vmatprep.subr.bf16.mxu0 %v11909_v34  ;;  %v11915_v57 = vld [vmem:[%s19137_s6 + $0x110] sm:$0xff]   ;;  %v11917_v13 = vld [vmem:[%s19137_s6 + $0x158] sm:$0xff]  }
 0x4d8   :  { %v1163_v63 = vrot.slane %v1162_v56, 4  ;;  %v1302_v62 = vrot.slane %v1301_v30, 4  ;;  %10790 = vmatprep.subr.bf16.mxu1 %v11910_v22  ;;  %v11916_v54 = vld [vmem:[%s19137_s6 + $0x190] sm:$0xff]   ;;  %v11918_v61 = vld [vmem:[%s19137_s6 + $0x1d8] sm:$0xff]  }
 0x4d9   :  { %v1125_v14 = vadd.f32 %v1124_v8, %v1123_v48  ;;  %v1315_v6 = vrot.slane %v1314_v60, 4  ;;  %v1277_v23 = vadd.f32 %v1276_v50, %v1275_v25  ;;  %v1151_v40 = vadd.f32 %v1150_v3, %v1149_v49  ;;  %v11919_v2 = vld [vmem:[%s19137_s6 + $0x118] sm:$0xff]  }
 0x4da   :  { %v1164_v15 = vadd.f32 %v1163_v63, %v1162_v56  ;;  %v1303_v11 = vadd.f32 %v1302_v62, %v1301_v30  ;;  %10727 = vmatpush3.bf16.msra.mxu0 %v11911_v58  ;;  %v11920_v48 = vld [vmem:[%s19137_s6 + $0x198] sm:$0xff]  }
 0x4db   :  { %v1126_v32 = vrot.slane %v1125_v14, 2  ;;  %v1316_v12 = vadd.f32 %v1315_v6, %v1314_v60  ;;  %v1278_v31 = vrot.slane %v1277_v23, 2  ;;  %v1152_v9 = vrot.slane %v1151_v40, 2  ;;  %10791 = vmatpush3.bf16.msra.mxu1 %v11912_v27  ;;  %10728 = vmatprep.subr.bf16.mxu0 %v11913_v53 }
 0x4dc   :  { %v1165_v16 = vrot.slane %v1164_v15, 2  ;;  %v1304_v36 = vrot.slane %v1303_v11, 2  ;;  %10792 = vmatprep.subr.bf16.mxu1 %v11914_v35 }
 0x4dd   :  { %v1127_v43 = vadd.f32 %v1126_v32, %v1125_v14  ;;  %v1317_v46 = vrot.slane %v1316_v12, 2  ;;  %v1279_v52 = vadd.f32 %v1278_v31, %v1277_v23  ;;  %v1153_v17 = vadd.f32 %v1152_v9, %v1151_v40  ;;  %v1349_v14 = vld [vmem:[%s19138_s4] sm:$0x1] }
 0x4de   :  { %v1166_v42 = vadd.f32 %v1165_v16, %v1164_v15  ;;  %v1305_v47 = vadd.f32 %v1304_v36, %v1303_v11  ;;  %10729 = vmatpush3.bf16.msra.mxu0 %v11915_v57  ;;  %v19469_v15 = vld [vmem:[#allocation4_spill] sm:$0xff]  ;;  %v19470_v11 = vld [vmem:[#allocation69_spill] sm:$0xff] }
 0x4df   :  { %v1128_v51 = vrot.slane %v1127_v43, 1  ;;  %v1318_v44 = vadd.f32 %v1317_v46, %v1316_v12  ;;  %v1280_v39 = vrot.slane %v1279_v52, 1  ;;  %v1154_v0 = vrot.slane %v1153_v17, 1  ;;  %10793 = vmatpush3.bf16.msra.mxu1 %v11916_v54  ;;  %10730 = vmatprep.subr.bf16.mxu0 %v11917_v13  ;;  %v11921_v31 = vld [vmem:[%s19137_s6 + $0x160] sm:$0xff]  }
 0x4e0   :  { %v1167_v55 = vrot.slane %v1166_v42, 1  ;;  %v1306_v18 = vrot.slane %v1305_v47, 1  ;;  %10794 = vmatprep.subr.bf16.mxu1 %v11918_v61  ;;  %v11922_v16 = vld [vmem:[%s19137_s6 + $0x1e0] sm:$0xff]   ;;  %v19471_v46 = vlaneseq }
 0x4e1   :  { %v1129_v37 = vadd.f32 %v1128_v51, %v1127_v43  ;;  %v1319_v26 = vrot.slane %v1318_v44, 1  ;;  %v1281_v7 = vadd.f32 %v1280_v39, %v1279_v52  ;;  %v1155_v1 = vadd.f32 %v1154_v0, %v1153_v17  ;;  %v11923_v9 = vld [vmem:[%s19137_s6 + $0x120] sm:$0xff]   ;;  %v13286_v17 = vld [vmem:[%s19137_s6 + $0x1e8] sm:$0xff]   ;;  %v11929_v39 = vld [vmem:[%s19137_s6 + $0x170] sm:$0xff]  }
 0x4e2   :  { %v1168_v33 = vadd.f32 %v1167_v55, %v1166_v42  ;;  %v1307_v29 = vadd.f32 %v1306_v18, %v1305_v47  ;;  %10731 = vmatpush3.bf16.msra.mxu0 %v11919_v2  ;;  %v11924_v36 = vld [vmem:[%s19137_s6 + $0x1a0] sm:$0xff]   ;;  %vm13274_vm9 = vcmp.lt.s32.totalorder %v19471_v46, 512  ;;  %v13281_v42 = vld [vmem:[%s19137_s6 + $0x168] sm:$0xff]   ;;  %v12215_v47 = vmov 0.0   ;;  %v11930_v55 = vld [vmem:[%s19137_s6 + $0x1f0] sm:$0xff]  }
 0x4e3   :  { %v1320_v59 = vadd.f32 %v1319_v26, %v1318_v44  ;;  %v1321_v45 = vadd.f32 %v1281_v7, %v1129_v37  ;;  %10795 = vmatpush3.bf16.msra.mxu1 %v11920_v48  ;;  %10732 = vmatprep.subr.bf16.mxu0 %v11921_v31  ;;  %1375 = vst [vmem:[#allocation3 + $0x8] sm:$0xff] %v12215_v47  ;;  %1379 = vst [vmem:[#allocation3 + $0x28] sm:$0x3] %v12215_v47  ;;  %v11927_v51 = vld [vmem:[%s19137_s6 + $0x128] sm:$0xff]   ;;  %v11931_v0 = vld [vmem:[%s19137_s6 + $0x130] sm:$0xff]  }
 0x4e4   :  { %v1323_v38 = vadd.f32 %v1307_v29, %v1155_v1  ;;  %10796 = vmatprep.subr.bf16.mxu1 %v11922_v16  ;;  %1383 = vst [vmem:[#allocation3 + $0x48] sm:$0xff] %v12215_v47  ;;  %1387 = vst [vmem:[#allocation3 + $0x68] sm:$0x3] %v12215_v47  ;;  %v11928_v44 = vld [vmem:[%s19137_s6 + $0x1a8] sm:$0xff]   ;;  %v11932_v18 = vld [vmem:[%s19137_s6 + $0x1b0] sm:$0xff]  }
 0x4e5   :  { %v1324_v28 = vadd.f32 %v1320_v59, %v1168_v33  ;;  %1326 = vrot.lane.b32.xlu0 %v1321_v45, %s12214_s3  ;;  %1374 = vst [vmem:[#allocation3] sm:$0xff] %v12215_v47  ;;  %1376 = vst [vmem:[#allocation3 + $0x10] sm:$0xff] %v12215_v47  ;;  %v11933_v33 = vld [vmem:[%s19137_s6 + $0x178] sm:$0xff]   ;;  %v11938_v31 = vld [vmem:[%s19137_s6 + $0xc0] sm:$0xff]  }
 0x4e6   :  { %10733 = vmatpush3.bf16.msra.mxu0 %v11923_v9  ;;  %1377 = vst [vmem:[#allocation3 + $0x18] sm:$0xff] %v12215_v47  ;;  %1378 = vst [vmem:[#allocation3 + $0x20] sm:$0x3] %v12215_v47  ;;  %v11934_v1 = vld [vmem:[%s19137_s6 + $0x1f8] sm:$0xff]   ;;  %v11939_v16 = vld [vmem:[%s19137_s6] sm:$0xff]  }
 0x4e7   :  { %1344 = vrot.lane.b32.xlu1 %v1324_v28, %s12214_s3  ;;  %10797 = vmatpush3.bf16.msra.mxu1 %v11924_v36  ;;  %1380 = vst [vmem:[#allocation3 + $0x30] sm:$0x3] %v12215_v47  ;;  %1381 = vst [vmem:[#allocation3 + $0x38] sm:$0x3] %v12215_v47 }
 0x4e8   :  { %1382 = vst [vmem:[#allocation3 + $0x40] sm:$0xff] %v12215_v47  ;;  %1384 = vst [vmem:[#allocation3 + $0x50] sm:$0xff] %v12215_v47  ;;  %10734 = vmatprep.subr.bf16.mxu0 %v13281_v42  ;;  %10798 = vmatprep.subr.bf16.mxu1 %v13286_v17  ;;  %v11941_v42 = vld [vmem:[%s19137_s6 + $0x48] sm:$0xff]  }
 0x4e9   :  { %1338 = vrot.lane.b32.xlu0 %v1323_v38, %s12214_s3  ;;  %1385 = vst [vmem:[#allocation3 + $0x58] sm:$0xff] %v12215_v47  ;;  %1386 = vst [vmem:[#allocation3 + $0x60] sm:$0x3] %v12215_v47  ;;  %v11942_v17 = vld [vmem:[%s19137_s6 + $0xc8] sm:$0xff]  }
 0x4ea   :  { %1388 = vst [vmem:[#allocation3 + $0x70] sm:$0x3] %v12215_v47  ;;  %1389 = vst [vmem:[#allocation3 + $0x78] sm:$0x3] %v12215_v47  ;;  %10735 = vmatpush3.bf16.msra.mxu0 %v11927_v51  ;;  %v2253_v37 = vld [vmem:[#allocation3 + $0x8] sm:$0xfe] }
 0x4eb   :  { %1391 = vst [vmem:[#allocation3 + $0x480] sm:$0xff] %v12215_v47  ;;  %1392 = vst [vmem:[#allocation3 + $0x488] sm:$0xff] %v12215_v47  ;;  %10799 = vmatpush3.bf16.msra.mxu1 %v11928_v44  ;;  %10736 = vmatprep.subr.bf16.mxu0 %v11929_v39  ;;  %v2257_v26 = vld [vmem:[#allocation3 + $0x28] sm:$0x1]  ;;  %v2261_v7 = vld [vmem:[#allocation3 + $0x48] sm:$0xfe] }
 0x4ec   :  { %1393 = vst [vmem:[#allocation3 + $0x490] sm:$0xff] %v12215_v47  ;;  %1394 = vst [vmem:[#allocation3 + $0x498] sm:$0xff] %v12215_v47  ;;  %10800 = vmatprep.subr.bf16.mxu1 %v11930_v55  ;;  %v2265_v29 = vld [vmem:[#allocation3 + $0x68] sm:$0x1]  ;;  %v2512_v59 = vrot.slane %v2253_v37, 1  ;;  %v2524_v10 = vrot.slane %v2261_v7, 1 }
 0x4ed   :  { %1395 = vst [vmem:[#allocation3 + $0x4a0] sm:$0x3] %v12215_v47  ;;  %1396 = vst [vmem:[#allocation3 + $0x4a8] sm:$0x3] %v12215_v47  ;;  %v2525_v19 = vrot.slane %v2265_v29, 1  ;;  %v11944_v51 = vld [vmem:[%s19137_s6 + $0x88] sm:$0xff]  }
 0x4ee   :  { %1397 = vst [vmem:[#allocation3 + $0x4b0] sm:$0x3] %v12215_v47  ;;  %1398 = vst [vmem:[#allocation3 + $0x4b8] sm:$0x3] %v12215_v47  ;;  %10737 = vmatpush3.bf16.msra.mxu0 %v11931_v0  ;;  %v2255_v24 = vld [vmem:[#allocation3 + $0x18] sm:$0xfe] }
 0x4ef   :  { %1399 = vst [vmem:[#allocation3 + $0x4c0] sm:$0xff] %v12215_v47  ;;  %1400 = vst [vmem:[#allocation3 + $0x4c8] sm:$0xff] %v12215_v47  ;;  %10801 = vmatpush3.bf16.msra.mxu1 %v11932_v18  ;;  %10738 = vmatprep.subr.bf16.mxu0 %v11933_v33  ;;  %v2259_v34 = vld [vmem:[#allocation3 + $0x38] sm:$0x1]  ;;  %v2526_v58 = vsel %vm2508_vm10, %v2524_v10, %v2525_v19  ;;  %v2518_v53 = vrot.slane %v2255_v24, 1  ;;  %v11945_v44 = vld [vmem:[%s19137_s6 + $0x50] sm:$0xff]  }
 0x4f0   :  { %1401 = vst [vmem:[#allocation3 + $0x4d0] sm:$0xff] %v12215_v47  ;;  %1402 = vst [vmem:[#allocation3 + $0x4d8] sm:$0xff] %v12215_v47  ;;  %10802 = vmatprep.subr.bf16.mxu1 %v11934_v1  ;;  %v2263_v22 = vld [vmem:[#allocation3 + $0x58] sm:$0xfe]  ;;  %v2519_v35 = vrot.slane %v2259_v34, 1  ;;  %v11946_v39 = vld [vmem:[%s19137_s6 + $0xd0] sm:$0xff]  }
 0x4f1   :  { %1403 = vst [vmem:[#allocation3 + $0x4e0] sm:$0x3] %v12215_v47  ;;  %1404 = vst [vmem:[#allocation3 + $0x4e8] sm:$0x3] %v12215_v47  ;;  %v2267_v27 = vld [vmem:[#allocation3 + $0x78] sm:$0x1] }
 0x4f2   :  { %1405 = vst [vmem:[#allocation3 + $0x4f0] sm:$0x3] %v12215_v47  ;;  %1406 = vst [vmem:[#allocation3 + $0x4f8] sm:$0x3] %v12215_v47  ;;  %v2530_v57 = vrot.slane %v2263_v22, 1  ;;  %v2531_v13 = vrot.slane %v2267_v27, 1  ;;  %v2520_v48 = vsel %vm2508_vm10, %v2518_v53, %v2519_v35 }
 0x4f3   :  { %1412 = vst.msk [vmem:[#allocation3 + $0x80] ss:$8 sm:$0xf] %vm13274_vm9, %v12215_v47  ;;  %1415 = vst.msk [vmem:[#allocation3 + $0xc0] ss:$8 sm:$0xf] %vm13274_vm9, %v12215_v47 }
 0x4f4   :  { %1418 = vst.msk [vmem:[#allocation3 + $0x100] ss:$8 sm:$0xf] %vm13274_vm9, %v12215_v47  ;;  %1421 = vst.msk [vmem:[#allocation3 + $0x140] ss:$8 sm:$0xf] %vm13274_vm9, %v12215_v47 }
 0x4f5   :  { %1424 = vst.msk [vmem:[#allocation3 + $0x180] ss:$8 sm:$0xf] %vm13274_vm9, %v12215_v47  ;;  %1427 = vst.msk [vmem:[#allocation3 + $0x1c0] ss:$8 sm:$0xf] %vm13274_vm9, %v12215_v47 }
 0x4f6   :  { %1430 = vst.msk [vmem:[#allocation3 + $0x200] ss:$8 sm:$0xf] %vm13274_vm9, %v12215_v47  ;;  %1433 = vst.msk [vmem:[#allocation3 + $0x240] ss:$8 sm:$0xf] %vm13274_vm9, %v12215_v47 }
 0x4f7   :  { %1436 = vst.msk [vmem:[#allocation3 + $0x280] ss:$8 sm:$0xf] %vm13274_vm9, %v12215_v47  ;;  %1439 = vst.msk [vmem:[#allocation3 + $0x2c0] ss:$8 sm:$0xf] %vm13274_vm9, %v12215_v47 }
 0x4f8   :  { %1442 = vst.msk [vmem:[#allocation3 + $0x300] ss:$8 sm:$0xf] %vm13274_vm9, %v12215_v47  ;;  %1445 = vst.msk [vmem:[#allocation3 + $0x340] ss:$8 sm:$0xf] %vm13274_vm9, %v12215_v47 }
 0x4f9   :  { %1448 = vst.msk [vmem:[#allocation3 + $0x380] ss:$8 sm:$0xf] %vm13274_vm9, %v12215_v47  ;;  %1451 = vst.msk [vmem:[#allocation3 + $0x3c0] ss:$8 sm:$0xf] %vm13274_vm9, %v12215_v47 }
 0x4fa   :  { %1454 = vst.msk [vmem:[#allocation3 + $0x400] ss:$8 sm:$0xf] %vm13274_vm9, %v12215_v47  ;;  %1457 = vst.msk [vmem:[#allocation3 + $0x440] ss:$8 sm:$0xf] %vm13274_vm9, %v12215_v47 }
 0x4fb   :  { %1460 = vst.msk [vmem:[#allocation3 + $0xa1] ss:$8 sm:$0xf] %vm13274_vm9, %v12215_v47  ;;  %1463 = vst.msk [vmem:[#allocation3 + $0xe1] ss:$8 sm:$0xf] %vm13274_vm9, %v12215_v47 }
 0x4fc   :  { %1466 = vst.msk [vmem:[#allocation3 + $0x121] ss:$8 sm:$0xf] %vm13274_vm9, %v12215_v47  ;;  %1469 = vst.msk [vmem:[#allocation3 + $0x161] ss:$8 sm:$0xf] %vm13274_vm9, %v12215_v47 }
 0x4fd   :  { %1472 = vst.msk [vmem:[#allocation3 + $0x1a1] ss:$8 sm:$0xf] %vm13274_vm9, %v12215_v47  ;;  %1475 = vst.msk [vmem:[#allocation3 + $0x1e1] ss:$8 sm:$0xf] %vm13274_vm9, %v12215_v47 }
 0x4fe   :  { %1478 = vst.msk [vmem:[#allocation3 + $0x221] ss:$8 sm:$0xf] %vm13274_vm9, %v12215_v47  ;;  %1481 = vst.msk [vmem:[#allocation3 + $0x261] ss:$8 sm:$0xf] %vm13274_vm9, %v12215_v47 }
 0x4ff   :  { %1484 = vst.msk [vmem:[#allocation3 + $0x2a1] ss:$8 sm:$0xf] %vm13274_vm9, %v12215_v47  ;;  %1487 = vst.msk [vmem:[#allocation3 + $0x2e1] ss:$8 sm:$0xf] %vm13274_vm9, %v12215_v47 }
 0x500   :  { %1490 = vst.msk [vmem:[#allocation3 + $0x321] ss:$8 sm:$0xf] %vm13274_vm9, %v12215_v47  ;;  %1493 = vst.msk [vmem:[#allocation3 + $0x361] ss:$8 sm:$0xf] %vm13274_vm9, %v12215_v47 }
 0x501   :  { %1496 = vst.msk [vmem:[#allocation3 + $0x3a1] ss:$8 sm:$0xf] %vm13274_vm9, %v12215_v47  ;;  %1499 = vst.msk [vmem:[#allocation3 + $0x3e1] ss:$8 sm:$0xf] %vm13274_vm9, %v12215_v47 }
 0x502   :  { %1502 = vst.msk [vmem:[#allocation3 + $0x421] ss:$8 sm:$0xf] %vm13274_vm9, %v12215_v47  ;;  %1505 = vst.msk [vmem:[#allocation3 + $0x461] ss:$8 sm:$0xf] %vm13274_vm9, %v12215_v47 }
 0x503   :  { %v2252_v61 = vld [vmem:[#allocation3] sm:$0xfe]  ;;  %v2256_v2 = vld [vmem:[#allocation3 + $0x20] sm:$0x1]  ;;  %v11943_v47 = vld [vmem:[%s19137_s6 + $0x8] sm:$0xff]  }
 0x504   :  { %v11947_v55 = vld [vmem:[%s19137_s6 + $0x10] sm:$0xff]   ;;  %v11949_v18 = vld [vmem:[%s19137_s6 + $0x58] sm:$0xff]   ;;  %v11953_v33 = vld [vmem:[%s19137_s6 + $0x60] sm:$0xff]  }
 0x505   :  { %v11948_v0 = vld [vmem:[%s19137_s6 + $0x90] sm:$0xff]   ;;  %v11950_v37 = vld [vmem:[%s19137_s6 + $0xd8] sm:$0xff]   ;;  %v11954_v1 = vld [vmem:[%s19137_s6 + $0xe0] sm:$0xff]  }
 0x506   :  { %v11952_v7 = vld [vmem:[%s19137_s6 + $0x98] sm:$0xff]   ;;  %v11955_v29 = vld [vmem:[%s19137_s6 + $0x20] sm:$0xff]   ;;  %v11960_v10 = vld [vmem:[%s19137_s6 + $0xa8] sm:$0xff]  }
 0x507   :  { %v11961_v19 = vld [vmem:[%s19137_s6 + $0x70] sm:$0xff]   ;;  %v11966_v27 = vld [vmem:[%s19137_s6 + $0xf8] sm:$0xff]  }
 0x508   :  { %v11963_v24 = vld [vmem:[%s19137_s6 + $0x30] sm:$0xff]  }
 0x509   :  { %v11964_v34 = vld [vmem:[%s19137_s6 + $0xb0] sm:$0xff]  }
 0x548   :  { %v1333_v56 = vpop.permute.xlu1 %1332 }
 0x557   :  { %v1327_v5 = vpop.permute.xlu0 %1326 }
 0x558   :  { %v1329_v25 = vadd.f32 %v1327_v5, %v1321_v45  ;;  %v2513_v45 = vrot.slane %v2257_v26, 1  ;;  %v2260_v5 = vld [vmem:[#allocation3 + $0x40] sm:$0xfe]  ;;  %v11951_v26 = vld [vmem:[%s19137_s6 + $0x18] sm:$0xff]  }
 0x559   :  { %v1345_v50 = vpop.permute.xlu1 %1344 }
 0x55a   :  { %v1330_v21 = vadd.f32 %v1329_v25, %v13177_v4  ;;  %v1353_v4 = vld [vmem:[%s19139_s5] sm:$0x1]  ;;  %v2514_v20 = vsel %vm2508_vm10, %v2512_v59, %v2513_v45  ;;  %v11957_v45 = vld [vmem:[%s19137_s6 + $0x68] sm:$0xff]  }
 0x55b   :  { %v1339_v30 = vpop.permute.xlu0 %1338  ;;  %v2766_v54 = vpack.c.bf16 %v2526_v58, %v2514_v20  ;;  %v2264_v25 = vld [vmem:[#allocation3 + $0x60] sm:$0x1]  ;;  %v11962_v20 = vld [vmem:[%s19137_s6 + $0xf0] sm:$0xff]   ;;  %v11965_v58 = vld [vmem:[%s19137_s6 + $0x78] sm:$0xff]  }
 0x55c   :  { %v1335_v41 = vadd.f32 %v1333_v56, %v1330_v21  ;;  %v2509_v21 = vrot.slane %v2252_v61, 1  ;;  %v2510_v56 = vrot.slane %v2256_v2, 1  ;;  %v11956_v59 = vld [vmem:[%s19137_s6 + $0xa0] sm:$0xff]   ;;  %v19475_v2 = vld [vmem:[#allocation7_spill] sm:$0xff] }
 0x55d   :  { %3086 = vmatprep.mubr.bf16.mxu0 %v2766_v54  ;;  %v11968_v54 = vld [vmem:[%s19137_s6 + $0xb8] sm:$0xff]  }
 0x55e   :  { %v1336_v49 = vadd.f32 %v1335_v41, %v1323_v38  ;;  %v11935_v38 = vld [vmem:[%s19137_s6 + $0x138] sm:$0xff]   ;;  %v2532_v41 = vsel %vm2508_vm10, %v2530_v57, %v2531_v13  ;;  %v19474_v13 = vld [vmem:[#allocation5_spill] sm:$0xff] }
 0x55f   :  { %10739 = vmatpush3.bf16.msra.mxu0 %v11935_v38  ;;  %v11958_v38 = vld [vmem:[%s19137_s6 + $0xe8] sm:$0xff]   ;;  %v11967_v57 = vld [vmem:[%s19137_s6 + $0x38] sm:$0xff]  }
 0x560   :  { %v1341_v8 = vadd.f32 %v1339_v30, %v1336_v49  ;;  %v2521_v49 = vrot.slane %v2260_v5, 1  ;;  %v2522_v30 = vrot.slane %v2264_v25, 1  ;;  %v11970_v5 = vld [vmem:[%s19137_s6 + $0x2c0] sm:$0xff]   ;;  %v19476_v25 = vld [vmem:[#allocation6_spill] sm:$0xff] }
 0x562   :  { %v1342_v60 = vadd.f32 %v1341_v8, %v1324_v28  ;;  %v11936_v28 = vld [vmem:[%s19137_s6 + $0x1b8] sm:$0xff]   ;;  %v2254_v8 = vld [vmem:[#allocation3 + $0x10] sm:$0xfe] }
 0x563   :  { %10803 = vmatpush3.bf16.msra.mxu1 %v11936_v28  ;;  %v11959_v28 = vld [vmem:[%s19137_s6 + $0x28] sm:$0xff]  }
 0x564   :  { %v1347_v63 = vadd.f32 %v1345_v50, %v1342_v60  ;;  %v2258_v60 = vld [vmem:[#allocation3 + $0x30] sm:$0x1]  ;;  %v2768_v50 = vpack.c.bf16 %v2532_v41, %v2520_v48  ;;  %10916 = vmatprep.subr.bf16.mxu1 %v11938_v31  ;;  %v11969_v48 = vld [vmem:[%s19137_s6 + $0x240] sm:$0xff]  }
 0x565   :  { %v19485_v31 = vld [vmem:[#allocation16_spill] sm:$0xff] }
 0x566   :  { %v1348_v3 = vmul.f32 0.0009765625, %v1347_v63  ;;  %v2511_v63 = vsel %vm2508_vm10, %v2509_v21, %v2510_v56  ;;  %3183 = vmatprep.mubr.bf16.mxu1 %v2768_v50  ;;  %v19477_v56 = vld [vmem:[#allocation8_spill] sm:$0xff]  ;;  %v19480_v50 = vld [vmem:[#allocation10_spill] sm:$0xff] }
 0x568   :  { %v1350_v62 = vadd.f32 1e-05, %v1348_v3  ;;  %v2262_v3 = vld [vmem:[#allocation3 + $0x50] sm:$0xfe] }
 0x56a   :  { %12195 = vrsqrt.f32 %v1350_v62  ;;  %v2266_v62 = vld [vmem:[#allocation3 + $0x70] sm:$0x1] }
 0x574   :  { %v12196_v6 = vpop.eup %12195 }
 0x575   :  { %v13249_v23 = vmul.f32 %v12196_v6, %v1349_v14  ;;  %v2515_v14 = vrot.slane %v2254_v8, 1  ;;  %v2516_v6 = vrot.slane %v2258_v60, 1  ;;  %v19479_v8 = vld [vmem:[#allocation11_spill] sm:$0xff] }
 0x577   :  { %v1360_v40 = vrot.slane %v13249_v23, %v19469_v15  ;;  %v1354_v32 = vmul.f32 %v13249_v23, %v19470_v11  ;;  %v2528_v11 = vrot.slane %v2266_v62, 1  ;;  %v2517_v36 = vsel %vm2508_vm10, %v2515_v14, %v2516_v6  ;;  %v19482_v14 = vld [vmem:[#allocation13_spill] sm:$0xff] }
 0x579   :  { %1361 = vrot.lane.b32.xlu0 %v1360_v40, %s12214_s3  ;;  %v13256_v12 = vsub.f32 %v1353_v4, %v1354_v32  ;;  %v2523_v4 = vsel %vm2508_vm10, %v2521_v49, %v2522_v30  ;;  %v2527_v40 = vrot.slane %v2262_v3, 1  ;;  %v11937_v32 = vld [vmem:[%s19137_s6 + $0x40] sm:$0xff]   ;;  %v19478_v49 = vld [vmem:[#allocation9_spill] sm:$0xff] }
 0x57a   :  { %v2765_v9 = vpack.c.bf16 %v2523_v4, %v2511_v63  ;;  %10852 = vmatprep.subr.bf16.mxu0 %v11937_v32  ;;  %v19481_v3 = vld [vmem:[#allocation12_spill] sm:$0xff]  ;;  %v19483_v4 = vld [vmem:[#allocation15_spill] sm:$0xff] }
 0x57b   :  { %v1369_v43 = vrot.slane %v13256_v12, %v19469_v15  ;;  %v2529_v46 = vsel %vm2508_vm10, %v2527_v40, %v2528_v11  ;;  %v19484_v11 = vld [vmem:[#allocation14_spill] sm:$0xff] }
 0x57c   :  { %3087 = vmatmul.mubr.bf16.vlgmr.msra.gmra.mrb[32].mxu0 %v2765_v9  ;;  %v2767_v52 = vpack.c.bf16 %v2529_v46, %v2517_v36  ;;  %v19486_v9 = vld [vmem:[#allocation17_spill] sm:$0xff] }
 0x57d   :  { %1370 = vrot.lane.b32.xlu1 %v1369_v43, %s12214_s3  ;;  %v11940_v43 = vld [vmem:[%s19137_s6 + $0x80] sm:$0xff]   ;;  %10853 = vmatpush3.bf16.msra.mxu0 %v11939_v16 }
 0x57e   :  { %3184 = vmatmul.mubr.bf16.vlgmr.msra.gmra.mrb[32].mxu1 %v2767_v52  ;;  %10854 = vmatprep.subr.bf16.mxu0 %v11941_v42  ;;  %v19488_v52 = vld [vmem:[#allocation18_spill] sm:$0xff] }
 0x57f   :  { %10917 = vmatpush3.bf16.msra.mxu1 %v11940_v43  ;;  %v19487_v43 = vld [vmem:[#allocation19_spill] sm:$0xff] }
 0x580   :  { %10918 = vmatprep.subr.bf16.mxu1 %v11942_v17  ;;  %v19489_v17 = vld [vmem:[#allocation20_spill] sm:$0xff] }
 0x581   :  { %10855 = vmatpush3.bf16.msra.mxu0 %v11943_v47 }
 0x582   :  { %10856 = vmatprep.subr.bf16.mxu0 %v11945_v44 }
 0x583   :  { %10919 = vmatpush3.bf16.msra.mxu1 %v11944_v51  ;;  %v19490_v51 = vld [vmem:[#allocation21_spill] sm:$0xff] }
 0x584   :  { %10920 = vmatprep.subr.bf16.mxu1 %v11946_v39  ;;  %v19491_v39 = vld [vmem:[#allocation23_spill] sm:$0xff] }
 0x585   :  { %10857 = vmatpush3.bf16.msra.mxu0 %v11947_v55 }
 0x586   :  { %10858 = vmatprep.subr.bf16.mxu0 %v11949_v18 }
 0x587   :  { %10921 = vmatpush3.bf16.msra.mxu1 %v11948_v0  ;;  %v19492_v0 = vld [vmem:[#allocation22_spill] sm:$0xff] }
 0x588   :  { %10922 = vmatprep.subr.bf16.mxu1 %v11950_v37  ;;  %v19493_v37 = vld [vmem:[#allocation24_spill] sm:$0xff] }
 0x589   :  { %10859 = vmatpush3.bf16.msra.mxu0 %v11951_v26 }
 0x58a   :  { %10860 = vmatprep.subr.bf16.mxu0 %v11953_v33 }
 0x58b   :  { %10923 = vmatpush3.bf16.msra.mxu1 %v11952_v7  ;;  %v19494_v7 = vld [vmem:[#allocation25_spill] sm:$0xff] }
 0x58c   :  { %10924 = vmatprep.subr.bf16.mxu1 %v11954_v1  ;;  %v19495_v1 = vld [vmem:[#allocation27_spill] sm:$0xff] }
 0x58d   :  { %10861 = vmatpush3.bf16.msra.mxu0 %v11955_v29 }
 0x58e   :  { %10862 = vmatprep.subr.bf16.mxu0 %v11957_v45 }
 0x58f   :  { %10925 = vmatpush3.bf16.msra.mxu1 %v11956_v59  ;;  %v19496_v59 = vld [vmem:[#allocation26_spill] sm:$0xff] }
 0x590   :  { %10926 = vmatprep.subr.bf16.mxu1 %v11958_v38  ;;  %v19497_v38 = vld [vmem:[#allocation28_spill] sm:$0xff] }
 0x591   :  { %10863 = vmatpush3.bf16.msra.mxu0 %v11959_v28 }
 0x592   :  { %10864 = vmatprep.subr.bf16.mxu0 %v11961_v19 }
 0x593   :  { %10927 = vmatpush3.bf16.msra.mxu1 %v11960_v10  ;;  %v19498_v10 = vld [vmem:[#allocation29_spill] sm:$0xff] }
 0x594   :  { %10928 = vmatprep.subr.bf16.mxu1 %v11962_v20  ;;  %v19499_v20 = vld [vmem:[#allocation31_spill] sm:$0xff] }
 0x595   :  { %10865 = vmatpush3.bf16.msra.mxu0 %v11963_v24 }
 0x596   :  { %10866 = vmatprep.subr.bf16.mxu0 %v11965_v58  ;;  %v19501_v58 = vld [vmem:[#allocation32_spill] sm:$0xff] }
 0x597   :  { %10929 = vmatpush3.bf16.msra.mxu1 %v11964_v34  ;;  %v19500_v34 = vld [vmem:[#allocation30_spill] sm:$0xff] }
 0x598   :  { %10930 = vmatprep.subr.bf16.mxu1 %v11966_v27 }
 0x599   :  { %10867 = vmatpush3.bf16.msra.mxu0 %v11967_v57 }
 0x59a   :  { %10980 = vmatprep.subr.bf16.mxu0 %v11969_v48 }
 0x59b   :  { %10931 = vmatpush3.bf16.msra.mxu1 %v11968_v54  ;;  %v19503_v54 = vld [vmem:[#allocation35_spill] sm:$0xff] }
 0x59c   :  { %11044 = vmatprep.subr.bf16.mxu1 %v11970_v5  ;;  %v19505_v5 = vld [vmem:[#allocation36_spill] sm:$0xff] }
 0x5eb   :  { %v1362_v22 = vpop.permute.xlu0 %1361 }
 0x5ec   :  { %v1364_v53 = vsel %vm1015_vm8, %v13249_v23, %v1362_v22 }
 0x5ed   :  { %v13549_v35 = vrot.slane %v1364_v53, %v19469_v15  ;;  %v19502_v53 = vld [vmem:[#allocation33_spill] sm:$0xff] }
 0x5ef   :  { %v13559_v61 = vmul.f32 %v13549_v35, %v19474_v13  ;;  %v13563_v23 = vmul.f32 %v13549_v35, %v19475_v2  ;;  %v13573_v21 = vmul.f32 %v13549_v35, %v19476_v25  ;;  %v13577_v41 = vmul.f32 %v13549_v35, %v19477_v56  ;;  %v19504_v2 = vld [vmem:[#allocation34_spill] sm:$0xff]  ;;  %v19506_v56 = vld [vmem:[#allocation37_spill] sm:$0xff] }
 0x5f0   :  { %v13581_v30 = vmul.f32 %v13549_v35, %v19478_v49  ;;  %v13585_v60 = vmul.f32 %v13549_v35, %v19479_v8  ;;  %v13589_v63 = vmul.f32 %v13549_v35, %v19480_v50  ;;  %v13593_v62 = vmul.f32 %v13549_v35, %v19481_v3  ;;  %v19507_v8 = vld [vmem:[#allocation39_spill] sm:$0xff]  ;;  %v19508_v3 = vld [vmem:[#allocation38_spill] sm:$0xff] }
 0x5f1   :  { %v13597_v6 = vmul.f32 %v13549_v35, %v19482_v14  ;;  %v13601_v40 = vmul.f32 %v13549_v35, %v19483_v4  ;;  %v13605_v32 = vmul.f32 %v13549_v35, %v19484_v11  ;;  %v13609_v16 = vmul.f32 %v13549_v35, %v19485_v31  ;;  %v19509_v4 = vld [vmem:[#allocation40_spill] sm:$0xff]  ;;  %v19510_v31 = vld [vmem:[#allocation41_spill] sm:$0xff] }
 0x5f2   :  { %v13613_v36 = vmul.f32 %v13549_v35, %v19486_v9  ;;  %v13617_v46 = vmul.f32 %v13549_v35, %v19487_v43  ;;  %v13621_v42 = vmul.f32 %v13549_v35, %v19488_v52  ;;  %v13625_v47 = vmul.f32 %v13549_v35, %v19489_v17  ;;  %v19511_v43 = vld [vmem:[#allocation43_spill] sm:$0xff]  ;;  %v19512_v17 = vld [vmem:[#allocation42_spill] sm:$0xff] }
 0x5f3   :  { %v13629_v44 = vmul.f32 %v13549_v35, %v19490_v51  ;;  %v13633_v55 = vmul.f32 %v13549_v35, %v19491_v39  ;;  %v13637_v18 = vmul.f32 %v13549_v35, %v19492_v0  ;;  %v13641_v26 = vmul.f32 %v13549_v35, %v19493_v37  ;;  %v19513_v39 = vld [vmem:[#allocation44_spill] sm:$0xff]  ;;  %v19514_v37 = vld [vmem:[#allocation45_spill] sm:$0xff] }
 0x5f4   :  { %v13645_v33 = vmul.f32 %v13549_v35, %v19494_v7  ;;  %v13649_v29 = vmul.f32 %v13549_v35, %v19495_v1  ;;  %v13653_v45 = vmul.f32 %v13549_v35, %v19496_v59  ;;  %v13657_v28 = vmul.f32 %v13549_v35, %v19497_v38  ;;  %v19515_v1 = vld [vmem:[#allocation47_spill] sm:$0xff]  ;;  %v19516_v38 = vld [vmem:[#allocation46_spill] sm:$0xff] }
 0x5f5   :  { %v13661_v19 = vmul.f32 %v13549_v35, %v19498_v10  ;;  %v13665_v24 = vmul.f32 %v13549_v35, %v19499_v20  ;;  %v13669_v22 = vmul.f32 %v13549_v35, %v19500_v34  ;;  %v13673_v27 = vmul.f32 %v13549_v35, %v19501_v58  ;;  %v19517_v20 = vld [vmem:[#allocation48_spill] sm:$0xff]  ;;  %v19518_v58 = vld [vmem:[#allocation49_spill] sm:$0xff] }
 0x5f6   :  { %v13677_v57 = vmul.f32 %v13549_v35, %v19502_v53  ;;  %v13681_v13 = vmul.f32 %v13549_v35, %v19503_v54  ;;  %v13685_v48 = vmul.f32 %v13549_v35, %v19504_v2  ;;  %v13689_v25 = vmul.f32 %v13549_v35, %v19505_v5  ;;  %v19519_v54 = vld [vmem:[#allocation51_spill] sm:$0xff]  ;;  %v1371_v5 = vpop.permute.xlu1 %1370 }
 0x5f7   :  { %v13693_v49 = vmul.f32 %v13549_v35, %v19506_v56  ;;  %v13697_v50 = vmul.f32 %v13549_v35, %v19507_v8  ;;  %v13701_v14 = vmul.f32 %v13549_v35, %v19508_v3  ;;  %v13705_v11 = vmul.f32 %v13549_v35, %v19509_v4  ;;  %v19520_v56 = vld [vmem:[#allocation50_spill] sm:$0xff]  ;;  %v19521_v3 = vld [vmem:[#allocation52_spill] sm:$0xff] }
 0x5f8   :  { %v13709_v9 = vmul.f32 %v13549_v35, %v19510_v31  ;;  %v13713_v52 = vmul.f32 %v13549_v35, %v19511_v43  ;;  %v13717_v51 = vmul.f32 %v13549_v35, %v19512_v17  ;;  %v13721_v0 = vmul.f32 %v13549_v35, %v19513_v39  ;;  %v19522_v31 = vld [vmem:[#allocation53_spill] sm:$0xff]  ;;  %v19523_v17 = vld [vmem:[#allocation55_spill] sm:$0xff] }
 0x5f9   :  { %v13725_v7 = vmul.f32 %v13549_v35, %v19514_v37  ;;  %v13729_v59 = vmul.f32 %v13549_v35, %v19515_v1  ;;  %v13733_v10 = vmul.f32 %v13549_v35, %v19516_v38  ;;  %v13737_v34 = vmul.f32 %v13549_v35, %v19517_v20  ;;  %v19525_v37 = vld [vmem:[#allocation54_spill] sm:$0xff]  ;;  %v19527_v38 = vld [vmem:[#allocation56_spill] sm:$0xff] }
 0x5fa   :  { %v13741_v53 = vmul.f32 %v13549_v35, %v19518_v58  ;;  %v13745_v2 = vmul.f32 %v13549_v35, %v19519_v54  ;;  %v13749_v8 = vmul.f32 %v13549_v35, %v19520_v56  ;;  %v13753_v4 = vmul.f32 %v13549_v35, %v19521_v3  ;;  %v19529_v58 = vld [vmem:[#allocation57_spill] sm:$0xff]  ;;  %v19531_v56 = vld [vmem:[#allocation59_spill] sm:$0xff] }
 0x5fb   :  { %v13757_v43 = vmul.f32 %v13549_v35, %v19522_v31  ;;  %v13761_v39 = vmul.f32 %v13549_v35, %v19523_v17  ;;  %v13765_v1 = vmul.f32 %v13549_v35, %v19525_v37  ;;  %v13769_v20 = vmul.f32 %v13549_v35, %v19527_v38  ;;  %v19533_v31 = vld [vmem:[#allocation58_spill] sm:$0xff] }
 0x5fc   :  { %v13773_v54 = vmul.f32 %v13549_v35, %v19529_v58  ;;  %v13777_v3 = vmul.f32 %v13549_v35, %v19531_v56  ;;  %v13781_v17 = vmul.f32 %v13549_v35, %v19533_v31  ;;  %v1373_v58 = vsel %vm1015_vm8, %v13256_v12, %v1371_v5  ;;  %v19540_v56 = vld [vmem:[#allocation62_spill] sm:$0xff]  ;;  %v19542_v31 = vld [vmem:[#allocation64_spill] sm:$0xff]  ;;  %v19544_v12 = vld [vmem:[#allocation67_spill] sm:$0xff] }
 0x5fd   :  { %19524 = vst [vmem:[#allocation70_spill] sm:$0xff] %v13761_v39  ;;  %19526 = vst [vmem:[#allocation71_spill] sm:$0xff] %v13765_v1  ;;  %v19535_v39 = vld [vmem:[#allocation60_spill] sm:$0xff]  ;;  %v19536_v1 = vld [vmem:[#allocation61_spill] sm:$0xff]  ;;  %v13814_v5 = vmul.f32 %v13549_v35, %v19544_v12 }
 0x5fe   :  { %19528 = vst [vmem:[#allocation72_spill] sm:$0xff] %v13769_v20  ;;  %19530 = vst [vmem:[#allocation73_spill] sm:$0xff] %v13773_v54  ;;  %v13785_v37 = vmul.f32 %v13549_v35, %v19535_v39  ;;  %v13789_v38 = vmul.f32 %v13549_v35, %v19536_v1  ;;  %v19538_v54 = vld [vmem:[#allocation63_spill] sm:$0xff]  ;;  %v13806_v39 = vrot.slane %v1373_v58, %v19469_v15  ;;  %v19543_v1 = vld [vmem:[#allocation65_spill] sm:$0xff] }
 0x5ff   :  { %19532 = vst [vmem:[#allocation74_spill] sm:$0xff] %v13777_v3  ;;  %19534 = vst [vmem:[#allocation75_spill] sm:$0xff] %v13781_v17  ;;  %v13795_v20 = vmul.f32 %v13549_v35, %v19538_v54  ;;  %v13799_v3 = vmul.f32 %v13549_v35, %v19540_v56  ;;  %v13803_v17 = vmul.f32 %v13549_v35, %v19542_v31  ;;  %v19545_v54 = vld [vmem:[#allocation66_spill] sm:$0xff]  ;;  %v19546_v56 = vld [vmem:[#allocation68_spill] sm:$0xff] }
 0x600   :  { %19537 = vst [vmem:[#allocation76_spill] sm:$0xff] %v13789_v38  ;;  %v13810_v38 = vmul.f32 %v13549_v35, %v19543_v1  ;;  %v13826_v15 = vadd.f32 %v13806_v39, %v13559_v61  ;;  %v13830_v58 = vadd.f32 %v13806_v39, %v13563_v23  ;;  %v13834_v31 = vadd.f32 %v13806_v39, %v13573_v21 }
 0x601   :  { %19539 = vst [vmem:[#allocation77_spill] sm:$0xff] %v13795_v20  ;;  %19541 = vst [vmem:[#allocation78_spill] sm:$0xff] %v13799_v3  ;;  %v13818_v20 = vmul.f32 %v13549_v35, %v19545_v54  ;;  %v13822_v3 = vmul.f32 %v13549_v35, %v19546_v56  ;;  %v13838_v1 = vadd.f32 %v13806_v39, %v13577_v41 }
 0x602   :  { %v13842_v35 = vadd.f32 %v13806_v39, %v13581_v30  ;;  %v13846_v61 = vadd.f32 %v13806_v39, %v13585_v60  ;;  %v13850_v23 = vadd.f32 %v13806_v39, %v13589_v63  ;;  %v13854_v21 = vadd.f32 %v13806_v39, %v13593_v62 }
 0x603   :  { %v13858_v41 = vadd.f32 %v13806_v39, %v13597_v6  ;;  %v13862_v30 = vadd.f32 %v13806_v39, %v13601_v40  ;;  %v13866_v60 = vadd.f32 %v13806_v39, %v13605_v32  ;;  %v13870_v63 = vadd.f32 %v13806_v39, %v13609_v16 }
 0x604   :  { %v13874_v62 = vadd.f32 %v13806_v39, %v13613_v36  ;;  %v13878_v6 = vadd.f32 %v13806_v39, %v13617_v46  ;;  %v13882_v40 = vadd.f32 %v13806_v39, %v13621_v42  ;;  %v13886_v32 = vadd.f32 %v13806_v39, %v13625_v47  ;;  %v19550_v12 = vld [vmem:[#allocation70_spill] sm:$0xff]  ;;  %v19551_v54 = vld [vmem:[#allocation71_spill] sm:$0xff] }
 0x605   :  { %v13890_v16 = vadd.f32 %v13806_v39, %v13629_v44  ;;  %v13894_v36 = vadd.f32 %v13806_v39, %v13633_v55  ;;  %v13898_v46 = vadd.f32 %v13806_v39, %v13637_v18  ;;  %v13902_v42 = vadd.f32 %v13806_v39, %v13641_v26  ;;  %v19553_v56 = vld [vmem:[#allocation72_spill] sm:$0xff] }
 0x606   :  { %v13906_v47 = vadd.f32 %v13806_v39, %v13645_v33  ;;  %v13910_v44 = vadd.f32 %v13806_v39, %v13649_v29  ;;  %v13914_v55 = vadd.f32 %v13806_v39, %v13653_v45  ;;  %v13918_v18 = vadd.f32 %v13806_v39, %v13657_v28 }
 0x607   :  { %v13922_v26 = vadd.f32 %v13806_v39, %v13661_v19  ;;  %v13926_v33 = vadd.f32 %v13806_v39, %v13665_v24  ;;  %v13930_v29 = vadd.f32 %v13806_v39, %v13669_v22  ;;  %v13934_v45 = vadd.f32 %v13806_v39, %v13673_v27 }
 0x608   :  { %v13938_v28 = vadd.f32 %v13806_v39, %v13677_v57  ;;  %v13942_v19 = vadd.f32 %v13806_v39, %v13681_v13  ;;  %v13946_v24 = vadd.f32 %v13806_v39, %v13685_v48  ;;  %v13950_v22 = vadd.f32 %v13806_v39, %v13689_v25 }
 0x609   :  { %v13954_v27 = vadd.f32 %v13693_v49, %v13806_v39  ;;  %v13958_v57 = vadd.f32 %v13697_v50, %v13806_v39  ;;  %v13962_v13 = vadd.f32 %v13701_v14, %v13806_v39  ;;  %v13966_v48 = vadd.f32 %v13705_v11, %v13806_v39 }
 0x60a   :  { %v13970_v25 = vadd.f32 %v13709_v9, %v13806_v39  ;;  %v13974_v49 = vadd.f32 %v13713_v52, %v13806_v39  ;;  %v13978_v50 = vadd.f32 %v13717_v51, %v13806_v39  ;;  %v13982_v14 = vadd.f32 %v13721_v0, %v13806_v39 }
 0x60b   :  { %v13986_v11 = vadd.f32 %v13725_v7, %v13806_v39  ;;  %v13990_v9 = vadd.f32 %v13729_v59, %v13806_v39  ;;  %v13994_v52 = vadd.f32 %v13733_v10, %v13806_v39  ;;  %v13998_v51 = vadd.f32 %v13737_v34, %v13806_v39 }
 0x60c   :  { %v14002_v0 = vadd.f32 %v13741_v53, %v13806_v39  ;;  %v14006_v7 = vadd.f32 %v13745_v2, %v13806_v39  ;;  %v14010_v59 = vadd.f32 %v13749_v8, %v13806_v39  ;;  %v14014_v10 = vadd.f32 %v13753_v4, %v13806_v39 }
 0x60d   :  { %v14018_v34 = vadd.f32 %v13757_v43, %v13806_v39  ;;  %v14022_v53 = vadd.f32 %v19550_v12, %v13806_v39  ;;  %v14026_v2 = vadd.f32 %v19551_v54, %v13806_v39  ;;  %v14030_v8 = vadd.f32 %v19553_v56, %v13806_v39 }
 0x60e   :  { %19547 = vst [vmem:[#allocation79_spill] sm:$0xff] %v14010_v59  ;;  %19548 = vst [vmem:[#allocation80_spill] sm:$0xff] %v14014_v10  ;;  %v19555_v59 = vld [vmem:[#allocation73_spill] sm:$0xff]  ;;  %v19557_v10 = vld [vmem:[#allocation74_spill] sm:$0xff]  ;;  %v14046_v54 = vadd.f32 %v13785_v37, %v13806_v39  ;;  %v14066_v37 = vadd.f32 %v13810_v38, %v13806_v39  ;;  %v1614_v38 = vmax.f32 %v13838_v1, 0.0  ;;  %v1625_v1 = vmax.f32 %v13882_v40, 0.0 }
 0x60f   :  { %19549 = vst [vmem:[#allocation81_spill] sm:$0xff] %v14018_v34  ;;  %19552 = vst [vmem:[#allocation82_spill] sm:$0xff] %v14026_v2  ;;  %v14034_v4 = vadd.f32 %v19555_v59, %v13806_v39  ;;  %v14038_v43 = vadd.f32 %v19557_v10, %v13806_v39  ;;  %v19558_v34 = vld [vmem:[#allocation75_spill] sm:$0xff]  ;;  %v19561_v2 = vld [vmem:[#allocation76_spill] sm:$0xff] }
 0x610   :  { %19554 = vst [vmem:[#allocation83_spill] sm:$0xff] %v14030_v8  ;;  %v14042_v12 = vadd.f32 %v19558_v34, %v13806_v39  ;;  %19560 = vst [vmem:[#allocation86_spill] sm:$0xff] %v14046_v54  ;;  %v14050_v56 = vadd.f32 %v19561_v2, %v13806_v39  ;;  %v19563_v8 = vld [vmem:[#allocation77_spill] sm:$0xff]  ;;  %v14062_v34 = vadd.f32 %v13803_v17, %v13806_v39  ;;  %v1612_v17 = vmax.f32 %v13830_v58, 0.0 }
 0x611   :  { %19556 = vst [vmem:[#allocation84_spill] sm:$0xff] %v14034_v4  ;;  %v14054_v59 = vadd.f32 %v19563_v8, %v13806_v39  ;;  %v19565_v4 = vld [vmem:[#allocation78_spill] sm:$0xff]  ;;  %19568 = vst [vmem:[#allocation90_spill] sm:$0xff] %v14066_v37  ;;  %v14070_v2 = vadd.f32 %v13814_v5, %v13806_v39  ;;  %v14074_v8 = vadd.f32 %v13818_v20, %v13806_v39  ;;  %v1615_v37 = vmax.f32 %v13842_v35, 0.0 }
 0x612   :  { %19559 = vst [vmem:[#allocation85_spill] sm:$0xff] %v14042_v12  ;;  %19562 = vst [vmem:[#allocation87_spill] sm:$0xff] %v14050_v56  ;;  %v14058_v10 = vadd.f32 %v19565_v4, %v13806_v39  ;;  %v14078_v4 = vadd.f32 %v13822_v3, %v13806_v39  ;;  %v1616_v5 = vmax.f32 %v13846_v61, 0.0  ;;  %v1618_v20 = vmax.f32 %v13854_v21, 0.0 }
 0x613   :  { %19564 = vst [vmem:[#allocation88_spill] sm:$0xff] %v14054_v59  ;;  %19567 = vst [vmem:[#allocation91_spill] sm:$0xff] %v14062_v34  ;;  %v1613_v34 = vmax.f32 %v13834_v31, 0.0  ;;  %v1620_v3 = vmax.f32 %v13862_v30, 0.0  ;;  %v1621_v39 = vmax.f32 %v13866_v60, 0.0  ;;  %v1623_v58 = vmax.f32 %v13874_v62, 0.0 }
 0x614   :  { %19566 = vst [vmem:[#allocation89_spill] sm:$0xff] %v14058_v10  ;;  %19569 = vst [vmem:[#allocation4_spill] sm:$0xff] %v14070_v2  ;;  %v1611_v10 = vmax.f32 %v13826_v15, 0.0  ;;  %v1617_v2 = vmax.f32 %v13850_v23, 0.0  ;;  %v1622_v15 = vmax.f32 %v13870_v63, 0.0  ;;  %v1624_v31 = vmax.f32 %v13878_v6, 0.0 }
 0x615   :  { %19570 = vst [vmem:[#allocation69_spill] sm:$0xff] %v14074_v8  ;;  %19571 = vst [vmem:[#allocation5_spill] sm:$0xff] %v14078_v4  ;;  %v1619_v8 = vmax.f32 %v13858_v41, 0.0  ;;  %v1626_v35 = vmax.f32 %v13886_v32, 0.0  ;;  %v1627_v61 = vmax.f32 %v13890_v16, 0.0  ;;  %v1628_v23 = vmax.f32 %v13894_v36, 0.0 }
 0x616   :  { %v1629_v21 = vmax.f32 %v13898_v46, 0.0  ;;  %v1630_v41 = vmax.f32 %v13902_v42, 0.0  ;;  %v1631_v30 = vmax.f32 %v13906_v47, 0.0  ;;  %v1632_v60 = vmax.f32 %v13910_v44, 0.0 }
 0x617   :  { %v1633_v63 = vmax.f32 %v13914_v55, 0.0  ;;  %v1634_v62 = vmax.f32 %v13918_v18, 0.0  ;;  %v1639_v36 = vmax.f32 %v13938_v28, 0.0  ;;  %v1640_v46 = vmax.f32 %v13942_v19, 0.0 }
 0x618   :  { %v1641_v42 = vmax.f32 %v13946_v24, 0.0  ;;  %v1642_v47 = vmax.f32 %v13950_v22, 0.0  ;;  %v1675_v44 = vrot.slane %v1611_v10, 7  ;;  %v1676_v55 = vrot.slane %v1612_v17, 7 }
 0x619   :  { %v1677_v4 = vrot.slane %v1613_v34, 7  ;;  %v1678_v18 = vrot.slane %v1614_v38, 7  ;;  %v1679_v59 = vrot.slane %v1615_v37, 7  ;;  %v1680_v6 = vrot.slane %v1616_v5, 7 }
 0x61a   :  { %v1681_v56 = vrot.slane %v1617_v2, 7  ;;  %v1682_v40 = vrot.slane %v1618_v20, 7  ;;  %v1683_v54 = vrot.slane %v1619_v8, 7  ;;  %v1684_v32 = vrot.slane %v1620_v3, 7  ;;  %1739 = vst [vmem:[#allocation3 + $0x80] sm:$0xfe] %v1675_v44 }
 0x61b   :  { %v1685_v12 = vrot.slane %v1621_v39, 7  ;;  %v1686_v16 = vrot.slane %v1622_v15, 7  ;;  %1740 = vst [vmem:[#allocation3 + $0x88] sm:$0xfe] %v1676_v55  ;;  %1741 = vst [vmem:[#allocation3 + $0x90] sm:$0xfe] %v1677_v4 }
 0x61c   :  { %1742 = vst [vmem:[#allocation3 + $0x98] sm:$0xfe] %v1678_v18  ;;  %1743 = vst [vmem:[#allocation3 + $0xa0] sm:$0x1] %v1675_v44  ;;  %v1687_v10 = vrot.slane %v1623_v58, 7  ;;  %v1688_v17 = vrot.slane %v1624_v31, 7 }
 0x61d   :  { %1744 = vst [vmem:[#allocation3 + $0xa8] sm:$0x1] %v1676_v55  ;;  %1745 = vst [vmem:[#allocation3 + $0xb0] sm:$0x1] %v1677_v4  ;;  %v1689_v34 = vrot.slane %v1625_v1, 7  ;;  %v1690_v38 = vrot.slane %v1626_v35, 7 }
 0x61e   :  { %1746 = vst [vmem:[#allocation3 + $0xb8] sm:$0x1] %v1678_v18  ;;  %1747 = vst [vmem:[#allocation3 + $0x100] sm:$0xfe] %v1679_v59  ;;  %v1691_v37 = vrot.slane %v1627_v61, 7  ;;  %v1692_v2 = vrot.slane %v1628_v23, 7 }
 0x61f   :  { %1748 = vst [vmem:[#allocation3 + $0x108] sm:$0xfe] %v1680_v6  ;;  %1749 = vst [vmem:[#allocation3 + $0x110] sm:$0xfe] %v1681_v56  ;;  %v1693_v8 = vrot.slane %v1629_v21, 7  ;;  %v1694_v5 = vrot.slane %v1630_v41, 7 }
 0x620   :  { %1750 = vst [vmem:[#allocation3 + $0x118] sm:$0xfe] %v1682_v40  ;;  %1751 = vst [vmem:[#allocation3 + $0x120] sm:$0x1] %v1679_v59  ;;  %v1695_v4 = vrot.slane %v1631_v30, 7  ;;  %v1696_v20 = vrot.slane %v1632_v60, 7 }
 0x621   :  { %1752 = vst [vmem:[#allocation3 + $0x128] sm:$0x1] %v1680_v6  ;;  %1753 = vst [vmem:[#allocation3 + $0x130] sm:$0x1] %v1681_v56  ;;  %v1697_v3 = vrot.slane %v1633_v63, 7  ;;  %v1698_v39 = vrot.slane %v1634_v62, 7 }
 0x622   :  { %1754 = vst [vmem:[#allocation3 + $0x138] sm:$0x1] %v1682_v40  ;;  %1755 = vst [vmem:[#allocation3 + $0x180] sm:$0xfe] %v1683_v54  ;;  %v19572_v56 = vmax.f32 %v13922_v26, 0.0  ;;  %v19575_v31 = vmax.f32 %v13934_v45, 0.0 }
 0x623   :  { %1756 = vst [vmem:[#allocation3 + $0x188] sm:$0xfe] %v1684_v32  ;;  %1757 = vst [vmem:[#allocation3 + $0x190] sm:$0xfe] %v1685_v12  ;;  %v1703_v26 = vrot.slane %v1639_v36, 7  ;;  %v1706_v45 = vrot.slane %v1642_v47, 7 }
 0x624   :  { %1758 = vst [vmem:[#allocation3 + $0x198] sm:$0xfe] %v1686_v16  ;;  %1759 = vst [vmem:[#allocation3 + $0x1a0] sm:$0x1] %v1683_v54  ;;  %v1699_v59 = vrot.slane %v19572_v56, 7  ;;  %v19573_v54 = vmax.f32 %v13926_v33, 0.0 }
 0x625   :  { %1760 = vst [vmem:[#allocation3 + $0x1a8] sm:$0x1] %v1684_v32  ;;  %1761 = vst [vmem:[#allocation3 + $0x1b0] sm:$0x1] %v1685_v12  ;;  %v19574_v12 = vmax.f32 %v13930_v29, 0.0  ;;  %v1702_v1 = vrot.slane %v19575_v31, 7 }
 0x626   :  { %1762 = vst [vmem:[#allocation3 + $0x1b8] sm:$0x1] %v1686_v16  ;;  %1763 = vst [vmem:[#allocation3 + $0x200] sm:$0xfe] %v1687_v10  ;;  %v1700_v15 = vrot.slane %v19573_v54, 7  ;;  %v1704_v33 = vrot.slane %v1640_v46, 7 }
 0x627   :  { %1764 = vst [vmem:[#allocation3 + $0x208] sm:$0xfe] %v1688_v17  ;;  %1765 = vst [vmem:[#allocation3 + $0x210] sm:$0xfe] %v1689_v34  ;;  %v1701_v58 = vrot.slane %v19574_v12, 7  ;;  %v1705_v29 = vrot.slane %v1641_v42, 7 }
 0x628   :  { %1766 = vst [vmem:[#allocation3 + $0x218] sm:$0xfe] %v1690_v38  ;;  %1767 = vst [vmem:[#allocation3 + $0x220] sm:$0x1] %v1687_v10  ;;  %v1899_v28 = vmax.f32 %v13954_v27, 0.0  ;;  %v1900_v19 = vmax.f32 %v13958_v57, 0.0 }
 0x629   :  { %1768 = vst [vmem:[#allocation3 + $0x228] sm:$0x1] %v1688_v17  ;;  %1769 = vst [vmem:[#allocation3 + $0x230] sm:$0x1] %v1689_v34  ;;  %v1901_v24 = vmax.f32 %v13962_v13, 0.0  ;;  %v1902_v22 = vmax.f32 %v13966_v48, 0.0 }
 0x62a   :  { %1770 = vst [vmem:[#allocation3 + $0x238] sm:$0x1] %v1690_v38  ;;  %1771 = vst [vmem:[#allocation3 + $0x280] sm:$0xfe] %v1691_v37  ;;  %v1903_v35 = vmax.f32 %v13970_v25, 0.0  ;;  %v1904_v61 = vmax.f32 %v13974_v49, 0.0 }
 0x62b   :  { %1772 = vst [vmem:[#allocation3 + $0x288] sm:$0xfe] %v1692_v2  ;;  %1773 = vst [vmem:[#allocation3 + $0x290] sm:$0xfe] %v1693_v8  ;;  %v1905_v27 = vmax.f32 %v13978_v50, 0.0  ;;  %v1906_v57 = vmax.f32 %v13982_v14, 0.0 }
 0x62c   :  { %1774 = vst [vmem:[#allocation3 + $0x298] sm:$0xfe] %v1694_v5  ;;  %1775 = vst [vmem:[#allocation3 + $0x2a0] sm:$0x1] %v1691_v37  ;;  %v1907_v13 = vmax.f32 %v13986_v11, 0.0  ;;  %v1908_v48 = vmax.f32 %v13990_v9, 0.0 }
 0x62d   :  { %1776 = vst [vmem:[#allocation3 + $0x2a8] sm:$0x1] %v1692_v2  ;;  %1777 = vst [vmem:[#allocation3 + $0x2b0] sm:$0x1] %v1693_v8  ;;  %v1909_v23 = vmax.f32 %v13994_v52, 0.0  ;;  %v1910_v21 = vmax.f32 %v13998_v51, 0.0 }
 0x62e   :  { %1778 = vst [vmem:[#allocation3 + $0x2b8] sm:$0x1] %v1694_v5  ;;  %1779 = vst [vmem:[#allocation3 + $0x300] sm:$0xfe] %v1695_v4  ;;  %v1911_v41 = vmax.f32 %v14002_v0, 0.0  ;;  %v1912_v30 = vmax.f32 %v14006_v7, 0.0 }
 0x62f   :  { %1780 = vst [vmem:[#allocation3 + $0x308] sm:$0xfe] %v1696_v20  ;;  %1781 = vst [vmem:[#allocation3 + $0x310] sm:$0xfe] %v1697_v3  ;;  %v19576_v60 = vld [vmem:[#allocation79_spill] sm:$0xff]  ;;  %v19577_v63 = vld [vmem:[#allocation80_spill] sm:$0xff] }
 0x630   :  { %1782 = vst [vmem:[#allocation3 + $0x318] sm:$0xfe] %v1698_v39  ;;  %1783 = vst [vmem:[#allocation3 + $0x320] sm:$0x1] %v1695_v4  ;;  %v1913_v25 = vmax.f32 %v19576_v60, 0.0  ;;  %v1914_v49 = vmax.f32 %v19577_v63, 0.0 }
 0x631   :  { %1784 = vst [vmem:[#allocation3 + $0x328] sm:$0x1] %v1696_v20  ;;  %1785 = vst [vmem:[#allocation3 + $0x330] sm:$0x1] %v1697_v3  ;;  %v19578_v62 = vld [vmem:[#allocation81_spill] sm:$0xff]  ;;  %v1916_v14 = vmax.f32 %v14022_v53, 0.0 }
 0x632   :  { %1786 = vst [vmem:[#allocation3 + $0x338] sm:$0x1] %v1698_v39  ;;  %1787 = vst [vmem:[#allocation3 + $0x380] sm:$0xfe] %v1699_v59  ;;  %v1915_v50 = vmax.f32 %v19578_v62, 0.0  ;;  %v19579_v6 = vld [vmem:[#allocation82_spill] sm:$0xff] }
 0x633   :  { %1788 = vst [vmem:[#allocation3 + $0x388] sm:$0xfe] %v1700_v15  ;;  %1789 = vst [vmem:[#allocation3 + $0x390] sm:$0xfe] %v1701_v58  ;;  %v1917_v11 = vmax.f32 %v19579_v6, 0.0  ;;  %v19580_v40 = vld [vmem:[#allocation83_spill] sm:$0xff] }
 0x634   :  { %1790 = vst [vmem:[#allocation3 + $0x398] sm:$0xfe] %v1702_v1  ;;  %1791 = vst [vmem:[#allocation3 + $0x3a0] sm:$0x1] %v1699_v59  ;;  %v1918_v9 = vmax.f32 %v19580_v40, 0.0  ;;  %v19581_v32 = vld [vmem:[#allocation84_spill] sm:$0xff] }
 0x635   :  { %1792 = vst [vmem:[#allocation3 + $0x3a8] sm:$0x1] %v1700_v15  ;;  %1793 = vst [vmem:[#allocation3 + $0x3b0] sm:$0x1] %v1701_v58  ;;  %v1919_v52 = vmax.f32 %v19581_v32, 0.0  ;;  %v1920_v51 = vmax.f32 %v14038_v43, 0.0 }
 0x636   :  { %1794 = vst [vmem:[#allocation3 + $0x3b8] sm:$0x1] %v1702_v1  ;;  %1795 = vst [vmem:[#allocation3 + $0x400] sm:$0xfe] %v1703_v26  ;;  %v19582_v16 = vld [vmem:[#allocation85_spill] sm:$0xff]  ;;  %v19583_v36 = vld [vmem:[#allocation86_spill] sm:$0xff] }
 0x637   :  { %1796 = vst [vmem:[#allocation3 + $0x408] sm:$0xfe] %v1704_v33  ;;  %1797 = vst [vmem:[#allocation3 + $0x410] sm:$0xfe] %v1705_v29  ;;  %v1921_v0 = vmax.f32 %v19582_v16, 0.0  ;;  %v1922_v7 = vmax.f32 %v19583_v36, 0.0 }
 0x638   :  { %1798 = vst [vmem:[#allocation3 + $0x418] sm:$0xfe] %v1706_v45  ;;  %1799 = vst [vmem:[#allocation3 + $0x420] sm:$0x1] %v1703_v26  ;;  %v19584_v46 = vld [vmem:[#allocation87_spill] sm:$0xff]  ;;  %v19585_v47 = vld [vmem:[#allocation88_spill] sm:$0xff] }
 0x639   :  { %1800 = vst [vmem:[#allocation3 + $0x428] sm:$0x1] %v1704_v33  ;;  %1801 = vst [vmem:[#allocation3 + $0x430] sm:$0x1] %v1705_v29  ;;  %v1923_v42 = vmax.f32 %v19584_v46, 0.0  ;;  %v1924_v44 = vmax.f32 %v19585_v47, 0.0 }
 0x63a   :  { %1802 = vst [vmem:[#allocation3 + $0x438] sm:$0x1] %v1706_v45  ;;  %v19586_v55 = vld [vmem:[#allocation89_spill] sm:$0xff]  ;;  %v19587_v10 = vld [vmem:[#allocation91_spill] sm:$0xff]  ;;  %v19588_v17 = vld [vmem:[#allocation90_spill] sm:$0xff]  ;;  %v1963_v4 = vrot.slane %v1899_v28, 7 }
 0x63b   :  { %v1925_v18 = vmax.f32 %v19586_v55, 0.0  ;;  %v1926_v53 = vmax.f32 %v19587_v10, 0.0  ;;  %v1927_v34 = vmax.f32 %v19588_v17, 0.0  ;;  %v19589_v38 = vld [vmem:[#allocation4_spill] sm:$0xff]  ;;  %v19590_v2 = vld [vmem:[#allocation69_spill] sm:$0xff]  ;;  %v1964_v20 = vrot.slane %v1900_v19, 7 }
 0x63c   :  { %v1928_v37 = vmax.f32 %v19589_v38, 0.0  ;;  %v1929_v8 = vmax.f32 %v19590_v2, 0.0  ;;  %v19591_v5 = vld [vmem:[#allocation5_spill] sm:$0xff]  ;;  %v1965_v3 = vrot.slane %v1901_v24, 7  ;;  %v1966_v39 = vrot.slane %v1902_v22, 7 }
 0x63d   :  { %v1930_v43 = vmax.f32 %v19591_v5, 0.0  ;;  %v1967_v56 = vrot.slane %v1903_v35, 7  ;;  %v1968_v59 = vrot.slane %v1904_v61, 7  ;;  %v1969_v54 = vrot.slane %v1905_v27, 7  ;;  %2028 = vst [vmem:[#allocation3 + $0xc0] sm:$0xfe] %v1963_v4 }
 0x63e   :  { %v1970_v15 = vrot.slane %v1906_v57, 7  ;;  %v1971_v12 = vrot.slane %v1907_v13, 7  ;;  %v1972_v58 = vrot.slane %v1908_v48, 7  ;;  %v1973_v31 = vrot.slane %v1909_v23, 7  ;;  %2029 = vst [vmem:[#allocation3 + $0xc8] sm:$0xfe] %v1964_v20 }
 0x63f   :  { %v1974_v1 = vrot.slane %v1910_v21, 7  ;;  %2030 = vst [vmem:[#allocation3 + $0xd0] sm:$0xfe] %v1965_v3  ;;  %2031 = vst [vmem:[#allocation3 + $0xd8] sm:$0xfe] %v1966_v39  ;;  %v1975_v26 = vrot.slane %v1911_v41, 7 }
 0x640   :  { %2032 = vst [vmem:[#allocation3 + $0xe0] sm:$0x1] %v1963_v4  ;;  %2033 = vst [vmem:[#allocation3 + $0xe8] sm:$0x1] %v1964_v20  ;;  %v1976_v33 = vrot.slane %v1912_v30, 7  ;;  %v1977_v29 = vrot.slane %v1913_v25, 7 }
 0x641   :  { %2034 = vst [vmem:[#allocation3 + $0xf0] sm:$0x1] %v1965_v3  ;;  %2035 = vst [vmem:[#allocation3 + $0xf8] sm:$0x1] %v1966_v39  ;;  %v1978_v45 = vrot.slane %v1914_v49, 7  ;;  %v1979_v24 = vrot.slane %v1915_v50, 7 }
 0x642   :  { %2036 = vst [vmem:[#allocation3 + $0x140] sm:$0xfe] %v1967_v56  ;;  %2037 = vst [vmem:[#allocation3 + $0x148] sm:$0xfe] %v1968_v59  ;;  %v14160_v28 = vld [vmem:[#allocation3 + $0x88] sm:$0xfe] }
 0x643   :  { %2038 = vst [vmem:[#allocation3 + $0x150] sm:$0xfe] %v1969_v54  ;;  %2039 = vst [vmem:[#allocation3 + $0x158] sm:$0xfe] %v1970_v15  ;;  %v14162_v19 = vld [vmem:[#allocation3 + $0xa8] sm:$0x1] }
 0x644   :  { %2040 = vst [vmem:[#allocation3 + $0x160] sm:$0x1] %v1967_v56  ;;  %2041 = vst [vmem:[#allocation3 + $0x168] sm:$0x1] %v1968_v59  ;;  %v1980_v22 = vrot.slane %v1916_v14, 7  ;;  %v1981_v35 = vrot.slane %v1917_v11, 7 }
 0x645   :  { %2042 = vst [vmem:[#allocation3 + $0x170] sm:$0x1] %v1969_v54  ;;  %2043 = vst [vmem:[#allocation3 + $0x178] sm:$0x1] %v1970_v15  ;;  %v1982_v61 = vrot.slane %v1918_v9, 7  ;;  %v1983_v57 = vrot.slane %v1919_v52, 7 }
 0x646   :  { %2044 = vst [vmem:[#allocation3 + $0x1c0] sm:$0xfe] %v1971_v12  ;;  %2045 = vst [vmem:[#allocation3 + $0x1c8] sm:$0xfe] %v1972_v58  ;;  %v14164_v27 = vld [vmem:[#allocation3 + $0x98] sm:$0xfe] }
 0x647   :  { %2046 = vst [vmem:[#allocation3 + $0x1d0] sm:$0xfe] %v1973_v31  ;;  %2047 = vst [vmem:[#allocation3 + $0x1d8] sm:$0xfe] %v1974_v1  ;;  %v1984_v13 = vrot.slane %v1920_v51, 7  ;;  %v1985_v48 = vrot.slane %v1921_v0, 7 }
 0x648   :  { %2048 = vst [vmem:[#allocation3 + $0x1e0] sm:$0x1] %v1971_v12  ;;  %2049 = vst [vmem:[#allocation3 + $0x1e8] sm:$0x1] %v1972_v58  ;;  %v1986_v23 = vrot.slane %v1922_v7, 7  ;;  %v1987_v41 = vrot.slane %v1923_v42, 7 }
 0x649   :  { %2050 = vst [vmem:[#allocation3 + $0x1f0] sm:$0x1] %v1973_v31  ;;  %2051 = vst [vmem:[#allocation3 + $0x1f8] sm:$0x1] %v1974_v1  ;;  %v2275_v21 = vld [vmem:[#allocation3 + $0xb8] sm:$0x1] }
 0x64a   :  { %2052 = vst [vmem:[#allocation3 + $0x240] sm:$0xfe] %v1975_v26  ;;  %2053 = vst [vmem:[#allocation3 + $0x248] sm:$0xfe] %v1976_v33  ;;  %v1988_v30 = vrot.slane %v1924_v44, 7  ;;  %v1989_v60 = vrot.slane %v1925_v18, 7 }
 0x64b   :  { %2054 = vst [vmem:[#allocation3 + $0x250] sm:$0xfe] %v1977_v29  ;;  %2055 = vst [vmem:[#allocation3 + $0x258] sm:$0xfe] %v1978_v45  ;;  %v1990_v25 = vrot.slane %v1926_v53, 7  ;;  %v1991_v63 = vrot.slane %v1927_v34, 7 }
 0x64c   :  { %2056 = vst [vmem:[#allocation3 + $0x260] sm:$0x1] %v1975_v26  ;;  %2057 = vst [vmem:[#allocation3 + $0x268] sm:$0x1] %v1976_v33  ;;  %v1992_v49 = vrot.slane %v1928_v37, 7  ;;  %v1993_v62 = vrot.slane %v1929_v8, 7 }
 0x64d   :  { %2058 = vst [vmem:[#allocation3 + $0x270] sm:$0x1] %v1977_v29  ;;  %2059 = vst [vmem:[#allocation3 + $0x278] sm:$0x1] %v1978_v45  ;;  %v1994_v50 = vrot.slane %v1930_v43, 7  ;;  %v2536_v14 = vrot.slane %v14160_v28, 1 }
 0x64e   :  { %2060 = vst [vmem:[#allocation3 + $0x2c0] sm:$0xfe] %v1979_v24  ;;  %2061 = vst [vmem:[#allocation3 + $0x2c8] sm:$0xfe] %v1980_v22  ;;  %v2537_v6 = vrot.slane %v14162_v19, 1  ;;  %v2542_v11 = vrot.slane %v14164_v27, 1 }
 0x64f   :  { %2062 = vst [vmem:[#allocation3 + $0x2d0] sm:$0xfe] %v1981_v35  ;;  %2063 = vst [vmem:[#allocation3 + $0x2d8] sm:$0xfe] %v1982_v61  ;;  %v2543_v40 = vrot.slane %v2275_v21, 1 }
 0x650   :  { %2064 = vst [vmem:[#allocation3 + $0x2e0] sm:$0x1] %v1979_v24  ;;  %2065 = vst [vmem:[#allocation3 + $0x2e8] sm:$0x1] %v1980_v22  ;;  %v2268_v9 = vld [vmem:[#allocation3 + $0x80] sm:$0xfe]  ;;  %v2538_v0 = vsel %vm2508_vm10, %v2536_v14, %v2537_v6 }
 0x651   :  { %2066 = vst [vmem:[#allocation3 + $0x2f0] sm:$0x1] %v1981_v35  ;;  %2067 = vst [vmem:[#allocation3 + $0x2f8] sm:$0x1] %v1982_v61  ;;  %v2277_v32 = vld [vmem:[#allocation3 + $0xc8] sm:$0xfe]  ;;  %v2544_v53 = vsel %vm2508_vm10, %v2542_v11, %v2543_v40 }
 0x652   :  { %2068 = vst [vmem:[#allocation3 + $0x340] sm:$0xfe] %v1983_v57  ;;  %2069 = vst [vmem:[#allocation3 + $0x348] sm:$0xfe] %v1984_v13  ;;  %v2281_v52 = vld [vmem:[#allocation3 + $0xe8] sm:$0x1] }
 0x653   :  { %2070 = vst [vmem:[#allocation3 + $0x350] sm:$0xfe] %v1985_v48  ;;  %2071 = vst [vmem:[#allocation3 + $0x358] sm:$0xfe] %v1986_v23  ;;  %v2279_v51 = vld [vmem:[#allocation3 + $0xd8] sm:$0xfe] }
 0x654   :  { %2072 = vst [vmem:[#allocation3 + $0x360] sm:$0x1] %v1983_v57  ;;  %2073 = vst [vmem:[#allocation3 + $0x368] sm:$0x1] %v1984_v13  ;;  %v2272_v16 = vld [vmem:[#allocation3 + $0xa0] sm:$0x1] }
 0x655   :  { %2074 = vst [vmem:[#allocation3 + $0x370] sm:$0x1] %v1985_v48  ;;  %2075 = vst [vmem:[#allocation3 + $0x378] sm:$0x1] %v1986_v23  ;;  %v2270_v36 = vld [vmem:[#allocation3 + $0x90] sm:$0xfe] }
 0x656   :  { %2076 = vst [vmem:[#allocation3 + $0x3c0] sm:$0xfe] %v1987_v41  ;;  %2077 = vst [vmem:[#allocation3 + $0x3c8] sm:$0xfe] %v1988_v30  ;;  %v2274_v7 = vld [vmem:[#allocation3 + $0xb0] sm:$0x1] }
 0x657   :  { %2078 = vst [vmem:[#allocation3 + $0x3d0] sm:$0xfe] %v1989_v60  ;;  %2079 = vst [vmem:[#allocation3 + $0x3d8] sm:$0xfe] %v1990_v25  ;;  %v2548_v46 = vrot.slane %v2277_v32, 1  ;;  %v2549_v42 = vrot.slane %v2281_v52, 1 }
 0x658   :  { %2080 = vst [vmem:[#allocation3 + $0x3e0] sm:$0x1] %v1987_v41  ;;  %2081 = vst [vmem:[#allocation3 + $0x3e8] sm:$0x1] %v1988_v30  ;;  %v2283_v47 = vld [vmem:[#allocation3 + $0xf8] sm:$0x1] }
 0x659   :  { %2082 = vst [vmem:[#allocation3 + $0x3f0] sm:$0x1] %v1989_v60  ;;  %2083 = vst [vmem:[#allocation3 + $0x3f8] sm:$0x1] %v1990_v25  ;;  %v2554_v44 = vrot.slane %v2279_v51, 1  ;;  %v2533_v55 = vrot.slane %v2268_v9, 1  ;;  %v2550_v2 = vsel %vm2508_vm10, %v2548_v46, %v2549_v42 }
 0x65a   :  { %2084 = vst [vmem:[#allocation3 + $0x440] sm:$0xfe] %v1991_v63  ;;  %2085 = vst [vmem:[#allocation3 + $0x448] sm:$0xfe] %v1992_v49  ;;  %v2285_v18 = vld [vmem:[#allocation3 + $0x108] sm:$0xfe]  ;;  %v2770_v20 = vpack.c.bf16 %v2550_v2, %v2538_v0 }
 0x65b   :  { %2086 = vst [vmem:[#allocation3 + $0x450] sm:$0xfe] %v1993_v62  ;;  %2087 = vst [vmem:[#allocation3 + $0x458] sm:$0xfe] %v1994_v50  ;;  %v2289_v10 = vld [vmem:[#allocation3 + $0x128] sm:$0x1] }
 0x65c   :  { %2088 = vst [vmem:[#allocation3 + $0x460] sm:$0x1] %v1991_v63  ;;  %2089 = vst [vmem:[#allocation3 + $0x468] sm:$0x1] %v1992_v49  ;;  %v2555_v17 = vrot.slane %v2283_v47, 1  ;;  %v2534_v37 = vrot.slane %v2272_v16, 1  ;;  %3094 = vmatprep.mubr.bf16.mxu0 %v2770_v20 }
 0x65d   :  { %2090 = vst [vmem:[#allocation3 + $0x470] sm:$0x1] %v1993_v62  ;;  %2091 = vst [vmem:[#allocation3 + $0x478] sm:$0x1] %v1994_v50  ;;  %v2276_v34 = vld [vmem:[#allocation3 + $0xc0] sm:$0xfe] }
 0x65e   :  { %v2280_v38 = vld [vmem:[#allocation3 + $0xe0] sm:$0x1]  ;;  %v2545_v8 = vrot.slane %v2276_v34, 1  ;;  %v2278_v43 = vld [vmem:[#allocation3 + $0xd0] sm:$0xfe]  ;;  %v2556_v3 = vsel %vm2508_vm10, %v2554_v44, %v2555_v17  ;;  %v2535_v39 = vsel %vm2508_vm10, %v2533_v55, %v2534_v37  ;;  %v2539_v56 = vrot.slane %v2270_v36, 1 }
 0x65f   :  { %v2546_v5 = vrot.slane %v2280_v38, 1  ;;  %v2282_v4 = vld [vmem:[#allocation3 + $0xf0] sm:$0x1]  ;;  %v2293_v59 = vld [vmem:[#allocation3 + $0x148] sm:$0xfe]  ;;  %v2772_v15 = vpack.c.bf16 %v2556_v3, %v2544_v53  ;;  %v2540_v58 = vrot.slane %v2274_v7, 1 }
 0x660   :  { %v2297_v54 = vld [vmem:[#allocation3 + $0x168] sm:$0x1]  ;;  %v2551_v31 = vrot.slane %v2278_v43, 1  ;;  %v2287_v1 = vld [vmem:[#allocation3 + $0x118] sm:$0xfe]  ;;  %v2552_v29 = vrot.slane %v2282_v4, 1 }
 0x661   :  { %v2547_v12 = vsel %vm2508_vm10, %v2545_v8, %v2546_v5  ;;  %v2291_v26 = vld [vmem:[#allocation3 + $0x138] sm:$0x1]  ;;  %v2560_v45 = vrot.slane %v2285_v18, 1  ;;  %v2561_v28 = vrot.slane %v2289_v10, 1  ;;  %v2295_v19 = vld [vmem:[#allocation3 + $0x158] sm:$0xfe]  ;;  %3191 = vmatprep.mubr.bf16.mxu1 %v2772_v15  ;;  %v2541_v24 = vsel %vm2508_vm10, %v2539_v56, %v2540_v58 }
 0x662   :  { %v2769_v33 = vpack.c.bf16 %v2547_v12, %v2535_v39  ;;  %v2572_v22 = vrot.slane %v2293_v59, 1  ;;  %v2573_v35 = vrot.slane %v2297_v54, 1  ;;  %v2299_v61 = vld [vmem:[#allocation3 + $0x178] sm:$0x1]  ;;  %v2566_v27 = vrot.slane %v2287_v1, 1 }
 0x663   :  { %v2553_v57 = vsel %vm2508_vm10, %v2551_v31, %v2552_v29  ;;  %v2562_v13 = vsel %vm2508_vm10, %v2560_v45, %v2561_v28  ;;  %v2567_v48 = vrot.slane %v2291_v26, 1  ;;  %v2578_v23 = vrot.slane %v2295_v19, 1  ;;  %v2284_v21 = vld [vmem:[#allocation3 + $0x100] sm:$0xfe]  ;;  %v2288_v41 = vld [vmem:[#allocation3 + $0x120] sm:$0x1] }
 0x664   :  { %3095 = vmatmul.mubr.bf16.gmra.mrb[36].mxu0 %v2769_v33  ;;  %v2771_v30 = vpack.c.bf16 %v2553_v57, %v2541_v24  ;;  %v2574_v60 = vsel %vm2508_vm10, %v2572_v22, %v2573_v35  ;;  %v2579_v25 = vrot.slane %v2299_v61, 1  ;;  %v2292_v63 = vld [vmem:[#allocation3 + $0x140] sm:$0xfe]  ;;  %v2296_v49 = vld [vmem:[#allocation3 + $0x160] sm:$0x1]  ;;  %v2557_v62 = vrot.slane %v2284_v21, 1 }
 0x665   :  { %v2774_v50 = vpack.c.bf16 %v2574_v60, %v2562_v13  ;;  %v2568_v14 = vsel %vm2508_vm10, %v2566_v27, %v2567_v48  ;;  %v2558_v6 = vrot.slane %v2288_v41, 1  ;;  %v2569_v11 = vrot.slane %v2292_v63, 1  ;;  %v2286_v40 = vld [vmem:[#allocation3 + $0x110] sm:$0xfe]  ;;  %v2290_v9 = vld [vmem:[#allocation3 + $0x130] sm:$0x1] }
 0x666   :  { %3192 = vmatmul.mubr.bf16.gmra.mrb[36].mxu1 %v2771_v30  ;;  %v2580_v32 = vsel %vm2508_vm10, %v2578_v23, %v2579_v25  ;;  %v2570_v52 = vrot.slane %v2296_v49, 1  ;;  %v2294_v51 = vld [vmem:[#allocation3 + $0x150] sm:$0xfe]  ;;  %v2298_v16 = vld [vmem:[#allocation3 + $0x170] sm:$0x1]  ;;  %v2563_v0 = vrot.slane %v2286_v40, 1 }
 0x667   :  { %3102 = vmatprep.mubr.bf16.mxu0 %v2774_v50  ;;  %v2776_v36 = vpack.c.bf16 %v2580_v32, %v2568_v14  ;;  %v2559_v7 = vsel %vm2508_vm10, %v2557_v62, %v2558_v6  ;;  %v2564_v46 = vrot.slane %v2290_v9, 1  ;;  %v2575_v42 = vrot.slane %v2294_v51, 1  ;;  %v2301_v47 = vld [vmem:[#allocation3 + $0x188] sm:$0xfe]  ;;  %v2305_v44 = vld [vmem:[#allocation3 + $0x1a8] sm:$0x1] }
 0x668   :  { %v2571_v55 = vsel %vm2508_vm10, %v2569_v11, %v2570_v52  ;;  %v2576_v18 = vrot.slane %v2298_v16, 1  ;;  %v2309_v10 = vld [vmem:[#allocation3 + $0x1c8] sm:$0xfe]  ;;  %v2313_v53 = vld [vmem:[#allocation3 + $0x1e8] sm:$0x1]  ;;  %v2584_v17 = vrot.slane %v2301_v47, 1 }
 0x669   :  { %3199 = vmatprep.mubr.bf16.mxu1 %v2776_v36  ;;  %v2773_v34 = vpack.c.bf16 %v2571_v55, %v2559_v7  ;;  %v2565_v38 = vsel %vm2508_vm10, %v2563_v0, %v2564_v46  ;;  %v2585_v37 = vrot.slane %v2305_v44, 1  ;;  %v2596_v2 = vrot.slane %v2309_v10, 1  ;;  %v2303_v8 = vld [vmem:[#allocation3 + $0x198] sm:$0xfe]  ;;  %v2307_v5 = vld [vmem:[#allocation3 + $0x1b8] sm:$0x1] }
 0x66a   :  { %v2577_v43 = vsel %vm2508_vm10, %v2575_v42, %v2576_v18  ;;  %v2597_v4 = vrot.slane %v2313_v53, 1  ;;  %v2311_v20 = vld [vmem:[#allocation3 + $0x1d8] sm:$0xfe]  ;;  %v2315_v3 = vld [vmem:[#allocation3 + $0x1f8] sm:$0x1]  ;;  %v2590_v39 = vrot.slane %v2303_v8, 1 }
 0x66b   :  { %v2586_v56 = vsel %vm2508_vm10, %v2584_v17, %v2585_v37  ;;  %v2591_v59 = vrot.slane %v2307_v5, 1  ;;  %v2602_v54 = vrot.slane %v2311_v20, 1  ;;  %v2300_v15 = vld [vmem:[#allocation3 + $0x180] sm:$0xfe]  ;;  %v2304_v12 = vld [vmem:[#allocation3 + $0x1a0] sm:$0x1]  ;;  %v2775_v58 = vpack.c.bf16 %v2577_v43, %v2565_v38 }
 0x66c   :  { %3103 = vmatmul.mubr.bf16.gmra.mrb[40].mxu0 %v2773_v34  ;;  %v2598_v31 = vsel %vm2508_vm10, %v2596_v2, %v2597_v4  ;;  %v2603_v1 = vrot.slane %v2315_v3, 1  ;;  %v2308_v26 = vld [vmem:[#allocation3 + $0x1c0] sm:$0xfe]  ;;  %v2312_v33 = vld [vmem:[#allocation3 + $0x1e0] sm:$0x1]  ;;  %v2581_v29 = vrot.slane %v2300_v15, 1 }
 0x66d   :  { %v2778_v45 = vpack.c.bf16 %v2598_v31, %v2586_v56  ;;  %v2592_v28 = vsel %vm2508_vm10, %v2590_v39, %v2591_v59  ;;  %v2582_v19 = vrot.slane %v2304_v12, 1  ;;  %v2593_v24 = vrot.slane %v2308_v26, 1  ;;  %v2302_v22 = vld [vmem:[#allocation3 + $0x190] sm:$0xfe]  ;;  %v2306_v35 = vld [vmem:[#allocation3 + $0x1b0] sm:$0x1] }
 0x66e   :  { %3200 = vmatmul.mubr.bf16.gmra.mrb[40].mxu1 %v2775_v58  ;;  %v2604_v61 = vsel %vm2508_vm10, %v2602_v54, %v2603_v1  ;;  %v2594_v27 = vrot.slane %v2312_v33, 1  ;;  %v2310_v57 = vld [vmem:[#allocation3 + $0x1d0] sm:$0xfe]  ;;  %v2314_v13 = vld [vmem:[#allocation3 + $0x1f0] sm:$0x1]  ;;  %v2587_v48 = vrot.slane %v2302_v22, 1 }
 0x66f   :  { %3110 = vmatprep.mubr.bf16.mxu0 %v2778_v45  ;;  %v2780_v23 = vpack.c.bf16 %v2604_v61, %v2592_v28  ;;  %v2583_v21 = vsel %vm2508_vm10, %v2581_v29, %v2582_v19  ;;  %v2588_v41 = vrot.slane %v2306_v35, 1  ;;  %v2599_v30 = vrot.slane %v2310_v57, 1  ;;  %v2317_v60 = vld [vmem:[#allocation3 + $0x208] sm:$0xfe]  ;;  %v2321_v25 = vld [vmem:[#allocation3 + $0x228] sm:$0x1] }
 0x670   :  { %v2595_v63 = vsel %vm2508_vm10, %v2593_v24, %v2594_v27  ;;  %v2600_v49 = vrot.slane %v2314_v13, 1  ;;  %v2325_v62 = vld [vmem:[#allocation3 + $0x248] sm:$0xfe]  ;;  %v2329_v50 = vld [vmem:[#allocation3 + $0x268] sm:$0x1]  ;;  %v2608_v14 = vrot.slane %v2317_v60, 1 }
 0x671   :  { %3207 = vmatprep.mubr.bf16.mxu1 %v2780_v23  ;;  %v2777_v6 = vpack.c.bf16 %v2595_v63, %v2583_v21  ;;  %v2589_v11 = vsel %vm2508_vm10, %v2587_v48, %v2588_v41  ;;  %v2609_v40 = vrot.slane %v2321_v25, 1  ;;  %v2620_v9 = vrot.slane %v2325_v62, 1  ;;  %v2319_v32 = vld [vmem:[#allocation3 + $0x218] sm:$0xfe]  ;;  %v2323_v52 = vld [vmem:[#allocation3 + $0x238] sm:$0x1] }
 0x672   :  { %v2601_v51 = vsel %vm2508_vm10, %v2599_v30, %v2600_v49  ;;  %v2621_v16 = vrot.slane %v2329_v50, 1  ;;  %v2327_v0 = vld [vmem:[#allocation3 + $0x258] sm:$0xfe]  ;;  %v2331_v36 = vld [vmem:[#allocation3 + $0x278] sm:$0x1]  ;;  %v2614_v7 = vrot.slane %v2319_v32, 1 }
 0x673   :  { %v2610_v46 = vsel %vm2508_vm10, %v2608_v14, %v2609_v40  ;;  %v2615_v42 = vrot.slane %v2323_v52, 1  ;;  %v2626_v47 = vrot.slane %v2327_v0, 1  ;;  %v2316_v44 = vld [vmem:[#allocation3 + $0x200] sm:$0xfe]  ;;  %v2320_v55 = vld [vmem:[#allocation3 + $0x220] sm:$0x1]  ;;  %v2779_v18 = vpack.c.bf16 %v2601_v51, %v2589_v11 }
 0x674   :  { %3111 = vmatmul.mubr.bf16.gmra.mrb[44].mxu0 %v2777_v6  ;;  %v2622_v10 = vsel %vm2508_vm10, %v2620_v9, %v2621_v16  ;;  %v2627_v53 = vrot.slane %v2331_v36, 1  ;;  %v2324_v17 = vld [vmem:[#allocation3 + $0x240] sm:$0xfe]  ;;  %v2328_v34 = vld [vmem:[#allocation3 + $0x260] sm:$0x1]  ;;  %v2605_v38 = vrot.slane %v2316_v44, 1 }
 0x675   :  { %v2782_v37 = vpack.c.bf16 %v2622_v10, %v2610_v46  ;;  %v2616_v2 = vsel %vm2508_vm10, %v2614_v7, %v2615_v42  ;;  %v2606_v8 = vrot.slane %v2320_v55, 1  ;;  %v2617_v5 = vrot.slane %v2324_v17, 1  ;;  %v2318_v43 = vld [vmem:[#allocation3 + $0x210] sm:$0xfe]  ;;  %v2322_v4 = vld [vmem:[#allocation3 + $0x230] sm:$0x1] }
 0x676   :  { %3208 = vmatmul.mubr.bf16.gmra.mrb[44].mxu1 %v2779_v18  ;;  %v2628_v20 = vsel %vm2508_vm10, %v2626_v47, %v2627_v53  ;;  %v2618_v3 = vrot.slane %v2328_v34, 1  ;;  %v2326_v39 = vld [vmem:[#allocation3 + $0x250] sm:$0xfe]  ;;  %v2330_v56 = vld [vmem:[#allocation3 + $0x270] sm:$0x1]  ;;  %v2611_v59 = vrot.slane %v2318_v43, 1 }
 0x677   :  { %3118 = vmatprep.mubr.bf16.mxu0 %v2782_v37  ;;  %v2784_v54 = vpack.c.bf16 %v2628_v20, %v2616_v2  ;;  %v2607_v15 = vsel %vm2508_vm10, %v2605_v38, %v2606_v8  ;;  %v2612_v12 = vrot.slane %v2322_v4, 1  ;;  %v2623_v58 = vrot.slane %v2326_v39, 1  ;;  %v2333_v31 = vld [vmem:[#allocation3 + $0x288] sm:$0xfe]  ;;  %v2337_v1 = vld [vmem:[#allocation3 + $0x2a8] sm:$0x1] }
 0x678   :  { %v2619_v26 = vsel %vm2508_vm10, %v2617_v5, %v2618_v3  ;;  %v2624_v33 = vrot.slane %v2330_v56, 1  ;;  %v2341_v29 = vld [vmem:[#allocation3 + $0x2c8] sm:$0xfe]  ;;  %v2345_v45 = vld [vmem:[#allocation3 + $0x2e8] sm:$0x1]  ;;  %v2632_v28 = vrot.slane %v2333_v31, 1 }
 0x679   :  { %3215 = vmatprep.mubr.bf16.mxu1 %v2784_v54  ;;  %v2781_v19 = vpack.c.bf16 %v2619_v26, %v2607_v15  ;;  %v2613_v24 = vsel %vm2508_vm10, %v2611_v59, %v2612_v12  ;;  %v2633_v22 = vrot.slane %v2337_v1, 1  ;;  %v2644_v35 = vrot.slane %v2341_v29, 1  ;;  %v2335_v61 = vld [vmem:[#allocation3 + $0x298] sm:$0xfe]  ;;  %v2339_v27 = vld [vmem:[#allocation3 + $0x2b8] sm:$0x1] }
 0x67a   :  { %v2625_v57 = vsel %vm2508_vm10, %v2623_v58, %v2624_v33  ;;  %v2645_v13 = vrot.slane %v2345_v45, 1  ;;  %v2343_v48 = vld [vmem:[#allocation3 + $0x2d8] sm:$0xfe]  ;;  %v2347_v23 = vld [vmem:[#allocation3 + $0x2f8] sm:$0x1]  ;;  %v2638_v21 = vrot.slane %v2335_v61, 1 }
 0x67b   :  { %v2634_v41 = vsel %vm2508_vm10, %v2632_v28, %v2633_v22  ;;  %v2639_v30 = vrot.slane %v2339_v27, 1  ;;  %v2650_v60 = vrot.slane %v2343_v48, 1  ;;  %v2332_v25 = vld [vmem:[#allocation3 + $0x280] sm:$0xfe]  ;;  %v2336_v63 = vld [vmem:[#allocation3 + $0x2a0] sm:$0x1]  ;;  %v2783_v49 = vpack.c.bf16 %v2625_v57, %v2613_v24 }
 0x67c   :  { %3119 = vmatmul.mubr.bf16.gmra.mrb[48].mxu0 %v2781_v19  ;;  %v2646_v62 = vsel %vm2508_vm10, %v2644_v35, %v2645_v13  ;;  %v2651_v50 = vrot.slane %v2347_v23, 1  ;;  %v2340_v14 = vld [vmem:[#allocation3 + $0x2c0] sm:$0xfe]  ;;  %v2344_v6 = vld [vmem:[#allocation3 + $0x2e0] sm:$0x1]  ;;  %v2629_v11 = vrot.slane %v2332_v25, 1 }
 0x67d   :  { %v2786_v40 = vpack.c.bf16 %v2646_v62, %v2634_v41  ;;  %v2640_v9 = vsel %vm2508_vm10, %v2638_v21, %v2639_v30  ;;  %v2630_v32 = vrot.slane %v2336_v63, 1  ;;  %v2641_v52 = vrot.slane %v2340_v14, 1  ;;  %v2334_v51 = vld [vmem:[#allocation3 + $0x290] sm:$0xfe]  ;;  %v2338_v16 = vld [vmem:[#allocation3 + $0x2b0] sm:$0x1] }
 0x67e   :  { %3216 = vmatmul.mubr.bf16.gmra.mrb[48].mxu1 %v2783_v49  ;;  %v2652_v0 = vsel %vm2508_vm10, %v2650_v60, %v2651_v50  ;;  %v2642_v36 = vrot.slane %v2344_v6, 1  ;;  %v2342_v7 = vld [vmem:[#allocation3 + $0x2d0] sm:$0xfe]  ;;  %v2346_v46 = vld [vmem:[#allocation3 + $0x2f0] sm:$0x1]  ;;  %v2635_v42 = vrot.slane %v2334_v51, 1 }
 0x67f   :  { %3126 = vmatprep.mubr.bf16.mxu0 %v2786_v40  ;;  %v2788_v47 = vpack.c.bf16 %v2652_v0, %v2640_v9  ;;  %v2631_v44 = vsel %vm2508_vm10, %v2629_v11, %v2630_v32  ;;  %v2636_v55 = vrot.slane %v2338_v16, 1  ;;  %v2647_v18 = vrot.slane %v2342_v7, 1  ;;  %v2349_v10 = vld [vmem:[#allocation3 + $0x308] sm:$0xfe]  ;;  %v2353_v53 = vld [vmem:[#allocation3 + $0x328] sm:$0x1] }
 0x680   :  { %v2643_v17 = vsel %vm2508_vm10, %v2641_v52, %v2642_v36  ;;  %v2648_v34 = vrot.slane %v2346_v46, 1  ;;  %v2357_v38 = vld [vmem:[#allocation3 + $0x348] sm:$0xfe]  ;;  %v2361_v37 = vld [vmem:[#allocation3 + $0x368] sm:$0x1]  ;;  %v2656_v2 = vrot.slane %v2349_v10, 1 }
 0x681   :  { %3223 = vmatprep.mubr.bf16.mxu1 %v2788_v47  ;;  %v2785_v8 = vpack.c.bf16 %v2643_v17, %v2631_v44  ;;  %v2637_v5 = vsel %vm2508_vm10, %v2635_v42, %v2636_v55  ;;  %v2657_v43 = vrot.slane %v2353_v53, 1  ;;  %v2668_v4 = vrot.slane %v2357_v38, 1  ;;  %v2351_v20 = vld [vmem:[#allocation3 + $0x318] sm:$0xfe]  ;;  %v2355_v3 = vld [vmem:[#allocation3 + $0x338] sm:$0x1] }
 0x682   :  { %v2649_v39 = vsel %vm2508_vm10, %v2647_v18, %v2648_v34  ;;  %v2669_v56 = vrot.slane %v2361_v37, 1  ;;  %v2359_v59 = vld [vmem:[#allocation3 + $0x358] sm:$0xfe]  ;;  %v2363_v54 = vld [vmem:[#allocation3 + $0x378] sm:$0x1]  ;;  %v2662_v15 = vrot.slane %v2351_v20, 1 }
 0x683   :  { %v2658_v12 = vsel %vm2508_vm10, %v2656_v2, %v2657_v43  ;;  %v2663_v58 = vrot.slane %v2355_v3, 1  ;;  %v2674_v31 = vrot.slane %v2359_v59, 1  ;;  %v2348_v1 = vld [vmem:[#allocation3 + $0x300] sm:$0xfe]  ;;  %v2352_v26 = vld [vmem:[#allocation3 + $0x320] sm:$0x1]  ;;  %v2787_v33 = vpack.c.bf16 %v2649_v39, %v2637_v5 }
 0x684   :  { %3127 = vmatmul.mubr.bf16.gmra.mrb[52].mxu0 %v2785_v8  ;;  %v2670_v29 = vsel %vm2508_vm10, %v2668_v4, %v2669_v56  ;;  %v2675_v45 = vrot.slane %v2363_v54, 1  ;;  %v2356_v28 = vld [vmem:[#allocation3 + $0x340] sm:$0xfe]  ;;  %v2360_v19 = vld [vmem:[#allocation3 + $0x360] sm:$0x1]  ;;  %v2653_v24 = vrot.slane %v2348_v1, 1 }
 0x685   :  { %v2790_v22 = vpack.c.bf16 %v2670_v29, %v2658_v12  ;;  %v2664_v35 = vsel %vm2508_vm10, %v2662_v15, %v2663_v58  ;;  %v2654_v61 = vrot.slane %v2352_v26, 1  ;;  %v2665_v27 = vrot.slane %v2356_v28, 1  ;;  %v2350_v57 = vld [vmem:[#allocation3 + $0x310] sm:$0xfe]  ;;  %v2354_v13 = vld [vmem:[#allocation3 + $0x330] sm:$0x1] }
 0x686   :  { %3224 = vmatmul.mubr.bf16.gmra.mrb[52].mxu1 %v2787_v33  ;;  %v2676_v48 = vsel %vm2508_vm10, %v2674_v31, %v2675_v45  ;;  %v2666_v23 = vrot.slane %v2360_v19, 1  ;;  %v2358_v21 = vld [vmem:[#allocation3 + $0x350] sm:$0xfe]  ;;  %v2362_v41 = vld [vmem:[#allocation3 + $0x370] sm:$0x1]  ;;  %v2659_v30 = vrot.slane %v2350_v57, 1 }
 0x687   :  { %3134 = vmatprep.mubr.bf16.mxu0 %v2790_v22  ;;  %v2792_v60 = vpack.c.bf16 %v2676_v48, %v2664_v35  ;;  %v2655_v25 = vsel %vm2508_vm10, %v2653_v24, %v2654_v61  ;;  %v2660_v63 = vrot.slane %v2354_v13, 1  ;;  %v2671_v49 = vrot.slane %v2358_v21, 1  ;;  %v2365_v62 = vld [vmem:[#allocation3 + $0x388] sm:$0xfe]  ;;  %v2369_v50 = vld [vmem:[#allocation3 + $0x3a8] sm:$0x1] }
 0x688   :  { %v2667_v14 = vsel %vm2508_vm10, %v2665_v27, %v2666_v23  ;;  %v2672_v6 = vrot.slane %v2362_v41, 1  ;;  %v2373_v11 = vld [vmem:[#allocation3 + $0x3c8] sm:$0xfe]  ;;  %v2377_v40 = vld [vmem:[#allocation3 + $0x3e8] sm:$0x1]  ;;  %v2680_v9 = vrot.slane %v2365_v62, 1 }
 0x689   :  { %3231 = vmatprep.mubr.bf16.mxu1 %v2792_v60  ;;  %v2789_v32 = vpack.c.bf16 %v2667_v14, %v2655_v25  ;;  %v2661_v52 = vsel %vm2508_vm10, %v2659_v30, %v2660_v63  ;;  %v2681_v51 = vrot.slane %v2369_v50, 1  ;;  %v2692_v16 = vrot.slane %v2373_v11, 1  ;;  %v2367_v0 = vld [vmem:[#allocation3 + $0x398] sm:$0xfe]  ;;  %v2371_v36 = vld [vmem:[#allocation3 + $0x3b8] sm:$0x1] }
 0x68a   :  { %v2673_v7 = vsel %vm2508_vm10, %v2671_v49, %v2672_v6  ;;  %v2693_v46 = vrot.slane %v2377_v40, 1  ;;  %v2375_v42 = vld [vmem:[#allocation3 + $0x3d8] sm:$0xfe]  ;;  %v2379_v47 = vld [vmem:[#allocation3 + $0x3f8] sm:$0x1]  ;;  %v2686_v44 = vrot.slane %v2367_v0, 1 }
 0x68b   :  { %v2682_v55 = vsel %vm2508_vm10, %v2680_v9, %v2681_v51  ;;  %v2687_v18 = vrot.slane %v2371_v36, 1  ;;  %v2698_v10 = vrot.slane %v2375_v42, 1  ;;  %v2364_v53 = vld [vmem:[#allocation3 + $0x380] sm:$0xfe]  ;;  %v2368_v17 = vld [vmem:[#allocation3 + $0x3a0] sm:$0x1]  ;;  %v2791_v34 = vpack.c.bf16 %v2673_v7, %v2661_v52 }
 0x68c   :  { %3135 = vmatmul.mubr.bf16.gmra.mrb[56].mxu0 %v2789_v32  ;;  %v2694_v38 = vsel %vm2508_vm10, %v2692_v16, %v2693_v46  ;;  %v2699_v37 = vrot.slane %v2379_v47, 1  ;;  %v2372_v2 = vld [vmem:[#allocation3 + $0x3c0] sm:$0xfe]  ;;  %v2376_v8 = vld [vmem:[#allocation3 + $0x3e0] sm:$0x1]  ;;  %v2677_v5 = vrot.slane %v2364_v53, 1 }
 0x68d   :  { %v2794_v43 = vpack.c.bf16 %v2694_v38, %v2682_v55  ;;  %v2688_v4 = vsel %vm2508_vm10, %v2686_v44, %v2687_v18  ;;  %v2678_v20 = vrot.slane %v2368_v17, 1  ;;  %v2689_v3 = vrot.slane %v2372_v2, 1  ;;  %v2366_v39 = vld [vmem:[#allocation3 + $0x390] sm:$0xfe]  ;;  %v2370_v56 = vld [vmem:[#allocation3 + $0x3b0] sm:$0x1] }
 0x68e   :  { %3232 = vmatmul.mubr.bf16.gmra.mrb[56].mxu1 %v2791_v34  ;;  %v2700_v59 = vsel %vm2508_vm10, %v2698_v10, %v2699_v37  ;;  %v2690_v54 = vrot.slane %v2376_v8, 1  ;;  %v2374_v15 = vld [vmem:[#allocation3 + $0x3d0] sm:$0xfe]  ;;  %v2378_v12 = vld [vmem:[#allocation3 + $0x3f0] sm:$0x1]  ;;  %v2683_v58 = vrot.slane %v2366_v39, 1 }
 0x68f   :  { %3142 = vmatprep.mubr.bf16.mxu0 %v2794_v43  ;;  %v2796_v31 = vpack.c.bf16 %v2700_v59, %v2688_v4  ;;  %v2679_v1 = vsel %vm2508_vm10, %v2677_v5, %v2678_v20  ;;  %v2684_v26 = vrot.slane %v2370_v56, 1  ;;  %v2695_v33 = vrot.slane %v2374_v15, 1  ;;  %v12197_v28 = vld [vmem:[#allocation3 + $0x8] sm:$0xff]  ;;  %v11971_v13 = vld [vmem:[%s19137_s6 + $0x200] sm:$0xff]   ;;  %v2103_v21 = vld [vmem:[#allocation3 + $0x98] sm:$0xff] }
 0x690   :  { %v2691_v29 = vsel %vm2508_vm10, %v2689_v3, %v2690_v54  ;;  %v2696_v45 = vrot.slane %v2378_v12, 1  ;;  %v2157_v19 = vpack.c.bf16 %v12197_v28, %v12197_v28  ;;  %v2101_v27 = vld [vmem:[#allocation3 + $0x88] sm:$0xff]  ;;  %v2107_v41 = vld [vmem:[#allocation3 + $0xd8] sm:$0xff]  ;;  %v11972_v30 = vld [vmem:[%s19137_s6 + $0x280] sm:$0xff]  }
 0x691   :  { %3239 = vmatprep.mubr.bf16.mxu1 %v2796_v31  ;;  %v2793_v24 = vpack.c.bf16 %v2691_v29, %v2679_v1  ;;  %v2685_v22 = vsel %vm2508_vm10, %v2683_v58, %v2684_v26  ;;  %v2105_v57 = vld [vmem:[#allocation3 + $0xc8] sm:$0xff]  ;;  %v2163_v63 = vpack.c.bf16 %v2107_v41, %v2103_v21  ;;  %v11977_v49 = vld [vmem:[%s19137_s6 + $0x250] sm:$0xff]   ;;  %v2100_v62 = vld [vmem:[#allocation3 + $0x80] sm:$0xff] }
 0x692   :  { %v2697_v35 = vsel %vm2508_vm10, %v2695_v33, %v2696_v45  ;;  %v11973_v48 = vld [vmem:[%s19137_s6 + $0x248] sm:$0xff]   ;;  %v2161_v23 = vpack.c.bf16 %v2105_v57, %v2101_v27  ;;  %v2104_v50 = vld [vmem:[#allocation3 + $0xc0] sm:$0xff]  ;;  %v11978_v40 = vld [vmem:[%s19137_s6 + $0x2d0] sm:$0xff]  }
 0x693   :  { %v2795_v61 = vpack.c.bf16 %v2697_v35, %v2685_v22  ;;  %v11974_v60 = vld [vmem:[%s19137_s6 + $0x2c8] sm:$0xff]   ;;  %v2160_v9 = vpack.c.bf16 %v2104_v50, %v2100_v62  ;;  %v2102_v32 = vld [vmem:[#allocation3 + $0x90] sm:$0xff]  ;;  %v2111_v0 = vld [vmem:[#allocation3 + $0x118] sm:$0xff] }
 0x694   :  { %3143 = vmatmul.mubr.bf16.gmra.mrb[60].mxu0 %v2793_v24  ;;  %v11975_v25 = vld [vmem:[%s19137_s6 + $0x208] sm:$0xff]   ;;  %v2106_v52 = vld [vmem:[#allocation3 + $0xd0] sm:$0xff]  ;;  %v2115_v36 = vld [vmem:[#allocation3 + $0x158] sm:$0xff] }
 0x695   :  { %3472 = vmatprep.mubr.bf16.mxu0 %v2157_v19  ;;  %v11976_v14 = vld [vmem:[%s19137_s6 + $0x288] sm:$0xff]   ;;  %v11979_v51 = vld [vmem:[%s19137_s6 + $0x210] sm:$0xff]   ;;  %v11981_v7 = vld [vmem:[%s19137_s6 + $0x258] sm:$0xff]   ;;  %v2162_v42 = vpack.c.bf16 %v2106_v52, %v2102_v32  ;;  %v2167_v44 = vpack.c.bf16 %v2115_v36, %v2111_v0 }
 0x696   :  { %3240 = vmatmul.mubr.bf16.gmra.mrb[60].mxu1 %v2795_v61  ;;  %v2109_v6 = vld [vmem:[#allocation3 + $0x108] sm:$0xff]  ;;  %v11980_v46 = vld [vmem:[%s19137_s6 + $0x290] sm:$0xff]   ;;  %v11982_v47 = vld [vmem:[%s19137_s6 + $0x2d8] sm:$0xff]  }
 0x697   :  { %3569 = vmatprep.mubr.bf16.mxu1 %v2157_v19  ;;  %v2113_v11 = vld [vmem:[#allocation3 + $0x148] sm:$0xff]  ;;  %v11983_v55 = vld [vmem:[%s19137_s6 + $0x218] sm:$0xff]   ;;  %v2108_v18 = vld [vmem:[#allocation3 + $0x100] sm:$0xff] }
 0x698   :  { %v2165_v16 = vpack.c.bf16 %v2113_v11, %v2109_v6  ;;  %v2112_v10 = vld [vmem:[#allocation3 + $0x140] sm:$0xff]  ;;  %v2117_v17 = vld [vmem:[#allocation3 + $0x188] sm:$0xff]  ;;  %v11984_v38 = vld [vmem:[%s19137_s6 + $0x298] sm:$0xff]  }
 0x699   :  { %v11985_v53 = vld [vmem:[%s19137_s6 + $0x260] sm:$0xff]   ;;  %v2121_v34 = vld [vmem:[#allocation3 + $0x1c8] sm:$0xff]  ;;  %v2164_v2 = vpack.c.bf16 %v2112_v10, %v2108_v18  ;;  %v2110_v8 = vld [vmem:[#allocation3 + $0x110] sm:$0xff] }
 0x69a   :  { %v11986_v37 = vld [vmem:[%s19137_s6 + $0x2e0] sm:$0xff]   ;;  %v2114_v5 = vld [vmem:[#allocation3 + $0x150] sm:$0xff]  ;;  %v2169_v4 = vpack.c.bf16 %v2121_v34, %v2117_v17  ;;  %v2119_v20 = vld [vmem:[#allocation3 + $0x198] sm:$0xff] }
 0x69b   :  { %v11987_v43 = vld [vmem:[%s19137_s6 + $0x220] sm:$0xff]   ;;  %v2123_v3 = vld [vmem:[#allocation3 + $0x1d8] sm:$0xff]  ;;  %v11989_v39 = vld [vmem:[%s19137_s6 + $0x268] sm:$0xff]   ;;  %v2166_v59 = vpack.c.bf16 %v2114_v5, %v2110_v8 }
 0x69c   :  { %3473 = vmatmul.mubr.bf16.vlgmr.msra.gmra.mrb[64].mxu0 %v2157_v19  ;;  %v11988_v56 = vld [vmem:[%s19137_s6 + $0x2a0] sm:$0xff]   ;;  %v11990_v54 = vld [vmem:[%s19137_s6 + $0x2e8] sm:$0xff]   ;;  %v2171_v15 = vpack.c.bf16 %v2123_v3, %v2119_v20  ;;  %v11993_v1 = vld [vmem:[%s19137_s6 + $0x270] sm:$0xff]  }
 0x69d   :  { %10981 = vmatpush3.bf16.msra.mxu0 %v11971_v13  ;;  %3480 = vmatprep.mubr.bf16.mxu0 %v2161_v23  ;;  %v11991_v12 = vld [vmem:[%s19137_s6 + $0x228] sm:$0xff]   ;;  %v2116_v58 = vld [vmem:[#allocation3 + $0x180] sm:$0xff]  ;;  %v11994_v45 = vld [vmem:[%s19137_s6 + $0x2f0] sm:$0xff]  }
 0x69e   :  { %10982 = vmatprep.subr.bf16.mxu0 %v11973_v48  ;;  %3570 = vmatmul.mubr.bf16.vlgmr.msra.gmra.mrb[64].mxu1 %v2157_v19  ;;  %v2120_v31 = vld [vmem:[#allocation3 + $0x1c0] sm:$0xff]  ;;  %v2125_v26 = vld [vmem:[#allocation3 + $0x208] sm:$0xff]  ;;  %v2118_v19 = vld [vmem:[#allocation3 + $0x190] sm:$0xff] }
 0x69f   :  { %11045 = vmatpush3.bf16.msra.mxu1 %v11972_v30  ;;  %3577 = vmatprep.mubr.bf16.mxu1 %v2163_v63  ;;  %v2129_v33 = vld [vmem:[#allocation3 + $0x248] sm:$0xff]  ;;  %v2168_v28 = vpack.c.bf16 %v2120_v31, %v2116_v58  ;;  %v2122_v24 = vld [vmem:[#allocation3 + $0x1d0] sm:$0xff]  ;;  %v2127_v61 = vld [vmem:[#allocation3 + $0x218] sm:$0xff] }
 0x6a0   :  { %11046 = vmatprep.subr.bf16.mxu1 %v11974_v60  ;;  %v11992_v29 = vld [vmem:[%s19137_s6 + $0x2a8] sm:$0xff]   ;;  %v11995_v22 = vld [vmem:[%s19137_s6 + $0x230] sm:$0xff]   ;;  %v2173_v35 = vpack.c.bf16 %v2129_v33, %v2125_v26  ;;  %v2131_v27 = vld [vmem:[#allocation3 + $0x258] sm:$0xff]  ;;  %v2170_v48 = vpack.c.bf16 %v2122_v24, %v2118_v19 }
 0x6a1   :  { %10983 = vmatpush3.bf16.msra.mxu0 %v11975_v25  ;;  %v11997_v57 = vld [vmem:[%s19137_s6 + $0x278] sm:$0xff]   ;;  %v11996_v13 = vld [vmem:[%s19137_s6 + $0x2b0] sm:$0xff]   ;;  %v2175_v21 = vpack.c.bf16 %v2131_v27, %v2127_v61  ;;  %v2124_v30 = vld [vmem:[#allocation3 + $0x200] sm:$0xff] }
 0x6a2   :  { %10984 = vmatprep.subr.bf16.mxu0 %v11977_v49  ;;  %v11998_v23 = vld [vmem:[%s19137_s6 + $0x2f8] sm:$0xff]   ;;  %v2128_v60 = vld [vmem:[#allocation3 + $0x240] sm:$0xff]  ;;  %v2133_v63 = vld [vmem:[#allocation3 + $0x288] sm:$0xff] }
 0x6a3   :  { %11047 = vmatpush3.bf16.msra.mxu1 %v11976_v14  ;;  %v11999_v41 = vld [vmem:[%s19137_s6 + $0x238] sm:$0xff]   ;;  %v12001_v25 = vld [vmem:[%s19137_s6 + $0x340] sm:$0xff]   ;;  %v2137_v49 = vld [vmem:[#allocation3 + $0x2c8] sm:$0xff]  ;;  %v2172_v14 = vpack.c.bf16 %v2128_v60, %v2124_v30 }
 0x6a4   :  { %3481 = vmatmul.mubr.bf16.gmra.mrb[68].mxu0 %v2160_v9  ;;  %11048 = vmatprep.subr.bf16.mxu1 %v11978_v40  ;;  %v12000_v62 = vld [vmem:[%s19137_s6 + $0x2b8] sm:$0xff]   ;;  %v12002_v50 = vld [vmem:[%s19137_s6 + $0x3c0] sm:$0xff]   ;;  %v2126_v6 = vld [vmem:[#allocation3 + $0x210] sm:$0xff]  ;;  %v2177_v40 = vpack.c.bf16 %v2137_v49, %v2133_v63 }
 0x6a5   :  { %3488 = vmatprep.mubr.bf16.mxu0 %v2165_v16  ;;  %10985 = vmatpush3.bf16.msra.mxu0 %v11979_v51  ;;  %v2130_v11 = vld [vmem:[#allocation3 + $0x250] sm:$0xff]  ;;  %v2135_v9 = vld [vmem:[#allocation3 + $0x298] sm:$0xff]  ;;  %v2132_v51 = vld [vmem:[#allocation3 + $0x280] sm:$0xff] }
 0x6a6   :  { %3578 = vmatmul.mubr.bf16.gmra.mrb[68].mxu1 %v2162_v42  ;;  %10986 = vmatprep.subr.bf16.mxu0 %v11981_v7  ;;  %v2139_v32 = vld [vmem:[#allocation3 + $0x2d8] sm:$0xff]  ;;  %v2174_v52 = vpack.c.bf16 %v2130_v11, %v2126_v6  ;;  %v14337_v16 = vld [vmem:[#allocation3 + $0x8] sm:$0xfc]  ;;  %v2136_v36 = vld [vmem:[#allocation3 + $0x2c0] sm:$0xff] }
 0x6a7   :  { %3585 = vmatprep.mubr.bf16.mxu1 %v2167_v44  ;;  %11049 = vmatpush3.bf16.msra.mxu1 %v11980_v46  ;;  %v2179_v0 = vpack.c.bf16 %v2139_v32, %v2135_v9  ;;  %v14339_v7 = vld [vmem:[#allocation3 + $0x28] sm:$0x3]  ;;  %v14341_v46 = vld [vmem:[#allocation3 + $0x48] sm:$0xfc]  ;;  %v2134_v42 = vld [vmem:[#allocation3 + $0x290] sm:$0xff]  ;;  %v2176_v5 = vpack.c.bf16 %v2136_v36, %v2132_v51 }
 0x6a8   :  { %11050 = vmatprep.subr.bf16.mxu1 %v11982_v47  ;;  %v14343_v47 = vld [vmem:[#allocation3 + $0x68] sm:$0x3]  ;;  %v14345_v44 = vld [vmem:[#allocation3 + $0x18] sm:$0xfc]  ;;  %v14358_v3 = vld [vmem:[#allocation3] sm:$0xfc] }
 0x6a9   :  { %10987 = vmatpush3.bf16.msra.mxu0 %v11983_v55  ;;  %v2138_v55 = vld [vmem:[#allocation3 + $0x2d0] sm:$0xff]  ;;  %v2141_v18 = vld [vmem:[#allocation3 + $0x308] sm:$0xff]  ;;  %v2143_v17 = vld [vmem:[#allocation3 + $0x318] sm:$0xff]  ;;  %v3900_v20 = vrot.slane %v14345_v44, 2  ;;  %v3891_v24 = vrot.slane %v14358_v3, 2 }
 0x6aa   :  { %10988 = vmatprep.subr.bf16.mxu0 %v11985_v53  ;;  %v2145_v10 = vld [vmem:[#allocation3 + $0x348] sm:$0xff]  ;;  %v3894_v53 = vrot.slane %v14337_v16, 2  ;;  %v2147_v34 = vld [vmem:[#allocation3 + $0x358] sm:$0xff]  ;;  %v14368_v58 = vld [vmem:[#allocation3 + $0x30] sm:$0x3] }
 0x6ab   :  { %11051 = vmatpush3.bf16.msra.mxu1 %v11984_v38  ;;  %v3895_v38 = vrot.slane %v14339_v7, 2  ;;  %v14352_v8 = vld [vmem:[#allocation3 + $0x58] sm:$0xfc]  ;;  %v14370_v31 = vld [vmem:[#allocation3 + $0x50] sm:$0xfc]  ;;  %v2144_v26 = vld [vmem:[#allocation3 + $0x340] sm:$0xff] }
 0x6ac   :  { %3489 = vmatmul.mubr.bf16.gmra.mrb[72].mxu0 %v2164_v2  ;;  %11052 = vmatprep.subr.bf16.mxu1 %v11986_v37  ;;  %v3906_v37 = vrot.slane %v14341_v46, 2  ;;  %v14350_v2 = vld [vmem:[#allocation3 + $0x38] sm:$0x3]  ;;  %v2142_v33 = vld [vmem:[#allocation3 + $0x310] sm:$0xff]  ;;  %v2153_v61 = vld [vmem:[#allocation3 + $0x3c8] sm:$0xff]  ;;  %v3898_v60 = vrot.slane %v14368_v58, 2 }
 0x6ad   :  { %3496 = vmatprep.mubr.bf16.mxu0 %v2169_v4  ;;  %10989 = vmatpush3.bf16.msra.mxu0 %v11987_v43  ;;  %v3907_v43 = vrot.slane %v14343_v47, 2  ;;  %v14355_v4 = vld [vmem:[#allocation3 + $0x78] sm:$0x3]  ;;  %v14386_v63 = vld [vmem:[#allocation3 + $0xa8] sm:$0x3] }
 0x6ae   :  { %3586 = vmatmul.mubr.bf16.gmra.mrb[72].mxu1 %v2166_v59  ;;  %10990 = vmatprep.subr.bf16.mxu0 %v11989_v39  ;;  %v2181_v39 = vpack.c.bf16 %v2145_v10, %v2141_v18  ;;  %v14362_v59 = vld [vmem:[#allocation3 + $0x40] sm:$0xfc]  ;;  %v3913_v19 = vrot.slane %v14355_v4, 2  ;;  %v14388_v49 = vld [vmem:[#allocation3 + $0xc8] sm:$0xfc]  ;;  %v3896_v10 = vsel %vm3890_vm11, %v3894_v53, %v3895_v38 }
 0x6af   :  { %3593 = vmatprep.mubr.bf16.mxu1 %v2171_v15  ;;  %11053 = vmatpush3.bf16.msra.mxu1 %v11988_v56  ;;  %v14360_v56 = vld [vmem:[#allocation3 + $0x20] sm:$0x3]  ;;  %v2178_v15 = vpack.c.bf16 %v2138_v55, %v2134_v42  ;;  %v14394_v6 = vld [vmem:[#allocation3 + $0x98] sm:$0xfc]  ;;  %v14396_v11 = vld [vmem:[#allocation3 + $0xb8] sm:$0x3] }
 0x6b0   :  { %11054 = vmatprep.subr.bf16.mxu1 %v11990_v54  ;;  %v14364_v54 = vld [vmem:[#allocation3 + $0x60] sm:$0x3]  ;;  %v3892_v27 = vrot.slane %v14360_v56, 2  ;;  %v14398_v32 = vld [vmem:[#allocation3 + $0xd8] sm:$0xfc]  ;;  %v3919_v42 = vrot.slane %v14386_v63, 2 }
 0x6b1   :  { %10991 = vmatpush3.bf16.msra.mxu0 %v11991_v12  ;;  %v14366_v12 = vld [vmem:[#allocation3 + $0x10] sm:$0xfc]  ;;  %v14402_v51 = vld [vmem:[#allocation3 + $0x80] sm:$0xfc]  ;;  %v3930_v47 = vrot.slane %v14388_v49, 2  ;;  %v3925_v7 = vrot.slane %v14396_v11, 2 }
 0x6b2   :  { %10992 = vmatprep.subr.bf16.mxu0 %v11993_v1  ;;  %v2140_v1 = vld [vmem:[#allocation3 + $0x300] sm:$0xff]  ;;  %v3897_v30 = vrot.slane %v14366_v12, 2  ;;  %v3936_v16 = vrot.slane %v14398_v32, 2  ;;  %v3915_v46 = vrot.slane %v14402_v51, 2  ;;  %v14442_v44 = vld [vmem:[#allocation3 + $0x108] sm:$0xfc] }
 0x6b3   :  { %11055 = vmatpush3.bf16.msra.mxu1 %v11992_v29  ;;  %v2146_v29 = vld [vmem:[#allocation3 + $0x350] sm:$0xff]  ;;  %v14406_v55 = vld [vmem:[#allocation3 + $0xa0] sm:$0x3]  ;;  %v14408_v18 = vld [vmem:[#allocation3 + $0xc0] sm:$0xfc] }
 0x6b4   :  { %3497 = vmatmul.mubr.bf16.gmra.mrb[76].mxu0 %v2168_v28  ;;  %11056 = vmatprep.subr.bf16.mxu1 %v11994_v45  ;;  %v3901_v45 = vrot.slane %v14350_v2, 2  ;;  %v3912_v28 = vrot.slane %v14352_v8, 2  ;;  %v2182_v9 = vpack.c.bf16 %v2146_v29, %v2142_v33  ;;  %v3924_v2 = vrot.slane %v14394_v6, 2  ;;  %v14420_v8 = vld [vmem:[#allocation3 + $0xe0] sm:$0x3]  ;;  %v12005_v6 = vld [vmem:[%s19137_s6 + $0x348] sm:$0xff]  }
 0x6b5   :  { %3504 = vmatprep.mubr.bf16.mxu0 %v2173_v35  ;;  %10993 = vmatpush3.bf16.msra.mxu0 %v11995_v22  ;;  %v2183_v22 = vpack.c.bf16 %v2147_v34, %v2143_v17  ;;  %v2149_v35 = vld [vmem:[#allocation3 + $0x388] sm:$0xff]  ;;  %v3908_v17 = vsel %vm3890_vm11, %v3906_v37, %v3907_v43  ;;  %v2148_v4 = vld [vmem:[#allocation3 + $0x380] sm:$0xff]  ;;  %v3916_v43 = vrot.slane %v14406_v55, 2  ;;  %v14439_v29 = vld [vmem:[#allocation3 + $0xf0] sm:$0x3]  ;;  %v19593_v32 = vrot.slane %v14408_v18, 2 }
 0x6b6   :  { %3594 = vmatmul.mubr.bf16.gmra.mrb[76].mxu1 %v2170_v48  ;;  %10994 = vmatprep.subr.bf16.mxu0 %v11997_v57  ;;  %v3903_v57 = vrot.slane %v14362_v59, 2  ;;  %v14380_v48 = vld [vmem:[#allocation3 + $0x88] sm:$0xfc]  ;;  %v3902_v38 = vsel %vm3890_vm11, %v3900_v20, %v3901_v45  ;;  %v3914_v37 = vsel %vm3890_vm11, %v3912_v28, %v3913_v19  ;;  %v14444_v20 = vld [vmem:[#allocation3 + $0x128] sm:$0x3] }
 0x6b7   :  { %3601 = vmatprep.mubr.bf16.mxu1 %v2175_v21  ;;  %11057 = vmatpush3.bf16.msra.mxu1 %v11996_v13  ;;  %v14378_v13 = vld [vmem:[#allocation3 + $0x70] sm:$0x3]  ;;  %v2155_v21 = vld [vmem:[#allocation3 + $0x3d8] sm:$0xff]  ;;  %v14446_v45 = vld [vmem:[#allocation3 + $0x148] sm:$0xfc] }
 0x6b8   :  { %11058 = vmatprep.subr.bf16.mxu1 %v11998_v23  ;;  %v2151_v23 = vld [vmem:[#allocation3 + $0x398] sm:$0xff]  ;;  %v14448_v28 = vld [vmem:[#allocation3 + $0x168] sm:$0x3]  ;;  %v14488_v33 = vld [vmem:[#allocation3 + $0x110] sm:$0xfc] }
 0x6b9   :  { %10995 = vmatpush3.bf16.msra.mxu0 %v11999_v41  ;;  %v3904_v41 = vrot.slane %v14364_v54, 2  ;;  %v2187_v36 = vpack.c.bf16 %v2155_v21, %v2151_v23  ;;  %v14450_v23 = vld [vmem:[#allocation3 + $0x118] sm:$0xfc]  ;;  %v14452_v21 = vld [vmem:[#allocation3 + $0x138] sm:$0x3] }
 0x6ba   :  { %11108 = vmatprep.subr.bf16.mxu0 %v12001_v25  ;;  %v3909_v25 = vrot.slane %v14370_v31, 2  ;;  %v14490_v56 = vld [vmem:[#allocation3 + $0x130] sm:$0x3]  ;;  %v14588_v49 = vld [vmem:[#allocation3 + $0x1e0] sm:$0x3] }
 0x6bb   :  { %11059 = vmatpush3.bf16.msra.mxu1 %v12000_v62  ;;  %v14390_v62 = vld [vmem:[#allocation3 + $0xe8] sm:$0x3]  ;;  %v3946_v11 = vrot.slane %v14490_v56, 2 }
 0x6bc   :  { %3505 = vmatmul.mubr.bf16.gmra.mrb[80].mxu0 %v2172_v14  ;;  %11172 = vmatprep.subr.bf16.mxu1 %v12002_v50  ;;  %v3910_v50 = vrot.slane %v14378_v13, 2  ;;  %v3918_v14 = vrot.slane %v14380_v48, 2  ;;  %v3931_v34 = vrot.slane %v14390_v62, 2  ;;  %v3926_v48 = vsel %vm3890_vm11, %v3924_v2, %v3925_v7  ;;  %v14539_v62 = vld [vmem:[#allocation3 + $0x1e8] sm:$0x3] }
 0x6bd   :  { %3512 = vmatprep.mubr.bf16.mxu0 %v2177_v40  ;;  %v2180_v40 = vpack.c.bf16 %v2144_v26, %v2140_v1  ;;  %v14434_v1 = vld [vmem:[#allocation3 + $0xb0] sm:$0x3]  ;;  %v14436_v26 = vld [vmem:[#allocation3 + $0xd0] sm:$0xfc]  ;;  %v12006_v2 = vld [vmem:[%s19137_s6 + $0x3c8] sm:$0xff]  }
 0x6be   :  { %3602 = vmatmul.mubr.bf16.gmra.mrb[80].mxu1 %v2174_v52  ;;  %v14400_v52 = vld [vmem:[#allocation3 + $0xf8] sm:$0x3]  ;;  %v3920_v12 = vsel %vm3890_vm11, %v3918_v14, %v3919_v42  ;;  %v3932_v58 = vsel %vm3890_vm11, %v3930_v47, %v3931_v34  ;;  %v12004_v14 = vld [vmem:[%s19137_s6 + $0x380] sm:$0xff]   ;;  %v12007_v7 = vld [vmem:[%s19137_s6 + $0x308] sm:$0xff]  }
 0x6bf   :  { %3609 = vmatprep.mubr.bf16.mxu1 %v2179_v0  ;;  %v2185_v0 = vpack.c.bf16 %v2153_v61, %v2149_v35  ;;  %v3937_v53 = vrot.slane %v14400_v52, 2  ;;  %v4148_v35 = vpack.c.bf16 %v3908_v17, %v3896_v10  ;;  %v4150_v61 = vpack.c.bf16 %v3914_v37, %v3902_v38  ;;  %v14472_v38 = vld [vmem:[#allocation3 + $0x178] sm:$0x3]  ;;  %v14474_v37 = vld [vmem:[#allocation3 + $0x100] sm:$0xfc] }
 0x6c0   :  { %v3893_v10 = vsel %vm3890_vm11, %v3891_v24, %v3892_v27  ;;  %v3905_v17 = vsel %vm3890_vm11, %v3903_v57, %v3904_v41  ;;  %v3949_v24 = vrot.slane %v14452_v21, 2  ;;  %v14480_v27 = vld [vmem:[#allocation3 + $0x120] sm:$0x3]  ;;  %v14482_v57 = vld [vmem:[#allocation3 + $0x140] sm:$0xfc]  ;;  %v4152_v34 = vpack.c.bf16 %v3932_v58, %v3920_v12  ;;  %v12013_v21 = vld [vmem:[%s19137_s6 + $0x358] sm:$0xff]  }
 0x6c1   :  { %v14484_v41 = vld [vmem:[#allocation3 + $0x160] sm:$0x3]  ;;  %v4147_v3 = vpack.c.bf16 %v3905_v17, %v3893_v10  ;;  %v14509_v10 = vld [vmem:[#allocation3 + $0x188] sm:$0xfc]  ;;  %v3940_v31 = vrot.slane %v14480_v27, 2  ;;  %v3951_v13 = vrot.slane %v14482_v57, 2 }
 0x6c2   :  { %v3952_v63 = vrot.slane %v14484_v41, 2  ;;  %v14563_v17 = vld [vmem:[#allocation3 + $0x1d8] sm:$0xfc]  ;;  %v14569_v12 = vld [vmem:[#allocation3 + $0x1f8] sm:$0x3]  ;;  %v19600_v27 = vrot.slane %v14488_v33, 2 }
 0x6c3   :  { %v14572_v42 = vld [vmem:[#allocation3 + $0x180] sm:$0xfc]  ;;  %v14584_v52 = vld [vmem:[#allocation3 + $0x1a0] sm:$0x3]  ;;  %v14704_v41 = vld [vmem:[#allocation3 + $0x278] sm:$0x3] }
 0x6c4   :  { %3513 = vmatmul.mubr.bf16.gmra.mrb[84].mxu0 %v2176_v5  ;;  %v14422_v5 = vld [vmem:[#allocation3 + $0x90] sm:$0xfc]  ;;  %v14586_v58 = vld [vmem:[#allocation3 + $0x1c0] sm:$0xfc]  ;;  %v19604_v56 = vrot.slane %v14509_v10, 2  ;;  %v12015_v10 = vld [vmem:[%s19137_s6 + $0x318] sm:$0xff]  }
 0x6c5   :  { %3520 = vmatprep.mubr.bf16.mxu0 %v2181_v39  ;;  %v2152_v39 = vld [vmem:[#allocation3 + $0x3c0] sm:$0xff]  ;;  %v19594_v55 = vrot.slane %v14422_v5, 2  ;;  %v19597_v5 = vrot.slane %v14446_v45, 2  ;;  %v3984_v45 = vrot.slane %v14563_v17, 2  ;;  %v19599_v17 = vrot.slane %v14474_v37, 2 }
 0x6c6   :  { %3610 = vmatmul.mubr.bf16.gmra.mrb[84].mxu1 %v2178_v15  ;;  %v2184_v19 = vpack.c.bf16 %v2152_v39, %v2148_v4  ;;  %v3934_v15 = vrot.slane %v14439_v29, 2  ;;  %v3943_v4 = vrot.slane %v14444_v20, 2  ;;  %v3961_v39 = vrot.slane %v14472_v38, 2  ;;  %v14616_v29 = vld [vmem:[#allocation3 + $0x1b0] sm:$0x3] }
 0x6c7   :  { %3617 = vmatprep.mubr.bf16.mxu1 %v2183_v22  ;;  %v3922_v22 = vrot.slane %v14434_v1, 2  ;;  %v3970_v38 = vrot.slane %v14616_v29, 2  ;;  %v3953_v37 = vsel %vm3890_vm11, %v3951_v13, %v3952_v63  ;;  %v14706_v57 = vld [vmem:[#allocation3 + $0x200] sm:$0xfc] }
 0x6c9   :  { %v14595_v51 = vsel %vm3890_vm11, %v19594_v55, %v3922_v22  ;;  %v14614_v22 = vld [vmem:[#allocation3 + $0x190] sm:$0xfc]  ;;  %v14679_v55 = vld [vmem:[#allocation3 + $0x218] sm:$0xfc] }
 0x6cc   :  { %3521 = vmatmul.mubr.bf16.gmra.mrb[88].mxu0 %v2180_v40  ;;  %v14454_v40 = vld [vmem:[#allocation3 + $0x158] sm:$0xfc] }
 0x6cd   :  { %3528 = vmatprep.mubr.bf16.mxu0 %v2185_v0  ;;  %v2154_v0 = vld [vmem:[#allocation3 + $0x3d0] sm:$0xff]  ;;  %v3960_v54 = vrot.slane %v14454_v40, 2  ;;  %v3976_v40 = vrot.slane %v14588_v49, 2  ;;  %v12020_v49 = vld [vmem:[%s19137_s6 + $0x3a0] sm:$0xff]  }
 0x6ce   :  { %3618 = vmatmul.mubr.bf16.gmra.mrb[88].mxu1 %v2182_v9  ;;  %v2150_v9 = vld [vmem:[#allocation3 + $0x390] sm:$0xff] }
 0x6cf   :  { %3625 = vmatprep.mubr.bf16.mxu1 %v2187_v36  ;;  %v3933_v36 = vrot.slane %v14436_v26, 2  ;;  %v2186_v59 = vpack.c.bf16 %v2154_v0, %v2150_v9  ;;  %v3911_v9 = vsel %vm3890_vm11, %v3909_v25, %v3910_v50  ;;  %v12003_v0 = vld [vmem:[%s19137_s6 + $0x300] sm:$0xff]   ;;  %v3938_v25 = vsel %vm3890_vm11, %v3936_v16, %v3937_v53  ;;  %v14541_v50 = vld [vmem:[#allocation3 + $0x198] sm:$0xfc]  ;;  %v14618_v26 = vld [vmem:[#allocation3 + $0x1d0] sm:$0xfc] }
 0x6d0   :  { %v4154_v53 = vpack.c.bf16 %v3938_v25, %v3926_v48  ;;  %v19592_v16 = vrot.slane %v14420_v8, 2  ;;  %v19595_v8 = vrot.slane %v14442_v44, 2  ;;  %v12010_v44 = vld [vmem:[%s19137_s6 + $0x3d0] sm:$0xff]   ;;  %v3962_v48 = vsel %vm3890_vm11, %v3960_v54, %v3961_v39 }
 0x6d1   :  { %v14602_v18 = vsel %vm3890_vm11, %v3933_v36, %v3934_v15  ;;  %v12008_v15 = vld [vmem:[%s19137_s6 + $0x388] sm:$0xff]   ;;  %v3963_v36 = vrot.slane %v14572_v42, 2  ;;  %v3964_v25 = vrot.slane %v14584_v52, 2  ;;  %v3969_v39 = vrot.slane %v14614_v22, 2 }
 0x6d2   :  { %v12022_v22 = vld [vmem:[%s19137_s6 + $0x3e8] sm:$0xff]  }
 0x6d3   :  { %v14796_v42 = vsel %vm3890_vm11, %v3969_v39, %v3970_v38 }
 0x6d4   :  { %3529 = vmatmul.mubr.bf16.gmra.mrb[92].mxu0 %v2184_v19  ;;  %v14505_v19 = vld [vmem:[#allocation3 + $0x150] sm:$0xfc] }
 0x6d5   :  { %4468 = vmatprep.mubr.bf16.mxu0 %v4148_v35  ;;  %v3899_v35 = vsel %vm3890_vm11, %v3897_v30, %v3898_v60  ;;  %v14523_v30 = vld [vmem:[#allocation3 + $0x1a8] sm:$0x3]  ;;  %v14525_v60 = vld [vmem:[#allocation3 + $0x1c8] sm:$0xfc] }
 0x6d6   :  { %3626 = vmatmul.mubr.bf16.gmra.mrb[92].mxu1 %v2186_v59  ;;  %v14507_v59 = vld [vmem:[#allocation3 + $0x170] sm:$0x3]  ;;  %v4149_v47 = vpack.c.bf16 %v3911_v9, %v3899_v35  ;;  %v3929_v9 = vsel %vm3890_vm11, %v19593_v32, %v19592_v16  ;;  %v14663_v16 = vld [vmem:[#allocation3 + $0x248] sm:$0xfc]  ;;  %v19603_v33 = vrot.slane %v14523_v30, 2 }
 0x6d7   :  { %4565 = vmatprep.mubr.bf16.mxu1 %v4150_v61  ;;  %v14561_v61 = vld [vmem:[#allocation3 + $0x1b8] sm:$0x3]  ;;  %v12009_v35 = vld [vmem:[%s19137_s6 + $0x350] sm:$0xff]   ;;  %v14727_v30 = vld [vmem:[#allocation3 + $0x260] sm:$0x3] }
 0x6d8   :  { %v3973_v20 = vrot.slane %v14561_v61, 2  ;;  %v14642_v32 = vld [vmem:[#allocation3 + $0x1f0] sm:$0x3]  ;;  %v3968_v13 = vsel %vm3890_vm11, %v19604_v56, %v19603_v33 }
 0x6d9   :  { %v14767_v33 = vld [vmem:[#allocation3 + $0x270] sm:$0x3] }
 0x6dc   :  { %4469 = vmatmul.mubr.bf16.vlgmr.msra.gmra.mrb[96].mxu0 %v4147_v3  ;;  %v3917_v3 = vsel %vm3890_vm11, %v3915_v46, %v3916_v43  ;;  %v3944_v46 = vsel %vm3890_vm11, %v19595_v8, %v3943_v4  ;;  %v19596_v43 = vrot.slane %v14448_v28, 2  ;;  %v3985_v28 = vrot.slane %v14569_v12, 2 }
 0x6dd   :  { %11109 = vmatpush3.bf16.msra.mxu0 %v12003_v0  ;;  %4476 = vmatprep.mubr.bf16.mxu0 %v4152_v34  ;;  %v19598_v4 = vrot.slane %v14450_v23, 2  ;;  %v12011_v23 = vld [vmem:[%s19137_s6 + $0x310] sm:$0xff]   ;;  %v4151_v54 = vpack.c.bf16 %v3929_v9, %v3917_v3  ;;  %v14672_v9 = vsel %vm3890_vm11, %v19599_v17, %v3940_v31  ;;  %v3982_v12 = vrot.slane %v14642_v32, 2  ;;  %v10804_v17 = vpop.f32.mrb[32].mxu1  ;;  %v3717_v32 = vld [vmem:[#allocation3 + $0x298] sm:$0xfc] }
 0x6de   :  { %11110 = vmatprep.subr.bf16.mxu0 %v12005_v6  ;;  %v3956_v1 = vsel %vm3890_vm11, %v19597_v5, %v19596_v43  ;;  %4566 = vmatmul.mubr.bf16.vlgmr.msra.gmra.mrb[96].mxu1 %v4149_v47  ;;  %v3975_v6 = vrot.slane %v14586_v58, 2  ;;  %v4153_v47 = vpack.c.bf16 %v14602_v18, %v14595_v51  ;;  %v14681_v51 = vld [vmem:[#allocation3 + $0x238] sm:$0x3]  ;;  %v14693_v31 = vsel %vm3890_vm11, %v19600_v27, %v3946_v11  ;;  %v14702_v43 = vld [vmem:[#allocation3 + $0x258] sm:$0xfc] }
 0x6df   :  { %11173 = vmatpush3.bf16.msra.mxu1 %v12004_v14  ;;  %4573 = vmatprep.mubr.bf16.mxu1 %v4154_v53  ;;  %v3950_v0 = vsel %vm3890_vm11, %v19598_v4, %v3949_v24  ;;  %v14644_v14 = vld [vmem:[#allocation3 + $0x208] sm:$0xfc]  ;;  %v3981_v24 = vrot.slane %v14618_v26, 2  ;;  %v4156_v34 = vpack.c.bf16 %v3956_v1, %v3944_v46  ;;  %v14665_v53 = vld [vmem:[#allocation3 + $0x268] sm:$0x3]  ;;  %v19601_v18 = vrot.slane %v14507_v59, 2 }
 0x6e0   :  { %11174 = vmatprep.subr.bf16.mxu1 %v12006_v2  ;;  %v12012_v2 = vld [vmem:[%s19137_s6 + $0x390] sm:$0xff]   ;;  %v4158_v61 = vpack.c.bf16 %v3962_v48, %v3950_v0  ;;  %v3990_v3 = vrot.slane %v14644_v14, 2  ;;  %v19602_v8 = vrot.slane %v14505_v19, 2  ;;  %v19605_v59 = vrot.slane %v14539_v62, 2  ;;  %v14723_v1 = vld [vmem:[#allocation3 + $0x220] sm:$0x3] }
 0x6e1   :  { %11111 = vmatpush3.bf16.msra.mxu0 %v12007_v7  ;;  %v14661_v7 = vld [vmem:[#allocation3 + $0x228] sm:$0x3]  ;;  %v19606_v19 = vrot.slane %v14525_v60, 2  ;;  %v19607_v11 = vrot.slane %v14541_v50, 2  ;;  %v12016_v60 = vld [vmem:[%s19137_s6 + $0x398] sm:$0xff]   ;;  %v4002_v50 = vrot.slane %v14663_v16, 2  ;;  %v14740_v4 = vsel %vm3890_vm11, %v3984_v45, %v3985_v28 }
 0x6e2   :  { %11112 = vmatprep.subr.bf16.mxu0 %v12009_v35  ;;  %v12014_v35 = vld [vmem:[%s19137_s6 + $0x3d8] sm:$0xff]   ;;  %v14700_v46 = vsel %vm3890_vm11, %v19602_v8, %v19601_v18  ;;  %v3991_v62 = vrot.slane %v14661_v7, 2  ;;  %v3997_v0 = vrot.slane %v14681_v51, 2  ;;  %v4008_v48 = vrot.slane %v14702_v43, 2  ;;  %v12018_v45 = vld [vmem:[%s19137_s6 + $0x3e0] sm:$0xff]   ;;  %v12026_v43 = vld [vmem:[%s19137_s6 + $0x3f0] sm:$0xff]  }
 0x6e3   :  { %11175 = vmatpush3.bf16.msra.mxu1 %v12008_v15  ;;  %v3980_v63 = vsel %vm3890_vm11, %v19606_v19, %v19605_v59  ;;  %v14721_v5 = vsel %vm3890_vm11, %v19607_v11, %v3973_v20  ;;  %v14725_v15 = vld [vmem:[#allocation3 + $0x240] sm:$0xfc]  ;;  %v3996_v20 = vrot.slane %v14679_v55, 2  ;;  %v3987_v28 = vrot.slane %v14706_v57, 2  ;;  %v10805_v19 = vpop.f32.mrb[33].mxu1 }
 0x6e4   :  { %4477 = vmatmul.mubr.bf16.gmra.mrb[100].mxu0 %v4151_v54  ;;  %11176 = vmatprep.subr.bf16.mxu1 %v12010_v44  ;;  %v4003_v44 = vrot.slane %v14665_v53, 2  ;;  %v12017_v54 = vld [vmem:[%s19137_s6 + $0x360] sm:$0xff]   ;;  %v4000_v7 = vrot.slane %v14727_v30, 2  ;;  %v14760_v53 = vld [vmem:[#allocation3 + $0x230] sm:$0x3]  ;;  %v4155_v27 = vpack.c.bf16 %v3953_v37, %v14672_v9  ;;  %v4157_v18 = vpack.c.bf16 %v14700_v46, %v14693_v31 }
 0x6e5   :  { %4484 = vmatprep.mubr.bf16.mxu0 %v4156_v34  ;;  %11113 = vmatpush3.bf16.msra.mxu0 %v12011_v23  ;;  %v4009_v23 = vrot.slane %v14704_v41, 2  ;;  %v14748_v34 = vld [vmem:[#allocation3 + $0x210] sm:$0xfc]  ;;  %v12019_v16 = vld [vmem:[%s19137_s6 + $0x320] sm:$0xff]   ;;  %v4160_v8 = vpack.c.bf16 %v3980_v63, %v3968_v13  ;;  %v4162_v11 = vpack.c.bf16 %v14740_v4, %v14721_v5  ;;  %v14780_v9 = vsel %vm3890_vm11, %v3963_v36, %v3964_v25  ;;  %v14782_v37 = vld [vmem:[#allocation3 + $0x288] sm:$0xfc] }
 0x6e6   :  { %4574 = vmatmul.mubr.bf16.gmra.mrb[100].mxu1 %v4153_v47  ;;  %11114 = vmatprep.subr.bf16.mxu0 %v12013_v21  ;;  %v3988_v21 = vrot.slane %v14723_v1, 2  ;;  %v3999_v47 = vrot.slane %v14725_v15, 2  ;;  %v3993_v56 = vrot.slane %v14748_v34, 2  ;;  %v14784_v31 = vld [vmem:[#allocation3 + $0x2a8] sm:$0x3]  ;;  %v10806_v13 = vadd.f32 %v10805_v19, %v10804_v17  ;;  %v12028_v30 = vld [vmem:[%s19137_s6 + $0x3b0] sm:$0xff]  }
 0x6e7   :  { %4581 = vmatprep.mubr.bf16.mxu1 %v4158_v61  ;;  %11177 = vmatpush3.bf16.msra.mxu1 %v12012_v2  ;;  %v14762_v2 = vld [vmem:[#allocation3 + $0x250] sm:$0xfc]  ;;  %v10740_v61 = vpop.f32.mrb[32].mxu0  ;;  %v3977_v52 = vsel %vm3890_vm11, %v3975_v6, %v3976_v40  ;;  %v14803_v36 = vsel %vm3890_vm11, %v3981_v24, %v3982_v12  ;;  %v14808_v58 = vld [vmem:[#allocation3 + $0x2c8] sm:$0xfc]  ;;  %v3992_v26 = vsel %vm3890_vm11, %v3990_v3, %v3991_v62  ;;  %v3994_v12 = vrot.slane %v14760_v53, 2 }
 0x6e8   :  { %11178 = vmatprep.subr.bf16.mxu1 %v12014_v35  ;;  %v12021_v35 = vld [vmem:[%s19137_s6 + $0x368] sm:$0xff]   ;;  %v10741_v59 = vpop.f32.mrb[33].mxu0  ;;  %v3721_v40 = vld [vmem:[#allocation3 + $0x2b8] sm:$0x3]  ;;  %v4004_v24 = vsel %vm3890_vm11, %v4002_v50, %v4003_v44  ;;  %v4005_v5 = vrot.slane %v14762_v2, 2  ;;  %v14832_v62 = vsel %vm3890_vm11, %v3996_v20, %v3997_v0  ;;  %v4014_v50 = vrot.slane %v14782_v37, 2 }
 0x6e9   :  { %11115 = vmatpush3.bf16.msra.mxu0 %v12015_v10  ;;  %v10742_v46 = vadd.f32 %v10741_v59, %v10740_v61  ;;  %v10743_v63 = vpop.f32.mrb[34].mxu0  ;;  %v10807_v10 = vpop.f32.mrb[34].mxu1  ;;  %v3727_v6 = vld [vmem:[#allocation3 + $0x2e8] sm:$0x3]  ;;  %v3725_v14 = vld [vmem:[#allocation3 + $0x2d8] sm:$0xfc]  ;;  %v4010_v55 = vsel %vm3890_vm11, %v4008_v48, %v4009_v23  ;;  %v4159_v41 = vpack.c.bf16 %v3977_v52, %v14780_v9  ;;  %v3989_v19 = vsel %vm3890_vm11, %v3987_v28, %v3988_v21 }
 0x6ea   :  { %11116 = vmatprep.subr.bf16.mxu0 %v12017_v54  ;;  %v10744_v29 = vpop.f32.mrb[35].mxu0  ;;  %v10808_v25 = vpop.f32.mrb[35].mxu1  ;;  %v12023_v3 = vld [vmem:[%s19137_s6 + $0x328] sm:$0xff]   ;;  %v4015_v44 = vrot.slane %v14784_v31, 2  ;;  %v4026_v4 = vrot.slane %v14808_v58, 2  ;;  %v4027_v51 = vrot.slane %v3727_v6, 2  ;;  %v4166_v59 = vpack.c.bf16 %v4010_v55, %v14832_v62 }
 0x6eb   :  { %11179 = vmatpush3.bf16.msra.mxu1 %v12016_v60  ;;  %v14816_v39 = vadd.f32 %v10744_v29, %v10743_v63  ;;  %v14818_v38 = vadd.f32 %v10808_v25, %v10807_v10  ;;  %v4006_v60 = vrot.slane %v14767_v33, 2  ;;  %v3729_v54 = vld [vmem:[#allocation3 + $0x2f8] sm:$0x3]  ;;  %v4020_v20 = vrot.slane %v3717_v32, 2  ;;  %v12024_v53 = vld [vmem:[%s19137_s6 + $0x3a8] sm:$0xff]  }
 0x6ec   :  { %4485 = vmatmul.mubr.bf16.gmra.mrb[104].mxu0 %v4155_v27  ;;  %11180 = vmatprep.subr.bf16.mxu1 %v12018_v45  ;;  %v12025_v45 = vld [vmem:[%s19137_s6 + $0x370] sm:$0xff]   ;;  %v4021_v0 = vrot.slane %v3721_v40, 2  ;;  %v4032_v2 = vrot.slane %v3725_v14, 2  ;;  %v14850_v61 = vld [vmem:[#allocation3 + $0x2a0] sm:$0x3]  ;;  %v4033_v48 = vrot.slane %v3729_v54, 2  ;;  %v4161_v33 = vpack.c.bf16 %v14803_v36, %v14796_v42 }
 0x6ed   :  { %4492 = vmatprep.mubr.bf16.mxu0 %v4160_v8  ;;  %11117 = vmatpush3.bf16.msra.mxu0 %v12019_v16  ;;  %v14845_v16 = vld [vmem:[#allocation3 + $0x280] sm:$0xfc]  ;;  %v14858_v23 = vld [vmem:[#allocation3 + $0x2e0] sm:$0x3]  ;;  %v14860_v27 = vld [vmem:[#allocation3 + $0x290] sm:$0xfc]  ;;  %v14865_v8 = vadd.f32 %v10806_v13, %v10742_v46  ;;  %v4001_v1 = vsel %vm3890_vm11, %v3999_v47, %v4000_v7  ;;  %v14890_v57 = vsel %vm3890_vm11, %v3993_v56, %v3994_v12 }
 0x6ee   :  { %4582 = vmatmul.mubr.bf16.gmra.mrb[104].mxu1 %v4157_v18  ;;  %11118 = vmatprep.subr.bf16.mxu0 %v12021_v35  ;;  %v14852_v17 = vld [vmem:[#allocation3 + $0x2c0] sm:$0xfc]  ;;  %v12027_v18 = vld [vmem:[%s19137_s6 + $0x330] sm:$0xff]   ;;  %v4164_v35 = vpack.c.bf16 %v4004_v24, %v3992_v26  ;;  %v12029_v37 = vld [vmem:[%s19137_s6 + $0x378] sm:$0xff]   ;;  %v14893_v28 = vsel %vm3890_vm11, %v4005_v5, %v4006_v60  ;;  %v4016_v15 = vsel %vm3890_vm11, %v4014_v50, %v4015_v44  ;;  %v4011_v7 = vrot.slane %v14845_v16, 2 }
 0x6ef   :  { %4589 = vmatprep.mubr.bf16.mxu1 %v4162_v11  ;;  %11181 = vmatpush3.bf16.msra.mxu1 %v12020_v49  ;;  %19608 = vst [vmem:[#allocation7_spill] sm:$0xff] %v14865_v8  ;;  %v14875_v11 = vld [vmem:[#allocation3 + $0x2b0] sm:$0x3]  ;;  %v14877_v9 = vld [vmem:[#allocation3 + $0x2d0] sm:$0xfc]  ;;  %v4028_v47 = vsel %vm3890_vm11, %v4026_v4, %v4027_v51  ;;  %v14903_v34 = vsel %vm3890_vm11, %v4020_v20, %v4021_v0  ;;  %v12030_v13 = vld [vmem:[%s19137_s6 + $0x3f8] sm:$0xff]  }
 0x6f0   :  { %11182 = vmatprep.subr.bf16.mxu1 %v12022_v22  ;;  %v3728_v21 = vld [vmem:[#allocation3 + $0x2f0] sm:$0x3]  ;;  %v14895_v31 = vld [vmem:[#allocation3 + $0x308] sm:$0xfc]  ;;  %v3735_v56 = vld [vmem:[#allocation3 + $0x328] sm:$0x3]  ;;  %v4034_v63 = vsel %vm3890_vm11, %v4032_v2, %v4033_v48  ;;  %v14917_v49 = vadd.f32 %v14818_v38, %v14816_v39  ;;  %v4163_v14 = vpack.c.bf16 %v4001_v1, %v3989_v19  ;;  %v4165_v44 = vpack.c.bf16 %v14893_v28, %v14890_v57 }
 0x6f1   :  { %11119 = vmatpush3.bf16.msra.mxu0 %v12023_v3  ;;  %v3739_v46 = vld [vmem:[#allocation3 + $0x348] sm:$0xfc]  ;;  %v4012_v10 = vrot.slane %v14850_v61, 2  ;;  %v4023_v52 = vrot.slane %v14852_v17, 2  ;;  %v3743_v42 = vld [vmem:[#allocation3 + $0x368] sm:$0x3]  ;;  %v4168_v4 = vpack.c.bf16 %v4028_v47, %v4016_v15  ;;  %v4170_v54 = vpack.c.bf16 %v4034_v63, %v14903_v34 }
 0x6f2   :  { %11120 = vmatprep.subr.bf16.mxu0 %v12025_v45  ;;  %v12031_v36 = vld [vmem:[%s19137_s6 + $0x338] sm:$0xff]   ;;  %19609 = vst [vmem:[#allocation6_spill] sm:$0xff] %v14917_v49  ;;  %v4024_v58 = vrot.slane %v14858_v23, 2  ;;  %v4017_v22 = vrot.slane %v14860_v27, 2  ;;  %v4018_v29 = vrot.slane %v14875_v11, 2  ;;  %v4029_v25 = vrot.slane %v14877_v9, 2 }
 0x6f3   :  { %11183 = vmatpush3.bf16.msra.mxu1 %v12024_v53  ;;  %v12033_v26 = vld [vmem:[%s19137_s6 + $0x440] sm:$0xff]   ;;  %v4030_v6 = vrot.slane %v3728_v21, 2  ;;  %v4038_v32 = vrot.slane %v14895_v31, 2  ;;  %v4039_v40 = vrot.slane %v3735_v56, 2  ;;  %v4050_v39 = vrot.slane %v3739_v46, 2  ;;  %v12032_v38 = vld [vmem:[%s19137_s6 + $0x3b8] sm:$0xff]  }
 0x6f4   :  { %4493 = vmatmul.mubr.bf16.gmra.mrb[108].mxu0 %v4159_v41  ;;  %11184 = vmatprep.subr.bf16.mxu1 %v12026_v43  ;;  %v4051_v24 = vrot.slane %v3743_v42, 2  ;;  %v3733_v12 = vld [vmem:[#allocation3 + $0x318] sm:$0xfc]  ;;  %v3737_v5 = vld [vmem:[#allocation3 + $0x338] sm:$0x3]  ;;  %v12034_v60 = vld [vmem:[%s19137_s6 + $0x4c0] sm:$0xff]   ;;  %v4013_v45 = vsel %vm3890_vm11, %v4011_v7, %v4012_v10  ;;  %v4025_v0 = vsel %vm3890_vm11, %v4023_v52, %v4024_v58  ;;  %v4019_v16 = vsel %vm3890_vm11, %v4017_v22, %v4018_v29 }
 0x6f5   :  { %4500 = vmatprep.mubr.bf16.mxu0 %v4164_v35  ;;  %11121 = vmatpush3.bf16.msra.mxu0 %v12027_v18  ;;  %v3741_v3 = vld [vmem:[#allocation3 + $0x358] sm:$0xfc]  ;;  %v3745_v62 = vld [vmem:[#allocation3 + $0x378] sm:$0x3]  ;;  %v3730_v50 = vld [vmem:[#allocation3 + $0x300] sm:$0xfc]  ;;  %v4031_v53 = vsel %vm3890_vm11, %v4029_v25, %v4030_v6  ;;  %v4167_v57 = vpack.c.bf16 %v4025_v0, %v4013_v45 }
 0x6f6   :  { %4590 = vmatmul.mubr.bf16.gmra.mrb[108].mxu1 %v4161_v33  ;;  %11122 = vmatprep.subr.bf16.mxu0 %v12029_v37  ;;  %v3734_v55 = vld [vmem:[#allocation3 + $0x320] sm:$0x3]  ;;  %v3738_v51 = vld [vmem:[#allocation3 + $0x340] sm:$0xfc]  ;;  %v4044_v2 = vrot.slane %v3733_v12, 2  ;;  %v4045_v61 = vrot.slane %v3737_v5, 2  ;;  %v4040_v33 = vsel %vm3890_vm11, %v4038_v32, %v4039_v40  ;;  %v4052_v35 = vsel %vm3890_vm11, %v4050_v39, %v4051_v24 }
 0x6f7   :  { %4597 = vmatprep.mubr.bf16.mxu1 %v4166_v59  ;;  %11185 = vmatpush3.bf16.msra.mxu1 %v12028_v30  ;;  %v3742_v20 = vld [vmem:[#allocation3 + $0x360] sm:$0x3]  ;;  %v4056_v17 = vrot.slane %v3741_v3, 2  ;;  %v4057_v43 = vrot.slane %v3745_v62, 2  ;;  %v3732_v41 = vld [vmem:[#allocation3 + $0x310] sm:$0xfc]  ;;  %v4169_v28 = vpack.c.bf16 %v4031_v53, %v4019_v16  ;;  %v4172_v15 = vpack.c.bf16 %v4052_v35, %v4040_v33 }
 0x6f8   :  { %11186 = vmatprep.subr.bf16.mxu1 %v12030_v13  ;;  %v4035_v48 = vrot.slane %v3730_v50, 2  ;;  %v4036_v23 = vrot.slane %v3734_v55, 2  ;;  %v4047_v27 = vrot.slane %v3738_v51, 2  ;;  %v4048_v18 = vrot.slane %v3742_v20, 2  ;;  %v3736_v59 = vld [vmem:[#allocation3 + $0x330] sm:$0x3] }
 0x6f9   :  { %11123 = vmatpush3.bf16.msra.mxu0 %v12031_v36  ;;  %v3740_v19 = vld [vmem:[#allocation3 + $0x350] sm:$0xfc]  ;;  %v3744_v11 = vld [vmem:[#allocation3 + $0x370] sm:$0x3]  ;;  %v4041_v9 = vrot.slane %v3732_v41, 2  ;;  %v4046_v47 = vsel %vm3890_vm11, %v4044_v2, %v4045_v61  ;;  %v4058_v34 = vsel %vm3890_vm11, %v4056_v17, %v4057_v43  ;;  %v4042_v10 = vrot.slane %v3736_v59, 2 }
 0x6fa   :  { %11236 = vmatprep.subr.bf16.mxu0 %v12033_v26  ;;  %v3747_v37 = vld [vmem:[#allocation3 + $0x388] sm:$0xfc]  ;;  %v3751_v1 = vld [vmem:[#allocation3 + $0x3a8] sm:$0x3]  ;;  %v3749_v30 = vld [vmem:[#allocation3 + $0x398] sm:$0xfc]  ;;  %v4037_v7 = vsel %vm3890_vm11, %v4035_v48, %v4036_v23  ;;  %v4049_v63 = vsel %vm3890_vm11, %v4047_v27, %v4048_v18  ;;  %v4174_v40 = vpack.c.bf16 %v4058_v34, %v4046_v47 }
 0x6fb   :  { %11187 = vmatpush3.bf16.msra.mxu1 %v12032_v38  ;;  %v3755_v21 = vld [vmem:[#allocation3 + $0x3c8] sm:$0xfc]  ;;  %v3759_v31 = vld [vmem:[#allocation3 + $0x3e8] sm:$0x3]  ;;  %v3753_v56 = vld [vmem:[#allocation3 + $0x3b8] sm:$0x3]  ;;  %v4171_v5 = vpack.c.bf16 %v4049_v63, %v4037_v7  ;;  %v4043_v3 = vsel %vm3890_vm11, %v4041_v9, %v4042_v10 }
 0x6fc   :  { %4501 = vmatmul.mubr.bf16.gmra.mrb[112].mxu0 %v4163_v14  ;;  %11300 = vmatprep.subr.bf16.mxu1 %v12034_v60  ;;  %v3757_v46 = vld [vmem:[#allocation3 + $0x3d8] sm:$0xfc]  ;;  %v3761_v13 = vld [vmem:[#allocation3 + $0x3f8] sm:$0x3]  ;;  %v4053_v52 = vrot.slane %v3740_v19, 2  ;;  %v4054_v42 = vrot.slane %v3744_v11, 2 }
 0x6fd   :  { %4508 = vmatprep.mubr.bf16.mxu0 %v4168_v4  ;;  %v4062_v36 = vrot.slane %v3747_v37, 2  ;;  %v4063_v58 = vrot.slane %v3751_v1, 2  ;;  %v4074_v22 = vrot.slane %v3755_v21, 2  ;;  %v4075_v29 = vrot.slane %v3759_v31, 2  ;;  %v3746_v39 = vld [vmem:[#allocation3 + $0x380] sm:$0xfc] }
 0x6fe   :  { %4598 = vmatmul.mubr.bf16.gmra.mrb[112].mxu1 %v4165_v44  ;;  %v4068_v25 = vrot.slane %v3749_v30, 2  ;;  %v4069_v26 = vrot.slane %v3753_v56, 2  ;;  %v4080_v6 = vrot.slane %v3757_v46, 2  ;;  %v4081_v32 = vrot.slane %v3761_v13, 2  ;;  %v3750_v38 = vld [vmem:[#allocation3 + $0x3a0] sm:$0x3] }
 0x6ff   :  { %4605 = vmatprep.mubr.bf16.mxu1 %v4170_v54  ;;  %v3754_v24 = vld [vmem:[#allocation3 + $0x3c0] sm:$0xfc]  ;;  %v3758_v12 = vld [vmem:[#allocation3 + $0x3e0] sm:$0x3]  ;;  %v4064_v60 = vsel %vm3890_vm11, %v4062_v36, %v4063_v58  ;;  %v4076_v14 = vsel %vm3890_vm11, %v4074_v22, %v4075_v29  ;;  %v4055_v62 = vsel %vm3890_vm11, %v4053_v52, %v4054_v42  ;;  %v4059_v4 = vrot.slane %v3746_v39, 2  ;;  %v4647_v18 = vld [vmem:[#allocation3 + $0x88] sm:$0xff] }
 0x700   :  { %v4070_v50 = vsel %vm3890_vm11, %v4068_v25, %v4069_v26  ;;  %v4082_v44 = vsel %vm3890_vm11, %v4080_v6, %v4081_v32  ;;  %v4060_v54 = vrot.slane %v3750_v38, 2  ;;  %v4071_v45 = vrot.slane %v3754_v24, 2  ;;  %v3748_v51 = vld [vmem:[#allocation3 + $0x390] sm:$0xfc]  ;;  %v3752_v0 = vld [vmem:[#allocation3 + $0x3b0] sm:$0x3] }
 0x701   :  { %v4072_v55 = vrot.slane %v3758_v12, 2  ;;  %v4176_v20 = vpack.c.bf16 %v4076_v14, %v4064_v60  ;;  %v3756_v16 = vld [vmem:[#allocation3 + $0x3d0] sm:$0xfc]  ;;  %v3760_v53 = vld [vmem:[#allocation3 + $0x3f0] sm:$0x3]  ;;  %v4173_v2 = vpack.c.bf16 %v4055_v62, %v4043_v3  ;;  %v4178_v61 = vpack.c.bf16 %v4082_v44, %v4070_v50  ;;  %v4651_v33 = vld [vmem:[#allocation3 + $0xc8] sm:$0xff] }
 0x702   :  { %v4065_v17 = vrot.slane %v3748_v51, 2  ;;  %v4066_v43 = vrot.slane %v3752_v0, 2  ;;  %v4077_v41 = vrot.slane %v3756_v16, 2  ;;  %v4078_v48 = vrot.slane %v3760_v53, 2  ;;  %v4649_v9 = vld [vmem:[#allocation3 + $0x98] sm:$0xff]  ;;  %v4650_v21 = vld [vmem:[#allocation3 + $0xc0] sm:$0xff] }
 0x703   :  { %v4061_v23 = vsel %vm3890_vm11, %v4059_v4, %v4060_v54  ;;  %v4073_v27 = vsel %vm3890_vm11, %v4071_v45, %v4072_v55  ;;  %v4711_v11 = vpack.c.bf16 %v4651_v33, %v4647_v18  ;;  %v4653_v37 = vld [vmem:[#allocation3 + $0xd8] sm:$0xff]  ;;  %v4655_v31 = vld [vmem:[#allocation3 + $0x108] sm:$0xff]  ;;  %v4648_v34 = vld [vmem:[#allocation3 + $0x90] sm:$0xff] }
 0x704   :  { %4509 = vmatmul.mubr.bf16.gmra.mrb[116].mxu0 %v4167_v57  ;;  %v4175_v35 = vpack.c.bf16 %v4073_v27, %v4061_v23  ;;  %v4067_v59 = vsel %vm3890_vm11, %v4065_v17, %v4066_v43  ;;  %v4079_v19 = vsel %vm3890_vm11, %v4077_v41, %v4078_v48  ;;  %v4713_v57 = vpack.c.bf16 %v4653_v37, %v4649_v9  ;;  %v4659_v30 = vld [vmem:[#allocation3 + $0x148] sm:$0xff]  ;;  %v4652_v7 = vld [vmem:[#allocation3 + $0xd0] sm:$0xff]  ;;  %v4657_v13 = vld [vmem:[#allocation3 + $0x118] sm:$0xff] }
 0x705   :  { %4516 = vmatprep.mubr.bf16.mxu0 %v4172_v15  ;;  %v4177_v1 = vpack.c.bf16 %v4079_v19, %v4067_v59  ;;  %v12035_v15 = vld [vmem:[%s19137_s6 + $0x400] sm:$0xff]   ;;  %v12037_v56 = vld [vmem:[%s19137_s6 + $0x448] sm:$0xff]   ;;  %v4715_v46 = vpack.c.bf16 %v4659_v30, %v4655_v31  ;;  %v4661_v63 = vld [vmem:[#allocation3 + $0x158] sm:$0xff]  ;;  %v4712_v52 = vpack.c.bf16 %v4652_v7, %v4648_v34 }
 0x706   :  { %4606 = vmatmul.mubr.bf16.gmra.mrb[116].mxu1 %v4169_v28  ;;  %v4646_v28 = vld [vmem:[#allocation3 + $0x80] sm:$0xff]  ;;  %v12038_v42 = vld [vmem:[%s19137_s6 + $0x4c8] sm:$0xff]   ;;  %v4717_v58 = vpack.c.bf16 %v4661_v63, %v4657_v13  ;;  %v12041_v22 = vld [vmem:[%s19137_s6 + $0x450] sm:$0xff]  }
 0x707   :  { %4613 = vmatprep.mubr.bf16.mxu1 %v4174_v40  ;;  %v4710_v47 = vpack.c.bf16 %v4650_v21, %v4646_v28  ;;  %v12036_v10 = vld [vmem:[%s19137_s6 + $0x480] sm:$0xff]   ;;  %v12039_v36 = vld [vmem:[%s19137_s6 + $0x408] sm:$0xff]   ;;  %v12042_v40 = vld [vmem:[%s19137_s6 + $0x4d0] sm:$0xff]  }
 0x708   :  { %v4654_v29 = vld [vmem:[#allocation3 + $0x100] sm:$0xff]  ;;  %v12040_v26 = vld [vmem:[%s19137_s6 + $0x488] sm:$0xff]   ;;  %v4656_v38 = vld [vmem:[#allocation3 + $0x110] sm:$0xff] }
 0x709   :  { %v4658_v25 = vld [vmem:[#allocation3 + $0x140] sm:$0xff]  ;;  %v4663_v6 = vld [vmem:[#allocation3 + $0x188] sm:$0xff]  ;;  %v4660_v24 = vld [vmem:[#allocation3 + $0x150] sm:$0xff] }
 0x70a   :  { %v4667_v32 = vld [vmem:[#allocation3 + $0x1c8] sm:$0xff]  ;;  %v4714_v39 = vpack.c.bf16 %v4658_v25, %v4654_v29  ;;  %v12043_v12 = vld [vmem:[%s19137_s6 + $0x410] sm:$0xff]   ;;  %v4665_v60 = vld [vmem:[#allocation3 + $0x198] sm:$0xff]  ;;  %v4716_v50 = vpack.c.bf16 %v4660_v24, %v4656_v38 }
 0x70b   :  { %v4669_v14 = vld [vmem:[#allocation3 + $0x1d8] sm:$0xff]  ;;  %v12044_v62 = vld [vmem:[%s19137_s6 + $0x490] sm:$0xff]   ;;  %v4662_v44 = vld [vmem:[#allocation3 + $0x180] sm:$0xff] }
 0x70c   :  { %4517 = vmatmul.mubr.bf16.gmra.mrb[120].mxu0 %v4171_v5  ;;  %v4719_v5 = vpack.c.bf16 %v4667_v32, %v4663_v6  ;;  %v12045_v3 = vld [vmem:[%s19137_s6 + $0x458] sm:$0xff]   ;;  %v4666_v4 = vld [vmem:[#allocation3 + $0x1c0] sm:$0xff]  ;;  %v14995_v55 = vld [vmem:[#allocation3 + $0x88] sm:$0xfe]  ;;  %v4721_v51 = vpack.c.bf16 %v4669_v14, %v4665_v60 }
 0x70d   :  { %4524 = vmatprep.mubr.bf16.mxu0 %v4176_v20  ;;  %v12046_v54 = vld [vmem:[%s19137_s6 + $0x4d8] sm:$0xff]   ;;  %v14997_v20 = vld [vmem:[#allocation3 + $0xa8] sm:$0x1]  ;;  %v14999_v0 = vld [vmem:[#allocation3 + $0xc8] sm:$0xfe]  ;;  %v4718_v9 = vpack.c.bf16 %v4666_v4, %v4662_v44 }
 0x70e   :  { %4614 = vmatmul.mubr.bf16.gmra.mrb[120].mxu1 %v4173_v2  ;;  %v12047_v45 = vld [vmem:[%s19137_s6 + $0x418] sm:$0xff]   ;;  %v15001_v16 = vld [vmem:[#allocation3 + $0xe8] sm:$0x1]  ;;  %v4664_v17 = vld [vmem:[#allocation3 + $0x190] sm:$0xff] }
 0x70f   :  { %4621 = vmatprep.mubr.bf16.mxu1 %v4178_v61  ;;  %v4671_v53 = vld [vmem:[#allocation3 + $0x208] sm:$0xff]  ;;  %v12049_v61 = vld [vmem:[%s19137_s6 + $0x460] sm:$0xff]   ;;  %v4668_v43 = vld [vmem:[#allocation3 + $0x1d0] sm:$0xff] }
 0x710   :  { %v4675_v2 = vld [vmem:[#allocation3 + $0x248] sm:$0xff]  ;;  %v4673_v41 = vld [vmem:[#allocation3 + $0x218] sm:$0xff]  ;;  %v12050_v27 = vld [vmem:[%s19137_s6 + $0x4e0] sm:$0xff]  }
 0x711   :  { %v4677_v48 = vld [vmem:[#allocation3 + $0x258] sm:$0xff]  ;;  %v12051_v18 = vld [vmem:[%s19137_s6 + $0x420] sm:$0xff]   ;;  %v12053_v33 = vld [vmem:[%s19137_s6 + $0x468] sm:$0xff]   ;;  %v4723_v21 = vpack.c.bf16 %v4675_v2, %v4671_v53 }
 0x712   :  { %v12048_v23 = vld [vmem:[%s19137_s6 + $0x498] sm:$0xff]   ;;  %v12052_v37 = vld [vmem:[%s19137_s6 + $0x4a0] sm:$0xff]   ;;  %v12054_v31 = vld [vmem:[%s19137_s6 + $0x4e8] sm:$0xff]   ;;  %v4725_v13 = vpack.c.bf16 %v4677_v48, %v4673_v41 }
 0x713   :  { %v15029_v28 = vld [vmem:[#allocation3 + $0xd8] sm:$0xfe]  ;;  %v15034_v30 = vld [vmem:[#allocation3 + $0xf8] sm:$0x1]  ;;  %v15040_v34 = vld [vmem:[#allocation3 + $0xc0] sm:$0xfe] }
 0x714   :  { %4525 = vmatmul.mubr.bf16.gmra.mrb[124].mxu0 %v4175_v35  ;;  %v15042_v7 = vld [vmem:[#allocation3 + $0xe0] sm:$0x1]  ;;  %v12055_v29 = vld [vmem:[%s19137_s6 + $0x428] sm:$0xff]   ;;  %v15061_v38 = vld [vmem:[#allocation3 + $0x298] sm:$0xff] }
 0x715   :  { %5031 = vmatprep.mubr.bf16.mxu0 %v4711_v11  ;;  %v4670_v63 = vld [vmem:[#allocation3 + $0x200] sm:$0xff]  ;;  %v15063_v24 = vld [vmem:[#allocation3 + $0x2d8] sm:$0xff]  ;;  %v12059_v44 = vld [vmem:[%s19137_s6 + $0x430] sm:$0xff]  }
 0x716   :  { %4622 = vmatmul.mubr.bf16.gmra.mrb[124].mxu1 %v4177_v1  ;;  %v15025_v1 = vld [vmem:[#allocation3 + $0x98] sm:$0xfe]  ;;  %v15088_v2 = vld [vmem:[#allocation3 + $0x108] sm:$0xfe]  ;;  %v12060_v41 = vld [vmem:[%s19137_s6 + $0x4b0] sm:$0xff]  }
 0x717   :  { %5128 = vmatprep.mubr.bf16.mxu1 %v4713_v57  ;;  %v15027_v57 = vld [vmem:[#allocation3 + $0xb8] sm:$0x1]  ;;  %v15097_v48 = vld [vmem:[#allocation3 + $0x168] sm:$0x1]  ;;  %v4680_v4 = vld [vmem:[#allocation3 + $0x290] sm:$0xff] }
 0x718   :  { %v12061_v53 = vld [vmem:[%s19137_s6 + $0x478] sm:$0xff]   ;;  %v15149_v60 = vld [vmem:[#allocation3 + $0x150] sm:$0xfe]  ;;  %v15189_v8 = vld [vmem:[#allocation3 + $0x1e0] sm:$0x1] }
 0x719   :  { %v4697_v49 = vld [vmem:[#allocation3 + $0x398] sm:$0xff]  ;;  %19622 = vst [vmem:[#allocation20_spill] sm:$0xff] %v15189_v8 }
 0x71a   :  { %v15224_v8 = vld [vmem:[#allocation3 + $0x418] sm:$0xff] }
 0x71c   :  { %5032 = vmatmul.mubr.bf16.vlgmr.msra.gmra.mrb[128].mxu0 %v4710_v47  ;;  %v15038_v47 = vld [vmem:[#allocation3 + $0xa0] sm:$0x1] }
 0x71d   :  { %11237 = vmatpush3.bf16.msra.mxu0 %v12035_v15  ;;  %5039 = vmatprep.mubr.bf16.mxu0 %v4715_v46  ;;  %v15036_v15 = vld [vmem:[#allocation3 + $0x80] sm:$0xfe]  ;;  %v4720_v46 = vpack.c.bf16 %v4668_v43, %v4664_v17  ;;  %v15092_v17 = vld [vmem:[#allocation3 + $0x148] sm:$0xfe] }
 0x71e   :  { %11238 = vmatprep.subr.bf16.mxu0 %v12037_v56  ;;  %5129 = vmatmul.mubr.bf16.vlgmr.msra.gmra.mrb[128].mxu1 %v4712_v52  ;;  %v15044_v56 = vld [vmem:[#allocation3 + $0x90] sm:$0xfe]  ;;  %v15046_v52 = vld [vmem:[#allocation3 + $0xb0] sm:$0x1] }
 0x71f   :  { %11301 = vmatpush3.bf16.msra.mxu1 %v12036_v10  ;;  %5136 = vmatprep.mubr.bf16.mxu1 %v4717_v58  ;;  %v4674_v10 = vld [vmem:[#allocation3 + $0x240] sm:$0xff]  ;;  %v4679_v58 = vld [vmem:[#allocation3 + $0x288] sm:$0xff] }
 0x720   :  { %11302 = vmatprep.subr.bf16.mxu1 %v12038_v42  ;;  %v15048_v42 = vld [vmem:[#allocation3 + $0xd0] sm:$0xfe]  ;;  %v4722_v43 = vpack.c.bf16 %v4674_v10, %v4670_v63  ;;  %v15118_v63 = vld [vmem:[#allocation3 + $0x120] sm:$0x1]  ;;  %v15120_v10 = vld [vmem:[#allocation3 + $0x140] sm:$0xfe] }
 0x721   :  { %11239 = vmatpush3.bf16.msra.mxu0 %v12039_v36  ;;  %v15050_v36 = vld [vmem:[#allocation3 + $0xf0] sm:$0x1] }
 0x722   :  { %11240 = vmatprep.subr.bf16.mxu0 %v12041_v22  ;;  %v4683_v22 = vld [vmem:[#allocation3 + $0x2c8] sm:$0xff] }
 0x723   :  { %11303 = vmatpush3.bf16.msra.mxu1 %v12040_v26  ;;  %v15161_v26 = vld [vmem:[#allocation3 + $0x1e8] sm:$0x1] }
 0x724   :  { %5040 = vmatmul.mubr.bf16.gmra.mrb[132].mxu0 %v4714_v39  ;;  %11304 = vmatprep.subr.bf16.mxu1 %v12042_v40  ;;  %v15059_v40 = vld [vmem:[#allocation3 + $0x210] sm:$0xff]  ;;  %19613 = vst [vmem:[#allocation10_spill] sm:$0xff] %v15161_v26 }
 0x725   :  { %5047 = vmatprep.mubr.bf16.mxu0 %v4719_v5  ;;  %11241 = vmatpush3.bf16.msra.mxu0 %v12043_v12  ;;  %v4676_v39 = vld [vmem:[#allocation3 + $0x250] sm:$0xff]  ;;  %v12056_v12 = vld [vmem:[%s19137_s6 + $0x4a8] sm:$0xff]  }
 0x726   :  { %5137 = vmatmul.mubr.bf16.gmra.mrb[132].mxu1 %v4716_v50  ;;  %11242 = vmatprep.subr.bf16.mxu0 %v12045_v3  ;;  %v12057_v5 = vld [vmem:[%s19137_s6 + $0x470] sm:$0xff]  }
 0x727   :  { %5144 = vmatprep.mubr.bf16.mxu1 %v4721_v51  ;;  %11305 = vmatpush3.bf16.msra.mxu1 %v12044_v62  ;;  %v12058_v50 = vld [vmem:[%s19137_s6 + $0x4f0] sm:$0xff]   ;;  %v4689_v62 = vld [vmem:[#allocation3 + $0x318] sm:$0xff]  ;;  %v15157_v51 = vld [vmem:[#allocation3 + $0x1a8] sm:$0x1] }
 0x728   :  { %11306 = vmatprep.subr.bf16.mxu1 %v12046_v54  ;;  %v4684_v54 = vld [vmem:[#allocation3 + $0x2d0] sm:$0xff]  ;;  %19611 = vst [vmem:[#allocation9_spill] sm:$0xff] %v15157_v51 }
 0x729   :  { %11243 = vmatpush3.bf16.msra.mxu0 %v12047_v45  ;;  %v4691_v45 = vld [vmem:[#allocation3 + $0x348] sm:$0xff]  ;;  %v4728_v59 = vpack.c.bf16 %v4684_v54, %v4680_v4  ;;  %v15176_v4 = vld [vmem:[#allocation3 + $0x180] sm:$0xfe] }
 0x72a   :  { %11244 = vmatprep.subr.bf16.mxu0 %v12049_v61  ;;  %v15090_v61 = vld [vmem:[#allocation3 + $0x128] sm:$0x1]  ;;  %19618 = vst [vmem:[#allocation16_spill] sm:$0xff] %v15176_v4 }
 0x72b   :  { %11307 = vmatpush3.bf16.msra.mxu1 %v12048_v23  ;;  %v15099_v23 = vld [vmem:[#allocation3 + $0x118] sm:$0xfe] }
 0x72c   :  { %5048 = vmatmul.mubr.bf16.gmra.mrb[136].mxu0 %v4718_v9  ;;  %11308 = vmatprep.subr.bf16.mxu1 %v12050_v27  ;;  %v15101_v27 = vld [vmem:[#allocation3 + $0x138] sm:$0x1]  ;;  %v15106_v9 = vld [vmem:[#allocation3 + $0x158] sm:$0xfe] }
 0x72d   :  { %5055 = vmatprep.mubr.bf16.mxu0 %v4723_v21  ;;  %11245 = vmatpush3.bf16.msra.mxu0 %v12051_v18  ;;  %v4727_v18 = vpack.c.bf16 %v4683_v22, %v4679_v58  ;;  %v15110_v21 = vld [vmem:[#allocation3 + $0x100] sm:$0xfe]  ;;  %v15122_v58 = vld [vmem:[#allocation3 + $0x160] sm:$0x1] }
 0x72e   :  { %5145 = vmatmul.mubr.bf16.gmra.mrb[136].mxu1 %v4720_v46  ;;  %11246 = vmatprep.subr.bf16.mxu0 %v12053_v33  ;;  %v12062_v33 = vld [vmem:[%s19137_s6 + $0x4f8] sm:$0xff]   ;;  %v4729_v46 = vpack.c.bf16 %v15063_v24, %v15061_v38  ;;  %v4678_v22 = vld [vmem:[#allocation3 + $0x280] sm:$0xff]  ;;  %v15140_v24 = vld [vmem:[#allocation3 + $0x130] sm:$0x1] }
 0x72f   :  { %5152 = vmatprep.mubr.bf16.mxu1 %v4725_v13  ;;  %11309 = vmatpush3.bf16.msra.mxu1 %v12052_v37  ;;  %v15108_v37 = vld [vmem:[#allocation3 + $0x178] sm:$0x1] }
 0x730   :  { %11310 = vmatprep.subr.bf16.mxu1 %v12054_v31  ;;  %v4724_v31 = vpack.c.bf16 %v4676_v39, %v15059_v40  ;;  %v12063_v13 = vld [vmem:[%s19137_s6 + $0x438] sm:$0xff]   ;;  %v12065_v40 = vld [vmem:[%s19137_s6 + $0x540] sm:$0xff]  }
 0x731   :  { %11247 = vmatpush3.bf16.msra.mxu0 %v12055_v29  ;;  %v4682_v29 = vld [vmem:[#allocation3 + $0x2c0] sm:$0xff] }
 0x732   :  { %11248 = vmatprep.subr.bf16.mxu0 %v12057_v5  ;;  %v15131_v5 = vld [vmem:[#allocation3 + $0x110] sm:$0xfe]  ;;  %v4726_v25 = vpack.c.bf16 %v4682_v29, %v4678_v22  ;;  %v15169_v22 = vld [vmem:[#allocation3 + $0x1d8] sm:$0xfe]  ;;  %v15171_v29 = vld [vmem:[#allocation3 + $0x1f8] sm:$0x1] }
 0x733   :  { %11311 = vmatpush3.bf16.msra.mxu1 %v12056_v12  ;;  %19616 = vst [vmem:[#allocation15_spill] sm:$0xff] %v15169_v22  ;;  %19617 = vst [vmem:[#allocation14_spill] sm:$0xff] %v15171_v29  ;;  %v15197_v22 = vld [vmem:[#allocation3 + $0x1b0] sm:$0x1] }
 0x734   :  { %5056 = vmatmul.mubr.bf16.gmra.mrb[140].mxu0 %v4722_v43  ;;  %11312 = vmatprep.subr.bf16.mxu1 %v12058_v50  ;;  %v4687_v43 = vld [vmem:[#allocation3 + $0x308] sm:$0xff]  ;;  %v12064_v50 = vld [vmem:[%s19137_s6 + $0x4b8] sm:$0xff]  }
 0x735   :  { %5063 = vmatprep.mubr.bf16.mxu0 %v4727_v18  ;;  %11249 = vmatpush3.bf16.msra.mxu0 %v12059_v44  ;;  %v12066_v44 = vld [vmem:[%s19137_s6 + $0x5c0] sm:$0xff]   ;;  %v15155_v18 = vld [vmem:[#allocation3 + $0x188] sm:$0xfe]  ;;  %v4731_v14 = vpack.c.bf16 %v4691_v45, %v4687_v43  ;;  %v4692_v43 = vld [vmem:[#allocation3 + $0x350] sm:$0xff] }
 0x736   :  { %5153 = vmatmul.mubr.bf16.gmra.mrb[140].mxu1 %v4724_v31  ;;  %11250 = vmatprep.subr.bf16.mxu0 %v12061_v53  ;;  %v4693_v31 = vld [vmem:[#allocation3 + $0x358] sm:$0xff]  ;;  %v15151_v53 = vld [vmem:[#allocation3 + $0x170] sm:$0x1]  ;;  %19610 = vst [vmem:[#allocation8_spill] sm:$0xff] %v15155_v18 }
 0x737   :  { %v10746_v12 = vpop.f32.mrb[36].mxu0  ;;  %5160 = vmatprep.mubr.bf16.mxu1 %v4729_v46  ;;  %11313 = vmatpush3.bf16.msra.mxu1 %v12060_v41  ;;  %v15159_v41 = vld [vmem:[#allocation3 + $0x1c8] sm:$0xfe]  ;;  %v4733_v45 = vpack.c.bf16 %v4693_v31, %v4689_v62  ;;  %v4688_v31 = vld [vmem:[#allocation3 + $0x310] sm:$0xff] }
 0x738   :  { %v10747_v38 = vpop.f32.mrb[37].mxu0  ;;  %11314 = vmatprep.subr.bf16.mxu1 %v12062_v33  ;;  %19612 = vst [vmem:[#allocation11_spill] sm:$0xff] %v15159_v41  ;;  %v15203_v41 = vld [vmem:[#allocation3 + $0x208] sm:$0xfe] }
 0x739   :  { %v10748_v6 = vadd.f32 %v10747_v38, %v10746_v12  ;;  %v10749_v32 = vpop.f32.mrb[38].mxu0  ;;  %v10810_v46 = vpop.f32.mrb[36].mxu1  ;;  %11251 = vmatpush3.bf16.msra.mxu0 %v12063_v13  ;;  %v15164_v38 = vld [vmem:[#allocation3 + $0x198] sm:$0xfe]  ;;  %v15166_v12 = vld [vmem:[#allocation3 + $0x1b8] sm:$0x1] }
 0x73a   :  { %v10750_v39 = vpop.f32.mrb[39].mxu0  ;;  %v10811_v19 = vpop.f32.mrb[37].mxu1  ;;  %11364 = vmatprep.subr.bf16.mxu0 %v12065_v40  ;;  %19614 = vst [vmem:[#allocation12_spill] sm:$0xff] %v15164_v38  ;;  %19615 = vst [vmem:[#allocation13_spill] sm:$0xff] %v15166_v12  ;;  %v4686_v40 = vld [vmem:[#allocation3 + $0x300] sm:$0xff]  ;;  %v4701_v13 = vld [vmem:[#allocation3 + $0x3d8] sm:$0xff] }
 0x73b   :  { %v10751_v11 = vadd.f32 %v10750_v39, %v10749_v32  ;;  %v10812_v3 = vadd.f32 %v10811_v19, %v10810_v46  ;;  %v10813_v35 = vpop.f32.mrb[38].mxu1  ;;  %11315 = vmatpush3.bf16.msra.mxu1 %v12064_v50  ;;  %v4690_v39 = vld [vmem:[#allocation3 + $0x340] sm:$0xff]  ;;  %v4695_v50 = vld [vmem:[#allocation3 + $0x388] sm:$0xff]  ;;  %v15201_v12 = vld [vmem:[#allocation3 + $0x1f0] sm:$0x1] }
 0x73c   :  { %5064 = vmatmul.mubr.bf16.gmra.mrb[144].mxu0 %v4726_v25  ;;  %v10814_v32 = vpop.f32.mrb[39].mxu1  ;;  %11428 = vmatprep.subr.bf16.mxu1 %v12066_v44  ;;  %v4699_v46 = vld [vmem:[#allocation3 + $0x3c8] sm:$0xff]  ;;  %v4730_v38 = vpack.c.bf16 %v4690_v39, %v4686_v40  ;;  %19626 = vst [vmem:[#allocation24_spill] sm:$0xff] %v15201_v12  ;;  %v15213_v39 = vld [vmem:[#allocation3 + $0x218] sm:$0xfe] }
 0x73d   :  { %5071 = vmatprep.mubr.bf16.mxu0 %v4731_v14  ;;  %v10815_v54 = vadd.f32 %v10814_v32, %v10813_v35  ;;  %v15180_v14 = vld [vmem:[#allocation3 + $0x1a0] sm:$0x1]  ;;  %v15182_v62 = vadd.f32 %v10812_v3, %v10748_v6  ;;  %v15187_v32 = vld [vmem:[#allocation3 + $0x1c0] sm:$0xfe]  ;;  %v15199_v35 = vld [vmem:[#allocation3 + $0x1d0] sm:$0xfe]  ;;  %v4735_v26 = vpack.c.bf16 %v4699_v46, %v4695_v50 }
 0x73e   :  { %19619 = vst [vmem:[#allocation17_spill] sm:$0xff] %v15180_v14  ;;  %5161 = vmatmul.mubr.bf16.gmra.mrb[144].mxu1 %v4728_v59  ;;  %19621 = vst [vmem:[#allocation18_spill] sm:$0xff] %v15187_v32  ;;  %v15192_v59 = vld [vmem:[#allocation3 + $0x190] sm:$0xfe]  ;;  %v15211_v40 = vld [vmem:[#allocation3 + $0x268] sm:$0x1] }
 0x73f   :  { %19620 = vst [vmem:[#allocation19_spill] sm:$0xff] %v15182_v62  ;;  %v10752_v44 = vpop.f32.mrb[40].mxu0  ;;  %5168 = vmatprep.mubr.bf16.mxu1 %v4733_v45  ;;  %19623 = vst [vmem:[#allocation21_spill] sm:$0xff] %v15192_v59  ;;  %v15194_v3 = vadd.f32 %v10815_v54, %v10751_v11  ;;  %v15208_v54 = vld [vmem:[#allocation3 + $0x248] sm:$0xfe]  ;;  %v4698_v50 = vld [vmem:[#allocation3 + $0x3c0] sm:$0xff] }
 0x740   :  { %v10753_v33 = vpop.f32.mrb[41].mxu0  ;;  %19625 = vst [vmem:[#allocation22_spill] sm:$0xff] %v15199_v35  ;;  %19627 = vst [vmem:[#allocation25_spill] sm:$0xff] %v15208_v54  ;;  %v15215_v46 = vld [vmem:[#allocation3 + $0x390] sm:$0xff]  ;;  %v4703_v32 = vld [vmem:[#allocation3 + $0x408] sm:$0xff] }
 0x741   :  { %19624 = vst [vmem:[#allocation23_spill] sm:$0xff] %v15194_v3  ;;  %v10754_v62 = vadd.f32 %v10753_v33, %v10752_v44  ;;  %v10755_v19 = vpop.f32.mrb[42].mxu0  ;;  %v10816_v45 = vpop.f32.mrb[40].mxu1  ;;  %v15206_v33 = vld [vmem:[#allocation3 + $0x228] sm:$0x1]  ;;  %v4732_v3 = vpack.c.bf16 %v4692_v43, %v4688_v31  ;;  %19628 = vst [vmem:[#allocation27_spill] sm:$0xff] %v15213_v39 }
 0x742   :  { %v10756_v29 = vpop.f32.mrb[43].mxu0  ;;  %v10817_v6 = vpop.f32.mrb[41].mxu1  ;;  %v15217_v11 = vld [vmem:[#allocation3 + $0x3d0] sm:$0xff]  ;;  %v15222_v31 = vld [vmem:[#allocation3 + $0x238] sm:$0x1]  ;;  %v4707_v14 = vld [vmem:[#allocation3 + $0x448] sm:$0xff] }
 0x743   :  { %v10757_v4 = vadd.f32 %v10756_v29, %v10755_v19  ;;  %v10818_v44 = vadd.f32 %v10817_v6, %v10816_v45  ;;  %v10819_v25 = vpop.f32.mrb[42].mxu1  ;;  %v4737_v29 = vpack.c.bf16 %v4701_v13, %v4697_v49  ;;  %v4694_v19 = vld [vmem:[#allocation3 + $0x380] sm:$0xff]  ;;  %19629 = vst [vmem:[#allocation26_spill] sm:$0xff] %v15222_v31  ;;  %v15228_v13 = vld [vmem:[#allocation3 + $0x258] sm:$0xfe]  ;;  %v4736_v39 = vpack.c.bf16 %v15217_v11, %v15215_v46 }
 0x744   :  { %5072 = vmatmul.mubr.bf16.gmra.mrb[148].mxu0 %v4730_v38  ;;  %v10820_v18 = vpop.f32.mrb[43].mxu1  ;;  %19630 = vst [vmem:[#allocation28_spill] sm:$0xff] %v15228_v13  ;;  %v4709_v59 = vld [vmem:[#allocation3 + $0x458] sm:$0xff]  ;;  %v15239_v12 = vld [vmem:[#allocation3 + $0x200] sm:$0xfe]  ;;  %v4739_v54 = vpack.c.bf16 %v4707_v14, %v4703_v32  ;;  %v15261_v13 = vld [vmem:[#allocation3 + $0x450] sm:$0xff] }
 0x745   :  { %5079 = vmatprep.mubr.bf16.mxu0 %v4735_v26  ;;  %v10821_v45 = vadd.f32 %v10820_v18, %v10819_v25  ;;  %v15230_v51 = vadd.f32 %v10818_v44, %v10754_v62  ;;  %v15236_v49 = vld [vmem:[#allocation3 + $0x278] sm:$0x1]  ;;  %v15246_v43 = vld [vmem:[#allocation3 + $0x240] sm:$0xfe]  ;;  %v4741_v38 = vpack.c.bf16 %v4709_v59, %v15224_v8  ;;  %v19635_v14 = vrot.slane %v14995_v55, 1 }
 0x746   :  { %5169 = vmatmul.mubr.bf16.gmra.mrb[148].mxu1 %v4732_v3  ;;  %19632 = vst [vmem:[#allocation31_spill] sm:$0xff] %v15236_v49  ;;  %v15250_v26 = vld [vmem:[#allocation3 + $0x400] sm:$0xff]  ;;  %v15273_v46 = vld [vmem:[#allocation3 + $0x250] sm:$0xfe]  ;;  %v19636_v8 = vrot.slane %v15001_v16, 1  ;;  %v19637_v59 = vrot.slane %v14999_v0, 1 }
 0x747   :  { %19631 = vst [vmem:[#allocation29_spill] sm:$0xff] %v15230_v51  ;;  %v10758_v6 = vpop.f32.mrb[44].mxu0  ;;  %5176 = vmatprep.mubr.bf16.mxu1 %v4737_v29  ;;  %v15241_v62 = vadd.f32 %v10821_v45, %v10757_v4  ;;  %v15244_v51 = vld [vmem:[#allocation3 + $0x220] sm:$0x1]  ;;  %v4734_v29 = vpack.c.bf16 %v4698_v50, %v4694_v19  ;;  %v19634_v19 = vrot.slane %v14997_v20, 1  ;;  %v19638_v55 = vrot.slane %v15027_v57, 1 }
 0x748   :  { %v10759_v35 = vpop.f32.mrb[45].mxu0  ;;  %v15252_v31 = vld [vmem:[#allocation3 + $0x440] sm:$0xff]  ;;  %v15271_v50 = vld [vmem:[#allocation3 + $0x230] sm:$0x1]  ;;  %v5482_v20 = vsel %vm2508_vm10, %v19637_v59, %v19636_v8  ;;  %v19640_v16 = vrot.slane %v15034_v30, 1  ;;  %v19641_v0 = vrot.slane %v15029_v28, 1 }
 0x749   :  { %19633 = vst [vmem:[#allocation30_spill] sm:$0xff] %v15241_v62  ;;  %v10760_v3 = vadd.f32 %v10759_v35, %v10758_v6  ;;  %v10761_v44 = vpop.f32.mrb[46].mxu0  ;;  %v10822_v18 = vpop.f32.mrb[44].mxu1  ;;  %v15254_v4 = vld [vmem:[#allocation3 + $0x260] sm:$0x1]  ;;  %v15259_v62 = vld [vmem:[#allocation3 + $0x410] sm:$0xff]  ;;  %v15268_v32 = vsel %vm2508_vm10, %v19635_v14, %v19634_v19 }
 0x74a   :  { %v10762_v25 = vpop.f32.mrb[47].mxu0  ;;  %v15256_v35 = vld [vmem:[#allocation3 + $0x210] sm:$0xfe]  ;;  %v10823_v6 = vpop.f32.mrb[45].mxu1  ;;  %v19639_v19 = vrot.slane %v15025_v1, 1 }
 0x74b   :  { %v10763_v45 = vadd.f32 %v10762_v25, %v10761_v44  ;;  %v10824_v25 = vadd.f32 %v10823_v6, %v10822_v18  ;;  %v10825_v44 = vpop.f32.mrb[46].mxu1  ;;  %v15288_v49 = vld [vmem:[#allocation3 + $0x270] sm:$0x1]  ;;  %v15290_v18 = vld [vmem:[#allocation3 + $0x288] sm:$0xfe]  ;;  %v15297_v6 = vsel %vm2508_vm10, %v19641_v0, %v19640_v16  ;;  %v4738_v16 = vpack.c.bf16 %v15252_v31, %v15250_v26 }
 0x74c   :  { %5080 = vmatmul.mubr.bf16.gmra.mrb[152].mxu0 %v4734_v29  ;;  %v15285_v14 = vsel %vm2508_vm10, %v19639_v19, %v19638_v55  ;;  %v10826_v29 = vpop.f32.mrb[47].mxu1  ;;  %v15302_v59 = vld [vmem:[#allocation3 + $0x2a8] sm:$0x1]  ;;  %v15306_v11 = vld [vmem:[#allocation3 + $0x2c8] sm:$0xfe]  ;;  %v4740_v19 = vpack.c.bf16 %v15261_v13, %v15259_v62 }
 0x74d   :  { %5087 = vmatprep.mubr.bf16.mxu0 %v4739_v54  ;;  %v10827_v55 = vadd.f32 %v10826_v29, %v10825_v44  ;;  %v15308_v30 = vadd.f32 %v10824_v25, %v10760_v3  ;;  %v15314_v8 = vld [vmem:[#allocation3 + $0x2e8] sm:$0x1]  ;;  %v5722_v3 = vpack.c.bf16 %v5482_v20, %v15268_v32  ;;  %v15321_v25 = vld [vmem:[#allocation3 + $0x298] sm:$0xfe]  ;;  %v15323_v31 = vld [vmem:[#allocation3 + $0x2b8] sm:$0x1]  ;;  %v5724_v44 = vpack.c.bf16 %v15297_v6, %v15285_v14 }
 0x74e   :  { %5177 = vmatmul.mubr.bf16.gmra.mrb[152].mxu1 %v4736_v39  ;;  %v19645_v54 = vrot.slane %v15036_v15, 1  ;;  %v15337_v32 = vld [vmem:[#allocation3 + $0x2d8] sm:$0xfe]  ;;  %v15339_v20 = vld [vmem:[#allocation3 + $0x2f8] sm:$0x1]  ;;  %v19648_v15 = vrot.slane %v15046_v52, 1 }
 0x74f   :  { %19642 = vst [vmem:[#allocation32_spill] sm:$0xff] %v15308_v30  ;;  %v10764_v28 = vpop.f32.mrb[48].mxu0  ;;  %5184 = vmatprep.mubr.bf16.mxu1 %v4741_v38  ;;  %v15325_v26 = vadd.f32 %v10827_v55, %v10763_v45  ;;  %v19644_v38 = vrot.slane %v15038_v47, 1  ;;  %v19649_v47 = vrot.slane %v15044_v56, 1  ;;  %v15369_v52 = vld [vmem:[#allocation3 + $0x280] sm:$0xfe] }
 0x750   :  { %v10765_v29 = vpop.f32.mrb[49].mxu0  ;;  %v15371_v56 = vld [vmem:[#allocation3 + $0x2a0] sm:$0x1] }
 0x751   :  { %19643 = vst [vmem:[#allocation33_spill] sm:$0xff] %v15325_v26  ;;  %v10766_v0 = vadd.f32 %v10765_v29, %v10764_v28  ;;  %v10767_v57 = vpop.f32.mrb[50].mxu0  ;;  %v15334_v13 = vsel %vm2508_vm10, %v19645_v54, %v19644_v38  ;;  %v10828_v45 = vpop.f32.mrb[48].mxu1  ;;  %v19646_v28 = vrot.slane %v15042_v7, 1  ;;  %v19647_v29 = vrot.slane %v15040_v34, 1  ;;  %v19683_v26 = vld [vmem:[#allocation11_spill] sm:$0xff] }
 0x752   :  { %v10768_v55 = vpop.f32.mrb[51].mxu0  ;;  %v15353_v6 = vsel %vm2508_vm10, %v19649_v47, %v19648_v15  ;;  %v19650_v54 = vrot.slane %v15050_v36, 1  ;;  %v19651_v38 = vrot.slane %v15048_v42, 1  ;;  %v19652_v7 = vrot.slane %v15090_v61, 1 }
 0x753   :  { %v15346_v14 = vsel %vm2508_vm10, %v19647_v29, %v19646_v28  ;;  %v19653_v34 = vrot.slane %v15088_v2, 1  ;;  %v10829_v29 = vpop.f32.mrb[49].mxu1  ;;  %v10769_v15 = vadd.f32 %v10768_v55, %v10767_v57  ;;  %v19654_v36 = vrot.slane %v15097_v48, 1  ;;  %v15444_v55 = vld [vmem:[#allocation3 + $0x348] sm:$0xfe] }
 0x754   :  { %v15360_v62 = vsel %vm2508_vm10, %v19651_v38, %v19650_v54  ;;  %v19655_v42 = vrot.slane %v15092_v17, 1  ;;  %v19656_v61 = vrot.slane %v15101_v27, 1  ;;  %v19657_v2 = vrot.slane %v15099_v23, 1  ;;  %v10831_v48 = vpop.f32.mrb[50].mxu1  ;;  %5088 = vmatmul.mubr.bf16.gmra.mrb[156].mxu0 %v4738_v16  ;;  %v15407_v17 = vld [vmem:[#allocation3 + $0x2b0] sm:$0x1] }
 0x755   :  { %v15367_v28 = vsel %vm2508_vm10, %v19653_v34, %v19652_v7  ;;  %v15388_v7 = vld [vmem:[#allocation3 + $0x2c0] sm:$0xfe]  ;;  %v15390_v34 = vld [vmem:[#allocation3 + $0x2e0] sm:$0x1]  ;;  %v10830_v57 = vadd.f32 %v10829_v29, %v10828_v45  ;;  %v10832_v23 = vpop.f32.mrb[51].mxu1  ;;  %6042 = vmatprep.mubr.bf16.mxu0 %v5722_v3  ;;  %19662 = vst [vmem:[#allocation36_spill] sm:$0xff] %v15407_v17 }
 0x756   :  { %v15378_v47 = vsel %vm2508_vm10, %v19655_v42, %v19654_v36  ;;  %v15385_v54 = vsel %vm2508_vm10, %v19657_v2, %v19656_v61  ;;  %19658 = vst [vmem:[#allocation35_spill] sm:$0xff] %v15388_v7  ;;  %v15395_v36 = vld [vmem:[#allocation3 + $0x290] sm:$0xfe]  ;;  %v19660_v42 = vrot.slane %v15108_v37, 1  ;;  %v19661_v61 = vrot.slane %v15106_v9, 1  ;;  %5185 = vmatmul.mubr.bf16.gmra.mrb[156].mxu1 %v4740_v19  ;;  %19668 = vst [vmem:[#allocation40_spill] sm:$0xff] %v15444_v55 }
 0x757   :  { %19659 = vst [vmem:[#allocation34_spill] sm:$0xff] %v15395_v36  ;;  %v10833_v27 = vadd.f32 %v10832_v23, %v10831_v48  ;;  %v15411_v38 = vld [vmem:[#allocation3 + $0x2d0] sm:$0xfe]  ;;  %v15413_v37 = vld [vmem:[#allocation3 + $0x2f0] sm:$0x1]  ;;  %v15415_v9 = vadd.f32 %v10830_v57, %v10766_v0  ;;  %v12067_v48 = vld [vmem:[%s19137_s6 + $0x500] sm:$0xff]   ;;  %v5726_v23 = vpack.c.bf16 %v15378_v47, %v15367_v28  ;;  %6139 = vmatprep.mubr.bf16.mxu1 %v5724_v44 }
 0x758   :  { %v15402_v2 = vsel %vm2508_vm10, %v19661_v61, %v19660_v42  ;;  %19663 = vst [vmem:[#allocation37_spill] sm:$0xff] %v15411_v38  ;;  %v10770_v42 = vpop.f32.mrb[52].mxu0  ;;  %v5721_v61 = vpack.c.bf16 %v15346_v14, %v15334_v13  ;;  %v15427_v3 = vld [vmem:[#allocation3 + $0x308] sm:$0xfe]  ;;  %v15429_v0 = vld [vmem:[#allocation3 + $0x328] sm:$0x1] }
 0x759   :  { %19664 = vst [vmem:[#allocation39_spill] sm:$0xff] %v15415_v9  ;;  %19665 = vst [vmem:[#allocation38_spill] sm:$0xff] %v15427_v3  ;;  %v10771_v19 = vpop.f32.mrb[53].mxu0  ;;  %v12069_v14 = vld [vmem:[%s19137_s6 + $0x548] sm:$0xff]   ;;  %v19666_v57 = vrot.slane %v15118_v63, 1  ;;  %v19667_v29 = vrot.slane %v15110_v21, 1  ;;  %v15448_v45 = vadd.f32 %v10833_v27, %v10769_v15 }
 0x75a   :  { %v15446_v44 = vld [vmem:[#allocation3 + $0x368] sm:$0x1]  ;;  %v10772_v39 = vadd.f32 %v10771_v19, %v10770_v42  ;;  %v10773_v1 = vpop.f32.mrb[54].mxu0  ;;  %v19670_v13 = vrot.slane %v15122_v58, 1  ;;  %v19671_v16 = vrot.slane %v15120_v10, 1  ;;  %v19672_v21 = vrot.slane %v15140_v24, 1 }
 0x75b   :  { %v15441_v28 = vsel %vm2508_vm10, %v19667_v29, %v19666_v57  ;;  %19669 = vst [vmem:[#allocation41_spill] sm:$0xff] %v15448_v45  ;;  %v19673_v29 = vrot.slane %v15131_v5, 1  ;;  %v15465_v15 = vld [vmem:[#allocation3 + $0x318] sm:$0xfe]  ;;  %v15467_v27 = vld [vmem:[#allocation3 + $0x338] sm:$0x1] }
 0x75c   :  { %v15455_v63 = vsel %vm2508_vm10, %v19671_v16, %v19670_v13  ;;  %19674 = vst [vmem:[#allocation43_spill] sm:$0xff] %v15465_v15  ;;  %v10834_v42 = vpop.f32.mrb[52].mxu1  ;;  %v10774_v58 = vpop.f32.mrb[55].mxu0  ;;  %v12068_v10 = vld [vmem:[%s19137_s6 + $0x580] sm:$0xff]   ;;  %v19675_v16 = vrot.slane %v15151_v53, 1  ;;  %v19676_v24 = vrot.slane %v15149_v60, 1  ;;  %6043 = vmatmul.mubr.bf16.vlgmr.msra.gmra.mrb[160].mxu0 %v5721_v61 }
 0x75d   :  { %v15462_v57 = vsel %vm2508_vm10, %v19673_v29, %v19672_v21  ;;  %v19677_v19 = vld [vmem:[#allocation9_spill] sm:$0xff]  ;;  %v19679_v21 = vld [vmem:[#allocation8_spill] sm:$0xff]  ;;  %v19681_v45 = vld [vmem:[#allocation10_spill] sm:$0xff]  ;;  %v19684_v30 = vrot.slane %v19683_v26, 1  ;;  %11365 = vmatpush3.bf16.msra.mxu0 %v12067_v48  ;;  %6050 = vmatprep.mubr.bf16.mxu0 %v5726_v23 }
 0x75e   :  { %v15477_v5 = vsel %vm2508_vm10, %v19676_v24, %v19675_v16  ;;  %v19678_v13 = vrot.slane %v19677_v19, 1  ;;  %v19680_v29 = vrot.slane %v19679_v21, 1  ;;  %v19682_v9 = vrot.slane %v19681_v45, 1  ;;  %v19685_v53 = vld [vmem:[#allocation13_spill] sm:$0xff]  ;;  %v19687_v60 = vld [vmem:[#allocation12_spill] sm:$0xff]  ;;  %11366 = vmatprep.subr.bf16.mxu0 %v12069_v14 }
 0x75f   :  { %v19686_v36 = vrot.slane %v19685_v53, 1  ;;  %v19688_v17 = vrot.slane %v19687_v60, 1  ;;  %v15500_v24 = vld [vmem:[#allocation3 + $0x358] sm:$0xfe]  ;;  %v15502_v19 = vld [vmem:[#allocation3 + $0x378] sm:$0x1]  ;;  %v10775_v21 = vadd.f32 %v10774_v58, %v10773_v1 }
 0x760   :  { %v15484_v47 = vsel %vm2508_vm10, %v19680_v29, %v19678_v13  ;;  %v15491_v38 = vsel %vm2508_vm10, %v19684_v30, %v19682_v9  ;;  %19689 = vst [vmem:[#allocation42_spill] sm:$0xff] %v15500_v24  ;;  %19690 = vst [vmem:[#allocation44_spill] sm:$0xff] %v15502_v19  ;;  %v10835_v13 = vpop.f32.mrb[53].mxu1  ;;  %v12070_v26 = vld [vmem:[%s19137_s6 + $0x5c8] sm:$0xff]   ;;  %v12073_v1 = vld [vmem:[%s19137_s6 + $0x550] sm:$0xff]  }
 0x761   :  { %v15498_v16 = vsel %vm2508_vm10, %v19688_v17, %v19686_v36  ;;  %v12071_v30 = vld [vmem:[%s19137_s6 + $0x508] sm:$0xff]   ;;  %v10836_v36 = vadd.f32 %v10835_v13, %v10834_v42  ;;  %v10837_v29 = vpop.f32.mrb[54].mxu1  ;;  %v15519_v7 = vld [vmem:[#allocation3 + $0x300] sm:$0xfe]  ;;  %v19691_v9 = vld [vmem:[#allocation14_spill] sm:$0xff] }
 0x762   :  { %v10838_v45 = vpop.f32.mrb[55].mxu1  ;;  %v19692_v17 = vrot.slane %v19691_v9, 1  ;;  %v19693_v42 = vld [vmem:[#allocation15_spill] sm:$0xff]  ;;  %v15531_v55 = vld [vmem:[#allocation3 + $0x320] sm:$0x1]  ;;  %v12072_v48 = vld [vmem:[%s19137_s6 + $0x588] sm:$0xff]   ;;  %11367 = vmatpush3.bf16.msra.mxu0 %v12071_v30 }
 0x763   :  { %v19694_v13 = vrot.slane %v19693_v42, 1  ;;  %v10839_v60 = vadd.f32 %v10838_v45, %v10837_v29  ;;  %v19695_v23 = vld [vmem:[#allocation17_spill] sm:$0xff]  ;;  %v19697_v42 = vld [vmem:[#allocation16_spill] sm:$0xff]  ;;  %v19701_v58 = vld [vmem:[#allocation18_spill] sm:$0xff]  ;;  %v15556_v19 = vadd.f32 %v10836_v36, %v10772_v39  ;;  %11368 = vmatprep.subr.bf16.mxu0 %v12073_v1  ;;  %v19717_v30 = vrot.slane %v15203_v41, 1 }
 0x764   :  { %v19696_v9 = vrot.slane %v19695_v23, 1  ;;  %v19698_v15 = vrot.slane %v19697_v42, 1  ;;  %v19702_v24 = vrot.slane %v19701_v58, 1  ;;  %v15550_v45 = vld [vmem:[#allocation3 + $0x340] sm:$0xfe]  ;;  %v19706_v23 = vpack.c.bf16 %v15360_v62, %v15353_v6  ;;  %v12075_v36 = vld [vmem:[%s19137_s6 + $0x510] sm:$0xff]  }
 0x765   :  { %v15526_v61 = vsel %vm2508_vm10, %v19694_v13, %v19692_v17  ;;  %v19699_v13 = vld [vmem:[#allocation20_spill] sm:$0xff]  ;;  %19703 = vst [vmem:[#allocation45_spill] sm:$0xff] %v15550_v45  ;;  %v15554_v29 = vld [vmem:[#allocation3 + $0x310] sm:$0xfe]  ;;  %19705 = vst [vmem:[#allocation46_spill] sm:$0xff] %v15556_v19  ;;  %v19708_v62 = vpack.c.bf16 %v15402_v2, %v15385_v54  ;;  %v15588_v58 = vadd.f32 %v10839_v60, %v10775_v21  ;;  %v10840_v60 = vpop.f32.mrb[56].mxu1 }
 0x766   :  { %v15541_v17 = vsel %vm2508_vm10, %v19698_v15, %v19696_v9  ;;  %v19700_v3 = vrot.slane %v19699_v13, 1  ;;  %v15552_v14 = vld [vmem:[#allocation3 + $0x360] sm:$0x1]  ;;  %19704 = vst [vmem:[#allocation47_spill] sm:$0xff] %v15554_v29  ;;  %6140 = vmatmul.mubr.bf16.vlgmr.msra.gmra.mrb[160].mxu1 %v19706_v23  ;;  %v10776_v15 = vpop.f32.mrb[56].mxu0  ;;  %v5725_v9 = vpack.c.bf16 %v15455_v63, %v15441_v28  ;;  %v5730_v28 = vpack.c.bf16 %v15491_v38, %v15484_v47  ;;  %v10841_v45 = vpop.f32.mrb[57].mxu1 }
 0x767   :  { %v15569_v42 = vld [vmem:[#allocation3 + $0x330] sm:$0x1]  ;;  %v15571_v39 = vld [vmem:[#allocation3 + $0x350] sm:$0xfe]  ;;  %11429 = vmatpush3.bf16.msra.mxu1 %v12068_v10  ;;  %6147 = vmatprep.mubr.bf16.mxu1 %v19708_v62  ;;  %v10777_v6 = vpop.f32.mrb[57].mxu0  ;;  %19710 = vst [vmem:[#allocation51_spill] sm:$0xff] %v15588_v58 }
 0x768   :  { %v15548_v53 = vsel %vm2508_vm10, %v19702_v24, %v19700_v3  ;;  %v12074_v24 = vld [vmem:[%s19137_s6 + $0x5d0] sm:$0xff]   ;;  %19707 = vst [vmem:[#allocation48_spill] sm:$0xff] %v15571_v39  ;;  %v15586_v10 = vld [vmem:[#allocation3 + $0x388] sm:$0xfe]  ;;  %v10778_v54 = vadd.f32 %v10777_v6, %v10776_v15  ;;  %v10779_v2 = vpop.f32.mrb[58].mxu0  ;;  %11430 = vmatprep.subr.bf16.mxu1 %v12070_v26  ;;  %v19711_v47 = vrot.slane %v15197_v22, 1  ;;  %6051 = vmatmul.mubr.bf16.gmra.mrb[164].mxu0 %v5725_v9 }
 0x769   :  { %v15584_v23 = vld [vmem:[#allocation3 + $0x370] sm:$0x1]  ;;  %19709 = vst [vmem:[#allocation49_spill] sm:$0xff] %v15586_v10  ;;  %v19712_v62 = vld [vmem:[#allocation21_spill] sm:$0xff]  ;;  %v10780_v15 = vpop.f32.mrb[59].mxu0  ;;  %v19716_v22 = vrot.slane %v15206_v33, 1  ;;  %6058 = vmatprep.mubr.bf16.mxu0 %v5730_v28  ;;  %11369 = vmatpush3.bf16.msra.mxu0 %v12075_v36 }
 0x76a   :  { %v19713_v63 = vrot.slane %v19712_v62, 1  ;;  %v15600_v19 = vld [vmem:[#allocation3 + $0x3a8] sm:$0x1]  ;;  %v15602_v21 = vld [vmem:[#allocation3 + $0x3c8] sm:$0xfe]  ;;  %v12076_v26 = vld [vmem:[%s19137_s6 + $0x590] sm:$0xff]   ;;  %v10781_v33 = vadd.f32 %v10780_v15, %v10779_v2 }
 0x76b   :  { %19714 = vst [vmem:[#allocation50_spill] sm:$0xff] %v15600_v19  ;;  %19715 = vst [vmem:[#allocation52_spill] sm:$0xff] %v15602_v21  ;;  %v15612_v6 = vsel %vm2508_vm10, %v19717_v30, %v19716_v22  ;;  %v15623_v58 = vld [vmem:[#allocation3 + $0x3e8] sm:$0x1]  ;;  %v12077_v41 = vld [vmem:[%s19137_s6 + $0x558] sm:$0xff]   ;;  %11431 = vmatpush3.bf16.msra.mxu1 %v12072_v48 }
 0x76c   :  { %v15597_v3 = vsel %vm2508_vm10, %v19713_v63, %v19711_v47  ;;  %v19718_v63 = vrot.slane %v15211_v40, 1  ;;  %v19719_v47 = vld [vmem:[#allocation25_spill] sm:$0xff]  ;;  %v12078_v40 = vld [vmem:[%s19137_s6 + $0x5d8] sm:$0xff]   ;;  %11432 = vmatprep.subr.bf16.mxu1 %v12074_v24  ;;  %v19721_v30 = vld [vmem:[#allocation24_spill] sm:$0xff]  ;;  %11370 = vmatprep.subr.bf16.mxu0 %v12077_v41 }
 0x76d   :  { %v19720_v62 = vrot.slane %v19719_v47, 1  ;;  %v10842_v47 = vadd.f32 %v10841_v45, %v10840_v60  ;;  %v12079_v2 = vld [vmem:[%s19137_s6 + $0x518] sm:$0xff]   ;;  %v19722_v45 = vrot.slane %v19721_v30, 1  ;;  %v19723_v60 = vld [vmem:[#allocation22_spill] sm:$0xff]  ;;  %v12081_v24 = vld [vmem:[%s19137_s6 + $0x560] sm:$0xff]  }
 0x76e   :  { %v15640_v29 = vld [vmem:[#allocation3 + $0x398] sm:$0xfe]  ;;  %v19724_v9 = vrot.slane %v19723_v60, 1  ;;  %v19725_v15 = vld [vmem:[#allocation26_spill] sm:$0xff]  ;;  %v15662_v30 = vld [vmem:[#allocation3 + $0x3b8] sm:$0x1]  ;;  %11371 = vmatpush3.bf16.msra.mxu0 %v12079_v2 }
 0x76f   :  { %v15619_v13 = vsel %vm2508_vm10, %v19720_v62, %v19718_v63  ;;  %v10843_v62 = vpop.f32.mrb[58].mxu1  ;;  %v19726_v10 = vrot.slane %v19725_v15, 1  ;;  %v19727_v38 = vld [vmem:[#allocation27_spill] sm:$0xff]  ;;  %v19731_v15 = vld [vmem:[#allocation28_spill] sm:$0xff]  ;;  %11433 = vmatpush3.bf16.msra.mxu1 %v12076_v26  ;;  %v15744_v26 = vld [vmem:[#allocation3 + $0x390] sm:$0xfe]  ;;  %11372 = vmatprep.subr.bf16.mxu0 %v12081_v24 }
 0x770   :  { %v10844_v22 = vpop.f32.mrb[59].mxu1  ;;  %v15647_v48 = vsel %vm2508_vm10, %v19724_v9, %v19722_v45  ;;  %v19728_v19 = vrot.slane %v19727_v38, 1  ;;  %v15664_v45 = vld [vmem:[#allocation3 + $0x3d8] sm:$0xfe]  ;;  %v19732_v21 = vrot.slane %v19731_v15, 1  ;;  %11434 = vmatprep.subr.bf16.mxu1 %v12078_v40  ;;  %v19751_v40 = vrot.slane %v15339_v20, 1 }
 0x771   :  { %v10845_v60 = vadd.f32 %v10844_v22, %v10843_v62  ;;  %v19729_v9 = vld [vmem:[#allocation31_spill] sm:$0xff]  ;;  %v15685_v36 = vld [vmem:[#allocation3 + $0x380] sm:$0xfe]  ;;  %v15687_v62 = vld [vmem:[#allocation3 + $0x3a0] sm:$0x1]  ;;  %v5731_v24 = vpack.c.bf16 %v15647_v48, %v15597_v3 }
 0x772   :  { %v15656_v1 = vsel %vm2508_vm10, %v19728_v19, %v19726_v10  ;;  %v19730_v63 = vrot.slane %v19729_v9, 1  ;;  %v19733_v19 = vrot.slane %v15244_v51, 1  ;;  %v19734_v10 = vrot.slane %v15239_v12, 1  ;;  %v12080_v28 = vld [vmem:[%s19137_s6 + $0x598] sm:$0xff]   ;;  %v10782_v12 = vpop.f32.mrb[60].mxu0  ;;  %v12086_v20 = vld [vmem:[%s19137_s6 + $0x5e8] sm:$0xff]  }
 0x773   :  { %v15683_v22 = vld [vmem:[#allocation3 + $0x3f8] sm:$0x1]  ;;  %v15689_v9 = vadd.f32 %v10842_v47, %v10778_v54  ;;  %v19736_v51 = vpack.c.bf16 %v15477_v5, %v15462_v57  ;;  %v19741_v47 = vrot.slane %v15288_v49, 1  ;;  %v19742_v57 = vrot.slane %v15273_v46, 1  ;;  %v15719_v41 = vld [vmem:[#allocation3 + $0x3c0] sm:$0xfe]  ;;  %11435 = vmatpush3.bf16.msra.mxu1 %v12080_v28 }
 0x774   :  { %v15671_v38 = vsel %vm2508_vm10, %v19732_v21, %v19730_v63  ;;  %v15678_v39 = vsel %vm2508_vm10, %v19734_v10, %v19733_v19  ;;  %v19737_v21 = vrot.slane %v15254_v4, 1  ;;  %v19738_v63 = vrot.slane %v15246_v43, 1  ;;  %v12082_v43 = vld [vmem:[%s19137_s6 + $0x5e0] sm:$0xff]   ;;  %v10783_v49 = vpop.f32.mrb[61].mxu0  ;;  %v12089_v48 = vld [vmem:[%s19137_s6 + $0x570] sm:$0xff]   ;;  %v12088_v28 = vld [vmem:[%s19137_s6 + $0x5a8] sm:$0xff]  }
 0x775   :  { %19735 = vst [vmem:[#allocation53_spill] sm:$0xff] %v15689_v9  ;;  %6148 = vmatmul.mubr.bf16.gmra.mrb[164].mxu1 %v19736_v51  ;;  %v19739_v19 = vrot.slane %v15271_v50, 1  ;;  %v19740_v10 = vrot.slane %v15256_v35, 1  ;;  %v15713_v5 = vsel %vm2508_vm10, %v19742_v57, %v19741_v47  ;;  %v15721_v50 = vld [vmem:[#allocation3 + $0x3e0] sm:$0x1]  ;;  %v19743_v35 = vpack.c.bf16 %v15526_v61, %v15498_v16  ;;  %v10785_v57 = vpop.f32.mrb[62].mxu0  ;;  %11436 = vmatprep.subr.bf16.mxu1 %v12082_v43 }
 0x776   :  { %v15699_v15 = vsel %vm2508_vm10, %v19738_v63, %v19737_v21  ;;  %v19744_v46 = vrot.slane %v15302_v59, 1  ;;  %v19745_v51 = vrot.slane %v15290_v18, 1  ;;  %v19746_v63 = vrot.slane %v15314_v8, 1  ;;  %v12083_v16 = vld [vmem:[%s19137_s6 + $0x520] sm:$0xff]   ;;  %v15746_v59 = vld [vmem:[#allocation3 + $0x3b0] sm:$0x1] }
 0x777   :  { %v15706_v54 = vsel %vm2508_vm10, %v19740_v10, %v19739_v19  ;;  %6155 = vmatprep.mubr.bf16.mxu1 %v19743_v35  ;;  %v19747_v19 = vrot.slane %v15306_v11, 1  ;;  %v15748_v18 = vadd.f32 %v10845_v60, %v10781_v33  ;;  %v10784_v47 = vadd.f32 %v10783_v49, %v10782_v12  ;;  %v12084_v49 = vld [vmem:[%s19137_s6 + $0x5a0] sm:$0xff]   ;;  %v15774_v35 = vld [vmem:[#allocation3 + $0x3f0] sm:$0x1]  ;;  %11373 = vmatpush3.bf16.msra.mxu0 %v12083_v16  ;;  %v15829_v11 = vld [vmem:[#allocation3 + $0x418] sm:$0xfe] }
 0x778   :  { %v15731_v21 = vsel %vm2508_vm10, %v19745_v51, %v19744_v46  ;;  %v15753_v46 = vld [vmem:[#allocation3 + $0x3d0] sm:$0xfe]  ;;  %v10846_v51 = vpop.f32.mrb[60].mxu1  ;;  %v19750_v4 = vrot.slane %v15321_v25, 1  ;;  %v19752_v60 = vrot.slane %v15337_v32, 1  ;;  %v12085_v32 = vld [vmem:[%s19137_s6 + $0x568] sm:$0xff]   ;;  %11437 = vmatpush3.bf16.msra.mxu1 %v12084_v49 }
 0x779   :  { %v15738_v10 = vsel %vm2508_vm10, %v19747_v19, %v19746_v63  ;;  %19748 = vst [vmem:[#allocation55_spill] sm:$0xff] %v15748_v18  ;;  %v10786_v63 = vpop.f32.mrb[63].mxu0  ;;  %v19749_v19 = vrot.slane %v15323_v31, 1  ;;  %v10847_v25 = vpop.f32.mrb[61].mxu1  ;;  %19757 = vst [vmem:[#allocation54_spill] sm:$0xff] %v15829_v11  ;;  %v19761_v61 = vld [vmem:[#allocation35_spill] sm:$0xff]  ;;  %11374 = vmatprep.subr.bf16.mxu0 %v12085_v32  ;;  %11438 = vmatprep.subr.bf16.mxu1 %v12086_v20 }
 0x77a   :  { %v15767_v12 = vsel %vm2508_vm10, %v19752_v60, %v19751_v40  ;;  %v10848_v31 = vadd.f32 %v10847_v25, %v10846_v51  ;;  %v10849_v2 = vpop.f32.mrb[62].mxu1  ;;  %v15796_v60 = vld [vmem:[#allocation3 + $0x408] sm:$0xfe]  ;;  %v15798_v51 = vld [vmem:[#allocation3 + $0x428] sm:$0x1]  ;;  %v19756_v40 = vrot.slane %v15369_v52, 1 }
 0x77b   :  { %v15760_v33 = vsel %vm2508_vm10, %v19750_v4, %v19749_v19  ;;  %v10787_v4 = vadd.f32 %v10786_v63, %v10785_v57  ;;  %v19753_v57 = vpack.c.bf16 %v15548_v53, %v15541_v17  ;;  %v5736_v63 = vpack.c.bf16 %v15671_v38, %v15656_v1  ;;  %v12087_v19 = vld [vmem:[%s19137_s6 + $0x528] sm:$0xff]   ;;  %v10850_v25 = vpop.f32.mrb[63].mxu1  ;;  %v15831_v8 = vld [vmem:[#allocation3 + $0x438] sm:$0x1]  ;;  %v19765_v3 = vld [vmem:[#allocation34_spill] sm:$0xff] }
 0x77c   :  { %v19754_v53 = vpack.c.bf16 %v15619_v13, %v15612_v6  ;;  %v15813_v38 = vld [vmem:[#allocation3 + $0x448] sm:$0xfe]  ;;  %v15815_v13 = vld [vmem:[#allocation3 + $0x468] sm:$0x1]  ;;  %v10851_v6 = vadd.f32 %v10850_v25, %v10849_v2  ;;  %v15833_v2 = vld [vmem:[#allocation3 + $0x458] sm:$0xfe]  ;;  %v15835_v25 = vadd.f32 %v10848_v31, %v10784_v47  ;;  %11375 = vmatpush3.bf16.msra.mxu0 %v12087_v19  ;;  %11439 = vmatpush3.bf16.msra.mxu1 %v12088_v28 }
 0x77d   :  { %6059 = vmatmul.mubr.bf16.gmra.mrb[168].mxu0 %v19753_v57  ;;  %19758 = vst [vmem:[#allocation56_spill] sm:$0xff] %v15833_v2  ;;  %6156 = vmatmul.mubr.bf16.gmra.mrb[168].mxu1 %v5731_v24  ;;  %v19760_v52 = vrot.slane %v15390_v34, 1  ;;  %v19766_v1 = vrot.slane %v19765_v3, 1  ;;  %v19767_v18 = vrot.slane %v15413_v37, 1  ;;  %v19768_v47 = vld [vmem:[#allocation37_spill] sm:$0xff]  ;;  %v12090_v34 = vld [vmem:[%s19137_s6 + $0x5f0] sm:$0xff]  }
 0x77e   :  { %6066 = vmatprep.mubr.bf16.mxu0 %v19754_v53  ;;  %v19755_v53 = vrot.slane %v15371_v56, 1  ;;  %19759 = vst [vmem:[#allocation57_spill] sm:$0xff] %v15835_v25  ;;  %v10868_v56 = vpop.f32.mrb[64].mxu0  ;;  %v19769_v31 = vrot.slane %v19768_v47, 1  ;;  %v15864_v3 = vld [vmem:[#allocation3 + $0x400] sm:$0xfe]  ;;  %6163 = vmatprep.mubr.bf16.mxu1 %v5736_v63 }
 0x77f   :  { %19771 = vst [vmem:[#allocation58_spill] sm:$0xff] %v15864_v3  ;;  %v12091_v37 = vld [vmem:[%s19137_s6 + $0x530] sm:$0xff]   ;;  %v15882_v32 = vld [vmem:[#allocation3 + $0x440] sm:$0xfe]  ;;  %11376 = vmatprep.subr.bf16.mxu0 %v12089_v48  ;;  %v12094_v19 = vld [vmem:[%s19137_s6 + $0x5f8] sm:$0xff]   ;;  %11440 = vmatprep.subr.bf16.mxu1 %v12090_v34 }
 0x780   :  { %v15824_v43 = vsel %vm2508_vm10, %v19756_v40, %v19755_v53  ;;  %v19762_v40 = vrot.slane %v19761_v61, 1  ;;  %v19763_v53 = vld [vmem:[#allocation36_spill] sm:$0xff]  ;;  %v15856_v24 = vsel %vm2508_vm10, %v19769_v31, %v19767_v18  ;;  %v12093_v18 = vld [vmem:[%s19137_s6 + $0x578] sm:$0xff]   ;;  %v15914_v9 = vld [vmem:[#allocation3 + $0x430] sm:$0x1]  ;;  %11377 = vmatpush3.bf16.msra.mxu0 %v12091_v37 }
 0x781   :  { %v19764_v57 = vrot.slane %v19763_v53, 1  ;;  %v15874_v53 = vadd.f32 %v10851_v6, %v10787_v4  ;;  %v19774_v4 = vrot.slane %v15429_v0, 1  ;;  %v19775_v6 = vld [vmem:[#allocation38_spill] sm:$0xff]  ;;  %v19778_v63 = vld [vmem:[#allocation40_spill] sm:$0xff]  ;;  %v12096_v34 = vld [vmem:[%s19137_s6 + $0x5b8] sm:$0xff]   ;;  %11378 = vmatprep.subr.bf16.mxu0 %v12093_v18 }
 0x782   :  { %v15842_v16 = vsel %vm2508_vm10, %v19762_v40, %v19760_v52  ;;  %v15862_v52 = vld [vmem:[#allocation3 + $0x478] sm:$0x1]  ;;  %v15872_v40 = vld [vmem:[#allocation3 + $0x420] sm:$0x1]  ;;  %v19779_v49 = vrot.slane %v19778_v63, 1  ;;  %v19797_v18 = vld [vmem:[#allocation45_spill] sm:$0xff] }
 0x783   :  { %v15849_v17 = vsel %vm2508_vm10, %v19766_v1, %v19764_v57  ;;  %19770 = vst [vmem:[#allocation59_spill] sm:$0xff] %v15862_v52  ;;  %v10869_v1 = vpop.f32.mrb[65].mxu0  ;;  %19772 = vst [vmem:[#allocation60_spill] sm:$0xff] %v15872_v40  ;;  %v10932_v57 = vpop.f32.mrb[64].mxu1  ;;  %v15902_v0 = vld [vmem:[#allocation3 + $0x460] sm:$0x1] }
 0x784   :  { %19773 = vst [vmem:[#allocation61_spill] sm:$0xff] %v15874_v53  ;;  %v10870_v47 = vadd.f32 %v10869_v1, %v10868_v56  ;;  %v10871_v31 = vpop.f32.mrb[66].mxu0  ;;  %v19776_v56 = vrot.slane %v19775_v6, 1  ;;  %v19777_v1 = vrot.slane %v15446_v44, 1  ;;  %v12092_v53 = vld [vmem:[%s19137_s6 + $0x5b0] sm:$0xff]   ;;  %v10933_v2 = vpop.f32.mrb[65].mxu1 }
 0x785   :  { %v10872_v25 = vpop.f32.mrb[67].mxu0  ;;  %v10934_v52 = vadd.f32 %v10933_v2, %v10932_v57  ;;  %v10935_v6 = vpop.f32.mrb[66].mxu1  ;;  %v19785_v63 = vld [vmem:[#allocation44_spill] sm:$0xff]  ;;  %v15934_v57 = vld [vmem:[#allocation3 + $0x450] sm:$0xfe]  ;;  %11441 = vmatpush3.bf16.msra.mxu1 %v12092_v53  ;;  %v19802_v53 = vrot.slane %v15584_v23, 1 }
 0x786   :  { %v15889_v20 = vsel %vm2508_vm10, %v19776_v56, %v19774_v4  ;;  %v15896_v61 = vsel %vm2508_vm10, %v19779_v49, %v19777_v1  ;;  %v19780_v4 = vld [vmem:[#allocation7_spill] sm:$0xff]  ;;  %v10873_v44 = vadd.f32 %v10872_v25, %v10871_v31  ;;  %v15912_v1 = vld [vmem:[#allocation3 + $0x410] sm:$0xfe]  ;;  %v19782_v25 = vrot.slane %v15467_v27, 1  ;;  %v15977_v2 = vld [vmem:[#allocation3 + $0xe8] sm:$0x3]  ;;  %11442 = vmatprep.subr.bf16.mxu1 %v12094_v19 }
 0x787   :  { %v3475_v56 = vadd.f32 %v10870_v47, %v19780_v4  ;;  %v19781_v47 = vpack.c.bf16 %v15699_v15, %v15678_v39  ;;  %v19783_v31 = vld [vmem:[#allocation43_spill] sm:$0xff]  ;;  %v19786_v3 = vrot.slane %v19785_v63, 1  ;;  %v19787_v49 = vld [vmem:[#allocation42_spill] sm:$0xff] }
 0x788   :  { %v19784_v48 = vrot.slane %v19783_v31, 1  ;;  %v19788_v40 = vrot.slane %v19787_v49, 1  ;;  %v15936_v39 = vld [vmem:[#allocation3 + $0x470] sm:$0x1]  ;;  %v15949_v49 = vld [vmem:[#allocation3 + $0xa8] sm:$0x3] }
 0x789   :  { %6067 = vmatmul.mubr.bf16.gmra.mrb[172].mxu0 %v19781_v47  ;;  %v19789_v27 = vld [vmem:[#allocation6_spill] sm:$0xff]  ;;  %v10936_v47 = vpop.f32.mrb[67].mxu1  ;;  %v15951_v31 = vadd.f32 %v10934_v52, %v3475_v56  ;;  %v19791_v52 = vpack.c.bf16 %v15713_v5, %v15706_v54  ;;  %v19792_v56 = vrot.slane %v15531_v55, 1  ;;  %v12097_v54 = vld [vmem:[%s19137_s6 + $0x640] sm:$0xff]   ;;  %v19795_v55 = vpack.c.bf16 %v15767_v12, %v15760_v33  ;;  %v15996_v28 = vld [vmem:[#allocation3 + $0x98] sm:$0xfc]  ;;  %11443 = vmatpush3.bf16.msra.mxu1 %v12096_v34 }
 0x78a   :  { %v15924_v4 = vsel %vm2508_vm10, %v19784_v48, %v19782_v25  ;;  %v15931_v11 = vsel %vm2508_vm10, %v19788_v40, %v19786_v3  ;;  %v3478_v15 = vadd.f32 %v10873_v44, %v19789_v27  ;;  %v19790_v25 = vpack.c.bf16 %v15738_v10, %v15731_v21  ;;  %v15947_v40 = vld [vmem:[#allocation3 + $0x88] sm:$0xfc]  ;;  %v12095_v48 = vld [vmem:[%s19137_s6 + $0x538] sm:$0xff]   ;;  %v12098_v33 = vld [vmem:[%s19137_s6 + $0x6c0] sm:$0xff]  }
 0x78b   :  { %v10937_v44 = vadd.f32 %v10936_v47, %v10935_v6  ;;  %v15961_v27 = vld [vmem:[#allocation3 + $0xc8] sm:$0xfc]  ;;  %6164 = vmatmul.mubr.bf16.gmra.mrb[172].mxu1 %v19791_v52  ;;  %v10874_v6 = vpop.f32.mrb[68].mxu0  ;;  %v19793_v47 = vrot.slane %v15519_v7, 1  ;;  %v19796_v52 = vrot.slane %v15552_v14, 1  ;;  %v19799_v14 = vrot.slane %v15569_v42, 1  ;;  %11379 = vmatpush3.bf16.msra.mxu0 %v12095_v48 }
 0x78c   :  { %6074 = vmatprep.mubr.bf16.mxu0 %v19790_v25  ;;  %6171 = vmatprep.mubr.bf16.mxu1 %v19795_v55  ;;  %v10875_v7 = vpop.f32.mrb[69].mxu0  ;;  %v16016_v37 = vld [vmem:[#allocation3 + $0xb8] sm:$0x3]  ;;  %v10938_v42 = vpop.f32.mrb[68].mxu1  ;;  %v19812_v10 = vrot.slane %v15662_v30, 1  ;;  %v19813_v3 = vrot.slane %v15640_v29, 1 }
 0x78d   :  { %v15973_v25 = vsel %vm2508_vm10, %v19793_v47, %v19792_v56  ;;  %v15982_v5 = vadd.f32 %v10937_v44, %v3478_v15  ;;  %v19798_v56 = vrot.slane %v19797_v18, 1  ;;  %v10876_v12 = vadd.f32 %v10875_v7, %v10874_v6  ;;  %v10877_v15 = vpop.f32.mrb[70].mxu0  ;;  %v19800_v44 = vld [vmem:[#allocation47_spill] sm:$0xff]  ;;  %v19803_v18 = vld [vmem:[#allocation48_spill] sm:$0xff]  ;;  %v10939_v30 = vpop.f32.mrb[69].mxu1  ;;  %11492 = vmatprep.subr.bf16.mxu0 %v12097_v54  ;;  %11556 = vmatprep.subr.bf16.mxu1 %v12098_v33 }
 0x78e   :  { %v19801_v55 = vrot.slane %v19800_v44, 1  ;;  %v16018_v6 = vld [vmem:[#allocation3 + $0xd8] sm:$0xfc]  ;;  %v10878_v7 = vpop.f32.mrb[71].mxu0  ;;  %v19805_v44 = vld [vmem:[#allocation50_spill] sm:$0xff]  ;;  %v19817_v29 = vrot.slane %v15687_v62, 1 }
 0x78f   :  { %19794 = vst [vmem:[#allocation63_spill] sm:$0xff] %v15982_v5  ;;  %v15992_v47 = vsel %vm2508_vm10, %v19798_v56, %v19796_v52  ;;  %v19804_v56 = vrot.slane %v19803_v18, 1  ;;  %v19806_v63 = vrot.slane %v19805_v44, 1  ;;  %v19809_v18 = vrot.slane %v15623_v58, 1  ;;  %v16048_v58 = vld [vmem:[#allocation3 + $0xf8] sm:$0x3] }
 0x790   :  { %v16006_v52 = vsel %vm2508_vm10, %v19801_v55, %v19799_v14  ;;  %v19807_v14 = vld [vmem:[#allocation49_spill] sm:$0xff]  ;;  %v16039_v5 = vsel %vm2508_vm10, %v19813_v3, %v19812_v10  ;;  %v19814_v44 = vrot.slane %v15683_v22, 1  ;;  %v19818_v3 = vrot.slane %v15685_v36, 1  ;;  %v16061_v10 = vld [vmem:[#allocation3 + $0xa0] sm:$0x3] }
 0x791   :  { %v16013_v21 = vsel %vm2508_vm10, %v19804_v56, %v19802_v53  ;;  %v19808_v55 = vrot.slane %v19807_v14, 1  ;;  %v19810_v53 = vld [vmem:[#allocation52_spill] sm:$0xff]  ;;  %v19815_v14 = vrot.slane %v15664_v45, 1  ;;  %v6492_v45 = vrot.slane %v15977_v2, 2  ;;  %v16094_v34 = vld [vmem:[#allocation3 + $0xb0] sm:$0x3] }
 0x792   :  { %v19811_v56 = vrot.slane %v19810_v53, 1  ;;  %v16058_v22 = vsel %vm2508_vm10, %v19818_v3, %v19817_v29  ;;  %v16063_v48 = vld [vmem:[#allocation3 + $0xc0] sm:$0xfc]  ;;  %v19820_v62 = vrot.slane %v15721_v50, 1  ;;  %v19821_v36 = vrot.slane %v15719_v41, 1  ;;  %v19824_v50 = vld [vmem:[#allocation23_spill] sm:$0xff] }
 0x793   :  { %v16025_v23 = vsel %vm2508_vm10, %v19808_v55, %v19806_v63  ;;  %v16046_v63 = vsel %vm2508_vm10, %v19815_v14, %v19814_v44  ;;  %v16050_v55 = vld [vmem:[#allocation3 + $0x80] sm:$0xfc]  ;;  %v10940_v44 = vadd.f32 %v10939_v30, %v10938_v42  ;;  %v10941_v14 = vpop.f32.mrb[70].mxu1  ;;  %v19823_v54 = vrot.slane %v15744_v26, 1  ;;  %v16083_v30 = vld [vmem:[#allocation3 + $0xe0] sm:$0x3] }
 0x794   :  { %v16032_v19 = vsel %vm2508_vm10, %v19811_v56, %v19809_v18  ;;  %v19816_v18 = vld [vmem:[#allocation19_spill] sm:$0xff]  ;;  %v10879_v56 = vadd.f32 %v10878_v7, %v10877_v15  ;;  %v16073_v15 = vsel %vm2508_vm10, %v19821_v36, %v19820_v62  ;;  %v19822_v7 = vrot.slane %v15746_v59, 1  ;;  %v10942_v41 = vpop.f32.mrb[71].mxu1  ;;  %v16197_v42 = vld [vmem:[#allocation3 + $0x160] sm:$0x3] }
 0x795   :  { %v3483_v53 = vadd.f32 %v10876_v12, %v19816_v18  ;;  %v19819_v12 = vpack.c.bf16 %v15842_v16, %v15824_v43  ;;  %v16085_v43 = vld [vmem:[#allocation3 + $0x90] sm:$0xfc]  ;;  %v19825_v29 = vpack.c.bf16 %v15896_v61, %v15889_v20  ;;  %v6486_v59 = vrot.slane %v16016_v37, 2  ;;  %v10880_v20 = vpop.f32.mrb[72].mxu0 }
 0x796   :  { %v16080_v18 = vsel %vm2508_vm10, %v19823_v54, %v19822_v7  ;;  %v3486_v16 = vadd.f32 %v10879_v56, %v19824_v50  ;;  %v10943_v62 = vadd.f32 %v10942_v41, %v10941_v14  ;;  %v16100_v7 = vld [vmem:[#allocation3 + $0xd0] sm:$0xfc]  ;;  %v19826_v61 = vpack.c.bf16 %v15856_v24, %v15849_v17  ;;  %v16114_v14 = vld [vmem:[#allocation3 + $0xf0] sm:$0x3]  ;;  %v19832_v24 = vld [vmem:[#allocation29_spill] sm:$0xff] }
 0x797   :  { %6075 = vmatmul.mubr.bf16.gmra.mrb[176].mxu0 %v19819_v12  ;;  %v16096_v12 = vadd.f32 %v10940_v44, %v3483_v53  ;;  %v19827_v54 = vrot.slane %v15774_v35, 1  ;;  %v19828_v33 = vrot.slane %v15753_v46, 1  ;;  %v19829_v17 = vpack.c.bf16 %v15931_v11, %v15924_v4  ;;  %v10881_v35 = vpop.f32.mrb[73].mxu0  ;;  %v16134_v4 = vld [vmem:[#allocation3 + $0x148] sm:$0xfc] }
 0x798   :  { %6082 = vmatprep.mubr.bf16.mxu0 %v19825_v29  ;;  %6172 = vmatmul.mubr.bf16.gmra.mrb[176].mxu1 %v19826_v61  ;;  %v16117_v29 = vadd.f32 %v10943_v62, %v3486_v16  ;;  %v5741_v46 = vpack.c.bf16 %v15992_v47, %v15973_v25  ;;  %v16125_v61 = vld [vmem:[#allocation3 + $0x108] sm:$0xfc]  ;;  %v10883_v53 = vpop.f32.mrb[74].mxu0  ;;  %v5743_v16 = vpack.c.bf16 %v16013_v21, %v16006_v52  ;;  %v10944_v25 = vpop.f32.mrb[72].mxu1  ;;  %v19830_v52 = vrot.slane %v15798_v51, 1 }
 0x799   :  { %v16110_v50 = vsel %vm2508_vm10, %v19828_v33, %v19827_v54  ;;  %6179 = vmatprep.mubr.bf16.mxu1 %v19829_v17  ;;  %v16127_v54 = vld [vmem:[#allocation3 + $0x128] sm:$0x3]  ;;  %v10882_v33 = vadd.f32 %v10881_v35, %v10880_v20  ;;  %v5746_v62 = vpack.c.bf16 %v16032_v19, %v16025_v23  ;;  %v10884_v47 = vpop.f32.mrb[75].mxu0  ;;  %v5748_v41 = vpack.c.bf16 %v16046_v63, %v16039_v5  ;;  %v16151_v35 = vld [vmem:[#allocation3 + $0x118] sm:$0xfc]  ;;  %v10945_v5 = vpop.f32.mrb[73].mxu1 }
 0x79a   :  { %v16136_v17 = vld [vmem:[#allocation3 + $0x168] sm:$0x3]  ;;  %v19831_v23 = vrot.slane %v15796_v60, 1  ;;  %v16153_v11 = vld [vmem:[#allocation3 + $0x138] sm:$0x3]  ;;  %v10885_v63 = vadd.f32 %v10884_v47, %v10883_v53  ;;  %v19833_v36 = vrot.slane %v15815_v13, 1 }
 0x79b   :  { %v3491_v44 = vadd.f32 %v10882_v33, %v19832_v24  ;;  %v19834_v56 = vrot.slane %v15813_v38, 1  ;;  %v16164_v51 = vld [vmem:[#allocation3 + $0x158] sm:$0xfc]  ;;  %v10947_v26 = vpop.f32.mrb[74].mxu1  ;;  %v19835_v24 = vrot.slane %v15831_v8, 1  ;;  %v19836_v33 = vld [vmem:[#allocation54_spill] sm:$0xff] }
 0x79c   :  { %v16149_v19 = vsel %vm2508_vm10, %v19831_v23, %v19830_v52  ;;  %v16166_v52 = vld [vmem:[#allocation3 + $0x178] sm:$0x3]  ;;  %v10946_v23 = vadd.f32 %v10945_v5, %v10944_v25  ;;  %v19837_v53 = vrot.slane %v19836_v33, 1  ;;  %v16183_v20 = vld [vmem:[#allocation3 + $0x100] sm:$0xfc]  ;;  %v10948_v5 = vpop.f32.mrb[75].mxu1 }
 0x79d   :  { %v16161_v21 = vsel %vm2508_vm10, %v19834_v56, %v19833_v36  ;;  %v19838_v38 = vld [vmem:[#allocation59_spill] sm:$0xff]  ;;  %v19840_v36 = vld [vmem:[#allocation56_spill] sm:$0xff]  ;;  %v19860_v37 = vrot.slane %v16018_v6, 2 }
 0x79e   :  { %v16173_v13 = vsel %vm2508_vm10, %v19837_v53, %v19835_v24  ;;  %v19839_v47 = vrot.slane %v19838_v38, 1  ;;  %v19841_v56 = vrot.slane %v19840_v36, 1  ;;  %v16185_v25 = vld [vmem:[#allocation3 + $0x120] sm:$0x3]  ;;  %v16191_v38 = vld [vmem:[#allocation3 + $0x140] sm:$0xfc]  ;;  %v10949_v36 = vadd.f32 %v10948_v5, %v10947_v26 }
 0x79f   :  { %6083 = vmatmul.mubr.bf16.gmra.mrb[180].mxu0 %v5741_v46  ;;  %v19842_v46 = vld [vmem:[#allocation30_spill] sm:$0xff] }
 0x7a0   :  { %v16180_v60 = vsel %vm2508_vm10, %v19841_v56, %v19839_v47  ;;  %v3494_v8 = vadd.f32 %v10885_v63, %v19842_v46  ;;  %6090 = vmatprep.mubr.bf16.mxu0 %v5746_v62  ;;  %v16193_v47 = vadd.f32 %v10946_v23, %v3491_v44  ;;  %6180 = vmatmul.mubr.bf16.gmra.mrb[180].mxu1 %v5743_v16  ;;  %v10886_v63 = vpop.f32.mrb[76].mxu0  ;;  %v16210_v5 = vld [vmem:[#allocation3 + $0x110] sm:$0xfc]  ;;  %v16212_v62 = vld [vmem:[#allocation3 + $0x130] sm:$0x3]  ;;  %v19843_v56 = vld [vmem:[#allocation60_spill] sm:$0xff] }
 0x7a1   :  { %6187 = vmatprep.mubr.bf16.mxu1 %v5748_v41  ;;  %v10887_v26 = vpop.f32.mrb[77].mxu0  ;;  %v5750_v44 = vpack.c.bf16 %v16161_v21, %v16149_v19  ;;  %v5752_v23 = vpack.c.bf16 %v16180_v60, %v16173_v13  ;;  %v19844_v53 = vrot.slane %v19843_v56, 1  ;;  %v19847_v21 = vrot.slane %v15902_v0, 1  ;;  %v16229_v16 = vld [vmem:[#allocation3 + $0x150] sm:$0xfc] }
 0x7a2   :  { %v16203_v24 = vadd.f32 %v10949_v36, %v3494_v8  ;;  %v10888_v46 = vadd.f32 %v10887_v26, %v10886_v63  ;;  %v10889_v33 = vpop.f32.mrb[78].mxu0  ;;  %v19845_v8 = vld [vmem:[#allocation58_spill] sm:$0xff]  ;;  %v19848_v19 = vrot.slane %v15882_v32, 1  ;;  %v10950_v26 = vpop.f32.mrb[76].mxu1  ;;  %v19851_v32 = vrot.slane %v15936_v39, 1 }
 0x7a3   :  { %v19846_v36 = vrot.slane %v19845_v8, 1  ;;  %v16231_v63 = vld [vmem:[#allocation3 + $0x170] sm:$0x3]  ;;  %v10890_v56 = vpop.f32.mrb[79].mxu0  ;;  %v19849_v8 = vrot.slane %v15914_v9, 1  ;;  %v19852_v0 = vrot.slane %v15934_v57, 1 }
 0x7a4   :  { %v16226_v60 = vsel %vm2508_vm10, %v19848_v19, %v19847_v21  ;;  %v19853_v19 = vrot.slane %v15949_v49, 2  ;;  %v19854_v13 = vrot.slane %v15947_v40, 2  ;;  %v19855_v9 = vrot.slane %v15961_v27, 2  ;;  %v16261_v39 = vld [vmem:[#allocation3 + $0x188] sm:$0xfc] }
 0x7a5   :  { %v16219_v41 = vsel %vm2508_vm10, %v19846_v36, %v19844_v53  ;;  %v19850_v53 = vrot.slane %v15912_v1, 1  ;;  %v16245_v21 = vsel %vm2508_vm10, %v19852_v0, %v19851_v32  ;;  %v16263_v57 = vld [vmem:[#allocation3 + $0x1a8] sm:$0x3]  ;;  %v10951_v32 = vpop.f32.mrb[77].mxu1  ;;  %v10891_v49 = vadd.f32 %v10890_v56, %v10889_v33  ;;  %v16274_v27 = vld [vmem:[#allocation3 + $0x1c8] sm:$0xfc] }
 0x7a6   :  { %v16252_v3 = vsel %vm3890_vm11, %v19854_v13, %v19853_v19  ;;  %v16259_v1 = vsel %vm3890_vm11, %v19855_v9, %v6492_v45  ;;  %v19857_v40 = vrot.slane %v15996_v28, 2  ;;  %v6506_v2 = vrot.slane %v16210_v5, 2  ;;  %v16276_v45 = vld [vmem:[#allocation3 + $0x1e8] sm:$0x3]  ;;  %v10953_v19 = vpop.f32.mrb[78].mxu1 }
 0x7a7   :  { %v16238_v36 = vsel %vm2508_vm10, %v19850_v53, %v19849_v8  ;;  %v19856_v8 = vld [vmem:[#allocation32_spill] sm:$0xff]  ;;  %v10952_v0 = vadd.f32 %v10951_v32, %v10950_v26  ;;  %v19859_v33 = vrot.slane %v16048_v58, 2  ;;  %v19862_v56 = vrot.slane %v16050_v55, 2  ;;  %v10954_v32 = vpop.f32.mrb[79].mxu1  ;;  %v16304_v55 = vld [vmem:[#allocation3 + $0x1d8] sm:$0xfc] }
 0x7a8   :  { %v3499_v53 = vadd.f32 %v10888_v46, %v19856_v8  ;;  %v16271_v13 = vsel %vm3890_vm11, %v19857_v40, %v6486_v59  ;;  %v19858_v46 = vpack.c.bf16 %v16073_v15, %v16058_v22  ;;  %v19861_v59 = vrot.slane %v16061_v10, 2  ;;  %v16296_v8 = vld [vmem:[#allocation3 + $0x198] sm:$0xfc]  ;;  %v16298_v22 = vld [vmem:[#allocation3 + $0x1b8] sm:$0x3]  ;;  %v19863_v15 = vld [vmem:[#allocation33_spill] sm:$0xff] }
 0x7a9   :  { %v16286_v28 = vsel %vm3890_vm11, %v19860_v37, %v19859_v33  ;;  %v6507_v26 = vrot.slane %v16212_v62, 2  ;;  %v3502_v58 = vadd.f32 %v10891_v49, %v19863_v15  ;;  %v6519_v40 = vrot.slane %v16231_v63, 2  ;;  %v10892_v49 = vpop.f32.mrb[80].mxu0  ;;  %v16484_v62 = vld [vmem:[#allocation3 + $0x220] sm:$0x3] }
 0x7aa   :  { %6091 = vmatmul.mubr.bf16.gmra.mrb[184].mxu0 %v19858_v46  ;;  %v16293_v9 = vsel %vm3890_vm11, %v19862_v56, %v19861_v59  ;;  %v16306_v46 = vadd.f32 %v10952_v0, %v3499_v53  ;;  %v10955_v33 = vadd.f32 %v10954_v32, %v10953_v19  ;;  %v16310_v56 = vld [vmem:[#allocation3 + $0x1f8] sm:$0x3]  ;;  %v19865_v15 = vrot.slane %v16083_v30, 2  ;;  %v16325_v32 = vld [vmem:[#allocation3 + $0x180] sm:$0xfc] }
 0x7ab   :  { %6098 = vmatprep.mubr.bf16.mxu0 %v5750_v44  ;;  %v19864_v44 = vpack.c.bf16 %v16110_v50, %v16080_v18  ;;  %v19866_v10 = vrot.slane %v16063_v48, 2  ;;  %v10893_v18 = vpop.f32.mrb[81].mxu0  ;;  %v5749_v30 = vpack.c.bf16 %v16226_v60, %v16219_v41  ;;  %v5751_v48 = vpack.c.bf16 %v16245_v21, %v16238_v36  ;;  %v16343_v41 = vld [vmem:[#allocation3 + $0x1e0] sm:$0x3]  ;;  %v16345_v60 = vld [vmem:[#allocation3 + $0x190] sm:$0xfc] }
 0x7ac   :  { %v16327_v59 = vadd.f32 %v10955_v33, %v3502_v58  ;;  %v10895_v0 = vpop.f32.mrb[82].mxu0  ;;  %v6733_v58 = vpack.c.bf16 %v16259_v1, %v16252_v3  ;;  %v10956_v36 = vpop.f32.mrb[80].mxu1  ;;  %v19869_v1 = vrot.slane %v16114_v14, 2  ;;  %v19871_v33 = vrot.slane %v16127_v54, 2  ;;  %v16383_v54 = vld [vmem:[#allocation3 + $0x1f0] sm:$0x3] }
 0x7ad   :  { %6188 = vmatmul.mubr.bf16.gmra.mrb[184].mxu1 %v19864_v44  ;;  %v16320_v6 = vsel %vm3890_vm11, %v19866_v10, %v19865_v15  ;;  %v16334_v10 = vld [vmem:[#allocation3 + $0x1a0] sm:$0x3]  ;;  %v16336_v44 = vld [vmem:[#allocation3 + $0x1c0] sm:$0xfc]  ;;  %v10894_v15 = vadd.f32 %v10893_v18, %v10892_v49  ;;  %v10896_v21 = vpop.f32.mrb[83].mxu0  ;;  %v19867_v49 = vrot.slane %v16094_v34, 2 }
 0x7ae   :  { %6195 = vmatprep.mubr.bf16.mxu1 %v5752_v23  ;;  %v6735_v23 = vpack.c.bf16 %v16286_v28, %v16271_v13  ;;  %v19868_v18 = vrot.slane %v16085_v43, 2  ;;  %v19870_v13 = vrot.slane %v16100_v7, 2  ;;  %v19872_v19 = vrot.slane %v16125_v61, 2  ;;  %v16370_v34 = vld [vmem:[#allocation3 + $0x1b0] sm:$0x3]  ;;  %v10957_v53 = vpop.f32.mrb[81].mxu1 }
 0x7af   :  { %v16372_v43 = vld [vmem:[#allocation3 + $0x1d0] sm:$0xfc]  ;;  %v10897_v14 = vadd.f32 %v10896_v21, %v10895_v0  ;;  %v19874_v7 = vrot.slane %v16136_v17, 2  ;;  %v10959_v37 = vpop.f32.mrb[82].mxu1  ;;  %v19877_v0 = vrot.slane %v16151_v35, 2  ;;  %v19879_v21 = vrot.slane %v16164_v51, 2 }
 0x7b0   :  { %v16354_v3 = vsel %vm3890_vm11, %v19868_v18, %v19867_v49  ;;  %v16361_v28 = vsel %vm3890_vm11, %v19870_v13, %v19869_v1  ;;  %v16368_v50 = vsel %vm3890_vm11, %v19872_v19, %v19871_v33  ;;  %v19873_v49 = vld [vmem:[#allocation39_spill] sm:$0xff]  ;;  %v19875_v1 = vrot.slane %v16134_v4, 2  ;;  %v16385_v19 = vld [vmem:[#allocation3 + $0x208] sm:$0xfc]  ;;  %v16410_v51 = vld [vmem:[#allocation3 + $0x268] sm:$0x3] }
 0x7b1   :  { %v3507_v18 = vadd.f32 %v10894_v15, %v19873_v49  ;;  %v10958_v33 = vadd.f32 %v10957_v53, %v10956_v36  ;;  %v19876_v15 = vrot.slane %v16153_v11, 2  ;;  %v19878_v4 = vrot.slane %v16166_v52, 2  ;;  %v16404_v53 = vld [vmem:[#allocation3 + $0x248] sm:$0xfc]  ;;  %v10960_v36 = vpop.f32.mrb[83].mxu1 }
 0x7b2   :  { %v16380_v13 = vsel %vm3890_vm11, %v19875_v1, %v19874_v7  ;;  %6099 = vmatmul.mubr.bf16.gmra.mrb[188].mxu0 %v5749_v30  ;;  %v16402_v1 = vld [vmem:[#allocation3 + $0x228] sm:$0x3]  ;;  %v16416_v7 = vld [vmem:[#allocation3 + $0x218] sm:$0xfc]  ;;  %v16451_v52 = vld [vmem:[#allocation3 + $0x200] sm:$0xfc] }
 0x7b3   :  { %v16392_v17 = vsel %vm3890_vm11, %v19877_v0, %v19876_v15  ;;  %v16399_v49 = vsel %vm3890_vm11, %v19879_v21, %v19878_v4  ;;  %v19880_v30 = vld [vmem:[#allocation41_spill] sm:$0xff]  ;;  %7053 = vmatprep.mubr.bf16.mxu0 %v6733_v58  ;;  %v16412_v0 = vadd.f32 %v10958_v33, %v3507_v18  ;;  %v10961_v4 = vadd.f32 %v10960_v36, %v10959_v37  ;;  %v12099_v58 = vld [vmem:[%s19137_s6 + $0x600] sm:$0xff]   ;;  %v16435_v21 = vld [vmem:[#allocation3 + $0x238] sm:$0x3]  ;;  %v10962_v35 = vpop.f32.mrb[84].mxu1 }
 0x7b4   :  { %v3510_v11 = vadd.f32 %v10897_v14, %v19880_v30  ;;  %v10898_v14 = vpop.f32.mrb[84].mxu0  ;;  %v6737_v61 = vpack.c.bf16 %v16380_v13, %v16368_v50  ;;  %v12101_v30 = vld [vmem:[%s19137_s6 + $0x648] sm:$0xff]   ;;  %v16437_v18 = vld [vmem:[#allocation3 + $0x258] sm:$0xfc]  ;;  %v16448_v13 = vld [vmem:[#allocation3 + $0x278] sm:$0x3] }
 0x7b5   :  { %6196 = vmatmul.mubr.bf16.gmra.mrb[188].mxu1 %v5751_v48  ;;  %v10899_v36 = vpop.f32.mrb[85].mxu0  ;;  %v6734_v48 = vpack.c.bf16 %v16361_v28, %v16354_v3  ;;  %v19881_v3 = vrot.slane %v16185_v25, 2  ;;  %v19882_v28 = vrot.slane %v16183_v20, 2  ;;  %v19884_v25 = vrot.slane %v16191_v38, 2  ;;  %v16486_v5 = vld [vmem:[#allocation3 + $0x240] sm:$0xfc] }
 0x7b6   :  { %v16425_v33 = vadd.f32 %v10961_v4, %v3510_v11  ;;  %7150 = vmatprep.mubr.bf16.mxu1 %v6735_v23  ;;  %v10900_v11 = vadd.f32 %v10899_v36, %v10898_v14  ;;  %v10901_v4 = vpop.f32.mrb[86].mxu0  ;;  %v6739_v23 = vpack.c.bf16 %v16399_v49, %v16392_v17  ;;  %v12100_v14 = vld [vmem:[%s19137_s6 + $0x680] sm:$0xff]   ;;  %v19883_v17 = vrot.slane %v16197_v42, 2 }
 0x7b7   :  { %v16446_v50 = vsel %vm3890_vm11, %v19882_v28, %v19881_v3  ;;  %v10902_v15 = vpop.f32.mrb[87].mxu0  ;;  %v16468_v49 = vsel %vm3890_vm11, %v6506_v2, %v6507_v26  ;;  %v19885_v36 = vrot.slane %v16229_v16, 2  ;;  %v19886_v42 = vrot.slane %v16263_v57, 2  ;;  %v19888_v2 = vld [vmem:[#allocation46_spill] sm:$0xff]  ;;  %v12102_v16 = vld [vmem:[%s19137_s6 + $0x6c8] sm:$0xff]  }
 0x7b8   :  { %v16461_v20 = vsel %vm3890_vm11, %v19884_v25, %v19883_v17  ;;  %v19887_v38 = vrot.slane %v16261_v39, 2  ;;  %v3515_v26 = vadd.f32 %v10900_v11, %v19888_v2  ;;  %v10963_v17 = vpop.f32.mrb[85].mxu1  ;;  %v10903_v63 = vadd.f32 %v10902_v15, %v10901_v4  ;;  %v12103_v57 = vld [vmem:[%s19137_s6 + $0x608] sm:$0xff]   ;;  %v16503_v11 = vld [vmem:[#allocation3 + $0x260] sm:$0x3] }
 0x7b9   :  { %v16475_v3 = vsel %vm3890_vm11, %v19885_v36, %v6519_v40  ;;  %v19889_v39 = vrot.slane %v16276_v45, 2  ;;  %v19890_v40 = vrot.slane %v16274_v27, 2  ;;  %v6558_v36 = vrot.slane %v16435_v21, 2  ;;  %v16505_v15 = vld [vmem:[#allocation3 + $0x210] sm:$0xfc] }
 0x7ba   :  { %v16482_v28 = vsel %vm3890_vm11, %v19887_v38, %v19886_v42  ;;  %v10964_v4 = vadd.f32 %v10963_v17, %v10962_v35  ;;  %v10965_v42 = vpop.f32.mrb[86].mxu1  ;;  %v19891_v38 = vpack.c.bf16 %v16320_v6, %v16293_v9  ;;  %v19892_v2 = vrot.slane %v16298_v22, 2  ;;  %v16525_v17 = vld [vmem:[#allocation3 + $0x230] sm:$0x3]  ;;  %v16527_v9 = vld [vmem:[#allocation3 + $0x250] sm:$0xfc] }
 0x7bb   :  { %v16500_v25 = vsel %vm3890_vm11, %v19890_v40, %v19889_v39  ;;  %v19893_v45 = vrot.slane %v16296_v8, 2  ;;  %v19894_v39 = vrot.slane %v16310_v56, 2  ;;  %v19895_v40 = vrot.slane %v16304_v55, 2  ;;  %v19896_v6 = vld [vmem:[#allocation51_spill] sm:$0xff]  ;;  %v10904_v56 = vpop.f32.mrb[88].mxu0 }
 0x7bc   :  { %7054 = vmatmul.mubr.bf16.vlgmr.msra.gmra.mrb[192].mxu0 %v19891_v38  ;;  %v3518_v22 = vadd.f32 %v10903_v63, %v19896_v6  ;;  %v10966_v38 = vpop.f32.mrb[87].mxu1  ;;  %v6570_v8 = vrot.slane %v16448_v13, 2  ;;  %v16545_v6 = vld [vmem:[#allocation3 + $0x288] sm:$0xfc]  ;;  %v16569_v55 = vld [vmem:[#allocation3 + $0x2e8] sm:$0x3] }
 0x7bd   :  { %v16515_v27 = vsel %vm3890_vm11, %v19893_v45, %v19892_v2  ;;  %v16522_v37 = vsel %vm3890_vm11, %v19895_v40, %v19894_v39  ;;  %11493 = vmatpush3.bf16.msra.mxu0 %v12099_v58  ;;  %7061 = vmatprep.mubr.bf16.mxu0 %v6737_v61  ;;  %v16533_v2 = vld [vmem:[#allocation3 + $0x270] sm:$0x3]  ;;  %v16535_v45 = vadd.f32 %v10964_v4, %v3515_v26  ;;  %v12104_v40 = vld [vmem:[%s19137_s6 + $0x688] sm:$0xff]   ;;  %v16659_v21 = vld [vmem:[#allocation3 + $0x2e0] sm:$0x3] }
 0x7be   :  { %v10967_v39 = vadd.f32 %v10966_v38, %v10965_v42  ;;  %11494 = vmatprep.subr.bf16.mxu0 %v12101_v30  ;;  %v12105_v61 = vld [vmem:[%s19137_s6 + $0x650] sm:$0xff]   ;;  %7151 = vmatmul.mubr.bf16.vlgmr.msra.gmra.mrb[192].mxu1 %v6734_v48  ;;  %v6736_v26 = vpack.c.bf16 %v16461_v20, %v16446_v50  ;;  %v16555_v58 = vld [vmem:[#allocation3 + $0x2a8] sm:$0x3]  ;;  %v10905_v48 = vpop.f32.mrb[89].mxu0  ;;  %v6738_v50 = vpack.c.bf16 %v16475_v3, %v16468_v49  ;;  %v16567_v38 = vld [vmem:[#allocation3 + $0x2c8] sm:$0xfc] }
 0x7bf   :  { %v12106_v30 = vld [vmem:[%s19137_s6 + $0x6d0] sm:$0xff]   ;;  %11557 = vmatpush3.bf16.msra.mxu1 %v12100_v14  ;;  %7158 = vmatprep.mubr.bf16.mxu1 %v6739_v23  ;;  %v6741_v20 = vpack.c.bf16 %v16500_v25, %v16482_v28  ;;  %v10907_v14 = vpop.f32.mrb[90].mxu0  ;;  %v6743_v23 = vpack.c.bf16 %v16522_v37, %v16515_v27  ;;  %v19897_v49 = vrot.slane %v16334_v10, 2  ;;  %v19898_v3 = vrot.slane %v16325_v32, 2  ;;  %v12109_v25 = vld [vmem:[%s19137_s6 + $0x658] sm:$0xff]  }
 0x7c0   :  { %v16557_v63 = vadd.f32 %v10967_v39, %v3518_v22  ;;  %v12107_v4 = vld [vmem:[%s19137_s6 + $0x610] sm:$0xff]   ;;  %v10906_v22 = vadd.f32 %v10905_v48, %v10904_v56  ;;  %11558 = vmatprep.subr.bf16.mxu1 %v12102_v16  ;;  %v16584_v56 = vld [vmem:[#allocation3 + $0x298] sm:$0xfc]  ;;  %v16586_v16 = vld [vmem:[#allocation3 + $0x2b8] sm:$0x3]  ;;  %v10908_v48 = vpop.f32.mrb[91].mxu0 }
 0x7c1   :  { %11495 = vmatpush3.bf16.msra.mxu0 %v12103_v57  ;;  %v16578_v28 = vsel %vm3890_vm11, %v19898_v3, %v19897_v49  ;;  %v10968_v57 = vpop.f32.mrb[88].mxu1  ;;  %v19899_v10 = vrot.slane %v16343_v41, 2  ;;  %v19900_v32 = vrot.slane %v16336_v44, 2  ;;  %v19901_v27 = vrot.slane %v16370_v34, 2  ;;  %v12108_v44 = vld [vmem:[%s19137_s6 + $0x690] sm:$0xff]  }
 0x7c2   :  { %11496 = vmatprep.subr.bf16.mxu0 %v12105_v61  ;;  %v19902_v49 = vrot.slane %v16345_v60, 2  ;;  %v19903_v39 = vrot.slane %v16383_v54, 2  ;;  %v19904_v42 = vrot.slane %v16372_v43, 2  ;;  %v19905_v41 = vrot.slane %v16402_v1, 2  ;;  %v19907_v54 = vld [vmem:[#allocation53_spill] sm:$0xff] }
 0x7c3   :  { %v16593_v37 = vsel %vm3890_vm11, %v19900_v32, %v19899_v10  ;;  %v19906_v34 = vrot.slane %v16385_v19, 2  ;;  %v16619_v10 = vld [vmem:[#allocation3 + $0x2d8] sm:$0xfc]  ;;  %v16621_v32 = vld [vmem:[#allocation3 + $0x2f8] sm:$0x3]  ;;  %v3523_v43 = vadd.f32 %v10906_v22, %v19907_v54  ;;  %v6576_v1 = vrot.slane %v16555_v58, 2  ;;  %11559 = vmatpush3.bf16.msra.mxu1 %v12104_v40 }
 0x7c4   :  { %v16600_v3 = vsel %vm3890_vm11, %v19902_v49, %v19901_v27  ;;  %v16607_v61 = vsel %vm3890_vm11, %v19904_v42, %v19903_v39  ;;  %v10969_v27 = vpop.f32.mrb[89].mxu1  ;;  %v10909_v42 = vadd.f32 %v10908_v48, %v10907_v14  ;;  %v19908_v39 = vrot.slane %v16410_v51, 2  ;;  %v12110_v19 = vld [vmem:[%s19137_s6 + $0x6d8] sm:$0xff]   ;;  %7062 = vmatmul.mubr.bf16.gmra.mrb[196].mxu0 %v6736_v26  ;;  %v16657_v26 = vld [vmem:[#allocation3 + $0x2c0] sm:$0xfc]  ;;  %11560 = vmatprep.subr.bf16.mxu1 %v12106_v30 }
 0x7c5   :  { %v16617_v60 = vsel %vm3890_vm11, %v19906_v34, %v19905_v41  ;;  %v19909_v49 = vrot.slane %v16404_v53, 2  ;;  %v16635_v41 = vld [vmem:[#allocation3 + $0x280] sm:$0xfc]  ;;  %v16637_v34 = vld [vmem:[#allocation3 + $0x2a0] sm:$0x3]  ;;  %v10970_v22 = vadd.f32 %v10969_v27, %v10968_v57  ;;  %v10971_v54 = vpop.f32.mrb[90].mxu1  ;;  %7069 = vmatprep.mubr.bf16.mxu0 %v6741_v20  ;;  %11497 = vmatpush3.bf16.msra.mxu0 %v12107_v4 }
 0x7c6   :  { %v19910_v53 = vrot.slane %v16416_v7, 2  ;;  %v19911_v14 = vrot.slane %v16437_v18, 2  ;;  %v12111_v57 = vld [vmem:[%s19137_s6 + $0x618] sm:$0xff]   ;;  %v10972_v27 = vpop.f32.mrb[91].mxu1  ;;  %v6588_v18 = vrot.slane %v16569_v55, 2  ;;  %v12113_v20 = vld [vmem:[%s19137_s6 + $0x660] sm:$0xff]   ;;  %7159 = vmatmul.mubr.bf16.gmra.mrb[196].mxu1 %v6738_v50  ;;  %11498 = vmatprep.subr.bf16.mxu0 %v12109_v25  ;;  %v6740_v50 = vpack.c.bf16 %v16593_v37, %v16578_v28 }
 0x7c7   :  { %v16629_v35 = vsel %vm3890_vm11, %v19909_v49, %v19908_v39  ;;  %v19912_v7 = vld [vmem:[#allocation55_spill] sm:$0xff]  ;;  %v16665_v39 = vld [vmem:[#allocation3 + $0x290] sm:$0xfc]  ;;  %v16667_v49 = vadd.f32 %v10970_v22, %v3523_v43  ;;  %v12114_v4 = vld [vmem:[%s19137_s6 + $0x6e0] sm:$0xff]   ;;  %7166 = vmatprep.mubr.bf16.mxu1 %v6743_v23  ;;  %v6742_v25 = vpack.c.bf16 %v16607_v61, %v16600_v3  ;;  %11561 = vmatpush3.bf16.msra.mxu1 %v12108_v44  ;;  %v10974_v22 = vpop.f32.mrb[92].mxu1  ;;  %v19917_v37 = vrot.slane %v16525_v17, 2 }
 0x7c8   :  { %v16644_v51 = vsel %vm3890_vm11, %v19910_v53, %v6558_v36  ;;  %v16651_v48 = vsel %vm3890_vm11, %v19911_v14, %v6570_v8  ;;  %v3526_v36 = vadd.f32 %v10909_v42, %v19912_v7  ;;  %v6582_v8 = vrot.slane %v16586_v16, 2  ;;  %v12112_v14 = vld [vmem:[%s19137_s6 + $0x698] sm:$0xff]   ;;  %v16677_v7 = vld [vmem:[#allocation3 + $0x2b0] sm:$0x3]  ;;  %v10910_v16 = vpop.f32.mrb[92].mxu0  ;;  %11562 = vmatprep.subr.bf16.mxu1 %v12110_v19  ;;  %v12117_v44 = vld [vmem:[%s19137_s6 + $0x668] sm:$0xff]  }
 0x7c9   :  { %v10973_v53 = vadd.f32 %v10972_v27, %v10971_v54  ;;  %v10911_v30 = vpop.f32.mrb[93].mxu0  ;;  %v16692_v13 = vld [vmem:[#allocation3 + $0x2d0] sm:$0xfc]  ;;  %v16694_v43 = vld [vmem:[#allocation3 + $0x2f0] sm:$0x3]  ;;  %v6745_v54 = vpack.c.bf16 %v16629_v35, %v16617_v60  ;;  %v6747_v28 = vpack.c.bf16 %v16651_v48, %v16644_v51  ;;  %v19914_v35 = vrot.slane %v16451_v52, 2  ;;  %11499 = vmatpush3.bf16.msra.mxu0 %v12111_v57 }
 0x7ca   :  { %v10913_v23 = vpop.f32.mrb[94].mxu0  ;;  %v16705_v3 = vld [vmem:[#allocation3 + $0x308] sm:$0xfc]  ;;  %v16707_v61 = vld [vmem:[#allocation3 + $0x328] sm:$0x3]  ;;  %v19915_v19 = vrot.slane %v16503_v11, 2  ;;  %11500 = vmatprep.subr.bf16.mxu0 %v12113_v20 }
 0x7cb   :  { %v16686_v42 = vadd.f32 %v10973_v53, %v3526_v36  ;;  %v12115_v36 = vld [vmem:[%s19137_s6 + $0x620] sm:$0xff]   ;;  %v10912_v53 = vadd.f32 %v10911_v30, %v10910_v16  ;;  %v10914_v30 = vpop.f32.mrb[95].mxu0  ;;  %v19913_v16 = vrot.slane %v16484_v62, 2  ;;  %v19916_v51 = vrot.slane %v16486_v5, 2  ;;  %v16743_v11 = vld [vmem:[#allocation3 + $0x348] sm:$0xfc]  ;;  %11563 = vmatpush3.bf16.msra.mxu1 %v12112_v14 }
 0x7cc   :  { %v19918_v27 = vrot.slane %v16505_v15, 2  ;;  %v19919_v62 = vrot.slane %v16533_v2, 2  ;;  %v19920_v52 = vrot.slane %v16527_v9, 2  ;;  %v12116_v5 = vld [vmem:[%s19137_s6 + $0x6a0] sm:$0xff]   ;;  %v16745_v17 = vld [vmem:[#allocation3 + $0x368] sm:$0x3]  ;;  %7070 = vmatmul.mubr.bf16.gmra.mrb[200].mxu0 %v6740_v50  ;;  %11564 = vmatprep.subr.bf16.mxu1 %v12114_v4 }
 0x7cd   :  { %v16717_v60 = vsel %vm3890_vm11, %v19914_v35, %v19913_v16  ;;  %v16724_v48 = vsel %vm3890_vm11, %v19916_v51, %v19915_v19  ;;  %v19921_v15 = vld [vmem:[#allocation57_spill] sm:$0xff]  ;;  %v19922_v9 = vrot.slane %v16545_v6, 2  ;;  %v6590_v57 = vrot.slane %v16692_v13, 2  ;;  %v16756_v19 = vld [vmem:[#allocation3 + $0x318] sm:$0xfc]  ;;  %7077 = vmatprep.mubr.bf16.mxu0 %v6745_v54  ;;  %11501 = vmatpush3.bf16.msra.mxu0 %v12115_v36  ;;  %v12121_v54 = vld [vmem:[%s19137_s6 + $0x670] sm:$0xff]  }
 0x7ce   :  { %v16731_v40 = vsel %vm3890_vm11, %v19918_v27, %v19917_v37  ;;  %v16738_v16 = vsel %vm3890_vm11, %v19920_v52, %v19919_v62  ;;  %v3531_v35 = vadd.f32 %v10912_v53, %v19921_v15  ;;  %v10975_v27 = vpop.f32.mrb[93].mxu1  ;;  %v10915_v37 = vadd.f32 %v10914_v30, %v10913_v23  ;;  %v16758_v51 = vld [vmem:[#allocation3 + $0x338] sm:$0x3]  ;;  %v12118_v53 = vld [vmem:[%s19137_s6 + $0x6e8] sm:$0xff]   ;;  %v16776_v52 = vld [vmem:[#allocation3 + $0x358] sm:$0xfc]  ;;  %7167 = vmatmul.mubr.bf16.gmra.mrb[200].mxu1 %v6742_v25 }
 0x7cf   :  { %v16753_v2 = vsel %vm3890_vm11, %v19922_v9, %v6576_v1  ;;  %v10976_v62 = vadd.f32 %v10975_v27, %v10974_v22  ;;  %v10977_v23 = vpop.f32.mrb[94].mxu1  ;;  %v19923_v58 = vrot.slane %v16567_v38, 2  ;;  %v19924_v1 = vrot.slane %v16584_v56, 2  ;;  %v16778_v22 = vld [vmem:[#allocation3 + $0x378] sm:$0x3]  ;;  %v12119_v55 = vld [vmem:[%s19137_s6 + $0x628] sm:$0xff]   ;;  %11502 = vmatprep.subr.bf16.mxu0 %v12117_v44  ;;  %7174 = vmatprep.mubr.bf16.mxu1 %v6747_v28 }
 0x7d0   :  { %v6591_v30 = vrot.slane %v16694_v43, 2  ;;  %v19925_v14 = vld [vmem:[#allocation61_spill] sm:$0xff]  ;;  %v10978_v50 = vpop.f32.mrb[95].mxu1  ;;  %v6599_v56 = vrot.slane %v16705_v3, 2  ;;  %v16787_v43 = vld [vmem:[#allocation3 + $0x300] sm:$0xfc]  ;;  %11565 = vmatpush3.bf16.msra.mxu1 %v12116_v5  ;;  %v6746_v28 = vpack.c.bf16 %v16738_v16, %v16731_v40 }
 0x7d1   :  { %v16768_v6 = vsel %vm3890_vm11, %v19923_v58, %v6588_v18  ;;  %v16773_v20 = vsel %vm3890_vm11, %v19924_v1, %v6582_v8  ;;  %v3534_v38 = vadd.f32 %v10915_v37, %v19925_v14  ;;  %v6600_v18 = vrot.slane %v16707_v61, 2  ;;  %v16793_v37 = vld [vmem:[#allocation3 + $0x320] sm:$0x3]  ;;  %v12120_v4 = vld [vmem:[%s19137_s6 + $0x6a8] sm:$0xff]   ;;  %v10996_v3 = vpop.f32.mrb[96].mxu0  ;;  %v12122_v25 = vld [vmem:[%s19137_s6 + $0x6f0] sm:$0xff]   ;;  %11566 = vmatprep.subr.bf16.mxu1 %v12118_v53  ;;  %11503 = vmatpush3.bf16.msra.mxu0 %v12119_v55 }
 0x7d2   :  { %v6611_v8 = vrot.slane %v16743_v11, 2  ;;  %v16789_v15 = vadd.f32 %v10976_v62, %v3531_v35  ;;  %v10979_v27 = vadd.f32 %v10978_v50, %v10977_v23  ;;  %v6612_v9 = vrot.slane %v16745_v17, 2  ;;  %v16811_v1 = vld [vmem:[#allocation3 + $0x340] sm:$0xfc]  ;;  %v16820_v50 = vld [vmem:[#allocation3 + $0x360] sm:$0x3]  ;;  %11504 = vmatprep.subr.bf16.mxu0 %v12121_v54 }
 0x7d3   :  { %v19926_v61 = vrot.slane %v16621_v32, 2  ;;  %v19927_v36 = vrot.slane %v16619_v10, 2  ;;  %v10997_v10 = vpop.f32.mrb[97].mxu0  ;;  %v6744_v32 = vpack.c.bf16 %v16724_v48, %v16717_v60  ;;  %v12123_v44 = vld [vmem:[%s19137_s6 + $0x630] sm:$0xff]   ;;  %v19928_v40 = vrot.slane %v16637_v34, 2  ;;  %v12127_v11 = vld [vmem:[%s19137_s6 + $0x638] sm:$0xff]  }
 0x7d4   :  { %v16816_v14 = vadd.f32 %v10979_v27, %v3534_v38  ;;  %v10998_v62 = vadd.f32 %v10997_v10, %v10996_v3  ;;  %v10999_v23 = vpop.f32.mrb[98].mxu0  ;;  %v6749_v38 = vpack.c.bf16 %v16768_v6, %v16753_v2  ;;  %v16833_v48 = vld [vmem:[#allocation3 + $0x330] sm:$0x3]  ;;  %v16835_v5 = vld [vmem:[#allocation3 + $0x350] sm:$0xfc]  ;;  %v12125_v27 = vld [vmem:[%s19137_s6 + $0x678] sm:$0xff]   ;;  %11567 = vmatpush3.bf16.msra.mxu1 %v12120_v4  ;;  %v6613_v54 = vsel %vm3890_vm11, %v6611_v8, %v6612_v9 }
 0x7d5   :  { %v16806_v17 = vsel %vm3890_vm11, %v19927_v36, %v19926_v61  ;;  %v16823_v36 = vld [vmem:[#allocation3 + $0x310] sm:$0xfc]  ;;  %v11060_v61 = vpop.f32.mrb[96].mxu1  ;;  %v11000_v3 = vpop.f32.mrb[99].mxu0  ;;  %v19929_v16 = vrot.slane %v16635_v41, 2  ;;  %v19930_v53 = vrot.slane %v16659_v21, 2  ;;  %v16873_v21 = vsel %vm3890_vm11, %v6599_v56, %v6600_v18  ;;  %7078 = vmatmul.mubr.bf16.gmra.mrb[204].mxu0 %v6744_v32  ;;  %11568 = vmatprep.subr.bf16.mxu1 %v12122_v25 }
 0x7d6   :  { %v6751_v10 = vpack.c.bf16 %v16806_v17, %v16773_v20  ;;  %v19931_v6 = vrot.slane %v16657_v26, 2  ;;  %v19932_v58 = vrot.slane %v16677_v7, 2  ;;  %v19933_v35 = vrot.slane %v16665_v39, 2  ;;  %v16863_v34 = vld [vmem:[#allocation3 + $0x370] sm:$0x3]  ;;  %v11061_v17 = vpop.f32.mrb[97].mxu1  ;;  %7085 = vmatprep.mubr.bf16.mxu0 %v6749_v38  ;;  %11505 = vmatpush3.bf16.msra.mxu0 %v12123_v44 }
 0x7d7   :  { %v16847_v2 = vsel %vm3890_vm11, %v19929_v16, %v19928_v40  ;;  %v16865_v41 = vld [vmem:[#allocation3 + $0x388] sm:$0xfc]  ;;  %v11001_v40 = vadd.f32 %v11000_v3, %v10999_v23  ;;  %v16870_v26 = vsel %vm3890_vm11, %v6590_v57, %v6591_v30  ;;  %v6608_v39 = vrot.slane %v16811_v1, 2  ;;  %v16876_v7 = vld [vmem:[#allocation3 + $0x3a8] sm:$0x3]  ;;  %v12124_v30 = vld [vmem:[%s19137_s6 + $0x6b0] sm:$0xff]   ;;  %7175 = vmatmul.mubr.bf16.gmra.mrb[204].mxu1 %v6746_v28  ;;  %11506 = vmatprep.subr.bf16.mxu0 %v12125_v27 }
 0x7d8   :  { %v16854_v60 = vsel %vm3890_vm11, %v19931_v6, %v19930_v53  ;;  %v16861_v20 = vsel %vm3890_vm11, %v19933_v35, %v19932_v58  ;;  %v16878_v58 = vld [vmem:[#allocation3 + $0x3c8] sm:$0xfc]  ;;  %v11062_v55 = vadd.f32 %v11061_v17, %v11060_v61  ;;  %v11063_v35 = vpop.f32.mrb[98].mxu1  ;;  %v6609_v23 = vrot.slane %v16820_v50, 2  ;;  %v12126_v56 = vld [vmem:[%s19137_s6 + $0x6f8] sm:$0xff]   ;;  %v11002_v9 = vpop.f32.mrb[100].mxu0  ;;  %7182 = vmatprep.mubr.bf16.mxu1 %v6751_v10  ;;  %11569 = vmatpush3.bf16.msra.mxu1 %v12124_v30 }
 0x7d9   :  { %v6602_v13 = vrot.slane %v16823_v36, 2  ;;  %v6603_v57 = vrot.slane %v16833_v48, 2  ;;  %v11064_v18 = vpop.f32.mrb[99].mxu1  ;;  %v6614_v1 = vrot.slane %v16835_v5, 2  ;;  %v6615_v32 = vrot.slane %v16863_v34, 2  ;;  %v12128_v8 = vld [vmem:[%s19137_s6 + $0x6b8] sm:$0xff]   ;;  %11570 = vmatprep.subr.bf16.mxu1 %v12126_v56 }
 0x7da   :  { %v16894_v50 = vld [vmem:[#allocation3 + $0x3e8] sm:$0x3]  ;;  %v6623_v4 = vrot.slane %v16865_v41, 2  ;;  %v4568_v61 = vadd.f32 %v11062_v55, %v10998_v62  ;;  %v11065_v36 = vadd.f32 %v11064_v18, %v11063_v35  ;;  %v6624_v48 = vrot.slane %v16876_v7, 2  ;;  %v16919_v53 = vld [vmem:[#allocation3 + $0x398] sm:$0xfc]  ;;  %11507 = vmatpush3.bf16.msra.mxu0 %v12127_v11 }
 0x7db   :  { %v6635_v3 = vrot.slane %v16878_v58, 2  ;;  %v19934_v38 = vrot.slane %v16758_v51, 2  ;;  %v19935_v62 = vrot.slane %v16756_v19, 2  ;;  %v19936_v5 = vrot.slane %v16778_v22, 2  ;;  %v16921_v6 = vld [vmem:[#allocation3 + $0x3b8] sm:$0x3] }
 0x7dc   :  { %v19937_v44 = vrot.slane %v16776_v52, 2  ;;  %v12129_v51 = vld [vmem:[%s19137_s6 + $0x740] sm:$0xff]   ;;  %v16927_v19 = vadd.f32 %v4568_v61, %v15951_v31  ;;  %v4571_v28 = vadd.f32 %v11065_v36, %v11001_v40  ;;  %v11003_v22 = vpop.f32.mrb[101].mxu0  ;;  %v6636_v52 = vrot.slane %v16894_v50, 2  ;;  %v16930_v34 = vld [vmem:[#allocation3 + $0x3d8] sm:$0xfc]  ;;  %11571 = vmatpush3.bf16.msra.mxu1 %v12128_v8 }
 0x7dd   :  { %v16910_v25 = vsel %vm3890_vm11, %v19935_v62, %v19934_v38  ;;  %v16932_v17 = vld [vmem:[#allocation3 + $0x3f8] sm:$0x3]  ;;  %v11004_v55 = vadd.f32 %v11003_v22, %v11002_v9  ;;  %v11005_v35 = vpop.f32.mrb[102].mxu0  ;;  %v6748_v27 = vpack.c.bf16 %v16854_v60, %v16847_v2  ;;  %v6750_v18 = vpack.c.bf16 %v16870_v26, %v16861_v20  ;;  %v16939_v40 = vld [vmem:[#allocation3 + $0x380] sm:$0xfc]  ;;  %v11066_v36 = vpop.f32.mrb[100].mxu1  ;;  %11620 = vmatprep.subr.bf16.mxu0 %v12129_v51 }
 0x7de   :  { %v16917_v16 = vsel %vm3890_vm11, %v19937_v44, %v19936_v5  ;;  %v6753_v31 = vpack.c.bf16 %v6613_v54, %v16873_v21  ;;  %v16941_v10 = vld [vmem:[#allocation3 + $0x3a0] sm:$0x3]  ;;  %v19938_v30 = vld [vmem:[#allocation63_spill] sm:$0xff]  ;;  %v11006_v9 = vpop.f32.mrb[103].mxu0  ;;  %v19939_v2 = vrot.slane %v16793_v37, 2  ;;  %v19940_v20 = vrot.slane %v16787_v43, 2 }
 0x7df   :  { %v12130_v50 = vld [vmem:[%s19137_s6 + $0x7c0] sm:$0xff]   ;;  %v16947_v61 = vadd.f32 %v4571_v28, %v19938_v30  ;;  %v6755_v60 = vpack.c.bf16 %v16917_v16, %v16910_v25  ;;  %v16959_v21 = vsel %vm3890_vm11, %v6608_v39, %v6609_v23  ;;  %v11067_v38 = vpop.f32.mrb[101].mxu1  ;;  %v11007_v62 = vadd.f32 %v11006_v9, %v11005_v35  ;;  %7086 = vmatmul.mubr.bf16.gmra.mrb[208].mxu0 %v6748_v27  ;;  %v16973_v51 = vld [vmem:[#allocation3 + $0x390] sm:$0xfc]  ;;  %v11008_v35 = vpop.f32.mrb[104].mxu0 }
 0x7e0   :  { %v16956_v26 = vsel %vm3890_vm11, %v19940_v20, %v19939_v2  ;;  %v6324_v56 = vld [vmem:[#allocation3 + $0x3c0] sm:$0xfc]  ;;  %v6328_v54 = vld [vmem:[#allocation3 + $0x3e0] sm:$0x3]  ;;  %v16962_v5 = vsel %vm3890_vm11, %v6602_v13, %v6603_v57  ;;  %v6629_v25 = vrot.slane %v16919_v53, 2  ;;  %v6630_v37 = vrot.slane %v16921_v6, 2  ;;  %7093 = vmatprep.mubr.bf16.mxu0 %v6753_v31  ;;  %11684 = vmatprep.subr.bf16.mxu1 %v12130_v50 }
 0x7e1   :  { %v11068_v43 = vadd.f32 %v11067_v38, %v11066_v36  ;;  %v11069_v44 = vpop.f32.mrb[102].mxu1  ;;  %v6641_v16 = vrot.slane %v16930_v34, 2  ;;  %v6642_v39 = vrot.slane %v16932_v17, 2  ;;  %v6620_v23 = vrot.slane %v16939_v40, 2  ;;  %v16983_v34 = vld [vmem:[#allocation3 + $0x3d0] sm:$0xfc]  ;;  %7183 = vmatmul.mubr.bf16.gmra.mrb[208].mxu1 %v6750_v18 }
 0x7e2   :  { %v11070_v11 = vpop.f32.mrb[103].mxu1  ;;  %v16970_v13 = vsel %vm3890_vm11, %v6614_v1, %v6615_v32  ;;  %v6621_v57 = vrot.slane %v16941_v10, 2  ;;  %v6632_v53 = vrot.slane %v6324_v56, 2  ;;  %v6633_v6 = vrot.slane %v6328_v54, 2  ;;  %v6322_v32 = vld [vmem:[#allocation3 + $0x3b0] sm:$0x3]  ;;  %7190 = vmatprep.mubr.bf16.mxu1 %v6755_v60 }
 0x7e3   :  { %v4576_v28 = vadd.f32 %v11068_v43, %v11004_v55  ;;  %v11071_v22 = vadd.f32 %v11070_v11, %v11069_v44  ;;  %v6625_v8 = vsel %vm3890_vm11, %v6623_v4, %v6624_v48  ;;  %v6637_v1 = vsel %vm3890_vm11, %v6635_v3, %v6636_v52  ;;  %v16985_v17 = vld [vmem:[#allocation3 + $0x3f0] sm:$0x3]  ;;  %v6333_v27 = vld [vmem:[#allocation3 + $0x408] sm:$0xfc]  ;;  %v6337_v7 = vld [vmem:[#allocation3 + $0x428] sm:$0x3] }
 0x7e4   :  { %v6752_v55 = vpack.c.bf16 %v16959_v21, %v16956_v26  ;;  %v11009_v58 = vpop.f32.mrb[105].mxu0  ;;  %v6754_v48 = vpack.c.bf16 %v16970_v13, %v16962_v5  ;;  %v6626_v3 = vrot.slane %v16973_v51, 2  ;;  %v6341_v52 = vld [vmem:[#allocation3 + $0x448] sm:$0xfc]  ;;  %v6345_v31 = vld [vmem:[#allocation3 + $0x468] sm:$0x3]  ;;  %v6757_v10 = vpack.c.bf16 %v6637_v1, %v6625_v8 }
 0x7e5   :  { %v16990_v41 = vadd.f32 %v4576_v28, %v16096_v12  ;;  %v4579_v4 = vadd.f32 %v11071_v22, %v11007_v62  ;;  %v11010_v18 = vadd.f32 %v11009_v58, %v11008_v35  ;;  %v11011_v40 = vpop.f32.mrb[106].mxu0  ;;  %v6631_v50 = vsel %vm3890_vm11, %v6629_v25, %v6630_v37  ;;  %v6335_v36 = vld [vmem:[#allocation3 + $0x418] sm:$0xfc]  ;;  %v6339_v9 = vld [vmem:[#allocation3 + $0x438] sm:$0x3]  ;;  %v11072_v60 = vpop.f32.mrb[104].mxu1 }
 0x7e6   :  { %v6627_v30 = vrot.slane %v6322_v32, 2  ;;  %v11012_v2 = vpop.f32.mrb[107].mxu0  ;;  %v6643_v20 = vsel %vm3890_vm11, %v6641_v16, %v6642_v39  ;;  %v6622_v26 = vsel %vm3890_vm11, %v6620_v23, %v6621_v57  ;;  %v6634_v21 = vsel %vm3890_vm11, %v6632_v53, %v6633_v6  ;;  %v6343_v56 = vld [vmem:[#allocation3 + $0x458] sm:$0xfc]  ;;  %v6347_v54 = vld [vmem:[#allocation3 + $0x478] sm:$0x3] }
 0x7e7   :  { %v16997_v12 = vadd.f32 %v4579_v4, %v16117_v29  ;;  %v11073_v38 = vpop.f32.mrb[105].mxu1  ;;  %v11013_v62 = vadd.f32 %v11012_v2, %v11011_v40  ;;  %v6638_v5 = vrot.slane %v16983_v34, 2  ;;  %v6639_v25 = vrot.slane %v16985_v17, 2  ;;  %7094 = vmatmul.mubr.bf16.gmra.mrb[212].mxu0 %v6752_v55  ;;  %v6332_v22 = vld [vmem:[#allocation3 + $0x400] sm:$0xfc]  ;;  %v11014_v32 = vpop.f32.mrb[108].mxu0 }
 0x7e8   :  { %v6647_v37 = vrot.slane %v6333_v27, 2  ;;  %v11074_v43 = vadd.f32 %v11073_v38, %v11072_v60  ;;  %v11075_v29 = vpop.f32.mrb[106].mxu1  ;;  %v6648_v44 = vrot.slane %v6337_v7, 2  ;;  %v6659_v11 = vrot.slane %v6341_v52, 2  ;;  %7101 = vmatprep.mubr.bf16.mxu0 %v6757_v10  ;;  %v6336_v8 = vld [vmem:[#allocation3 + $0x420] sm:$0x3] }
 0x7e9   :  { %v6660_v13 = vrot.slane %v6345_v31, 2  ;;  %v11076_v16 = vpop.f32.mrb[107].mxu1  ;;  %v6653_v39 = vrot.slane %v6335_v36, 2  ;;  %v6654_v23 = vrot.slane %v6339_v9, 2  ;;  %v6665_v57 = vrot.slane %v6343_v56, 2  ;;  %7191 = vmatmul.mubr.bf16.gmra.mrb[212].mxu1 %v6754_v48  ;;  %v11015_v27 = vpop.f32.mrb[109].mxu0 }
 0x7ea   :  { %v6666_v53 = vrot.slane %v6347_v54, 2  ;;  %v4584_v6 = vadd.f32 %v11074_v43, %v11010_v18  ;;  %v11077_v51 = vadd.f32 %v11076_v16, %v11075_v29  ;;  %v6759_v28 = vpack.c.bf16 %v6643_v20, %v6631_v50  ;;  %v6340_v1 = vld [vmem:[#allocation3 + $0x440] sm:$0xfc]  ;;  %v6344_v58 = vld [vmem:[#allocation3 + $0x460] sm:$0x3]  ;;  %v11017_v31 = vpop.f32.mrb[110].mxu0 }
 0x7eb   :  { %v6756_v34 = vpack.c.bf16 %v6634_v21, %v6622_v26  ;;  %v6628_v17 = vsel %vm3890_vm11, %v6626_v3, %v6627_v30  ;;  %v6649_v7 = vsel %vm3890_vm11, %v6647_v37, %v6648_v44  ;;  %v6661_v4 = vsel %vm3890_vm11, %v6659_v11, %v6660_v13  ;;  %v11078_v3 = vpop.f32.mrb[108].mxu1  ;;  %v11018_v50 = vpop.f32.mrb[111].mxu0  ;;  %v6334_v9 = vld [vmem:[#allocation3 + $0x410] sm:$0xfc]  ;;  %v6338_v60 = vld [vmem:[#allocation3 + $0x430] sm:$0x3] }
 0x7ec   :  { %v17006_v35 = vadd.f32 %v4584_v6, %v16193_v47  ;;  %v4587_v55 = vadd.f32 %v11077_v51, %v11013_v62  ;;  %7198 = vmatprep.mubr.bf16.mxu1 %v6759_v28  ;;  %v11016_v52 = vadd.f32 %v11015_v27, %v11014_v32  ;;  %v6644_v18 = vrot.slane %v6332_v22, 2  ;;  %v11079_v2 = vpop.f32.mrb[109].mxu1  ;;  %v6342_v56 = vld [vmem:[#allocation3 + $0x450] sm:$0xfc]  ;;  %v6346_v54 = vld [vmem:[#allocation3 + $0x470] sm:$0x3] }
 0x7ed   :  { %v6645_v40 = vrot.slane %v6336_v8, 2  ;;  %v6656_v48 = vrot.slane %v6340_v1, 2  ;;  %v6640_v47 = vsel %vm3890_vm11, %v6638_v5, %v6639_v25  ;;  %v6655_v30 = vsel %vm3890_vm11, %v6653_v39, %v6654_v23  ;;  %v11081_v62 = vpop.f32.mrb[110].mxu1  ;;  %v11020_v16 = vpop.f32.mrb[112].mxu0  ;;  %v7233_v51 = vld [vmem:[#allocation3 + $0x108] sm:$0xff] }
 0x7ee   :  { %v17011_v10 = vadd.f32 %v4587_v55, %v16203_v24  ;;  %v6667_v36 = vsel %vm3890_vm11, %v6665_v57, %v6666_v53  ;;  %v11019_v20 = vadd.f32 %v11018_v50, %v11017_v31  ;;  %v6761_v26 = vpack.c.bf16 %v6661_v4, %v6649_v7  ;;  %v11082_v24 = vpop.f32.mrb[111].mxu1  ;;  %v11021_v6 = vpop.f32.mrb[113].mxu0  ;;  %v7237_v28 = vld [vmem:[#allocation3 + $0x148] sm:$0xff] }
 0x7ef   :  { %v6657_v21 = vrot.slane %v6344_v58, 2  ;;  %v11080_v38 = vadd.f32 %v11079_v2, %v11078_v3  ;;  %7102 = vmatmul.mubr.bf16.gmra.mrb[216].mxu0 %v6756_v34  ;;  %v6758_v37 = vpack.c.bf16 %v6640_v47, %v6628_v17  ;;  %v6763_v43 = vpack.c.bf16 %v6667_v36, %v6655_v30  ;;  %v11023_v8 = vpop.f32.mrb[114].mxu0  ;;  %v11084_v32 = vpop.f32.mrb[112].mxu1  ;;  %v7235_v58 = vld [vmem:[#allocation3 + $0x118] sm:$0xff]  ;;  %v7232_v30 = vld [vmem:[#allocation3 + $0x100] sm:$0xff] }
 0x7f0   :  { %7109 = vmatprep.mubr.bf16.mxu0 %v6761_v26  ;;  %v6650_v5 = vrot.slane %v6334_v9, 2  ;;  %v6651_v25 = vrot.slane %v6338_v60, 2  ;;  %v11083_v44 = vadd.f32 %v11082_v24, %v11081_v62  ;;  %v6662_v11 = vrot.slane %v6342_v56, 2  ;;  %v11024_v34 = vpop.f32.mrb[115].mxu0  ;;  %v11085_v7 = vpop.f32.mrb[113].mxu1  ;;  %v7236_v36 = vld [vmem:[#allocation3 + $0x140] sm:$0xff] }
 0x7f1   :  { %v4592_v29 = vadd.f32 %v11080_v38, %v11016_v52  ;;  %v6663_v13 = vrot.slane %v6346_v54, 2  ;;  %7199 = vmatmul.mubr.bf16.gmra.mrb[216].mxu1 %v6758_v37  ;;  %v6646_v39 = vsel %vm3890_vm11, %v6644_v18, %v6645_v40  ;;  %v6658_v23 = vsel %vm3890_vm11, %v6656_v48, %v6657_v21  ;;  %v7239_v52 = vld [vmem:[#allocation3 + $0x158] sm:$0xff]  ;;  %v11087_v18 = vpop.f32.mrb[114].mxu1  ;;  %v11026_v47 = vpop.f32.mrb[116].mxu0  ;;  %v7245_v26 = vld [vmem:[#allocation3 + $0x1c8] sm:$0xff]  ;;  %v12131_v54 = vld [vmem:[%s19137_s6 + $0x700] sm:$0xff]  }
 0x7f2   :  { %v4595_v53 = vadd.f32 %v11083_v44, %v11019_v20  ;;  %7206 = vmatprep.mubr.bf16.mxu1 %v6763_v43  ;;  %v11022_v22 = vadd.f32 %v11021_v6, %v11020_v16  ;;  %v6760_v17 = vpack.c.bf16 %v6658_v23, %v6646_v39  ;;  %v6652_v55 = vsel %vm3890_vm11, %v6650_v5, %v6651_v25  ;;  %v11088_v40 = vpop.f32.mrb[115].mxu1  ;;  %v11027_v2 = vpop.f32.mrb[117].mxu0  ;;  %v7241_v20 = vld [vmem:[#allocation3 + $0x188] sm:$0xff]  ;;  %v7234_v43 = vld [vmem:[#allocation3 + $0x110] sm:$0xff] }
 0x7f3   :  { %v17019_v57 = vadd.f32 %v4592_v29, %v16306_v46  ;;  %v6664_v27 = vsel %vm3890_vm11, %v6662_v11, %v6663_v13  ;;  %v11025_v46 = vadd.f32 %v11024_v34, %v11023_v8  ;;  %v7297_v4 = vpack.c.bf16 %v7237_v28, %v7233_v51  ;;  %v11029_v56 = vpop.f32.mrb[118].mxu0  ;;  %v11090_v62 = vpop.f32.mrb[116].mxu1  ;;  %v12133_v5 = vld [vmem:[%s19137_s6 + $0x748] sm:$0xff]   ;;  %v7243_v11 = vld [vmem:[#allocation3 + $0x198] sm:$0xff] }
 0x7f4   :  { %v17022_v1 = vadd.f32 %v4595_v53, %v16327_v59  ;;  %v11086_v31 = vadd.f32 %v11085_v7, %v11084_v32  ;;  %v6762_v48 = vpack.c.bf16 %v6664_v27, %v6652_v55  ;;  %v11089_v3 = vadd.f32 %v11088_v40, %v11087_v18  ;;  %v11030_v24 = vpop.f32.mrb[119].mxu0  ;;  %v11091_v25 = vpop.f32.mrb[117].mxu1  ;;  %v7247_v13 = vld [vmem:[#allocation3 + $0x1d8] sm:$0xff]  ;;  %v12134_v6 = vld [vmem:[%s19137_s6 + $0x7c8] sm:$0xff]   ;;  %v12137_v32 = vld [vmem:[%s19137_s6 + $0x750] sm:$0xff]  }
 0x7f5   :  { %v7299_v50 = vpack.c.bf16 %v7239_v52, %v7235_v58  ;;  %v11028_v21 = vadd.f32 %v11027_v2, %v11026_v47  ;;  %v7296_v37 = vpack.c.bf16 %v7236_v36, %v7232_v30  ;;  %v11031_v29 = vadd.f32 %v11030_v24, %v11029_v56  ;;  %v11093_v39 = vpop.f32.mrb[118].mxu1  ;;  %v12135_v51 = vld [vmem:[%s19137_s6 + $0x708] sm:$0xff]   ;;  %v11032_v34 = vpop.f32.mrb[120].mxu0  ;;  %v7244_v55 = vld [vmem:[#allocation3 + $0x1c0] sm:$0xff]  ;;  %v12138_v40 = vld [vmem:[%s19137_s6 + $0x7d0] sm:$0xff]  }
 0x7f6   :  { %v4600_v59 = vadd.f32 %v11086_v31, %v11022_v22  ;;  %v4603_v60 = vadd.f32 %v11089_v3, %v11025_v46  ;;  %v7301_v44 = vpack.c.bf16 %v7245_v26, %v7241_v20  ;;  %v11092_v16 = vadd.f32 %v11091_v25, %v11090_v62  ;;  %v11094_v23 = vpop.f32.mrb[119].mxu1  ;;  %v11033_v46 = vpop.f32.mrb[121].mxu0  ;;  %v7249_v58 = vld [vmem:[#allocation3 + $0x208] sm:$0xff]  ;;  %v7246_v47 = vld [vmem:[#allocation3 + $0x1d0] sm:$0xff]  ;;  %v7251_v20 = vld [vmem:[#allocation3 + $0x218] sm:$0xff] }
 0x7f7   :  { %7110 = vmatmul.mubr.bf16.gmra.mrb[220].mxu0 %v6760_v17  ;;  %v11095_v22 = vadd.f32 %v11094_v23, %v11093_v39  ;;  %v7303_v8 = vpack.c.bf16 %v7247_v13, %v7243_v11  ;;  %v7240_v17 = vld [vmem:[#allocation3 + $0x180] sm:$0xff]  ;;  %v7253_v52 = vld [vmem:[#allocation3 + $0x248] sm:$0xff]  ;;  %v11034_v31 = vadd.f32 %v11033_v46, %v11032_v34  ;;  %v11035_v18 = vpop.f32.mrb[122].mxu0  ;;  %v12139_v30 = vld [vmem:[%s19137_s6 + $0x710] sm:$0xff]  }
 0x7f8   :  { %7617 = vmatprep.mubr.bf16.mxu0 %v7297_v4  ;;  %v17027_v9 = vadd.f32 %v4600_v59, %v16412_v0  ;;  %v17033_v38 = vadd.f32 %v4603_v60, %v16425_v33  ;;  %v7238_v0 = vld [vmem:[#allocation3 + $0x150] sm:$0xff]  ;;  %v12132_v33 = vld [vmem:[%s19137_s6 + $0x780] sm:$0xff]   ;;  %v4608_v28 = vadd.f32 %v11092_v16, %v11028_v21  ;;  %v12136_v4 = vld [vmem:[%s19137_s6 + $0x788] sm:$0xff]   ;;  %v11036_v59 = vpop.f32.mrb[123].mxu0  ;;  %v7300_v3 = vpack.c.bf16 %v7244_v55, %v7240_v17 }
 0x7f9   :  { %7207 = vmatmul.mubr.bf16.gmra.mrb[220].mxu1 %v6762_v48  ;;  %v7298_v53 = vpack.c.bf16 %v7238_v0, %v7234_v43  ;;  %v4611_v7 = vadd.f32 %v11095_v22, %v11031_v29  ;;  %v11096_v48 = vpop.f32.mrb[120].mxu1  ;;  %v11037_v60 = vadd.f32 %v11036_v59, %v11035_v18  ;;  %v7305_v2 = vpack.c.bf16 %v7253_v52, %v7249_v58  ;;  %v7255_v26 = vld [vmem:[#allocation3 + $0x258] sm:$0xff]  ;;  %v17068_v21 = vld [vmem:[#allocation3 + $0x100] sm:$0xfe]  ;;  %v12140_v62 = vld [vmem:[%s19137_s6 + $0x790] sm:$0xff]  }
 0x7fa   :  { %19941 = vst [vmem:[#allocation62_spill] sm:$0xff] %v17027_v9  ;;  %7714 = vmatprep.mubr.bf16.mxu1 %v7299_v50  ;;  %19942 = vst [vmem:[#allocation64_spill] sm:$0xff] %v17033_v38  ;;  %v17051_v27 = vadd.f32 %v4608_v28, %v16535_v45  ;;  %v7242_v50 = vld [vmem:[#allocation3 + $0x190] sm:$0xff]  ;;  %v11097_v36 = vpop.f32.mrb[121].mxu1  ;;  %v17077_v43 = vld [vmem:[#allocation3 + $0x140] sm:$0xfe]  ;;  %v7307_v39 = vpack.c.bf16 %v7255_v26, %v7251_v20 }
 0x7fb   :  { %v17060_v45 = vadd.f32 %v4611_v7, %v16557_v63  ;;  %v12141_v63 = vld [vmem:[%s19137_s6 + $0x758] sm:$0xff]   ;;  %v11098_v56 = vadd.f32 %v11097_v36, %v11096_v48  ;;  %v17073_v24 = vld [vmem:[#allocation3 + $0x110] sm:$0xfe]  ;;  %v17082_v29 = vld [vmem:[#allocation3 + $0x130] sm:$0x1]  ;;  %v19966_v38 = vrot.slane %v17068_v21, 1 }
 0x7fc   :  { %19943 = vst [vmem:[#allocation65_spill] sm:$0xff] %v17051_v27  ;;  %v12142_v25 = vld [vmem:[%s19137_s6 + $0x7d8] sm:$0xff]   ;;  %v17086_v11 = vld [vmem:[#allocation3 + $0x160] sm:$0x1]  ;;  %v17091_v23 = vld [vmem:[#allocation3 + $0x170] sm:$0x1] }
 0x7fd   :  { %19944 = vst [vmem:[#allocation67_spill] sm:$0xff] %v17060_v45  ;;  %v4616_v13 = vadd.f32 %v11098_v56, %v11034_v31  ;;  %v7252_v28 = vld [vmem:[#allocation3 + $0x240] sm:$0xff]  ;;  %v7257_v55 = vld [vmem:[#allocation3 + $0x288] sm:$0xff]  ;;  %v12144_v46 = vld [vmem:[%s19137_s6 + $0x798] sm:$0xff]  }
 0x7fe   :  { %v12145_v22 = vld [vmem:[%s19137_s6 + $0x760] sm:$0xff]   ;;  %v7261_v7 = vld [vmem:[#allocation3 + $0x2c8] sm:$0xff]  ;;  %v17108_v52 = vld [vmem:[#allocation3 + $0x110] sm:$0xfc] }
 0x7ff   :  { %7618 = vmatmul.mubr.bf16.vlgmr.msra.gmra.mrb[224].mxu0 %v7296_v37  ;;  %v17075_v37 = vld [vmem:[#allocation3 + $0x120] sm:$0x1]  ;;  %19948 = vst [vmem:[#allocation71_spill] sm:$0xff] %v17108_v52  ;;  %v17265_v27 = vld [vmem:[#allocation3 + $0x1f0] sm:$0x1] }
 0x800   :  { %11621 = vmatpush3.bf16.msra.mxu0 %v12131_v54  ;;  %7625 = vmatprep.mubr.bf16.mxu0 %v7301_v44  ;;  %v11099_v54 = vpop.f32.mrb[122].mxu1  ;;  %v17084_v44 = vld [vmem:[#allocation3 + $0x150] sm:$0xfe]  ;;  %v12146_v48 = vld [vmem:[%s19137_s6 + $0x7e0] sm:$0xff]   ;;  %19956 = vst [vmem:[#allocation79_spill] sm:$0xff] %v17265_v27 }
 0x801   :  { %11622 = vmatprep.subr.bf16.mxu0 %v12133_v5  ;;  %7715 = vmatmul.mubr.bf16.vlgmr.msra.gmra.mrb[224].mxu1 %v7298_v53  ;;  %v11100_v0 = vpop.f32.mrb[123].mxu1  ;;  %v7302_v5 = vpack.c.bf16 %v7246_v47, %v7242_v50  ;;  %v17093_v53 = vld [vmem:[#allocation3 + $0x100] sm:$0xfc]  ;;  %v17291_v9 = vld [vmem:[#allocation3 + $0x238] sm:$0x1] }
 0x802   :  { %11685 = vmatpush3.bf16.msra.mxu1 %v12132_v33  ;;  %7722 = vmatprep.mubr.bf16.mxu1 %v7303_v8  ;;  %v11101_v16 = vadd.f32 %v11100_v0, %v11099_v54  ;;  %v12143_v33 = vld [vmem:[%s19137_s6 + $0x718] sm:$0xff]   ;;  %19945 = vst [vmem:[#allocation66_spill] sm:$0xff] %v17093_v53  ;;  %v17098_v8 = vld [vmem:[#allocation3 + $0x140] sm:$0xfc]  ;;  %v11102_v47 = vpop.f32.mrb[124].mxu1  ;;  %v7277_v53 = vld [vmem:[#allocation3 + $0x3c8] sm:$0xff] }
 0x803   :  { %11686 = vmatprep.subr.bf16.mxu1 %v12134_v6  ;;  %v11038_v6 = vpop.f32.mrb[124].mxu0  ;;  %19946 = vst [vmem:[#allocation68_spill] sm:$0xff] %v17098_v8  ;;  %v12147_v20 = vld [vmem:[%s19137_s6 + $0x720] sm:$0xff]   ;;  %v11103_v56 = vpop.f32.mrb[125].mxu1  ;;  %v7273_v8 = vld [vmem:[#allocation3 + $0x388] sm:$0xff] }
 0x804   :  { %11623 = vmatpush3.bf16.msra.mxu0 %v12135_v51  ;;  %v7248_v51 = vld [vmem:[#allocation3 + $0x200] sm:$0xff]  ;;  %v4619_v34 = vadd.f32 %v11101_v16, %v11037_v60  ;;  %v11039_v17 = vpop.f32.mrb[125].mxu0  ;;  %v7259_v60 = vld [vmem:[#allocation3 + $0x298] sm:$0xff]  ;;  %v17327_v21 = vld [vmem:[#allocation3 + $0x230] sm:$0x1] }
 0x805   :  { %11624 = vmatprep.subr.bf16.mxu0 %v12137_v32  ;;  %v17101_v32 = vadd.f32 %v4616_v13, %v16667_v49  ;;  %v11040_v31 = vadd.f32 %v11039_v17, %v11038_v6  ;;  %v11041_v18 = vpop.f32.mrb[126].mxu0  ;;  %v7250_v49 = vld [vmem:[#allocation3 + $0x210] sm:$0xff]  ;;  %v7304_v36 = vpack.c.bf16 %v7252_v28, %v7248_v51  ;;  %v11105_v13 = vpop.f32.mrb[126].mxu1  ;;  %v12148_v16 = vld [vmem:[%s19137_s6 + $0x7a0] sm:$0xff]  }
 0x806   :  { %11687 = vmatpush3.bf16.msra.mxu1 %v12136_v4  ;;  %v17116_v50 = vadd.f32 %v4619_v34, %v16686_v42  ;;  %v12149_v42 = vld [vmem:[%s19137_s6 + $0x768] sm:$0xff]   ;;  %v11106_v51 = vpop.f32.mrb[127].mxu1  ;;  %v7256_v34 = vld [vmem:[#allocation3 + $0x280] sm:$0xff]  ;;  %v12155_v6 = vld [vmem:[%s19137_s6 + $0x730] sm:$0xff]  }
 0x807   :  { %7626 = vmatmul.mubr.bf16.gmra.mrb[228].mxu0 %v7300_v3  ;;  %11688 = vmatprep.subr.bf16.mxu1 %v12138_v40  ;;  %19947 = vst [vmem:[#allocation70_spill] sm:$0xff] %v17101_v32  ;;  %v7254_v40 = vld [vmem:[#allocation3 + $0x250] sm:$0xff]  ;;  %v7260_v17 = vld [vmem:[#allocation3 + $0x2c0] sm:$0xff] }
 0x808   :  { %7633 = vmatprep.mubr.bf16.mxu0 %v7305_v2  ;;  %11625 = vmatpush3.bf16.msra.mxu0 %v12139_v30  ;;  %19949 = vst [vmem:[#allocation72_spill] sm:$0xff] %v17116_v50  ;;  %v11042_v30 = vpop.f32.mrb[127].mxu0  ;;  %v7263_v2 = vld [vmem:[#allocation3 + $0x2d8] sm:$0xff]  ;;  %v7306_v28 = vpack.c.bf16 %v7254_v40, %v7250_v49  ;;  %v12151_v49 = vld [vmem:[%s19137_s6 + $0x728] sm:$0xff]   ;;  %v7308_v59 = vpack.c.bf16 %v7260_v17, %v7256_v34  ;;  %v17246_v32 = vld [vmem:[#allocation3 + $0x180] sm:$0xfe] }
 0x809   :  { %7723 = vmatmul.mubr.bf16.gmra.mrb[228].mxu1 %v7302_v5  ;;  %11626 = vmatprep.subr.bf16.mxu0 %v12141_v63  ;;  %v17122_v63 = vld [vmem:[#allocation3 + $0x150] sm:$0xfc]  ;;  %v11043_v54 = vadd.f32 %v11042_v30, %v11041_v18  ;;  %v7265_v30 = vld [vmem:[#allocation3 + $0x308] sm:$0xff]  ;;  %v11188_v5 = vpop.f32.mrb[128].mxu1  ;;  %v17260_v50 = vld [vmem:[#allocation3 + $0x1b0] sm:$0x1] }
 0x80a   :  { %7730 = vmatprep.mubr.bf16.mxu1 %v7307_v39  ;;  %11689 = vmatpush3.bf16.msra.mxu1 %v12140_v62  ;;  %19950 = vst [vmem:[#allocation73_spill] sm:$0xff] %v17122_v63  ;;  %v7309_v62 = vpack.c.bf16 %v7261_v7, %v7257_v55  ;;  %v17132_v39 = vld [vmem:[#allocation3 + $0x108] sm:$0xfe]  ;;  %v17139_v7 = vld [vmem:[#allocation3 + $0x128] sm:$0x1] }
 0x80b   :  { %11690 = vmatprep.subr.bf16.mxu1 %v12142_v25  ;;  %v11104_v25 = vadd.f32 %v11103_v56, %v11102_v47  ;;  %v12150_v55 = vld [vmem:[%s19137_s6 + $0x7e8] sm:$0xff]   ;;  %v11107_v47 = vadd.f32 %v11106_v51, %v11105_v13  ;;  %v17152_v56 = vld [vmem:[#allocation3 + $0x290] sm:$0xff]  ;;  %v17178_v51 = vld [vmem:[#allocation3 + $0x138] sm:$0x1] }
 0x80c   :  { %11627 = vmatpush3.bf16.msra.mxu0 %v12143_v33  ;;  %v12152_v40 = vld [vmem:[%s19137_s6 + $0x7a8] sm:$0xff]   ;;  %v17176_v33 = vld [vmem:[#allocation3 + $0x118] sm:$0xfe] }
 0x80d   :  { %11628 = vmatprep.subr.bf16.mxu0 %v12145_v22  ;;  %v7311_v22 = vpack.c.bf16 %v7263_v2, %v7259_v60  ;;  %v4624_v18 = vadd.f32 %v11104_v25, %v11040_v31  ;;  %v11124_v31 = vpop.f32.mrb[128].mxu0  ;;  %v12154_v25 = vld [vmem:[%s19137_s6 + $0x7f0] sm:$0xff]   ;;  %v17162_v13 = vld [vmem:[#allocation3 + $0x168] sm:$0x1]  ;;  %v4627_v2 = vadd.f32 %v11107_v47, %v11043_v54  ;;  %v12157_v54 = vld [vmem:[%s19137_s6 + $0x778] sm:$0xff]  }
 0x80e   :  { %11691 = vmatpush3.bf16.msra.mxu1 %v12144_v46  ;;  %v11125_v60 = vpop.f32.mrb[129].mxu0  ;;  %v17168_v46 = vld [vmem:[#allocation3 + $0x318] sm:$0xff]  ;;  %v17202_v34 = vld [vmem:[#allocation3 + $0x1c8] sm:$0xfe]  ;;  %v17204_v17 = vld [vmem:[#allocation3 + $0x1e8] sm:$0x1] }
 0x80f   :  { %7634 = vmatmul.mubr.bf16.gmra.mrb[232].mxu0 %v7304_v36  ;;  %11692 = vmatprep.subr.bf16.mxu1 %v12146_v48  ;;  %v7269_v36 = vld [vmem:[#allocation3 + $0x348] sm:$0xff]  ;;  %v17186_v47 = vld [vmem:[#allocation3 + $0x178] sm:$0x1]  ;;  %v17189_v26 = vadd.f32 %v4627_v2, %v16816_v14  ;;  %v17221_v2 = vld [vmem:[#allocation3 + $0x1d8] sm:$0xfe] }
 0x810   :  { %7641 = vmatprep.mubr.bf16.mxu0 %v7309_v62  ;;  %11629 = vmatpush3.bf16.msra.mxu0 %v12147_v20  ;;  %v17148_v48 = vld [vmem:[#allocation3 + $0x148] sm:$0xfe]  ;;  %v17154_v62 = vld [vmem:[#allocation3 + $0x2d0] sm:$0xff]  ;;  %v7313_v4 = vpack.c.bf16 %v7269_v36, %v7265_v30  ;;  %v12158_v14 = vld [vmem:[%s19137_s6 + $0x7f8] sm:$0xff]  }
 0x811   :  { %7731 = vmatmul.mubr.bf16.gmra.mrb[232].mxu1 %v7306_v28  ;;  %11630 = vmatprep.subr.bf16.mxu0 %v12149_v42  ;;  %v12153_v20 = vld [vmem:[%s19137_s6 + $0x770] sm:$0xff]   ;;  %v17166_v28 = vadd.f32 %v4624_v18, %v16789_v15  ;;  %v17170_v42 = vld [vmem:[#allocation3 + $0x358] sm:$0xff]  ;;  %v11126_v15 = vadd.f32 %v11125_v60, %v11124_v31  ;;  %v11127_v18 = vpop.f32.mrb[130].mxu0  ;;  %19952 = vst [vmem:[#allocation75_spill] sm:$0xff] %v17189_v26  ;;  %v17194_v60 = vld [vmem:[#allocation3 + $0x188] sm:$0xfe] }
 0x812   :  { %7738 = vmatprep.mubr.bf16.mxu1 %v7311_v22  ;;  %11693 = vmatpush3.bf16.msra.mxu1 %v12148_v16  ;;  %v17184_v16 = vld [vmem:[#allocation3 + $0x158] sm:$0xfe]  ;;  %v11128_v0 = vpop.f32.mrb[131].mxu0  ;;  %v17196_v31 = vld [vmem:[#allocation3 + $0x1a8] sm:$0x1]  ;;  %v11189_v22 = vpop.f32.mrb[129].mxu1  ;;  %v7310_v63 = vpack.c.bf16 %v17154_v62, %v17152_v56 }
 0x813   :  { %19951 = vst [vmem:[#allocation74_spill] sm:$0xff] %v17166_v28  ;;  %11694 = vmatprep.subr.bf16.mxu1 %v12150_v55  ;;  %v12156_v55 = vld [vmem:[%s19137_s6 + $0x7b0] sm:$0xff]   ;;  %v11129_v3 = vadd.f32 %v11128_v0, %v11127_v18  ;;  %v11191_v58 = vpop.f32.mrb[130].mxu1  ;;  %v12159_v0 = vld [vmem:[%s19137_s6 + $0x738] sm:$0xff]  }
 0x814   :  { %11631 = vmatpush3.bf16.msra.mxu0 %v12151_v49  ;;  %v11190_v49 = vadd.f32 %v11189_v22, %v11188_v5  ;;  %v17212_v36 = vld [vmem:[#allocation3 + $0x198] sm:$0xfe]  ;;  %v11192_v18 = vpop.f32.mrb[131].mxu1  ;;  %v7315_v5 = vpack.c.bf16 %v17170_v42, %v17168_v46  ;;  %v7268_v22 = vld [vmem:[#allocation3 + $0x340] sm:$0xff]  ;;  %v17231_v56 = vld [vmem:[#allocation3 + $0x1f8] sm:$0x1] }
 0x815   :  { %11632 = vmatprep.subr.bf16.mxu0 %v12153_v20  ;;  %v17214_v20 = vld [vmem:[#allocation3 + $0x1b8] sm:$0x1]  ;;  %v11193_v52 = vadd.f32 %v11192_v18, %v11191_v58  ;;  %v12161_v46 = vld [vmem:[%s19137_s6 + $0x840] sm:$0xff]   ;;  %v17233_v58 = vld [vmem:[#allocation3 + $0x310] sm:$0xff] }
 0x816   :  { %11695 = vmatpush3.bf16.msra.mxu1 %v12152_v40  ;;  %v5131_v30 = vadd.f32 %v11190_v49, %v11126_v15  ;;  %v11130_v15 = vpop.f32.mrb[132].mxu0  ;;  %v7270_v49 = vld [vmem:[#allocation3 + $0x350] sm:$0xff]  ;;  %v7275_v28 = vld [vmem:[#allocation3 + $0x398] sm:$0xff]  ;;  %v17248_v18 = vld [vmem:[#allocation3 + $0x1a0] sm:$0x1] }
 0x817   :  { %7642 = vmatmul.mubr.bf16.gmra.mrb[236].mxu0 %v7308_v59  ;;  %v7264_v59 = vld [vmem:[#allocation3 + $0x300] sm:$0xff]  ;;  %11696 = vmatprep.subr.bf16.mxu1 %v12154_v25  ;;  %v11131_v26 = vpop.f32.mrb[133].mxu0  ;;  %v7285_v25 = vld [vmem:[#allocation3 + $0x448] sm:$0xff] }
 0x818   :  { %7649 = vmatprep.mubr.bf16.mxu0 %v7313_v4  ;;  %11633 = vmatpush3.bf16.msra.mxu0 %v12155_v6  ;;  %v12160_v4 = vld [vmem:[%s19137_s6 + $0x7b8] sm:$0xff]   ;;  %v12162_v6 = vld [vmem:[%s19137_s6 + $0x8c0] sm:$0xff]   ;;  %v17243_v40 = vadd.f32 %v5131_v30, %v16927_v19  ;;  %v11132_v62 = vadd.f32 %v11131_v26, %v11130_v15  ;;  %v11133_v45 = vpop.f32.mrb[134].mxu0  ;;  %v7312_v30 = vpack.c.bf16 %v7268_v22, %v7264_v59  ;;  %v17269_v22 = vld [vmem:[#allocation3 + $0x208] sm:$0xfe] }
 0x819   :  { %7739 = vmatmul.mubr.bf16.gmra.mrb[236].mxu1 %v7310_v63  ;;  %11634 = vmatprep.subr.bf16.mxu0 %v12157_v54  ;;  %v5134_v63 = vadd.f32 %v11193_v52, %v11129_v3  ;;  %v7279_v54 = vld [vmem:[#allocation3 + $0x3d8] sm:$0xff]  ;;  %v17251_v42 = vld [vmem:[#allocation3 + $0x1c0] sm:$0xfe]  ;;  %v17253_v19 = vld [vmem:[#allocation3 + $0x1e0] sm:$0x1]  ;;  %v11194_v3 = vpop.f32.mrb[132].mxu1  ;;  %v7314_v59 = vpack.c.bf16 %v7270_v49, %v17233_v58 }
 0x81a   :  { %19953 = vst [vmem:[#allocation76_spill] sm:$0xff] %v17243_v40  ;;  %7746 = vmatprep.mubr.bf16.mxu1 %v7315_v5  ;;  %11697 = vmatpush3.bf16.msra.mxu1 %v12156_v55  ;;  %v11134_v55 = vpop.f32.mrb[135].mxu0  ;;  %v17258_v5 = vld [vmem:[#allocation3 + $0x190] sm:$0xfe]  ;;  %v11195_v26 = vpop.f32.mrb[133].mxu1  ;;  %19957 = vst [vmem:[#allocation80_spill] sm:$0xff] %v17269_v22 }
 0x81b   :  { %11698 = vmatprep.subr.bf16.mxu1 %v12158_v14  ;;  %v17256_v52 = vadd.f32 %v5134_v63, %v16947_v61  ;;  %v11135_v15 = vadd.f32 %v11134_v55, %v11133_v45  ;;  %v7317_v14 = vpack.c.bf16 %v7277_v53, %v7273_v8  ;;  %v17263_v40 = vld [vmem:[#allocation3 + $0x1d0] sm:$0xfe]  ;;  %v11196_v61 = vadd.f32 %v11195_v26, %v11194_v3  ;;  %v11197_v63 = vpop.f32.mrb[134].mxu1  ;;  %v7272_v8 = vld [vmem:[#allocation3 + $0x380] sm:$0xff]  ;;  %v17276_v58 = vld [vmem:[#allocation3 + $0x248] sm:$0xfe] }
 0x81c   :  { %11635 = vmatpush3.bf16.msra.mxu0 %v12159_v0  ;;  %19955 = vst [vmem:[#allocation78_spill] sm:$0xff] %v17263_v40  ;;  %v11198_v45 = vpop.f32.mrb[135].mxu1  ;;  %v7319_v53 = vpack.c.bf16 %v7279_v54, %v7275_v28  ;;  %19959 = vst [vmem:[#allocation82_spill] sm:$0xff] %v17276_v58  ;;  %v7281_v26 = vld [vmem:[#allocation3 + $0x408] sm:$0xff]  ;;  %v7274_v54 = vld [vmem:[#allocation3 + $0x390] sm:$0xff] }
 0x81d   :  { %19954 = vst [vmem:[#allocation77_spill] sm:$0xff] %v17256_v52  ;;  %11748 = vmatprep.subr.bf16.mxu0 %v12161_v46  ;;  %v17271_v52 = vld [vmem:[#allocation3 + $0x228] sm:$0x1]  ;;  %v7276_v46 = vld [vmem:[#allocation3 + $0x3c0] sm:$0xff]  ;;  %v11199_v49 = vadd.f32 %v11198_v45, %v11197_v63  ;;  %v7278_v55 = vld [vmem:[#allocation3 + $0x3d0] sm:$0xff] }
 0x81e   :  { %11699 = vmatpush3.bf16.msra.mxu1 %v12160_v4  ;;  %19958 = vst [vmem:[#allocation81_spill] sm:$0xff] %v17271_v52  ;;  %v5139_v4 = vadd.f32 %v11196_v61, %v11132_v62  ;;  %v17280_v28 = vld [vmem:[#allocation3 + $0x268] sm:$0x1]  ;;  %v17285_v62 = vld [vmem:[#allocation3 + $0x218] sm:$0xfe]  ;;  %v7318_v27 = vpack.c.bf16 %v7278_v55, %v7274_v54 }
 0x81f   :  { %7650 = vmatmul.mubr.bf16.gmra.mrb[240].mxu0 %v7312_v30  ;;  %11812 = vmatprep.subr.bf16.mxu1 %v12162_v6  ;;  %19960 = vst [vmem:[#allocation83_spill] sm:$0xff] %v17280_v28  ;;  %v11136_v6 = vpop.f32.mrb[136].mxu0  ;;  %19961 = vst [vmem:[#allocation84_spill] sm:$0xff] %v17285_v62  ;;  %v5142_v63 = vadd.f32 %v11199_v49, %v11135_v15  ;;  %v7287_v0 = vld [vmem:[#allocation3 + $0x458] sm:$0xff]  ;;  %v17298_v52 = vld [vmem:[#allocation3 + $0x200] sm:$0xfe] }
 0x820   :  { %7657 = vmatprep.mubr.bf16.mxu0 %v7317_v14  ;;  %v17288_v61 = vadd.f32 %v5139_v4, %v16990_v41  ;;  %v11137_v45 = vpop.f32.mrb[137].mxu0  ;;  %v7283_v14 = vld [vmem:[#allocation3 + $0x418] sm:$0xff]  ;;  %v11200_v15 = vpop.f32.mrb[136].mxu1  ;;  %v7316_v4 = vpack.c.bf16 %v7276_v46, %v7272_v8  ;;  %v17303_v49 = vld [vmem:[#allocation3 + $0x220] sm:$0x1] }
 0x821   :  { %7747 = vmatmul.mubr.bf16.gmra.mrb[240].mxu1 %v7314_v59  ;;  %v17293_v40 = vld [vmem:[#allocation3 + $0x258] sm:$0xfe]  ;;  %v11138_v3 = vadd.f32 %v11137_v45, %v11136_v6  ;;  %v11139_v30 = vpop.f32.mrb[138].mxu0  ;;  %v17296_v22 = vld [vmem:[#allocation3 + $0x278] sm:$0x1]  ;;  %v17301_v41 = vadd.f32 %v5142_v63, %v16997_v12  ;;  %v7321_v6 = vpack.c.bf16 %v7285_v25, %v7281_v26  ;;  %v19965_v45 = vrot.slane %v17075_v37, 1 }
 0x822   :  { %19962 = vst [vmem:[#allocation85_spill] sm:$0xff] %v17288_v61  ;;  %7754 = vmatprep.mubr.bf16.mxu1 %v7319_v53  ;;  %v11140_v53 = vpop.f32.mrb[139].mxu0  ;;  %v17305_v59 = vld [vmem:[#allocation3 + $0x240] sm:$0xfe]  ;;  %v11201_v61 = vpop.f32.mrb[137].mxu1  ;;  %v19968_v25 = vrot.slane %v17077_v43, 1 }
 0x823   :  { %19963 = vst [vmem:[#allocation86_spill] sm:$0xff] %v17301_v41  ;;  %19964 = vst [vmem:[#allocation87_spill] sm:$0xff] %v17305_v59  ;;  %v11141_v58 = vadd.f32 %v11140_v53, %v11139_v30  ;;  %v17312_v28 = vsel %vm2508_vm10, %v19966_v38, %v19965_v45  ;;  %v17315_v63 = vld [vmem:[#allocation3 + $0x260] sm:$0x1]  ;;  %v17317_v41 = vld [vmem:[#allocation3 + $0x210] sm:$0xfe]  ;;  %v11202_v8 = vadd.f32 %v11201_v61, %v11200_v15 }
 0x824   :  { %v11203_v46 = vpop.f32.mrb[138].mxu1  ;;  %v19967_v30 = vrot.slane %v17086_v11, 1  ;;  %v17329_v26 = vld [vmem:[#allocation3 + $0x250] sm:$0xfe]  ;;  %v7323_v45 = vpack.c.bf16 %v7287_v0, %v7283_v14  ;;  %v7280_v61 = vld [vmem:[#allocation3 + $0x400] sm:$0xff]  ;;  %v11142_v0 = vpop.f32.mrb[140].mxu0 }
 0x825   :  { %19969 = vst [vmem:[#allocation88_spill] sm:$0xff] %v17329_v26  ;;  %v11204_v53 = vpop.f32.mrb[139].mxu1  ;;  %v17334_v43 = vld [vmem:[#allocation3 + $0x270] sm:$0x1]  ;;  %v5147_v54 = vadd.f32 %v11202_v8, %v11138_v3  ;;  %v17338_v62 = vld [vmem:[#allocation3 + $0x288] sm:$0xfe] }
 0x826   :  { %v17324_v37 = vsel %vm2508_vm10, %v19968_v25, %v19967_v30  ;;  %v7284_v30 = vld [vmem:[#allocation3 + $0x440] sm:$0xff]  ;;  %v7282_v25 = vld [vmem:[#allocation3 + $0x410] sm:$0xff]  ;;  %19970 = vst [vmem:[#allocation89_spill] sm:$0xff] %v17338_v62  ;;  %v17348_v12 = vld [vmem:[#allocation3 + $0x2a8] sm:$0x1]  ;;  %v19977_v26 = vrot.slane %v17162_v13, 1 }
 0x827   :  { %7658 = vmatmul.mubr.bf16.gmra.mrb[244].mxu0 %v7316_v4  ;;  %v11205_v4 = vadd.f32 %v11204_v53, %v11203_v46  ;;  %v7286_v14 = vld [vmem:[#allocation3 + $0x450] sm:$0xff]  ;;  %v17345_v8 = vadd.f32 %v5147_v54, %v17006_v35  ;;  %v11143_v53 = vpop.f32.mrb[141].mxu0  ;;  %v12198_v59 = vld [vmem:[#allocation3 + $0x8] sm:$0xff]  ;;  %v17357_v35 = vld [vmem:[#allocation3 + $0x298] sm:$0xfe]  ;;  %v19982_v13 = vrot.slane %v17184_v16, 1 }
 0x828   :  { %7665 = vmatprep.mubr.bf16.mxu0 %v7321_v6  ;;  %v11144_v55 = vadd.f32 %v11143_v53, %v11142_v0  ;;  %v11145_v6 = vpop.f32.mrb[142].mxu0  ;;  %v17352_v15 = vpack.c.bf16 %v12198_v59, %v12198_v59  ;;  %v17354_v11 = vld [vmem:[#allocation3 + $0x2e8] sm:$0x1]  ;;  %v19973_v0 = vrot.slane %v17082_v29, 1  ;;  %v19974_v59 = vrot.slane %v17073_v24, 1  ;;  %v20010_v29 = vld [vmem:[#allocation80_spill] sm:$0xff] }
 0x829   :  { %7755 = vmatmul.mubr.bf16.gmra.mrb[244].mxu1 %v7318_v27  ;;  %19971 = vst [vmem:[#allocation91_spill] sm:$0xff] %v17345_v8  ;;  %v5150_v46 = vadd.f32 %v11205_v4, %v11141_v58  ;;  %v17350_v27 = vld [vmem:[#allocation3 + $0x2c8] sm:$0xfe]  ;;  %v11146_v54 = vpop.f32.mrb[143].mxu0  ;;  %v7320_v4 = vpack.c.bf16 %v7284_v30, %v7280_v61  ;;  %v17371_v8 = vld [vmem:[#allocation3 + $0x2b8] sm:$0x1] }
 0x82a   :  { %7762 = vmatprep.mubr.bf16.mxu1 %v7323_v45  ;;  %v11206_v45 = vpop.f32.mrb[140].mxu1  ;;  %v17369_v53 = vsel %vm2508_vm10, %v19974_v59, %v19973_v0  ;;  %v17373_v3 = vld [vmem:[#allocation3 + $0x2d8] sm:$0xfe]  ;;  %v19976_v61 = vrot.slane %v17132_v39, 1  ;;  %v17383_v24 = vld [vmem:[#allocation3 + $0x2f8] sm:$0x1] }
 0x82b   :  { %v17360_v58 = vadd.f32 %v5150_v46, %v17011_v10  ;;  %v11207_v62 = vpop.f32.mrb[141].mxu1  ;;  %v11147_v10 = vadd.f32 %v11146_v54, %v11145_v6  ;;  %v7322_v46 = vpack.c.bf16 %v7286_v14, %v7282_v25  ;;  %v17385_v0 = vld [vmem:[#allocation3 + $0x280] sm:$0xfe]  ;;  %v19978_v25 = vrot.slane %v17148_v48, 1  ;;  %v17402_v54 = vld [vmem:[#allocation3 + $0x2a0] sm:$0x1] }
 0x82c   :  { %v11208_v59 = vadd.f32 %v11207_v62, %v11206_v45  ;;  %v11209_v38 = vpop.f32.mrb[142].mxu1  ;;  %v19979_v39 = vrot.slane %v17178_v51, 1  ;;  %v19980_v14 = vrot.slane %v17176_v33, 1  ;;  %v17404_v62 = vld [vmem:[#allocation3 + $0x2c0] sm:$0xfe]  ;;  %v19981_v48 = vrot.slane %v17186_v47, 1 }
 0x82d   :  { %19972 = vst [vmem:[#allocation90_spill] sm:$0xff] %v17360_v58  ;;  %v19975_v58 = vrot.slane %v17139_v7, 1  ;;  %v17392_v7 = vsel %vm2508_vm10, %v19978_v25, %v19977_v26  ;;  %v11210_v45 = vpop.f32.mrb[143].mxu1  ;;  %v17421_v47 = vld [vmem:[#allocation3 + $0x290] sm:$0xfe]  ;;  %v11148_v16 = vpop.f32.mrb[144].mxu0 }
 0x82e   :  { %v17399_v6 = vsel %vm2508_vm10, %v19980_v14, %v19979_v39  ;;  %v17412_v51 = vsel %vm2508_vm10, %v19982_v13, %v19981_v48  ;;  %v5155_v25 = vadd.f32 %v11208_v59, %v11144_v55  ;;  %v11211_v39 = vadd.f32 %v11210_v45, %v11209_v38  ;;  %v17433_v59 = vld [vmem:[#allocation3 + $0x2b0] sm:$0x1]  ;;  %v11149_v14 = vpop.f32.mrb[145].mxu0 }
 0x82f   :  { %v17380_v30 = vsel %vm2508_vm10, %v19976_v61, %v19975_v58  ;;  %7666 = vmatmul.mubr.bf16.gmra.mrb[248].mxu0 %v7320_v4  ;;  %v17417_v61 = vld [vmem:[#allocation3 + $0x2e0] sm:$0x1]  ;;  %v19983_v48 = vrot.slane %v17091_v23, 1  ;;  %v19984_v13 = vrot.slane %v17084_v44, 1  ;;  %v11150_v4 = vadd.f32 %v11149_v14, %v11148_v16  ;;  %v11151_v38 = vpop.f32.mrb[146].mxu0  ;;  %v11212_v14 = vpop.f32.mrb[144].mxu1 }
 0x830   :  { %7673 = vmatprep.mubr.bf16.mxu0 %v17352_v15  ;;  %v17436_v45 = vadd.f32 %v5155_v25, %v17019_v57  ;;  %v8308_v44 = vpack.c.bf16 %v17392_v7, %v17380_v30  ;;  %v8310_v55 = vpack.c.bf16 %v17412_v51, %v17399_v6  ;;  %v19986_v57 = vrot.slane %v17196_v31, 1  ;;  %v17456_v7 = vld [vmem:[#allocation3 + $0x308] sm:$0xfe]  ;;  %v11152_v16 = vpop.f32.mrb[147].mxu0  ;;  %v17505_v58 = vld [vmem:[#allocation3 + $0x338] sm:$0x1] }
 0x831   :  { %7763 = vmatmul.mubr.bf16.gmra.mrb[248].mxu1 %v7322_v46  ;;  %v17428_v26 = vsel %vm2508_vm10, %v19984_v13, %v19983_v48  ;;  %v5158_v46 = vadd.f32 %v11211_v39, %v11147_v10  ;;  %v17442_v48 = vld [vmem:[#allocation3 + $0x2d0] sm:$0xfe]  ;;  %v17444_v13 = vld [vmem:[#allocation3 + $0x2f0] sm:$0x1]  ;;  %v19987_v10 = vrot.slane %v17194_v60, 1  ;;  %v19989_v6 = vrot.slane %v17204_v17, 1 }
 0x832   :  { %19985 = vst [vmem:[#allocation4_spill] sm:$0xff] %v17436_v45  ;;  %7770 = vmatprep.mubr.bf16.mxu1 %v17352_v15  ;;  %v17458_v39 = vld [vmem:[#allocation3 + $0x328] sm:$0x1]  ;;  %v19990_v31 = vrot.slane %v17202_v34, 1  ;;  %v19991_v51 = vrot.slane %v17214_v20, 1  ;;  %v19993_v30 = vrot.slane %v17231_v56, 1 }
 0x833   :  { %v17453_v25 = vsel %vm2508_vm10, %v19987_v10, %v19986_v57  ;;  %v17461_v23 = vadd.f32 %v5158_v46, %v17022_v1  ;;  %v19992_v57 = vrot.slane %v17212_v36, 1  ;;  %v19994_v1 = vrot.slane %v17221_v2, 1  ;;  %v17484_v17 = vld [vmem:[#allocation3 + $0x348] sm:$0xfe]  ;;  %v17486_v34 = vld [vmem:[#allocation3 + $0x368] sm:$0x1] }
 0x834   :  { %v17468_v60 = vsel %vm2508_vm10, %v19990_v31, %v19989_v6  ;;  %19995 = vst [vmem:[#allocation5_spill] sm:$0xff] %v17484_v17  ;;  %v11213_v6 = vpop.f32.mrb[145].mxu1  ;;  %v11153_v31 = vadd.f32 %v11152_v16, %v11151_v38  ;;  %v19996_v20 = vrot.slane %v17248_v18, 1  ;;  %v19997_v36 = vrot.slane %v17246_v32, 1  ;;  %v20018_v17 = vld [vmem:[#allocation82_spill] sm:$0xff] }
 0x835   :  { %19988 = vst [vmem:[#allocation69_spill] sm:$0xff] %v17461_v23  ;;  %v17475_v10 = vsel %vm2508_vm10, %v19992_v57, %v19991_v51  ;;  %v17482_v46 = vsel %vm2508_vm10, %v19994_v1, %v19993_v30  ;;  %v19998_v56 = vrot.slane %v17253_v19, 1  ;;  %v19999_v2 = vrot.slane %v17251_v42, 1  ;;  %v17503_v1 = vld [vmem:[#allocation3 + $0x318] sm:$0xfe]  ;;  %v11215_v18 = vpop.f32.mrb[146].mxu1 }
 0x836   :  { %v17493_v51 = vsel %vm2508_vm10, %v19997_v36, %v19996_v20  ;;  %v11214_v38 = vadd.f32 %v11213_v6, %v11212_v14  ;;  %v20000_v32 = vrot.slane %v17260_v50, 1  ;;  %v20001_v16 = vrot.slane %v17258_v5, 1  ;;  %v20002_v42 = vld [vmem:[#allocation79_spill] sm:$0xff]  ;;  %v20004_v36 = vld [vmem:[#allocation78_spill] sm:$0xff]  ;;  %v11216_v33 = vpop.f32.mrb[147].mxu1  ;;  %v20008_v50 = vld [vmem:[#allocation81_spill] sm:$0xff] }
 0x837   :  { %v17500_v30 = vsel %vm2508_vm10, %v19999_v2, %v19998_v56  ;;  %7674 = vmatmul.mubr.bf16.gmra.mrb[252].mxu0 %v17352_v15  ;;  %v20003_v20 = vrot.slane %v20002_v42, 1  ;;  %v20005_v56 = vrot.slane %v20004_v36, 1  ;;  %v17523_v14 = vld [vmem:[#allocation3 + $0x358] sm:$0xfe]  ;;  %v17525_v6 = vld [vmem:[#allocation3 + $0x378] sm:$0x1]  ;;  %v11217_v23 = vadd.f32 %v11216_v33, %v11215_v18 }
 0x838   :  { %v17513_v19 = vsel %vm2508_vm10, %v20001_v16, %v20000_v32  ;;  %20006 = vst [vmem:[#allocation9_spill] sm:$0xff] %v17523_v14  ;;  %20007 = vst [vmem:[#allocation8_spill] sm:$0xff] %v17525_v6  ;;  %8628 = vmatprep.mubr.bf16.mxu0 %v8308_v44  ;;  %v20009_v5 = vrot.slane %v20008_v50, 1  ;;  %v20011_v32 = vrot.slane %v20010_v29, 1  ;;  %v5163_v57 = vadd.f32 %v11214_v38, %v11150_v4  ;;  %v17541_v50 = vld [vmem:[#allocation3 + $0x320] sm:$0x1] }
 0x839   :  { %v17520_v2 = vsel %vm2508_vm10, %v20005_v56, %v20003_v20  ;;  %v17537_v56 = vld [vmem:[#allocation3 + $0x300] sm:$0xfe]  ;;  %20013 = vst [vmem:[#allocation11_spill] sm:$0xff] %v17541_v50  ;;  %7771 = vmatmul.mubr.bf16.gmra.mrb[252].mxu1 %v17352_v15  ;;  %v11154_v29 = vpop.f32.mrb[148].mxu0  ;;  %v20014_v38 = vld [vmem:[#allocation62_spill] sm:$0xff]  ;;  %v5166_v45 = vadd.f32 %v11217_v23, %v11153_v31  ;;  %v12165_v15 = vld [vmem:[%s19137_s6 + $0x848] sm:$0xff]  }
 0x83a   :  { %v17532_v16 = vsel %vm2508_vm10, %v20011_v32, %v20009_v5  ;;  %20012 = vst [vmem:[#allocation10_spill] sm:$0xff] %v17537_v56  ;;  %v12163_v5 = vld [vmem:[%s19137_s6 + $0x800] sm:$0xff]   ;;  %v17552_v18 = vadd.f32 %v5163_v57, %v20014_v38  ;;  %8725 = vmatprep.mubr.bf16.mxu1 %v8310_v55  ;;  %v11155_v44 = vpop.f32.mrb[149].mxu0  ;;  %v20016_v36 = vld [vmem:[#allocation83_spill] sm:$0xff]  ;;  %v20019_v32 = vrot.slane %v20018_v17, 1  ;;  %v20022_v31 = vrot.slane %v17291_v9, 1 }
 0x83b   :  { %v20017_v42 = vrot.slane %v20016_v36, 1  ;;  %v17564_v4 = vld [vmem:[#allocation3 + $0x340] sm:$0xfe]  ;;  %v17566_v33 = vld [vmem:[#allocation3 + $0x360] sm:$0x1]  ;;  %v11156_v23 = vadd.f32 %v11155_v44, %v11154_v29  ;;  %v11157_v55 = vpop.f32.mrb[150].mxu0 }
 0x83c   :  { %20015 = vst [vmem:[#allocation13_spill] sm:$0xff] %v17552_v18  ;;  %20020 = vst [vmem:[#allocation12_spill] sm:$0xff] %v17564_v4  ;;  %v20023_v38 = vld [vmem:[#allocation84_spill] sm:$0xff]  ;;  %v20025_v17 = vrot.slane %v17296_v22, 1  ;;  %v17584_v6 = vld [vmem:[#allocation3 + $0x310] sm:$0xfe]  ;;  %v8312_v22 = vpack.c.bf16 %v17468_v60, %v17453_v25 }
 0x83d   :  { %v17562_v20 = vsel %vm2508_vm10, %v20019_v32, %v20017_v42  ;;  %20021 = vst [vmem:[#allocation14_spill] sm:$0xff] %v17566_v33  ;;  %v20024_v18 = vrot.slane %v20023_v38, 1  ;;  %v20026_v42 = vrot.slane %v17293_v40, 1  ;;  %v17586_v44 = vld [vmem:[#allocation3 + $0x330] sm:$0x1]  ;;  %v20027_v29 = vld [vmem:[#allocation64_spill] sm:$0xff] }
 0x83e   :  { %v17589_v9 = vadd.f32 %v5166_v45, %v20027_v29  ;;  %v11218_v38 = vpop.f32.mrb[148].mxu1  ;;  %v11158_v57 = vpop.f32.mrb[151].mxu0  ;;  %v12164_v40 = vld [vmem:[%s19137_s6 + $0x880] sm:$0xff]   ;;  %v12167_v25 = vld [vmem:[%s19137_s6 + $0x808] sm:$0xff]   ;;  %v17641_v32 = vld [vmem:[#allocation3 + $0x398] sm:$0xfe] }
 0x83f   :  { %v17574_v14 = vsel %vm2508_vm10, %v20024_v18, %v20022_v31  ;;  %v17581_v36 = vsel %vm2508_vm10, %v20026_v42, %v20025_v17  ;;  %v8309_v18 = vpack.c.bf16 %v17428_v26, %v17369_v53  ;;  %v8314_v31 = vpack.c.bf16 %v17482_v46, %v17475_v10  ;;  %v17600_v17 = vld [vmem:[#allocation3 + $0x350] sm:$0xfe]  ;;  %v17602_v42 = vld [vmem:[#allocation3 + $0x370] sm:$0x1]  ;;  %v11219_v45 = vpop.f32.mrb[149].mxu1  ;;  %v12166_v53 = vld [vmem:[%s19137_s6 + $0x8c8] sm:$0xff]  }
 0x840   :  { %20028 = vst [vmem:[#allocation15_spill] sm:$0xff] %v17589_v9  ;;  %20029 = vst [vmem:[#allocation17_spill] sm:$0xff] %v17600_v17  ;;  %v11159_v29 = vadd.f32 %v11158_v57, %v11157_v55  ;;  %v17615_v10 = vld [vmem:[#allocation3 + $0x388] sm:$0xfe]  ;;  %v17617_v46 = vld [vmem:[#allocation3 + $0x3a8] sm:$0x1]  ;;  %v11220_v57 = vadd.f32 %v11219_v45, %v11218_v38  ;;  %v20030_v9 = vpack.c.bf16 %v17324_v37, %v17312_v28 }
 0x841   :  { %v11221_v55 = vpop.f32.mrb[150].mxu1  ;;  %v17627_v50 = vld [vmem:[#allocation3 + $0x3c8] sm:$0xfe]  ;;  %v17629_v60 = vld [vmem:[#allocation3 + $0x3e8] sm:$0x1]  ;;  %v20031_v38 = vrot.slane %v17303_v49, 1  ;;  %8726 = vmatmul.mubr.bf16.vlgmr.msra.gmra.mrb[0].mxu1 %v8309_v18 }
 0x842   :  { %8629 = vmatmul.mubr.bf16.vlgmr.msra.gmra.mrb[0].mxu0 %v20030_v9  ;;  %v11222_v4 = vpop.f32.mrb[151].mxu1  ;;  %v20032_v28 = vrot.slane %v17298_v52, 1  ;;  %20033 = vst [vmem:[#allocation16_spill] sm:$0xff] %v17641_v32  ;;  %v5171_v26 = vadd.f32 %v11220_v57, %v11156_v23  ;;  %v12168_v49 = vld [vmem:[%s19137_s6 + $0x888] sm:$0xff]   ;;  %v12169_v52 = vld [vmem:[%s19137_s6 + $0x850] sm:$0xff]   ;;  %v20035_v23 = vld [vmem:[#allocation87_spill] sm:$0xff]  ;;  %11813 = vmatpush3.bf16.msra.mxu1 %v12164_v40 }
 0x843   :  { %11749 = vmatpush3.bf16.msra.mxu0 %v12163_v5  ;;  %8636 = vmatprep.mubr.bf16.mxu0 %v8312_v22  ;;  %v11223_v33 = vadd.f32 %v11222_v4, %v11221_v55  ;;  %v12170_v4 = vld [vmem:[%s19137_s6 + $0x8d0] sm:$0xff]   ;;  %v20036_v57 = vrot.slane %v20035_v23, 1  ;;  %v17666_v45 = vld [vmem:[#allocation3 + $0x3d8] sm:$0xfe]  ;;  %v20037_v18 = vld [vmem:[#allocation65_spill] sm:$0xff]  ;;  %v20039_v23 = vrot.slane %v17327_v21, 1 }
 0x844   :  { %v17636_v37 = vsel %vm2508_vm10, %v20032_v28, %v20031_v38  ;;  %11750 = vmatprep.subr.bf16.mxu0 %v12165_v15  ;;  %v17651_v38 = vld [vmem:[#allocation3 + $0x3b8] sm:$0x1]  ;;  %v11160_v28 = vpop.f32.mrb[152].mxu0  ;;  %v20034_v15 = vrot.slane %v17315_v63, 1  ;;  %v17669_v22 = vadd.f32 %v5171_v26, %v20037_v18  ;;  %8733 = vmatprep.mubr.bf16.mxu1 %v8314_v31  ;;  %v12171_v5 = vld [vmem:[%s19137_s6 + $0x810] sm:$0xff]   ;;  %v20041_v21 = vrot.slane %v17334_v43, 1 }
 0x845   :  { %v5174_v17 = vadd.f32 %v11223_v33, %v11159_v29  ;;  %v11161_v63 = vpop.f32.mrb[153].mxu0  ;;  %v17681_v9 = vld [vmem:[#allocation3 + $0x3f8] sm:$0x1]  ;;  %v17684_v18 = vld [vmem:[#allocation3 + $0x380] sm:$0xfe]  ;;  %11814 = vmatprep.subr.bf16.mxu1 %v12166_v53  ;;  %v20051_v26 = vrot.slane %v17371_v8, 1 }
 0x846   :  { %v17661_v55 = vsel %vm2508_vm10, %v20036_v57, %v20034_v15  ;;  %20038 = vst [vmem:[#allocation20_spill] sm:$0xff] %v17669_v22  ;;  %v20040_v15 = vrot.slane %v17317_v41, 1  ;;  %v11162_v33 = vadd.f32 %v11161_v63, %v11160_v28  ;;  %v11163_v40 = vpop.f32.mrb[154].mxu0  ;;  %v20042_v41 = vld [vmem:[#allocation88_spill] sm:$0xff]  ;;  %v12173_v28 = vld [vmem:[%s19137_s6 + $0x858] sm:$0xff]   ;;  %v20052_v53 = vrot.slane %v17357_v35, 1  ;;  %11815 = vmatpush3.bf16.msra.mxu1 %v12168_v49 }
 0x847   :  { %11751 = vmatpush3.bf16.msra.mxu0 %v12167_v25  ;;  %v20043_v31 = vrot.slane %v20042_v41, 1  ;;  %v17704_v25 = vld [vmem:[#allocation3 + $0x3a0] sm:$0x1]  ;;  %v17706_v43 = vld [vmem:[#allocation3 + $0x3c0] sm:$0xfe]  ;;  %v20047_v63 = vld [vmem:[#allocation67_spill] sm:$0xff]  ;;  %11816 = vmatprep.subr.bf16.mxu1 %v12170_v4 }
 0x848   :  { %v17676_v57 = vsel %vm2508_vm10, %v20040_v15, %v20039_v23  ;;  %v20044_v23 = vrot.slane %v17348_v12, 1  ;;  %v20045_v15 = vld [vmem:[#allocation89_spill] sm:$0xff]  ;;  %v11224_v41 = vpop.f32.mrb[152].mxu1  ;;  %v11164_v12 = vpop.f32.mrb[155].mxu0  ;;  %11752 = vmatprep.subr.bf16.mxu0 %v12169_v52  ;;  %v20053_v52 = vrot.slane %v17383_v24, 1  ;;  %v12174_v8 = vld [vmem:[%s19137_s6 + $0x8d8] sm:$0xff]  }
 0x849   :  { %v17691_v29 = vsel %vm2508_vm10, %v20043_v31, %v20041_v21  ;;  %v20046_v56 = vrot.slane %v20045_v15, 1  ;;  %v17709_v21 = vadd.f32 %v5174_v17, %v20047_v63  ;;  %v20049_v31 = vrot.slane %v17354_v11, 1  ;;  %v17735_v11 = vld [vmem:[#allocation3 + $0x3e0] sm:$0x1]  ;;  %v17782_v49 = vld [vmem:[#allocation3 + $0x3f0] sm:$0x1] }
 0x84a   :  { %v17726_v17 = vsel %vm2508_vm10, %v20052_v53, %v20051_v26  ;;  %v20054_v63 = vrot.slane %v17373_v3, 1  ;;  %v20055_v35 = vrot.slane %v17402_v54, 1  ;;  %v20056_v26 = vrot.slane %v17385_v0, 1  ;;  %v17809_v4 = vld [vmem:[#allocation3 + $0x448] sm:$0xfe] }
 0x84b   :  { %v17698_v22 = vsel %vm2508_vm10, %v20046_v56, %v20044_v23  ;;  %20048 = vst [vmem:[#allocation18_spill] sm:$0xff] %v17709_v21  ;;  %v12172_v56 = vld [vmem:[%s19137_s6 + $0x890] sm:$0xff]   ;;  %v20050_v23 = vrot.slane %v17350_v27, 1  ;;  %v20057_v3 = vrot.slane %v17417_v61, 1  ;;  %v20058_v53 = vrot.slane %v17404_v62, 1  ;;  %11753 = vmatpush3.bf16.msra.mxu0 %v12171_v5  ;;  %v12178_v5 = vld [vmem:[%s19137_s6 + $0x8e0] sm:$0xff]  }
 0x84c   :  { %v17733_v21 = vsel %vm2508_vm10, %v20054_v63, %v20053_v52  ;;  %v17737_v27 = vld [vmem:[#allocation3 + $0x390] sm:$0xfe]  ;;  %v17747_v24 = vsel %vm2508_vm10, %v20056_v26, %v20055_v35  ;;  %v20059_v0 = vpack.c.bf16 %v17500_v30, %v17493_v51  ;;  %v20060_v61 = vrot.slane %v17433_v59, 1  ;;  %v12175_v51 = vld [vmem:[%s19137_s6 + $0x818] sm:$0xff]   ;;  %v17784_v59 = vld [vmem:[#allocation3 + $0x408] sm:$0xfe]  ;;  %11754 = vmatprep.subr.bf16.mxu0 %v12173_v28  ;;  %11817 = vmatpush3.bf16.msra.mxu1 %v12172_v56 }
 0x84d   :  { %v17719_v15 = vsel %vm2508_vm10, %v20050_v23, %v20049_v31  ;;  %v11225_v31 = vpop.f32.mrb[153].mxu1  ;;  %v11165_v23 = vadd.f32 %v11164_v12, %v11163_v40  ;;  %v17754_v52 = vsel %vm2508_vm10, %v20058_v53, %v20057_v3  ;;  %v17757_v12 = vld [vmem:[#allocation3 + $0x3b0] sm:$0x1]  ;;  %v17759_v63 = vld [vmem:[#allocation3 + $0x3d0] sm:$0xfe]  ;;  %v20061_v62 = vrot.slane %v17421_v47, 1  ;;  %11818 = vmatprep.subr.bf16.mxu1 %v12174_v8 }
 0x84e   :  { %v11226_v32 = vadd.f32 %v11225_v31, %v11224_v41  ;;  %v11227_v54 = vpop.f32.mrb[154].mxu1  ;;  %8637 = vmatmul.mubr.bf16.gmra.mrb[4].mxu0 %v20059_v0  ;;  %v20062_v26 = vrot.slane %v17444_v13, 1  ;;  %v20063_v3 = vrot.slane %v17442_v48, 1  ;;  %v20064_v41 = vpack.c.bf16 %v17562_v20, %v17532_v16  ;;  %v17866_v8 = vld [vmem:[#allocation3 + $0x478] sm:$0x1]  ;;  %v20081_v30 = vld [vmem:[#allocation9_spill] sm:$0xff] }
 0x84f   :  { %v17769_v35 = vsel %vm2508_vm10, %v20061_v62, %v20060_v61  ;;  %v11228_v47 = vpop.f32.mrb[155].mxu1  ;;  %v20065_v48 = vrot.slane %v17458_v39, 1  ;;  %v20066_v13 = vrot.slane %v17456_v7, 1  ;;  %v12176_v39 = vld [vmem:[%s19137_s6 + $0x898] sm:$0xff]   ;;  %v12177_v7 = vld [vmem:[%s19137_s6 + $0x860] sm:$0xff]   ;;  %v20071_v28 = vrot.slane %v17486_v34, 1  ;;  %11755 = vmatpush3.bf16.msra.mxu0 %v12175_v51 }
 0x850   :  { %v17776_v53 = vsel %vm2508_vm10, %v20063_v3, %v20062_v26  ;;  %8644 = vmatprep.mubr.bf16.mxu0 %v20064_v41  ;;  %v17799_v26 = vld [vmem:[#allocation3 + $0x428] sm:$0x1]  ;;  %v5179_v3 = vadd.f32 %v11226_v32, %v11162_v33  ;;  %v11229_v40 = vadd.f32 %v11228_v47, %v11227_v54  ;;  %v20067_v41 = vpack.c.bf16 %v17520_v2, %v17513_v19  ;;  %v11166_v32 = vpop.f32.mrb[156].mxu0  ;;  %v17878_v51 = vld [vmem:[#allocation3 + $0x420] sm:$0x1] }
 0x851   :  { %v17794_v31 = vsel %vm2508_vm10, %v20066_v13, %v20065_v48  ;;  %v20068_v13 = vld [vmem:[#allocation70_spill] sm:$0xff]  ;;  %v20070_v19 = vpack.c.bf16 %v17581_v36, %v17574_v14  ;;  %v11167_v2 = vpop.f32.mrb[157].mxu0  ;;  %v12179_v48 = vld [vmem:[%s19137_s6 + $0x820] sm:$0xff]   ;;  %v8315_v34 = vpack.c.bf16 %v17661_v55, %v17636_v37  ;;  %v8317_v56 = vpack.c.bf16 %v17691_v29, %v17676_v57  ;;  %11756 = vmatprep.subr.bf16.mxu0 %v12177_v7 }
 0x852   :  { %8734 = vmatmul.mubr.bf16.gmra.mrb[4].mxu1 %v20067_v41  ;;  %v17822_v20 = vadd.f32 %v5179_v3, %v20068_v13  ;;  %v5182_v62 = vadd.f32 %v11229_v40, %v11165_v23  ;;  %v20072_v41 = vld [vmem:[#allocation5_spill] sm:$0xff]  ;;  %v17840_v40 = vld [vmem:[#allocation3 + $0x418] sm:$0xfe]  ;;  %v11168_v14 = vadd.f32 %v11167_v2, %v11166_v32  ;;  %v11169_v36 = vpop.f32.mrb[158].mxu0  ;;  %v11230_v2 = vpop.f32.mrb[156].mxu1  ;;  %v8320_v37 = vpack.c.bf16 %v17719_v15, %v17698_v22  ;;  %v12180_v29 = vld [vmem:[%s19137_s6 + $0x8a0] sm:$0xff]  }
 0x853   :  { %8741 = vmatprep.mubr.bf16.mxu1 %v20070_v19  ;;  %v20073_v33 = vrot.slane %v20072_v41, 1  ;;  %v17837_v3 = vld [vmem:[#allocation3 + $0x468] sm:$0x1]  ;;  %v17850_v19 = vld [vmem:[#allocation3 + $0x438] sm:$0x1]  ;;  %v20074_v41 = vld [vmem:[#allocation72_spill] sm:$0xff]  ;;  %v8322_v55 = vpack.c.bf16 %v17733_v21, %v17726_v17  ;;  %11819 = vmatpush3.bf16.msra.mxu1 %v12176_v39 }
 0x854   :  { %20069 = vst [vmem:[#allocation21_spill] sm:$0xff] %v17822_v20  ;;  %v17855_v32 = vadd.f32 %v5182_v62, %v20074_v41  ;;  %v11170_v23 = vpop.f32.mrb[159].mxu0  ;;  %v17868_v62 = vld [vmem:[#allocation3 + $0x400] sm:$0xfe]  ;;  %v11231_v41 = vpop.f32.mrb[157].mxu1  ;;  %v12182_v15 = vld [vmem:[%s19137_s6 + $0x8e8] sm:$0xff]   ;;  %11820 = vmatprep.subr.bf16.mxu1 %v12178_v5  ;;  %11757 = vmatpush3.bf16.msra.mxu0 %v12179_v48 }
 0x855   :  { %v17832_v54 = vsel %vm2508_vm10, %v20073_v33, %v20071_v28  ;;  %v12181_v33 = vld [vmem:[%s19137_s6 + $0x868] sm:$0xff]   ;;  %v17852_v28 = vld [vmem:[#allocation3 + $0x458] sm:$0xfe]  ;;  %v11171_v13 = vadd.f32 %v11170_v23, %v11169_v36  ;;  %v17880_v47 = vld [vmem:[#allocation3 + $0x440] sm:$0xfe]  ;;  %v11232_v16 = vadd.f32 %v11231_v41, %v11230_v2  ;;  %v11233_v0 = vpop.f32.mrb[158].mxu1 }
 0x856   :  { %20075 = vst [vmem:[#allocation25_spill] sm:$0xff] %v17855_v32  ;;  %20076 = vst [vmem:[#allocation24_spill] sm:$0xff] %v17880_v47  ;;  %8645 = vmatmul.mubr.bf16.gmra.mrb[8].mxu0 %v8315_v34  ;;  %v20077_v23 = vrot.slane %v17505_v58, 1  ;;  %v20078_v36 = vrot.slane %v17503_v1, 1  ;;  %v20079_v22 = vld [vmem:[#allocation8_spill] sm:$0xff]  ;;  %v20082_v21 = vrot.slane %v20081_v30, 1  ;;  %11758 = vmatprep.subr.bf16.mxu0 %v12181_v33 }
 0x857   :  { %v20080_v61 = vrot.slane %v20079_v22, 1  ;;  %v12183_v2 = vld [vmem:[%s19137_s6 + $0x828] sm:$0xff]   ;;  %v17900_v34 = vld [vmem:[#allocation3 + $0x460] sm:$0x1]  ;;  %v17902_v58 = vld [vmem:[#allocation3 + $0x410] sm:$0xfe]  ;;  %8652 = vmatprep.mubr.bf16.mxu0 %v8320_v37  ;;  %v5187_v32 = vadd.f32 %v11232_v16, %v11168_v14  ;;  %11821 = vmatpush3.bf16.msra.mxu1 %v12180_v29 }
 0x858   :  { %v17887_v7 = vsel %vm2508_vm10, %v20078_v36, %v20077_v23  ;;  %v11234_v1 = vpop.f32.mrb[159].mxu1  ;;  %v20083_v41 = vld [vmem:[#allocation11_spill] sm:$0xff]  ;;  %v20085_v23 = vld [vmem:[#allocation10_spill] sm:$0xff]  ;;  %v12184_v5 = vld [vmem:[%s19137_s6 + $0x8a8] sm:$0xff]   ;;  %v20097_v29 = vrot.slane %v17629_v60, 1  ;;  %11822 = vmatprep.subr.bf16.mxu1 %v12182_v15  ;;  %11759 = vmatpush3.bf16.msra.mxu0 %v12183_v2 }
 0x859   :  { %v17894_v17 = vsel %vm2508_vm10, %v20082_v21, %v20080_v61  ;;  %v20084_v22 = vrot.slane %v20083_v41, 1  ;;  %v20086_v30 = vrot.slane %v20085_v23, 1  ;;  %v17914_v57 = vld [vmem:[#allocation3 + $0x430] sm:$0x1]  ;;  %v11235_v20 = vadd.f32 %v11234_v1, %v11233_v0  ;;  %v17924_v23 = vld [vmem:[#allocation3 + $0x450] sm:$0xfe] }
 0x85a   :  { %v12185_v37 = vld [vmem:[%s19137_s6 + $0x870] sm:$0xff]   ;;  %20087 = vst [vmem:[#allocation22_spill] sm:$0xff] %v17924_v23  ;;  %8742 = vmatmul.mubr.bf16.gmra.mrb[8].mxu1 %v8317_v56  ;;  %v20090_v0 = vld [vmem:[#allocation12_spill] sm:$0xff]  ;;  %v17952_v47 = vld [vmem:[#allocation3 + $0x4a8] sm:$0x1] }
 0x85b   :  { %v17909_v61 = vsel %vm2508_vm10, %v20086_v30, %v20084_v22  ;;  %v11252_v30 = vpop.f32.mrb[160].mxu0  ;;  %v20088_v36 = vld [vmem:[#allocation14_spill] sm:$0xff]  ;;  %v20091_v48 = vrot.slane %v20090_v0, 1  ;;  %v5190_v0 = vadd.f32 %v11235_v20, %v11171_v13  ;;  %8749 = vmatprep.mubr.bf16.mxu1 %v8322_v55  ;;  %v17950_v22 = vld [vmem:[#allocation3 + $0x488] sm:$0xfe]  ;;  %v20095_v20 = vrot.slane %v17617_v46, 1  ;;  %11760 = vmatprep.subr.bf16.mxu0 %v12185_v37 }
 0x85c   :  { %v20089_v16 = vrot.slane %v20088_v36, 1  ;;  %v12186_v1 = vld [vmem:[%s19137_s6 + $0x8f0] sm:$0xff]   ;;  %20094 = vst [vmem:[#allocation27_spill] sm:$0xff] %v17950_v22  ;;  %v20096_v13 = vrot.slane %v17615_v10, 1  ;;  %v20100_v46 = vld [vmem:[#allocation75_spill] sm:$0xff]  ;;  %v11316_v10 = vpop.f32.mrb[160].mxu1  ;;  %11823 = vmatpush3.bf16.msra.mxu1 %v12184_v5 }
 0x85d   :  { %v17938_v39 = vld [vmem:[#allocation3 + $0x470] sm:$0x1]  ;;  %v12189_v2 = vld [vmem:[%s19137_s6 + $0x878] sm:$0xff]   ;;  %11824 = vmatprep.subr.bf16.mxu1 %v12186_v1  ;;  %v20117_v1 = vrot.slane %v17706_v43, 1 }
 0x85e   :  { %v17931_v14 = vsel %vm2508_vm10, %v20091_v48, %v20089_v16  ;;  %v20092_v21 = vld [vmem:[#allocation74_spill] sm:$0xff]  ;;  %v11253_v16 = vpop.f32.mrb[161].mxu0  ;;  %v17959_v55 = vsel %vm2508_vm10, %v20096_v13, %v20095_v20  ;;  %v20103_v13 = vrot.slane %v17584_v6, 1  ;;  %v11317_v6 = vpop.f32.mrb[161].mxu1  ;;  %v18021_v22 = vld [vmem:[#allocation3 + $0x4d8] sm:$0xfe] }
 0x85f   :  { %v17942_v36 = vadd.f32 %v5187_v32, %v20092_v21  ;;  %v12187_v41 = vld [vmem:[%s19137_s6 + $0x830] sm:$0xff]   ;;  %v11254_v56 = vadd.f32 %v11253_v16, %v11252_v30  ;;  %v11255_v32 = vpop.f32.mrb[162].mxu0  ;;  %v20098_v21 = vrot.slane %v17627_v50, 1  ;;  %v17971_v30 = vld [vmem:[#allocation3 + $0x4e8] sm:$0x1]  ;;  %v17974_v16 = vadd.f32 %v5190_v0, %v20100_v46 }
 0x860   :  { %v11256_v20 = vpop.f32.mrb[163].mxu0  ;;  %v20102_v50 = vrot.slane %v17586_v44, 1  ;;  %v12188_v0 = vld [vmem:[%s19137_s6 + $0x8b0] sm:$0xff]   ;;  %v17995_v46 = vld [vmem:[#allocation3 + $0x498] sm:$0xfe]  ;;  %11761 = vmatpush3.bf16.msra.mxu0 %v12187_v41  ;;  %v20121_v41 = vrot.slane %v17782_v49, 1 }
 0x861   :  { %20093 = vst [vmem:[#allocation26_spill] sm:$0xff] %v17942_v36  ;;  %v17966_v48 = vsel %vm2508_vm10, %v20098_v21, %v20097_v29  ;;  %v17969_v36 = vld [vmem:[#allocation3 + $0x4c8] sm:$0xfe]  ;;  %20101 = vst [vmem:[#allocation28_spill] sm:$0xff] %v17974_v16  ;;  %v20104_v29 = vrot.slane %v17602_v42, 1  ;;  %v11257_v60 = vadd.f32 %v11256_v20, %v11255_v32  ;;  %v20107_v32 = vpack.c.bf16 %v17754_v52, %v17747_v24  ;;  %v20109_v42 = vld [vmem:[#allocation16_spill] sm:$0xff] }
 0x862   :  { %20099 = vst [vmem:[#allocation31_spill] sm:$0xff] %v17969_v36  ;;  %v17983_v15 = vsel %vm2508_vm10, %v20103_v13, %v20102_v50  ;;  %v20105_v21 = vld [vmem:[#allocation17_spill] sm:$0xff]  ;;  %v17997_v44 = vld [vmem:[#allocation3 + $0x4b8] sm:$0x1]  ;;  %v20108_v20 = vrot.slane %v17651_v38, 1  ;;  %v20110_v13 = vrot.slane %v20109_v42, 1  ;;  %v20111_v38 = vpack.c.bf16 %v17832_v54, %v17794_v31  ;;  %11762 = vmatprep.subr.bf16.mxu0 %v12189_v2  ;;  %11825 = vmatpush3.bf16.msra.mxu1 %v12188_v0 }
 0x863   :  { %v20106_v33 = vrot.slane %v20105_v21, 1  ;;  %v11319_v21 = vpop.f32.mrb[162].mxu1  ;;  %8653 = vmatmul.mubr.bf16.gmra.mrb[12].mxu0 %v20107_v32  ;;  %v12191_v24 = vld [vmem:[%s19137_s6 + $0x838] sm:$0xff]   ;;  %v20113_v42 = vrot.slane %v17666_v45, 1  ;;  %v8228_v32 = vrot.slane %v17995_v46, 1  ;;  %v20114_v31 = vrot.slane %v17704_v25, 1 }
 0x864   :  { %v18018_v50 = vsel %vm2508_vm10, %v20110_v13, %v20108_v20  ;;  %v11320_v52 = vpop.f32.mrb[163].mxu1  ;;  %8660 = vmatprep.mubr.bf16.mxu0 %v20111_v38  ;;  %v8235_v13 = vrot.slane %v17971_v30, 1  ;;  %v8229_v20 = vrot.slane %v17997_v44, 1  ;;  %v18041_v16 = vld [vmem:[#allocation3 + $0x480] sm:$0xfe]  ;;  %v20116_v54 = vrot.slane %v17735_v11, 1  ;;  %11763 = vmatpush3.bf16.msra.mxu0 %v12191_v24 }
 0x865   :  { %v17990_v23 = vsel %vm2508_vm10, %v20106_v33, %v20104_v29  ;;  %v12190_v33 = vld [vmem:[%s19137_s6 + $0x8f8] sm:$0xff]   ;;  %v11318_v29 = vadd.f32 %v11317_v6, %v11316_v10  ;;  %v20112_v6 = vrot.slane %v17681_v9, 1  ;;  %v11321_v36 = vadd.f32 %v11320_v52, %v11319_v21  ;;  %v11258_v25 = vpop.f32.mrb[164].mxu0  ;;  %v20125_v49 = vld [vmem:[#allocation76_spill] sm:$0xff]  ;;  %v20127_v0 = vld [vmem:[#allocation77_spill] sm:$0xff] }
 0x866   :  { %v18023_v10 = vld [vmem:[#allocation3 + $0x4f8] sm:$0x1]  ;;  %v20115_v9 = vrot.slane %v17684_v18, 1  ;;  %v18055_v38 = vsel %vm2508_vm10, %v20117_v1, %v20116_v54  ;;  %v20118_v18 = vpack.c.bf16 %v17776_v53, %v17769_v35  ;;  %v20120_v11 = vrot.slane %v17737_v27, 1  ;;  %v18088_v27 = vld [vmem:[#allocation3 + $0x490] sm:$0xfe]  ;;  %11826 = vmatprep.subr.bf16.mxu1 %v12190_v33 }
 0x867   :  { %v18036_v5 = vsel %vm2508_vm10, %v20113_v42, %v20112_v6  ;;  %v6142_v37 = vadd.f32 %v11318_v29, %v11254_v56  ;;  %v18057_v6 = vld [vmem:[#allocation3 + $0x4a0] sm:$0x1]  ;;  %v18059_v42 = vld [vmem:[#allocation3 + $0x4c0] sm:$0xfe]  ;;  %v20119_v29 = vrot.slane %v17757_v12, 1  ;;  %v20122_v21 = vrot.slane %v17759_v63, 1 }
 0x868   :  { %v18048_v45 = vsel %vm2508_vm10, %v20115_v9, %v20114_v31  ;;  %v18061_v56 = vld [vmem:[#allocation3 + $0x4e0] sm:$0x1]  ;;  %8750 = vmatmul.mubr.bf16.gmra.mrb[12].mxu1 %v20118_v18  ;;  %v20123_v31 = vrot.slane %v17799_v26, 1  ;;  %v20124_v35 = vrot.slane %v17784_v59, 1  ;;  %v8240_v12 = vrot.slane %v18021_v22, 1  ;;  %v11259_v26 = vpop.f32.mrb[165].mxu0 }
 0x869   :  { %v18071_v43 = vsel %vm2508_vm10, %v20120_v11, %v20119_v29  ;;  %v18078_v52 = vsel %vm2508_vm10, %v20122_v21, %v20121_v41  ;;  %v18090_v9 = vld [vmem:[#allocation3 + $0x4b0] sm:$0x1]  ;;  %v18093_v54 = vadd.f32 %v6142_v37, %v20125_v49  ;;  %v6145_v63 = vadd.f32 %v11321_v36, %v11257_v60  ;;  %v18100_v29 = vld [vmem:[#allocation3 + $0x4d0] sm:$0xfe]  ;;  %v12192_v2 = vld [vmem:[%s19137_s6 + $0x8b8] sm:$0xff]   ;;  %v11261_v37 = vpop.f32.mrb[166].mxu0 }
 0x86a   :  { %v18085_v53 = vsel %vm2508_vm10, %v20124_v35, %v20123_v31  ;;  %v20126_v1 = vpack.c.bf16 %v17894_v17, %v17887_v7  ;;  %v8241_v59 = vrot.slane %v18023_v10, 1  ;;  %v11260_v11 = vadd.f32 %v11259_v26, %v11258_v25  ;;  %v18108_v60 = vld [vmem:[#allocation3 + $0x4f0] sm:$0x1]  ;;  %v11322_v21 = vpop.f32.mrb[164].mxu1  ;;  %v11262_v31 = vpop.f32.mrb[167].mxu0  ;;  %11827 = vmatpush3.bf16.msra.mxu1 %v12192_v2 }
 0x86b   :  { %v8220_v36 = vrot.slane %v18057_v6, 1  ;;  %v18111_v41 = vadd.f32 %v6145_v63, %v20127_v0  ;;  %v20128_v35 = vrot.slane %v17837_v3, 1  ;;  %v20129_v49 = vrot.slane %v17809_v4, 1  ;;  %v18122_v26 = vld [vmem:[#allocation3 + $0x108] sm:$0xfc]  ;;  %v11323_v17 = vpop.f32.mrb[165].mxu1 }
 0x86c   :  { %8757 = vmatprep.mubr.bf16.mxu1 %v20126_v1  ;;  %v11263_v7 = vadd.f32 %v11262_v31, %v11261_v37  ;;  %v20130_v63 = vrot.slane %v17850_v19, 1  ;;  %v20131_v0 = vrot.slane %v17840_v40, 1  ;;  %v20132_v4 = vrot.slane %v17866_v8, 1  ;;  %v18139_v33 = vld [vmem:[#allocation3 + $0x128] sm:$0x3]  ;;  %v11325_v19 = vpop.f32.mrb[166].mxu1 }
 0x86d   :  { %v18118_v25 = vsel %vm2508_vm10, %v20129_v49, %v20128_v35  ;;  %v20133_v35 = vrot.slane %v17852_v28, 1  ;;  %v18141_v1 = vld [vmem:[#allocation3 + $0x148] sm:$0xfc]  ;;  %v11324_v37 = vadd.f32 %v11323_v17, %v11322_v21  ;;  %v20134_v40 = vpack.c.bf16 %v17931_v14, %v17909_v61  ;;  %v18198_v24 = vld [vmem:[#allocation3 + $0x170] sm:$0x3] }
 0x86e   :  { %v18129_v3 = vsel %vm2508_vm10, %v20131_v0, %v20130_v63  ;;  %v8325_v8 = vpack.c.bf16 %v17990_v23, %v17983_v15  ;;  %v8330_v28 = vpack.c.bf16 %v18036_v5, %v18018_v50  ;;  %v18151_v63 = vld [vmem:[#allocation3 + $0x168] sm:$0x3]  ;;  %v18153_v0 = vld [vmem:[#allocation3 + $0x118] sm:$0xfc]  ;;  %v20135_v17 = vpack.c.bf16 %v17966_v48, %v17959_v55  ;;  %v18165_v50 = vld [vmem:[#allocation3 + $0x138] sm:$0x3] }
 0x86f   :  { %v18136_v49 = vsel %vm2508_vm10, %v20133_v35, %v20132_v4  ;;  %8661 = vmatmul.mubr.bf16.gmra.mrb[16].mxu0 %v20134_v40  ;;  %v11326_v4 = vpop.f32.mrb[167].mxu1  ;;  %v8327_v61 = vpack.c.bf16 %v18055_v38, %v18048_v45  ;;  %v8332_v14 = vpack.c.bf16 %v18118_v25, %v18085_v53  ;;  %v18167_v5 = vld [vmem:[#allocation3 + $0x158] sm:$0xfc]  ;;  %v6150_v2 = vadd.f32 %v11324_v37, %v11260_v11  ;;  %v18178_v35 = vld [vmem:[#allocation3 + $0x178] sm:$0x3]  ;;  %v11264_v40 = vpop.f32.mrb[168].mxu0 }
 0x870   :  { %8668 = vmatprep.mubr.bf16.mxu0 %v20135_v17  ;;  %v11327_v21 = vadd.f32 %v11326_v4, %v11325_v19  ;;  %v20136_v55 = vrot.slane %v17878_v51, 1  ;;  %v20137_v45 = vrot.slane %v17868_v62, 1  ;;  %v18180_v53 = vld [vmem:[#allocation3 + $0x120] sm:$0x3]  ;;  %8758 = vmatmul.mubr.bf16.gmra.mrb[16].mxu1 %v8325_v8  ;;  %v20138_v62 = vld [vmem:[#allocation85_spill] sm:$0xff]  ;;  %v20144_v19 = vrot.slane %v17902_v58, 1 }
 0x871   :  { %v18182_v25 = vld [vmem:[#allocation3 + $0x160] sm:$0x3]  ;;  %v18189_v4 = vadd.f32 %v6150_v2, %v20138_v62  ;;  %8765 = vmatprep.mubr.bf16.mxu1 %v8330_v28  ;;  %v18193_v8 = vld [vmem:[#allocation3 + $0x130] sm:$0x3]  ;;  %v11328_v28 = vpop.f32.mrb[168].mxu1  ;;  %v20140_v62 = vrot.slane %v17900_v34, 1  ;;  %v18252_v30 = vsel %vm2508_vm10, %v8228_v32, %v8229_v20 }
 0x872   :  { %v18176_v38 = vsel %vm2508_vm10, %v20137_v45, %v20136_v55  ;;  %v6153_v17 = vadd.f32 %v11327_v21, %v11263_v7  ;;  %v11265_v55 = vpop.f32.mrb[169].mxu0  ;;  %v20139_v2 = vld [vmem:[#allocation86_spill] sm:$0xff]  ;;  %v20141_v15 = vld [vmem:[#allocation24_spill] sm:$0xff]  ;;  %v20145_v37 = vrot.slane %v17938_v39, 1  ;;  %v18224_v34 = vld [vmem:[#allocation3 + $0x188] sm:$0xfc] }
 0x873   :  { %v11266_v48 = vadd.f32 %v11265_v55, %v11264_v40  ;;  %v11267_v11 = vpop.f32.mrb[170].mxu0  ;;  %v20142_v45 = vrot.slane %v20141_v15, 1  ;;  %v20143_v55 = vrot.slane %v17914_v57, 1  ;;  %v18226_v15 = vld [vmem:[#allocation3 + $0x1a8] sm:$0x3]  ;;  %v20148_v57 = vrot.slane %v17952_v47, 1 }
 0x874   :  { %v18201_v7 = vadd.f32 %v6153_v17, %v20139_v2  ;;  %v11268_v21 = vpop.f32.mrb[171].mxu0  ;;  %v20146_v17 = vld [vmem:[#allocation22_spill] sm:$0xff]  ;;  %v20149_v23 = vld [vmem:[#allocation27_spill] sm:$0xff]  ;;  %v18245_v18 = vld [vmem:[#allocation3 + $0x1e8] sm:$0x3]  ;;  %v20153_v46 = vrot.slane %v18041_v16, 1 }
 0x875   :  { %v18208_v40 = vsel %vm2508_vm10, %v20142_v45, %v20140_v62  ;;  %v18215_v51 = vsel %vm2508_vm10, %v20144_v19, %v20143_v55  ;;  %v20147_v2 = vrot.slane %v20146_v17, 1  ;;  %v11329_v45 = vpop.f32.mrb[169].mxu1  ;;  %v11269_v62 = vadd.f32 %v11268_v21, %v11267_v11  ;;  %v20151_v39 = vld [vmem:[#allocation31_spill] sm:$0xff] }
 0x876   :  { %v20150_v58 = vrot.slane %v20149_v23, 1  ;;  %v20152_v55 = vrot.slane %v20151_v39, 1  ;;  %v9069_v17 = vrot.slane %v18193_v8, 2  ;;  %v11330_v11 = vadd.f32 %v11329_v45, %v11328_v28  ;;  %v11331_v47 = vpop.f32.mrb[170].mxu1  ;;  %v18262_v21 = vld [vmem:[#allocation3 + $0x198] sm:$0xfc] }
 0x877   :  { %v18222_v31 = vsel %vm2508_vm10, %v20147_v2, %v20145_v37  ;;  %v18243_v2 = vld [vmem:[#allocation3 + $0x1c8] sm:$0xfc]  ;;  %8669 = vmatmul.mubr.bf16.gmra.mrb[20].mxu0 %v8327_v61  ;;  %v9081_v23 = vrot.slane %v18198_v24, 2  ;;  %v18264_v28 = vld [vmem:[#allocation3 + $0x1b8] sm:$0x3]  ;;  %v11332_v61 = vpop.f32.mrb[171].mxu1  ;;  %v18271_v44 = vsel %vm2508_vm10, %v20153_v46, %v8220_v36 }
 0x878   :  { %v18233_v19 = vsel %vm2508_vm10, %v20150_v58, %v20148_v57  ;;  %v18240_v37 = vsel %vm2508_vm10, %v20152_v55, %v8235_v13  ;;  %v18259_v13 = vsel %vm2508_vm10, %v8240_v12, %v8241_v59  ;;  %8676 = vmatprep.mubr.bf16.mxu0 %v8332_v14  ;;  %v20154_v22 = vrot.slane %v18061_v56, 1  ;;  %v18288_v16 = vld [vmem:[#allocation3 + $0x1d8] sm:$0xfc]  ;;  %v18290_v36 = vld [vmem:[#allocation3 + $0x1f8] sm:$0x3] }
 0x879   :  { %v20155_v10 = vrot.slane %v18059_v42, 1  ;;  %v20156_v20 = vrot.slane %v18090_v9, 1  ;;  %v20157_v12 = vrot.slane %v18088_v27, 1  ;;  %v9089_v6 = vrot.slane %v18224_v34, 2  ;;  %v18294_v57 = vld [vmem:[#allocation3 + $0x180] sm:$0xfc] }
 0x87a   :  { %v6158_v14 = vadd.f32 %v11330_v11, %v11266_v48  ;;  %v11333_v56 = vadd.f32 %v11332_v61, %v11331_v47  ;;  %v9090_v42 = vrot.slane %v18226_v15, 2  ;;  %v9101_v45 = vrot.slane %v18243_v2, 2  ;;  %v11270_v9 = vpop.f32.mrb[172].mxu0  ;;  %v18309_v61 = vld [vmem:[#allocation3 + $0x1a0] sm:$0x3]  ;;  %v20161_v46 = vld [vmem:[#allocation91_spill] sm:$0xff] }
 0x87b   :  { %v18278_v32 = vsel %vm2508_vm10, %v20155_v10, %v20154_v22  ;;  %v18285_v59 = vsel %vm2508_vm10, %v20157_v12, %v20156_v20  ;;  %v20158_v27 = vpack.c.bf16 %v18078_v52, %v18071_v43  ;;  %v20159_v58 = vrot.slane %v18108_v60, 1  ;;  %v18319_v20 = vld [vmem:[#allocation3 + $0x1c0] sm:$0xfc] }
 0x87c   :  { %v20160_v39 = vrot.slane %v18100_v29, 1  ;;  %v9102_v48 = vrot.slane %v18245_v18, 2  ;;  %v9096_v47 = vrot.slane %v18264_v28, 2  ;;  %v18312_v22 = vadd.f32 %v6158_v14, %v20161_v46  ;;  %v11271_v29 = vpop.f32.mrb[173].mxu0  ;;  %v11334_v46 = vpop.f32.mrb[172].mxu1 }
 0x87d   :  { %8766 = vmatmul.mubr.bf16.gmra.mrb[20].mxu1 %v20158_v27  ;;  %v6161_v43 = vadd.f32 %v11333_v56, %v11269_v62  ;;  %v20162_v52 = vpack.c.bf16 %v18136_v49, %v18129_v3  ;;  %v11272_v12 = vadd.f32 %v11271_v29, %v11270_v9  ;;  %v11273_v27 = vpop.f32.mrb[174].mxu0  ;;  %v8336_v14 = vpack.c.bf16 %v18240_v37, %v18233_v19  ;;  %v18325_v62 = vld [vmem:[#allocation3 + $0x1e0] sm:$0x3]  ;;  %v18328_v49 = vld [vmem:[#allocation3 + $0x190] sm:$0xfc]  ;;  %v11335_v29 = vpop.f32.mrb[173].mxu1 }
 0x87e   :  { %v18304_v55 = vsel %vm2508_vm10, %v20160_v39, %v20159_v58  ;;  %v8331_v58 = vpack.c.bf16 %v18208_v40, %v18176_v38  ;;  %v20163_v56 = vld [vmem:[#allocation90_spill] sm:$0xff]  ;;  %v8333_v9 = vpack.c.bf16 %v18222_v31, %v18215_v51  ;;  %v8338_v38 = vpack.c.bf16 %v18259_v13, %v18252_v30  ;;  %v18355_v13 = vld [vmem:[#allocation3 + $0x208] sm:$0xfc]  ;;  %v11337_v40 = vpop.f32.mrb[174].mxu1  ;;  %v18372_v51 = vld [vmem:[#allocation3 + $0x228] sm:$0x3] }
 0x87f   :  { %8773 = vmatprep.mubr.bf16.mxu1 %v20162_v52  ;;  %v18331_v39 = vadd.f32 %v6161_v43, %v20163_v56  ;;  %v11274_v52 = vpop.f32.mrb[175].mxu0  ;;  %v18339_v19 = vld [vmem:[#allocation3 + $0x1b0] sm:$0x3]  ;;  %v18341_v37 = vld [vmem:[#allocation3 + $0x1d0] sm:$0xfc]  ;;  %v20164_v56 = vrot.slane %v18139_v33, 2  ;;  %v11336_v10 = vadd.f32 %v11335_v29, %v11334_v46  ;;  %v18461_v24 = vsel %vm3890_vm11, %v9101_v45, %v9102_v48 }
 0x880   :  { %v11275_v3 = vadd.f32 %v11274_v52, %v11273_v27  ;;  %v20165_v60 = vrot.slane %v18122_v26, 2  ;;  %v18353_v30 = vld [vmem:[#allocation3 + $0x1f0] sm:$0x3]  ;;  %8677 = vmatmul.mubr.bf16.gmra.mrb[24].mxu0 %v8331_v58  ;;  %v20166_v27 = vrot.slane %v18151_v63, 2  ;;  %v20167_v52 = vrot.slane %v18141_v1, 2  ;;  %v11338_v58 = vpop.f32.mrb[175].mxu1 }
 0x881   :  { %v20168_v26 = vrot.slane %v18165_v50, 2  ;;  %v18374_v46 = vld [vmem:[#allocation3 + $0x248] sm:$0xfc]  ;;  %8684 = vmatprep.mubr.bf16.mxu0 %v8336_v14  ;;  %v20170_v1 = vrot.slane %v18178_v35, 2  ;;  %v20171_v63 = vrot.slane %v18167_v5, 2  ;;  %v11276_v5 = vpop.f32.mrb[176].mxu0  ;;  %v20185_v2 = vpack.c.bf16 %v18278_v32, %v18271_v44 }
 0x882   :  { %v18350_v31 = vsel %vm3890_vm11, %v20165_v60, %v20164_v56  ;;  %v18362_v33 = vsel %vm3890_vm11, %v20167_v52, %v20166_v27  ;;  %v20169_v60 = vrot.slane %v18153_v0, 2  ;;  %v9099_v0 = vrot.slane %v18325_v62, 2  ;;  %v18386_v52 = vld [vmem:[#allocation3 + $0x268] sm:$0x3]  ;;  %v18390_v35 = vld [vmem:[#allocation3 + $0x218] sm:$0xfc] }
 0x883   :  { %v18381_v29 = vsel %vm3890_vm11, %v20171_v63, %v20170_v1  ;;  %v9319_v1 = vpack.c.bf16 %v18362_v33, %v18350_v31  ;;  %v18397_v27 = vld [vmem:[#allocation3 + $0x238] sm:$0x3]  ;;  %v20174_v43 = vld [vmem:[#allocation66_spill] sm:$0xff]  ;;  %v18410_v62 = vld [vmem:[#allocation3 + $0x258] sm:$0xfc]  ;;  %v20184_v34 = vrot.slane %v18262_v21, 2 }
 0x884   :  { %v18369_v56 = vsel %vm3890_vm11, %v20169_v60, %v20168_v26  ;;  %v6166_v26 = vadd.f32 %v11336_v10, %v11272_v12  ;;  %v11339_v60 = vadd.f32 %v11338_v58, %v11337_v40  ;;  %v20172_v10 = vld [vmem:[#allocation4_spill] sm:$0xff]  ;;  %v11277_v58 = vpop.f32.mrb[177].mxu0  ;;  %v20175_v14 = vrot.slane %v20174_v43, 2  ;;  %v18412_v50 = vld [vmem:[#allocation3 + $0x278] sm:$0x3] }
 0x885   :  { %8774 = vmatmul.mubr.bf16.gmra.mrb[24].mxu1 %v8333_v9  ;;  %v20173_v9 = vrot.slane %v18180_v53, 2  ;;  %v11278_v63 = vadd.f32 %v11277_v58, %v11276_v5  ;;  %v11279_v11 = vpop.f32.mrb[178].mxu0  ;;  %v11340_v5 = vpop.f32.mrb[176].mxu1  ;;  %v18452_v8 = vld [vmem:[#allocation3 + $0x240] sm:$0xfc]  ;;  %v18468_v15 = vsel %vm3890_vm11, %v20184_v34, %v9096_v47  ;;  %v20186_v45 = vrot.slane %v18290_v36, 2 }
 0x886   :  { %v18400_v12 = vadd.f32 %v6166_v26, %v20172_v10  ;;  %v6169_v40 = vadd.f32 %v11339_v60, %v11275_v3  ;;  %8781 = vmatprep.mubr.bf16.mxu1 %v8338_v38  ;;  %v9321_v3 = vpack.c.bf16 %v18381_v29, %v18369_v56  ;;  %v20176_v38 = vrot.slane %v18182_v25, 2  ;;  %v20177_v26 = vld [vmem:[#allocation68_spill] sm:$0xff]  ;;  %v11280_v58 = vpop.f32.mrb[179].mxu0  ;;  %v20180_v56 = vld [vmem:[#allocation71_spill] sm:$0xff]  ;;  %v18495_v44 = vld [vmem:[#allocation3 + $0x270] sm:$0x3] }
 0x887   :  { %v18407_v31 = vsel %vm3890_vm11, %v20175_v14, %v20173_v9  ;;  %v20178_v53 = vrot.slane %v20177_v26, 2  ;;  %v9119_v60 = vrot.slane %v18390_v35, 2  ;;  %v18424_v14 = vld [vmem:[#allocation3 + $0x200] sm:$0xfc]  ;;  %v18426_v10 = vld [vmem:[#allocation3 + $0x220] sm:$0x3] }
 0x888   :  { %v20179_v9 = vld [vmem:[#allocation69_spill] sm:$0xff]  ;;  %v20181_v25 = vrot.slane %v20180_v56, 2  ;;  %v11281_v56 = vadd.f32 %v11280_v58, %v11279_v11  ;;  %8685 = vmatmul.mubr.bf16.gmra.mrb[28].mxu0 %v20185_v2  ;;  %v20187_v28 = vrot.slane %v18288_v16, 2  ;;  %v20188_v48 = vrot.slane %v18309_v61, 2 }
 0x889   :  { %v18421_v43 = vsel %vm3890_vm11, %v20178_v53, %v20176_v38  ;;  %v18429_v33 = vadd.f32 %v6169_v40, %v20179_v9  ;;  %v20182_v38 = vld [vmem:[#allocation73_spill] sm:$0xff]  ;;  %v18450_v40 = vsel %vm3890_vm11, %v9089_v6, %v9090_v42  ;;  %v18454_v9 = vld [vmem:[#allocation3 + $0x260] sm:$0x3]  ;;  %v18471_v6 = vld [vmem:[#allocation3 + $0x210] sm:$0xfc]  ;;  %v20189_v47 = vrot.slane %v18294_v57, 2  ;;  %9639 = vmatprep.mubr.bf16.mxu0 %v9319_v1 }
 0x88a   :  { %v18436_v29 = vsel %vm3890_vm11, %v20181_v25, %v9069_v17  ;;  %v20183_v26 = vrot.slane %v20182_v38, 2  ;;  %v11341_v17 = vpop.f32.mrb[177].mxu1  ;;  %v18473_v42 = vld [vmem:[#allocation3 + $0x230] sm:$0x3]  ;;  %v18483_v21 = vsel %vm3890_vm11, %v20187_v28, %v20186_v45  ;;  %v18493_v25 = vld [vmem:[#allocation3 + $0x250] sm:$0xfc] }
 0x88b   :  { %v11342_v11 = vadd.f32 %v11341_v17, %v11340_v5  ;;  %v11343_v18 = vpop.f32.mrb[178].mxu1  ;;  %v18490_v58 = vsel %vm3890_vm11, %v20189_v47, %v20188_v48  ;;  %v9131_v5 = vrot.slane %v18410_v62, 2  ;;  %v20190_v16 = vrot.slane %v18319_v20, 2  ;;  %v18509_v1 = vld [vmem:[#allocation3 + $0x2a8] sm:$0x3] }
 0x88c   :  { %v18443_v53 = vsel %vm3890_vm11, %v20183_v26, %v9081_v23  ;;  %v9120_v23 = vrot.slane %v18397_v27, 2  ;;  %v11344_v32 = vpop.f32.mrb[179].mxu1  ;;  %v9132_v61 = vrot.slane %v18412_v50, 2  ;;  %v9110_v57 = vrot.slane %v18424_v14, 2  ;;  %v18505_v26 = vld [vmem:[#allocation3 + $0x288] sm:$0xfc] }
 0x88d   :  { %v18500_v36 = vsel %vm3890_vm11, %v20190_v16, %v9099_v0  ;;  %v9111_v38 = vrot.slane %v18426_v10, 2  ;;  %v6174_v62 = vadd.f32 %v11342_v11, %v11278_v63  ;;  %v11345_v17 = vadd.f32 %v11344_v32, %v11343_v18  ;;  %v11282_v0 = vpop.f32.mrb[180].mxu0  ;;  %v20192_v11 = vld [vmem:[#allocation13_spill] sm:$0xff]  ;;  %v18553_v16 = vld [vmem:[#allocation3 + $0x2f8] sm:$0x3] }
 0x88e   :  { %v9122_v34 = vrot.slane %v18452_v8, 2  ;;  %v9123_v2 = vrot.slane %v18454_v9, 2  ;;  %v20191_v20 = vpack.c.bf16 %v18304_v55, %v18285_v59  ;;  %v11283_v47 = vpop.f32.mrb[181].mxu0  ;;  %v9318_v32 = vpack.c.bf16 %v18421_v43, %v18407_v31  ;;  %v18523_v59 = vld [vmem:[#allocation3 + $0x2c8] sm:$0xfc]  ;;  %v20193_v31 = vld [vmem:[#allocation15_spill] sm:$0xff] }
 0x88f   :  { %v18519_v18 = vadd.f32 %v6174_v62, %v20192_v11  ;;  %v6177_v48 = vadd.f32 %v11345_v17, %v11281_v56  ;;  %v18525_v55 = vld [vmem:[#allocation3 + $0x2e8] sm:$0x3]  ;;  %v11285_v50 = vpop.f32.mrb[182].mxu0  ;;  %v9320_v28 = vpack.c.bf16 %v18443_v53, %v18436_v29  ;;  %v9323_v62 = vpack.c.bf16 %v18461_v24, %v18450_v40  ;;  %v18533_v56 = vld [vmem:[#allocation3 + $0x298] sm:$0xfc]  ;;  %v11346_v11 = vpop.f32.mrb[180].mxu1 }
 0x890   :  { %8782 = vmatmul.mubr.bf16.gmra.mrb[28].mxu1 %v20191_v20  ;;  %v11284_v20 = vadd.f32 %v11283_v47, %v11282_v0  ;;  %v18535_v17 = vld [vmem:[#allocation3 + $0x2b8] sm:$0x3]  ;;  %v11286_v63 = vpop.f32.mrb[183].mxu0  ;;  %v9325_v0 = vpack.c.bf16 %v18483_v21, %v18468_v15  ;;  %v20194_v53 = vrot.slane %v18339_v19, 2  ;;  %v20195_v40 = vrot.slane %v18328_v49, 2  ;;  %9640 = vmatmul.mubr.bf16.vlgmr.msra.gmra.mrb[32].mxu0 %v9318_v32 }
 0x891   :  { %9736 = vmatprep.mubr.bf16.mxu1 %v9321_v3  ;;  %v18538_v43 = vadd.f32 %v6177_v48, %v20193_v31  ;;  %v18551_v47 = vld [vmem:[#allocation3 + $0x2d8] sm:$0xfc]  ;;  %v11347_v48 = vpop.f32.mrb[181].mxu1  ;;  %v11287_v31 = vadd.f32 %v11286_v63, %v11285_v50  ;;  %v20196_v3 = vrot.slane %v18353_v30, 2  ;;  %v20197_v15 = vrot.slane %v18341_v37, 2  ;;  %9647 = vmatprep.mubr.bf16.mxu0 %v9323_v62  ;;  %v11288_v62 = vpop.f32.mrb[184].mxu0 }
 0x892   :  { %v18549_v24 = vsel %vm3890_vm11, %v20195_v40, %v20194_v53  ;;  %v20198_v19 = vrot.slane %v18372_v51, 2  ;;  %v20199_v49 = vrot.slane %v18355_v13, 2  ;;  %v9149_v40 = vrot.slane %v18523_v59, 2  ;;  %v18570_v29 = vld [vmem:[#allocation3 + $0x280] sm:$0xfc]  ;;  %v11349_v30 = vpop.f32.mrb[182].mxu1 }
 0x893   :  { %v18560_v21 = vsel %vm3890_vm11, %v20197_v15, %v20196_v3  ;;  %v18572_v45 = vld [vmem:[#allocation3 + $0x2a0] sm:$0x3]  ;;  %v11348_v50 = vadd.f32 %v11347_v48, %v11346_v11  ;;  %v20200_v37 = vrot.slane %v18386_v52, 2  ;;  %v20201_v63 = vrot.slane %v18374_v46, 2  ;;  %v18589_v3 = vld [vmem:[#allocation3 + $0x2c0] sm:$0xfc] }
 0x894   :  { %v18567_v53 = vsel %vm3890_vm11, %v20199_v49, %v20198_v19  ;;  %v18586_v13 = vsel %vm3890_vm11, %v9119_v60, %v9120_v23  ;;  %v9150_v59 = vrot.slane %v18525_v55, 2  ;;  %v18591_v11 = vld [vmem:[#allocation3 + $0x2e0] sm:$0x3]  ;;  %v11350_v32 = vpop.f32.mrb[183].mxu1  ;;  %v18594_v46 = vsel %vm3890_vm11, %v9131_v5, %v9132_v61  ;;  %v18599_v48 = vld [vmem:[#allocation3 + $0x290] sm:$0xfc] }
 0x895   :  { %v18579_v51 = vsel %vm3890_vm11, %v20201_v63, %v20200_v37  ;;  %v9143_v52 = vrot.slane %v18533_v56, 2  ;;  %v9144_v27 = vrot.slane %v18535_v17, 2  ;;  %v9155_v35 = vrot.slane %v18551_v47, 2  ;;  %v18603_v19 = vld [vmem:[#allocation3 + $0x2b0] sm:$0x3] }
 0x896   :  { %v6182_v60 = vadd.f32 %v11348_v50, %v11284_v20  ;;  %v11351_v23 = vadd.f32 %v11350_v32, %v11349_v30  ;;  %v9156_v55 = vrot.slane %v18553_v16, 2  ;;  %v9134_v15 = vrot.slane %v18570_v29, 2  ;;  %v18610_v47 = vld [vmem:[#allocation3 + $0x2d0] sm:$0xfc]  ;;  %v20202_v20 = vld [vmem:[#allocation20_spill] sm:$0xff]  ;;  %v11289_v29 = vpop.f32.mrb[185].mxu0 }
 0x897   :  { %v9324_v5 = vpack.c.bf16 %v18560_v21, %v18549_v24  ;;  %v9135_v61 = vrot.slane %v18572_v45, 2  ;;  %v9146_v56 = vrot.slane %v18589_v3, 2  ;;  %v9147_v17 = vrot.slane %v18591_v11, 2  ;;  %v18617_v50 = vld [vmem:[#allocation3 + $0x2f0] sm:$0x3]  ;;  %v11291_v30 = vpop.f32.mrb[186].mxu0 }
 0x898   :  { %9737 = vmatmul.mubr.bf16.vlgmr.msra.gmra.mrb[32].mxu1 %v9320_v28  ;;  %v18613_v49 = vadd.f32 %v6182_v60, %v20202_v20  ;;  %v6185_v16 = vadd.f32 %v11351_v23, %v11287_v31  ;;  %v9327_v28 = vpack.c.bf16 %v18579_v51, %v18567_v53  ;;  %v9140_v24 = vrot.slane %v18599_v48, 2  ;;  %v18620_v45 = vld [vmem:[#allocation3 + $0x308] sm:$0xfc]  ;;  %v18632_v53 = vld [vmem:[#allocation3 + $0x328] sm:$0x3]  ;;  %v20203_v51 = vld [vmem:[#allocation18_spill] sm:$0xff] }
 0x899   :  { %9744 = vmatprep.mubr.bf16.mxu1 %v9325_v0  ;;  %v11290_v21 = vadd.f32 %v11289_v29, %v11288_v62  ;;  %v9329_v37 = vpack.c.bf16 %v18594_v46, %v18586_v13  ;;  %v18629_v0 = vsel %vm3890_vm11, %v9110_v57, %v9111_v38  ;;  %v9141_v31 = vrot.slane %v18603_v19, 2  ;;  %v18634_v63 = vld [vmem:[#allocation3 + $0x348] sm:$0xfc]  ;;  %v11352_v60 = vpop.f32.mrb[184].mxu1  ;;  %v11292_v23 = vpop.f32.mrb[187].mxu0 }
 0x89a   :  { %v18637_v32 = vadd.f32 %v6185_v16, %v20203_v51  ;;  %v18644_v14 = vsel %vm3890_vm11, %v9122_v34, %v9123_v2  ;;  %v20204_v10 = vrot.slane %v18473_v42, 2  ;;  %v20205_v57 = vrot.slane %v18471_v6, 2  ;;  %v18660_v9 = vld [vmem:[#allocation3 + $0x368] sm:$0x3]  ;;  %v18662_v8 = vld [vmem:[#allocation3 + $0x318] sm:$0xfc] }
 0x89b   :  { %v20206_v13 = vrot.slane %v18495_v44, 2  ;;  %v20207_v46 = vrot.slane %v18493_v25, 2  ;;  %v11353_v34 = vpop.f32.mrb[185].mxu1  ;;  %v11293_v2 = vadd.f32 %v11292_v23, %v11291_v30  ;;  %v20208_v42 = vrot.slane %v18509_v1, 2  ;;  %v18675_v16 = vld [vmem:[#allocation3 + $0x338] sm:$0x3] }
 0x89c   :  { %v18651_v38 = vsel %vm3890_vm11, %v20205_v57, %v20204_v10  ;;  %v20209_v6 = vrot.slane %v18505_v26, 2  ;;  %v18672_v44 = vsel %vm3890_vm11, %v9149_v40, %v9150_v59  ;;  %v9152_v25 = vrot.slane %v18610_v47, 2  ;;  %v18677_v29 = vld [vmem:[#allocation3 + $0x358] sm:$0xfc]  ;;  %v11355_v10 = vpop.f32.mrb[186].mxu1 }
 0x89d   :  { %v18658_v62 = vsel %vm3890_vm11, %v20207_v46, %v20206_v13  ;;  %v11354_v51 = vadd.f32 %v11353_v34, %v11352_v60  ;;  %v20210_v30 = vpack.c.bf16 %v18500_v36, %v18490_v58  ;;  %v18683_v26 = vsel %vm3890_vm11, %v9143_v52, %v9144_v27  ;;  %v18689_v59 = vld [vmem:[#allocation3 + $0x378] sm:$0x3]  ;;  %v18691_v47 = vld [vmem:[#allocation3 + $0x300] sm:$0xfc]  ;;  %v11356_v23 = vpop.f32.mrb[187].mxu1 }
 0x89e   :  { %v18669_v20 = vsel %vm3890_vm11, %v20209_v6, %v20208_v42  ;;  %v18686_v1 = vsel %vm3890_vm11, %v9155_v35, %v9156_v55  ;;  %v9153_v40 = vrot.slane %v18617_v50, 2  ;;  %v18694_v60 = vsel %vm3890_vm11, %v9134_v15, %v9135_v61  ;;  %v18699_v27 = vld [vmem:[#allocation3 + $0x320] sm:$0x3]  ;;  %v18703_v13 = vld [vmem:[#allocation3 + $0x340] sm:$0xfc] }
 0x89f   :  { %9648 = vmatmul.mubr.bf16.gmra.mrb[36].mxu0 %v20210_v30  ;;  %v9161_v58 = vrot.slane %v18620_v45, 2  ;;  %v9162_v36 = vrot.slane %v18632_v53, 2  ;;  %v9173_v52 = vrot.slane %v18634_v63, 2  ;;  %v6190_v35 = vadd.f32 %v11354_v51, %v11290_v21  ;;  %v20211_v63 = vld [vmem:[#allocation21_spill] sm:$0xff]  ;;  %v18719_v34 = vld [vmem:[#allocation3 + $0x360] sm:$0x3] }
 0x8a0   :  { %9655 = vmatprep.mubr.bf16.mxu0 %v9327_v28  ;;  %v11357_v55 = vadd.f32 %v11356_v23, %v11355_v10  ;;  %v9174_v50 = vrot.slane %v18660_v9, 2  ;;  %v9167_v57 = vrot.slane %v18662_v8, 2  ;;  %9745 = vmatmul.mubr.bf16.gmra.mrb[36].mxu1 %v9324_v5  ;;  %v11294_v28 = vpop.f32.mrb[188].mxu0  ;;  %v9168_v15 = vrot.slane %v18675_v16, 2  ;;  %v18722_v6 = vld [vmem:[#allocation3 + $0x310] sm:$0xfc] }
 0x8a1   :  { %v9179_v61 = vrot.slane %v18677_v29, 2  ;;  %v9180_v45 = vrot.slane %v18689_v59, 2  ;;  %v9158_v53 = vrot.slane %v18691_v47, 2  ;;  %v18710_v46 = vadd.f32 %v6190_v35, %v20211_v63  ;;  %9752 = vmatprep.mubr.bf16.mxu1 %v9329_v37  ;;  %v11295_v9 = vpop.f32.mrb[189].mxu0  ;;  %v18729_v3 = vld [vmem:[#allocation3 + $0x330] sm:$0x3] }
 0x8a2   :  { %v6193_v21 = vadd.f32 %v11357_v55, %v11293_v2  ;;  %v18717_v5 = vsel %vm3890_vm11, %v9146_v56, %v9147_v17  ;;  %v9159_v42 = vrot.slane %v18699_v27, 2  ;;  %v11296_v51 = vadd.f32 %v11295_v9, %v11294_v28  ;;  %v11297_v10 = vpop.f32.mrb[190].mxu0  ;;  %v18731_v56 = vld [vmem:[#allocation3 + $0x350] sm:$0xfc]  ;;  %v20212_v17 = vld [vmem:[#allocation25_spill] sm:$0xff]  ;;  %v11358_v23 = vpop.f32.mrb[188].mxu1 }
 0x8a3   :  { %v9326_v2 = vpack.c.bf16 %v18644_v14, %v18629_v0  ;;  %v9328_v37 = vpack.c.bf16 %v18658_v62, %v18651_v38  ;;  %v9170_v11 = vrot.slane %v18703_v13, 2  ;;  %v11298_v35 = vpop.f32.mrb[191].mxu0  ;;  %v9331_v55 = vpack.c.bf16 %v18672_v44, %v18669_v20  ;;  %v8884_v38 = vld [vmem:[#allocation3 + $0x370] sm:$0x3]  ;;  %v18748_v62 = vld [vmem:[#allocation3 + $0x388] sm:$0xfc] }
 0x8a4   :  { %v18734_v30 = vadd.f32 %v6193_v21, %v20212_v17  ;;  %v18743_v0 = vsel %vm3890_vm11, %v9140_v24, %v9141_v31  ;;  %v18746_v14 = vsel %vm3890_vm11, %v9152_v25, %v9153_v40  ;;  %v11359_v28 = vpop.f32.mrb[189].mxu1  ;;  %v11299_v63 = vadd.f32 %v11298_v35, %v11297_v10  ;;  %v18755_v48 = vld [vmem:[#allocation3 + $0x3a8] sm:$0x3]  ;;  %v18757_v24 = vld [vmem:[#allocation3 + $0x3c8] sm:$0xfc] }
 0x8a5   :  { %v9333_v21 = vpack.c.bf16 %v18686_v1, %v18683_v26  ;;  %v9330_v20 = vpack.c.bf16 %v18717_v5, %v18694_v60  ;;  %v9171_v19 = vrot.slane %v18719_v34, 2  ;;  %v11360_v31 = vadd.f32 %v11359_v28, %v11358_v23  ;;  %v11361_v44 = vpop.f32.mrb[190].mxu1  ;;  %v8899_v10 = vld [vmem:[#allocation3 + $0x3e8] sm:$0x3]  ;;  %v18762_v26 = vld [vmem:[#allocation3 + $0x398] sm:$0xfc] }
 0x8a6   :  { %v9163_v25 = vsel %vm3890_vm11, %v9161_v58, %v9162_v36  ;;  %v9175_v40 = vsel %vm3890_vm11, %v9173_v52, %v9174_v50  ;;  %v9164_v9 = vrot.slane %v18722_v6, 2  ;;  %v11362_v1 = vpop.f32.mrb[191].mxu1  ;;  %v9165_v5 = vrot.slane %v18729_v3, 2  ;;  %v18772_v6 = vld [vmem:[#allocation3 + $0x3d8] sm:$0xfc]  ;;  %v11380_v23 = vpop.f32.mrb[192].mxu0 }
 0x8a7   :  { %9656 = vmatmul.mubr.bf16.gmra.mrb[40].mxu0 %v9326_v2  ;;  %v9176_v34 = vrot.slane %v18731_v56, 2  ;;  %v9177_v17 = vrot.slane %v8884_v38, 2  ;;  %v18768_v2 = vld [vmem:[#allocation3 + $0x3b8] sm:$0x3]  ;;  %v6198_v58 = vadd.f32 %v11360_v31, %v11296_v51  ;;  %v11363_v36 = vadd.f32 %v11362_v1, %v11361_v44  ;;  %v20213_v38 = vld [vmem:[#allocation26_spill] sm:$0xff]  ;;  %v11444_v59 = vpop.f32.mrb[192].mxu1 }
 0x8a8   :  { %9663 = vmatprep.mubr.bf16.mxu0 %v9331_v55  ;;  %v9185_v52 = vrot.slane %v18748_v62, 2  ;;  %v9186_v50 = vrot.slane %v18755_v48, 2  ;;  %9753 = vmatmul.mubr.bf16.gmra.mrb[40].mxu1 %v9328_v37  ;;  %v9335_v35 = vpack.c.bf16 %v9175_v40, %v9163_v25  ;;  %v9197_v55 = vrot.slane %v18757_v24, 2  ;;  %v18775_v3 = vld [vmem:[#allocation3 + $0x3f8] sm:$0x3]  ;;  %v11381_v62 = vpop.f32.mrb[193].mxu0 }
 0x8a9   :  { %v9198_v28 = vrot.slane %v8899_v10, 2  ;;  %v9191_v56 = vrot.slane %v18762_v26, 2  ;;  %v18779_v60 = vadd.f32 %v6198_v58, %v20213_v38  ;;  %v6201_v51 = vadd.f32 %v11363_v36, %v11299_v63  ;;  %9760 = vmatprep.mubr.bf16.mxu1 %v9333_v21  ;;  %v18787_v24 = vld [vmem:[#allocation3 + $0x380] sm:$0xfc]  ;;  %v18789_v31 = vld [vmem:[#allocation3 + $0x3a0] sm:$0x3] }
 0x8aa   :  { %v9169_v37 = vsel %vm3890_vm11, %v9167_v57, %v9168_v15  ;;  %v9192_v48 = vrot.slane %v18768_v2, 2  ;;  %v11382_v44 = vadd.f32 %v11381_v62, %v11380_v23  ;;  %v11383_v25 = vpop.f32.mrb[194].mxu0  ;;  %v9181_v63 = vsel %vm3890_vm11, %v9179_v61, %v9180_v45  ;;  %v18804_v57 = vld [vmem:[#allocation3 + $0x3c0] sm:$0xfc]  ;;  %v18806_v15 = vld [vmem:[#allocation3 + $0x3e0] sm:$0x3] }
 0x8ab   :  { %v18801_v8 = vsel %vm3890_vm11, %v9158_v53, %v9159_v42  ;;  %v9203_v16 = vrot.slane %v18772_v6, 2  ;;  %v20214_v21 = vld [vmem:[#allocation28_spill] sm:$0xff]  ;;  %v11384_v29 = vpop.f32.mrb[195].mxu0  ;;  %v18814_v27 = vsel %vm3890_vm11, %v9170_v11, %v9171_v19  ;;  %v18817_v47 = vsel %vm3890_vm11, %v9164_v9, %v9165_v5  ;;  %v18822_v45 = vld [vmem:[#allocation3 + $0x390] sm:$0xfc]  ;;  %v11445_v42 = vpop.f32.mrb[193].mxu1 }
 0x8ac   :  { %v18809_v40 = vadd.f32 %v6201_v51, %v20214_v21  ;;  %v18820_v61 = vsel %vm3890_vm11, %v9176_v34, %v9177_v17  ;;  %v18824_v53 = vld [vmem:[#allocation3 + $0x3b0] sm:$0x3]  ;;  %v11385_v10 = vadd.f32 %v11384_v29, %v11383_v25  ;;  %v9204_v1 = vrot.slane %v18775_v3, 2  ;;  %v18829_v11 = vld [vmem:[#allocation3 + $0x3d0] sm:$0xfc]  ;;  %v11447_v9 = vpop.f32.mrb[194].mxu1 }
 0x8ad   :  { %v9182_v2 = vrot.slane %v18787_v24, 2  ;;  %v9183_v13 = vrot.slane %v18789_v31, 2  ;;  %v11446_v19 = vadd.f32 %v11445_v42, %v11444_v59  ;;  %v9187_v5 = vsel %vm3890_vm11, %v9185_v52, %v9186_v50  ;;  %v8900_v58 = vld [vmem:[#allocation3 + $0x3f0] sm:$0x3]  ;;  %v8903_v36 = vld [vmem:[#allocation3 + $0x408] sm:$0xfc] }
 0x8ae   :  { %v9199_v34 = vsel %vm3890_vm11, %v9197_v55, %v9198_v28  ;;  %v9194_v17 = vrot.slane %v18804_v57, 2  ;;  %v11448_v23 = vpop.f32.mrb[195].mxu1  ;;  %v9337_v3 = vpack.c.bf16 %v9181_v63, %v9169_v37  ;;  %v9195_v38 = vrot.slane %v18806_v15, 2  ;;  %v8907_v24 = vld [vmem:[#allocation3 + $0x428] sm:$0x3]  ;;  %v11386_v37 = vpop.f32.mrb[196].mxu0 }
 0x8af   :  { %9664 = vmatmul.mubr.bf16.gmra.mrb[44].mxu0 %v9330_v20  ;;  %v9188_v51 = vrot.slane %v18822_v45, 2  ;;  %v9189_v62 = vrot.slane %v18824_v53, 2  ;;  %v7153_v31 = vadd.f32 %v11446_v19, %v11382_v44  ;;  %v11449_v20 = vadd.f32 %v11448_v23, %v11447_v9  ;;  %v8911_v55 = vld [vmem:[#allocation3 + $0x448] sm:$0xfc]  ;;  %v8915_v28 = vld [vmem:[#allocation3 + $0x468] sm:$0x3] }
 0x8b0   :  { %9671 = vmatprep.mubr.bf16.mxu0 %v9335_v35  ;;  %v9334_v52 = vpack.c.bf16 %v18814_v27, %v18801_v8  ;;  %v9336_v50 = vpack.c.bf16 %v18820_v61, %v18817_v47  ;;  %v8905_v25 = vld [vmem:[#allocation3 + $0x418] sm:$0xfc]  ;;  %v20215_v35 = vpack.c.bf16 %v18746_v14, %v18743_v0  ;;  %v9339_v63 = vpack.c.bf16 %v9199_v34, %v9187_v5  ;;  %v8909_v21 = vld [vmem:[#allocation3 + $0x438] sm:$0x3]  ;;  %v11387_v29 = vpop.f32.mrb[197].mxu0 }
 0x8b1   :  { %v9200_v57 = vrot.slane %v18829_v11, 2  ;;  %v9201_v15 = vrot.slane %v8900_v58, 2  ;;  %v9209_v44 = vrot.slane %v8903_v36, 2  ;;  %v18846_v59 = vadd.f32 %v7153_v31, %v18093_v54  ;;  %v8913_v0 = vld [vmem:[#allocation3 + $0x458] sm:$0xfc]  ;;  %v11389_v45 = vpop.f32.mrb[198].mxu0 }
 0x8b2   :  { %9761 = vmatmul.mubr.bf16.gmra.mrb[44].mxu1 %v20215_v35  ;;  %v7156_v8 = vadd.f32 %v11449_v20, %v11385_v10  ;;  %v9193_v27 = vsel %vm3890_vm11, %v9191_v56, %v9192_v48  ;;  %v9210_v47 = vrot.slane %v8907_v24, 2  ;;  %v8917_v14 = vld [vmem:[#allocation3 + $0x478] sm:$0x3]  ;;  %v11388_v61 = vadd.f32 %v11387_v29, %v11386_v37  ;;  %v18851_v19 = vld [vmem:[#allocation3 + $0x400] sm:$0xfc]  ;;  %v11450_v10 = vpop.f32.mrb[196].mxu1 }
 0x8b3   :  { %9768 = vmatprep.mubr.bf16.mxu1 %v9337_v3  ;;  %v9221_v53 = vrot.slane %v8911_v55, 2  ;;  %v9222_v42 = vrot.slane %v8915_v28, 2  ;;  %v9215_v11 = vrot.slane %v8905_v25, 2  ;;  %v11390_v9 = vpop.f32.mrb[199].mxu0  ;;  %v9205_v26 = vsel %vm3890_vm11, %v9203_v16, %v9204_v1  ;;  %v18865_v5 = vld [vmem:[#allocation3 + $0x420] sm:$0x3] }
 0x8b4   :  { %v18854_v54 = vadd.f32 %v7156_v8, %v18111_v41  ;;  %v18860_v56 = vsel %vm3890_vm11, %v9182_v2, %v9183_v13  ;;  %v18863_v48 = vsel %vm3890_vm11, %v9194_v17, %v9195_v38  ;;  %v18867_v34 = vld [vmem:[#allocation3 + $0x440] sm:$0xfc]  ;;  %v11451_v58 = vpop.f32.mrb[197].mxu1  ;;  %v11391_v36 = vadd.f32 %v11390_v9, %v11389_v45  ;;  %v8914_v2 = vld [vmem:[#allocation3 + $0x460] sm:$0x3] }
 0x8b5   :  { %v9216_v41 = vrot.slane %v8909_v21, 2  ;;  %v9227_v23 = vrot.slane %v8913_v0, 2  ;;  %v9228_v3 = vrot.slane %v8917_v14, 2  ;;  %v11452_v24 = vadd.f32 %v11451_v58, %v11450_v10  ;;  %v11453_v31 = vpop.f32.mrb[198].mxu1  ;;  %v8919_v55 = vld [vmem:[#allocation3 + $0x488] sm:$0xfc] }
 0x8b6   :  { %v18870_v6 = vsel %vm3890_vm11, %v9188_v51, %v9189_v62  ;;  %v18873_v16 = vsel %vm3890_vm11, %v9200_v57, %v9201_v15  ;;  %v18876_v1 = vsel %vm3890_vm11, %v9209_v44, %v9210_v47  ;;  %v11454_v13 = vpop.f32.mrb[199].mxu1  ;;  %v9223_v17 = vsel %vm3890_vm11, %v9221_v53, %v9222_v42  ;;  %v18884_v35 = vld [vmem:[#allocation3 + $0x410] sm:$0xfc]  ;;  %v8923_v37 = vld [vmem:[#allocation3 + $0x4a8] sm:$0x3]  ;;  %v11392_v15 = vpop.f32.mrb[200].mxu0 }
 0x8b7   :  { %9672 = vmatmul.mubr.bf16.gmra.mrb[48].mxu0 %v9334_v52  ;;  %v9206_v38 = vrot.slane %v18851_v19, 2  ;;  %v9207_v20 = vrot.slane %v18865_v5, 2  ;;  %v9218_v52 = vrot.slane %v18867_v34, 2  ;;  %v7161_v51 = vadd.f32 %v11452_v24, %v11388_v61  ;;  %v8927_v57 = vld [vmem:[#allocation3 + $0x4c8] sm:$0xfc]  ;;  %v11393_v45 = vpop.f32.mrb[201].mxu0 }
 0x8b8   :  { %9679 = vmatprep.mubr.bf16.mxu0 %v9339_v63  ;;  %v11455_v62 = vadd.f32 %v11454_v13, %v11453_v31  ;;  %v9341_v28 = vpack.c.bf16 %v9205_v26, %v9193_v27  ;;  %v9338_v25 = vpack.c.bf16 %v18863_v48, %v18860_v56  ;;  %v8931_v63 = vld [vmem:[#allocation3 + $0x4e8] sm:$0x3]  ;;  %v9340_v44 = vpack.c.bf16 %v18873_v16, %v18870_v6  ;;  %v18890_v47 = vld [vmem:[#allocation3 + $0x430] sm:$0x3]  ;;  %v8921_v27 = vld [vmem:[#allocation3 + $0x498] sm:$0xfc] }
 0x8b9   :  { %v9217_v21 = vsel %vm3890_vm11, %v9215_v11, %v9216_v41  ;;  %v9229_v8 = vsel %vm3890_vm11, %v9227_v23, %v9228_v3  ;;  %v9219_v29 = vrot.slane %v8914_v2, 2  ;;  %v8925_v0 = vld [vmem:[#allocation3 + $0x4b8] sm:$0x3]  ;;  %v18893_v14 = vadd.f32 %v7161_v51, %v18189_v4  ;;  %v18896_v53 = vld [vmem:[#allocation3 + $0x450] sm:$0xfc]  ;;  %v11395_v9 = vpop.f32.mrb[202].mxu0 }
 0x8ba   :  { %9769 = vmatmul.mubr.bf16.gmra.mrb[48].mxu1 %v9336_v50  ;;  %v7164_v61 = vadd.f32 %v11455_v62, %v11391_v36  ;;  %v9343_v50 = vpack.c.bf16 %v9223_v17, %v18876_v1  ;;  %v9233_v42 = vrot.slane %v8919_v55, 2  ;;  %v8929_v19 = vld [vmem:[#allocation3 + $0x4d8] sm:$0xfc]  ;;  %v8933_v11 = vld [vmem:[#allocation3 + $0x4f8] sm:$0x3]  ;;  %v11394_v10 = vadd.f32 %v11393_v45, %v11392_v15  ;;  %v11456_v4 = vpop.f32.mrb[200].mxu1 }
 0x8bb   :  { %9776 = vmatprep.mubr.bf16.mxu1 %v9341_v28  ;;  %v8916_v26 = vld [vmem:[#allocation3 + $0x470] sm:$0x3]  ;;  %v9234_v56 = vrot.slane %v8923_v37, 2  ;;  %v9245_v48 = vrot.slane %v8927_v57, 2  ;;  %v9246_v5 = vrot.slane %v8931_v63, 2  ;;  %v11396_v58 = vpop.f32.mrb[203].mxu0  ;;  %v9345_v36 = vpack.c.bf16 %v9229_v8, %v9217_v21 }
 0x8bc   :  { %v18899_v34 = vadd.f32 %v7164_v61, %v18201_v7  ;;  %v9239_v41 = vrot.slane %v8921_v27, 2  ;;  %v9240_v23 = vrot.slane %v8925_v0, 2  ;;  %v8918_v3 = vld [vmem:[#allocation3 + $0x480] sm:$0xfc]  ;;  %v11457_v24 = vpop.f32.mrb[201].mxu1  ;;  %v11397_v31 = vadd.f32 %v11396_v58, %v11395_v9 }
 0x8bd   :  { %v9212_v6 = vrot.slane %v18884_v35, 2  ;;  %v9251_v16 = vrot.slane %v8929_v19, 2  ;;  %v9252_v1 = vrot.slane %v8933_v11, 2  ;;  %v8922_v2 = vld [vmem:[#allocation3 + $0x4a0] sm:$0x3]  ;;  %v11458_v13 = vadd.f32 %v11457_v24, %v11456_v4  ;;  %v11459_v17 = vpop.f32.mrb[202].mxu1 }
 0x8be   :  { %v9208_v55 = vsel %vm3890_vm11, %v9206_v38, %v9207_v20  ;;  %v9220_v7 = vsel %vm3890_vm11, %v9218_v52, %v9219_v29  ;;  %v9213_v51 = vrot.slane %v18890_v47, 2  ;;  %v8926_v62 = vld [vmem:[#allocation3 + $0x4c0] sm:$0xfc]  ;;  %v8930_v28 = vld [vmem:[#allocation3 + $0x4e0] sm:$0x3]  ;;  %v11460_v37 = vpop.f32.mrb[203].mxu1  ;;  %v9235_v35 = vsel %vm3890_vm11, %v9233_v42, %v9234_v56 }
 0x8bf   :  { %9680 = vmatmul.mubr.bf16.gmra.mrb[52].mxu0 %v9338_v25  ;;  %v9224_v57 = vrot.slane %v18896_v53, 2  ;;  %v9225_v63 = vrot.slane %v8916_v26, 2  ;;  %v9247_v15 = vsel %vm3890_vm11, %v9245_v48, %v9246_v5  ;;  %v7169_v21 = vadd.f32 %v11458_v13, %v11394_v10  ;;  %v11398_v20 = vpop.f32.mrb[204].mxu0  ;;  %v8924_v53 = vld [vmem:[#allocation3 + $0x4b0] sm:$0x3]  ;;  %v11462_v56 = vpop.f32.mrb[204].mxu1 }
 0x8c0   :  { %9687 = vmatprep.mubr.bf16.mxu0 %v9343_v50  ;;  %v11461_v8 = vadd.f32 %v11460_v37, %v11459_v17  ;;  %v9241_v25 = vsel %vm3890_vm11, %v9239_v41, %v9240_v23  ;;  %v9230_v38 = vrot.slane %v8918_v3, 2  ;;  %v9253_v52 = vsel %vm3890_vm11, %v9251_v16, %v9252_v1  ;;  %v11399_v45 = vpop.f32.mrb[205].mxu0  ;;  %v8920_v50 = vld [vmem:[#allocation3 + $0x490] sm:$0xfc]  ;;  %v11463_v58 = vpop.f32.mrb[205].mxu1 }
 0x8c1   :  { %v9231_v29 = vrot.slane %v8922_v2, 2  ;;  %v9242_v47 = vrot.slane %v8926_v62, 2  ;;  %v9243_v27 = vrot.slane %v8930_v28, 2  ;;  %v18911_v0 = vadd.f32 %v7169_v21, %v18312_v22  ;;  %v11401_v19 = vpop.f32.mrb[206].mxu0  ;;  %v8928_v9 = vld [vmem:[#allocation3 + $0x4d0] sm:$0xfc] }
 0x8c2   :  { %9777 = vmatmul.mubr.bf16.gmra.mrb[52].mxu1 %v9340_v44  ;;  %v7172_v61 = vadd.f32 %v11461_v8, %v11397_v31  ;;  %v11400_v42 = vadd.f32 %v11399_v45, %v11398_v20  ;;  %v9342_v11 = vpack.c.bf16 %v9220_v7, %v9208_v55  ;;  %v9347_v10 = vpack.c.bf16 %v9247_v15, %v9235_v35  ;;  %v8932_v44 = vld [vmem:[#allocation3 + $0x4f0] sm:$0x3]  ;;  %v11402_v48 = vpop.f32.mrb[207].mxu0  ;;  %v11465_v31 = vpop.f32.mrb[206].mxu1 }
 0x8c3   :  { %9784 = vmatprep.mubr.bf16.mxu1 %v9345_v36  ;;  %v9214_v5 = vsel %vm3890_vm11, %v9212_v6, %v9213_v51  ;;  %v9226_v22 = vsel %vm3890_vm11, %v9224_v57, %v9225_v63  ;;  %v9349_v4 = vpack.c.bf16 %v9253_v52, %v9241_v25  ;;  %v11403_v36 = vadd.f32 %v11402_v48, %v11401_v19  ;;  %v11466_v2 = vpop.f32.mrb[207].mxu1  ;;  %v11404_v55 = vpop.f32.mrb[208].mxu0 }
 0x8c4   :  { %v18914_v26 = vadd.f32 %v7172_v61, %v18331_v39  ;;  %v9232_v41 = vsel %vm3890_vm11, %v9230_v38, %v9231_v29  ;;  %v9244_v23 = vsel %vm3890_vm11, %v9242_v47, %v9243_v27  ;;  %v9236_v3 = vrot.slane %v8920_v50, 2  ;;  %v11405_v28 = vpop.f32.mrb[209].mxu0  ;;  %v11468_v21 = vpop.f32.mrb[208].mxu1 }
 0x8c5   :  { %v11464_v24 = vadd.f32 %v11463_v58, %v11462_v56  ;;  %v9237_v16 = vrot.slane %v8924_v53, 2  ;;  %v9248_v39 = vrot.slane %v8928_v9, 2  ;;  %v9249_v1 = vrot.slane %v8932_v44, 2  ;;  %v11407_v35 = vpop.f32.mrb[210].mxu0  ;;  %v11469_v25 = vpop.f32.mrb[209].mxu1 }
 0x8c6   :  { %v9344_v13 = vpack.c.bf16 %v9226_v22, %v9214_v5  ;;  %v11467_v17 = vadd.f32 %v11466_v2, %v11465_v31  ;;  %v9346_v7 = vpack.c.bf16 %v9244_v23, %v9232_v41  ;;  %v11406_v63 = vadd.f32 %v11405_v28, %v11404_v55  ;;  %v11408_v8 = vpop.f32.mrb[211].mxu0 }
 0x8c7   :  { %9688 = vmatmul.mubr.bf16.gmra.mrb[56].mxu0 %v9342_v11  ;;  %v7177_v6 = vadd.f32 %v11464_v24, %v11400_v42  ;;  %v9238_v37 = vsel %vm3890_vm11, %v9236_v3, %v9237_v16  ;;  %v9250_v57 = vsel %vm3890_vm11, %v9248_v39, %v9249_v1  ;;  %v11409_v38 = vadd.f32 %v11408_v8, %v11407_v35  ;;  %v11410_v61 = vpop.f32.mrb[212].mxu0 }
 0x8c8   :  { %9695 = vmatprep.mubr.bf16.mxu0 %v9347_v10  ;;  %v7180_v62 = vadd.f32 %v11467_v17, %v11403_v36  ;;  %v9348_v20 = vpack.c.bf16 %v9250_v57, %v9238_v37  ;;  %v11470_v52 = vadd.f32 %v11469_v25, %v11468_v21  ;;  %v11411_v53 = vpop.f32.mrb[213].mxu0 }
 0x8c9   :  { %v18921_v51 = vadd.f32 %v7177_v6, %v18400_v12  ;;  %v11471_v12 = vpop.f32.mrb[210].mxu1  ;;  %v11413_v42 = vpop.f32.mrb[214].mxu0 }
 0x8ca   :  { %9785 = vmatmul.mubr.bf16.gmra.mrb[56].mxu1 %v9344_v13  ;;  %v18926_v15 = vadd.f32 %v7180_v62, %v18429_v33  ;;  %v11472_v29 = vpop.f32.mrb[211].mxu1  ;;  %v7185_v47 = vadd.f32 %v11470_v52, %v11406_v63  ;;  %v11412_v33 = vadd.f32 %v11411_v53, %v11410_v61  ;;  %v11414_v10 = vpop.f32.mrb[215].mxu0 }
 0x8cb   :  { %9792 = vmatprep.mubr.bf16.mxu1 %v9349_v4  ;;  %v11473_v27 = vadd.f32 %v11472_v29, %v11471_v12  ;;  %v11474_v11 = vpop.f32.mrb[212].mxu1  ;;  %v11415_v44 = vadd.f32 %v11414_v10, %v11413_v42  ;;  %v11416_v58 = vpop.f32.mrb[216].mxu0 }
 0x8cc   :  { %v18929_v45 = vadd.f32 %v7185_v47, %v18519_v18  ;;  %v11475_v9 = vpop.f32.mrb[213].mxu1  ;;  %v11417_v41 = vpop.f32.mrb[217].mxu0 }
 0x8cd   :  { %v7188_v50 = vadd.f32 %v11473_v27, %v11409_v38  ;;  %v11476_v56 = vadd.f32 %v11475_v9, %v11474_v11  ;;  %v11477_v48 = vpop.f32.mrb[214].mxu1  ;;  %v11418_v23 = vadd.f32 %v11417_v41, %v11416_v58  ;;  %v11419_v3 = vpop.f32.mrb[218].mxu0 }
 0x8ce   :  { %v11478_v5 = vpop.f32.mrb[215].mxu1  ;;  %v11420_v31 = vpop.f32.mrb[219].mxu0 }
 0x8cf   :  { %9696 = vmatmul.mubr.bf16.gmra.mrb[60].mxu0 %v9346_v7  ;;  %v18932_v19 = vadd.f32 %v7188_v50, %v18538_v43  ;;  %v7193_v22 = vadd.f32 %v11476_v56, %v11412_v33  ;;  %v11479_v4 = vadd.f32 %v11478_v5, %v11477_v48  ;;  %v11480_v24 = vpop.f32.mrb[216].mxu1  ;;  %v11421_v39 = vadd.f32 %v11420_v31, %v11419_v3  ;;  %v11422_v55 = vpop.f32.mrb[220].mxu0 }
 0x8d0   :  { %v11481_v16 = vpop.f32.mrb[217].mxu1  ;;  %v11423_v62 = vpop.f32.mrb[221].mxu0 }
 0x8d1   :  { %v18935_v18 = vadd.f32 %v7193_v22, %v18613_v49  ;;  %v7196_v36 = vadd.f32 %v11479_v4, %v11415_v44  ;;  %v11482_v1 = vadd.f32 %v11481_v16, %v11480_v24  ;;  %v11483_v2 = vpop.f32.mrb[218].mxu1  ;;  %v11424_v28 = vadd.f32 %v11423_v62, %v11422_v55  ;;  %v11425_v37 = vpop.f32.mrb[222].mxu0 }
 0x8d2   :  { %9793 = vmatmul.mubr.bf16.gmra.mrb[60].mxu1 %v9348_v20  ;;  %v11484_v13 = vpop.f32.mrb[219].mxu1  ;;  %v11426_v63 = vpop.f32.mrb[223].mxu0 }
 0x8d3   :  { %v18938_v43 = vadd.f32 %v7196_v36, %v18637_v32  ;;  %v7201_v6 = vadd.f32 %v11482_v1, %v11418_v23  ;;  %v11485_v17 = vadd.f32 %v11484_v13, %v11483_v2  ;;  %v11486_v57 = vpop.f32.mrb[220].mxu1  ;;  %v11427_v21 = vadd.f32 %v11426_v63, %v11425_v37  ;;  %v11508_v12 = vpop.f32.mrb[224].mxu0 }
 0x8d4   :  { %v11487_v35 = vpop.f32.mrb[221].mxu1  ;;  %v11509_v47 = vpop.f32.mrb[225].mxu0 }
 0x8d5   :  { %v18941_v49 = vadd.f32 %v7201_v6, %v18710_v46  ;;  %v7204_v7 = vadd.f32 %v11485_v17, %v11421_v39  ;;  %v11488_v8 = vadd.f32 %v11487_v35, %v11486_v57  ;;  %v11489_v25 = vpop.f32.mrb[222].mxu1  ;;  %v11510_v27 = vadd.f32 %v11509_v47, %v11508_v12  ;;  %v11511_v61 = vpop.f32.mrb[226].mxu0 }
 0x8d6   :  { %v11490_v38 = vpop.f32.mrb[223].mxu1  ;;  %v11512_v53 = vpop.f32.mrb[227].mxu0 }
 0x8d7   :  { %v18944_v32 = vadd.f32 %v7204_v7, %v18734_v30  ;;  %v7209_v20 = vadd.f32 %v11488_v8, %v11424_v28  ;;  %v11491_v52 = vadd.f32 %v11490_v38, %v11489_v25  ;;  %v11572_v50 = vpop.f32.mrb[224].mxu1  ;;  %v11513_v42 = vadd.f32 %v11512_v53, %v11511_v61 }
 0x8d8   :  { %v11573_v33 = vpop.f32.mrb[225].mxu1 }
 0x8d9   :  { %v18947_v46 = vadd.f32 %v7209_v20, %v18779_v60  ;;  %v7212_v29 = vadd.f32 %v11491_v52, %v11427_v21  ;;  %v11574_v11 = vadd.f32 %v11573_v33, %v11572_v50  ;;  %v11575_v10 = vpop.f32.mrb[226].mxu1 }
 0x8da   :  { %v11576_v9 = vpop.f32.mrb[227].mxu1  ;;  %v11514_v48 = vpop.f32.mrb[228].mxu0 }
 0x8db   :  { %v18950_v30 = vadd.f32 %v7212_v29, %v18809_v40  ;;  %v7717_v44 = vadd.f32 %v11574_v11, %v11510_v27  ;;  %v11577_v56 = vadd.f32 %v11576_v9, %v11575_v10  ;;  %v11515_v22 = vpop.f32.mrb[229].mxu0 }
 0x8dc   :  { %v11516_v4 = vadd.f32 %v11515_v22, %v11514_v48  ;;  %v11517_v58 = vpop.f32.mrb[230].mxu0  ;;  %v11578_v36 = vpop.f32.mrb[228].mxu1 }
 0x8dd   :  { %v18953_v60 = vadd.f32 %v7717_v44, %v18846_v59  ;;  %v7720_v5 = vadd.f32 %v11577_v56, %v11513_v42  ;;  %v11518_v41 = vpop.f32.mrb[231].mxu0  ;;  %v11579_v23 = vpop.f32.mrb[229].mxu1 }
 0x8de   :  { %v11519_v3 = vadd.f32 %v11518_v41, %v11517_v58  ;;  %v11580_v24 = vadd.f32 %v11579_v23, %v11578_v36  ;;  %v11581_v31 = vpop.f32.mrb[230].mxu1 }
 0x8df   :  { %v18956_v40 = vadd.f32 %v7720_v5, %v18854_v54  ;;  %v11582_v16 = vpop.f32.mrb[231].mxu1 }
 0x8e0   :  { %v7725_v39 = vadd.f32 %v11580_v24, %v11516_v4  ;;  %v11583_v1 = vadd.f32 %v11582_v16, %v11581_v31 }
 0x8e2   :  { %v11520_v2 = vpop.f32.mrb[232].mxu0  ;;  %v18959_v59 = vadd.f32 %v7725_v39, %v18893_v14  ;;  %v7728_v13 = vadd.f32 %v11583_v1, %v11519_v3 }
 0x8e3   :  { %v11521_v6 = vpop.f32.mrb[233].mxu0 }
 0x8e4   :  { %v11522_v17 = vadd.f32 %v11521_v6, %v11520_v2  ;;  %v11523_v55 = vpop.f32.mrb[234].mxu0  ;;  %v18962_v54 = vadd.f32 %v7728_v13, %v18899_v34  ;;  %v11584_v7 = vpop.f32.mrb[232].mxu1 }
 0x8e5   :  { %v11524_v62 = vpop.f32.mrb[235].mxu0  ;;  %v11585_v28 = vpop.f32.mrb[233].mxu1 }
 0x8e6   :  { %v11525_v37 = vadd.f32 %v11524_v62, %v11523_v55  ;;  %v11586_v57 = vadd.f32 %v11585_v28, %v11584_v7  ;;  %v11587_v63 = vpop.f32.mrb[234].mxu1 }
 0x8e7   :  { %v11588_v35 = vpop.f32.mrb[235].mxu1 }
 0x8e8   :  { %v7733_v21 = vadd.f32 %v11586_v57, %v11522_v17  ;;  %v11589_v8 = vadd.f32 %v11588_v35, %v11587_v63 }
 0x8ea   :  { %v11526_v25 = vpop.f32.mrb[236].mxu0  ;;  %v18965_v14 = vadd.f32 %v7733_v21, %v18911_v0  ;;  %v7736_v38 = vadd.f32 %v11589_v8, %v11525_v37 }
 0x8eb   :  { %v11527_v20 = vpop.f32.mrb[237].mxu0 }
 0x8ec   :  { %v11528_v52 = vadd.f32 %v11527_v20, %v11526_v25  ;;  %v11529_v12 = vpop.f32.mrb[238].mxu0  ;;  %v18968_v34 = vadd.f32 %v7736_v38, %v18914_v26  ;;  %v11590_v29 = vpop.f32.mrb[236].mxu1 }
 0x8ed   :  { %v11530_v47 = vpop.f32.mrb[239].mxu0  ;;  %v11591_v27 = vpop.f32.mrb[237].mxu1 }
 0x8ee   :  { %v11531_v61 = vadd.f32 %v11530_v47, %v11529_v12  ;;  %v11592_v50 = vadd.f32 %v11591_v27, %v11590_v29  ;;  %v11593_v53 = vpop.f32.mrb[238].mxu1 }
 0x8ef   :  { %v11594_v33 = vpop.f32.mrb[239].mxu1 }
 0x8f0   :  { %v7741_v42 = vadd.f32 %v11592_v50, %v11528_v52  ;;  %v11595_v11 = vadd.f32 %v11594_v33, %v11593_v53 }
 0x8f2   :  { %v11532_v10 = vpop.f32.mrb[240].mxu0  ;;  %v18971_v0 = vadd.f32 %v7741_v42, %v18921_v51  ;;  %v7744_v9 = vadd.f32 %v11595_v11, %v11531_v61 }
 0x8f3   :  { %v11533_v44 = vpop.f32.mrb[241].mxu0 }
 0x8f4   :  { %v11534_v56 = vadd.f32 %v11533_v44, %v11532_v10  ;;  %v11535_v48 = vpop.f32.mrb[242].mxu0  ;;  %v18974_v26 = vadd.f32 %v7744_v9, %v18926_v15  ;;  %v11596_v5 = vpop.f32.mrb[240].mxu1 }
 0x8f5   :  { %v11536_v22 = vpop.f32.mrb[243].mxu0  ;;  %v11597_v4 = vpop.f32.mrb[241].mxu1 }
 0x8f6   :  { %v11537_v58 = vadd.f32 %v11536_v22, %v11535_v48  ;;  %v11598_v36 = vadd.f32 %v11597_v4, %v11596_v5  ;;  %v11599_v41 = vpop.f32.mrb[242].mxu1 }
 0x8f7   :  { %v11600_v23 = vpop.f32.mrb[243].mxu1 }
 0x8f8   :  { %v7749_v3 = vadd.f32 %v11598_v36, %v11534_v56  ;;  %v11601_v24 = vadd.f32 %v11600_v23, %v11599_v41 }
 0x8fa   :  { %v11538_v31 = vpop.f32.mrb[244].mxu0  ;;  %v18977_v51 = vadd.f32 %v7749_v3, %v18929_v45  ;;  %v7752_v16 = vadd.f32 %v11601_v24, %v11537_v58 }
 0x8fb   :  { %v11539_v39 = vpop.f32.mrb[245].mxu0 }
 0x8fc   :  { %v11540_v1 = vadd.f32 %v11539_v39, %v11538_v31  ;;  %v11541_v2 = vpop.f32.mrb[246].mxu0  ;;  %v18980_v15 = vadd.f32 %v7752_v16, %v18932_v19  ;;  %v11602_v13 = vpop.f32.mrb[244].mxu1 }
 0x8fd   :  { %v11542_v6 = vpop.f32.mrb[247].mxu0  ;;  %v11603_v17 = vpop.f32.mrb[245].mxu1 }
 0x8fe   :  { %v11543_v55 = vadd.f32 %v11542_v6, %v11541_v2  ;;  %v11604_v7 = vadd.f32 %v11603_v17, %v11602_v13  ;;  %v11605_v62 = vpop.f32.mrb[246].mxu1 }
 0x8ff   :  { %v11606_v28 = vpop.f32.mrb[247].mxu1 }
 0x900   :  { %v7757_v37 = vadd.f32 %v11604_v7, %v11540_v1  ;;  %v11607_v57 = vadd.f32 %v11606_v28, %v11605_v62 }
 0x902   :  { %v11544_v63 = vpop.f32.mrb[248].mxu0  ;;  %v18983_v45 = vadd.f32 %v7757_v37, %v18935_v18  ;;  %v7760_v35 = vadd.f32 %v11607_v57, %v11543_v55 }
 0x903   :  { %v11545_v21 = vpop.f32.mrb[249].mxu0 }
 0x904   :  { %v11546_v8 = vadd.f32 %v11545_v21, %v11544_v63  ;;  %v11547_v25 = vpop.f32.mrb[250].mxu0  ;;  %v18986_v19 = vadd.f32 %v7760_v35, %v18938_v43  ;;  %v11608_v38 = vpop.f32.mrb[248].mxu1 }
 0x905   :  { %v11548_v20 = vpop.f32.mrb[251].mxu0  ;;  %v11609_v52 = vpop.f32.mrb[249].mxu1 }
 0x906   :  { %v11549_v12 = vadd.f32 %v11548_v20, %v11547_v25  ;;  %v11610_v29 = vadd.f32 %v11609_v52, %v11608_v38  ;;  %v11611_v47 = vpop.f32.mrb[250].mxu1 }
 0x907   :  { %v11612_v27 = vpop.f32.mrb[251].mxu1 }
 0x908   :  { %v7765_v61 = vadd.f32 %v11610_v29, %v11546_v8  ;;  %v11613_v50 = vadd.f32 %v11612_v27, %v11611_v47 }
 0x90a   :  { %v11550_v53 = vpop.f32.mrb[252].mxu0  ;;  %v18989_v18 = vadd.f32 %v7765_v61, %v18941_v49  ;;  %v7768_v33 = vadd.f32 %v11613_v50, %v11549_v12 }
 0x90b   :  { %v11551_v42 = vpop.f32.mrb[253].mxu0 }
 0x90c   :  { %v11552_v11 = vadd.f32 %v11551_v42, %v11550_v53  ;;  %v11553_v10 = vpop.f32.mrb[254].mxu0  ;;  %v18992_v43 = vadd.f32 %v7768_v33, %v18944_v32  ;;  %v11614_v9 = vpop.f32.mrb[252].mxu1 }
 0x90d   :  { %v11554_v44 = vpop.f32.mrb[255].mxu0  ;;  %v11615_v56 = vpop.f32.mrb[253].mxu1 }
 0x90e   :  { %v11555_v48 = vadd.f32 %v11554_v44, %v11553_v10  ;;  %v11616_v5 = vadd.f32 %v11615_v56, %v11614_v9  ;;  %v11617_v22 = vpop.f32.mrb[254].mxu1 }
 0x90f   :  { %v11618_v4 = vpop.f32.mrb[255].mxu1 }
 0x910   :  { %v7773_v58 = vadd.f32 %v11616_v5, %v11552_v11  ;;  %v11619_v36 = vadd.f32 %v11618_v4, %v11617_v22 }
 0x912   :  { %v18995_v49 = vadd.f32 %v7773_v58, %v18947_v46  ;;  %v7776_v23 = vadd.f32 %v11619_v36, %v11555_v48 }
 0x914   :  { %v18998_v32 = vadd.f32 %v7776_v23, %v18950_v30  ;;  %v11700_v16 = vpop.f32.mrb[0].mxu1 }
 0x915   :  { %v11636_v41 = vpop.f32.mrb[0].mxu0  ;;  %v11701_v1 = vpop.f32.mrb[1].mxu1 }
 0x916   :  { %v11637_v3 = vpop.f32.mrb[1].mxu0  ;;  %v11702_v13 = vadd.f32 %v11701_v1, %v11700_v16  ;;  %v11703_v6 = vpop.f32.mrb[2].mxu1 }
 0x917   :  { %v11638_v24 = vadd.f32 %v11637_v3, %v11636_v41  ;;  %v11639_v31 = vpop.f32.mrb[2].mxu0  ;;  %v11704_v17 = vpop.f32.mrb[3].mxu1 }
 0x918   :  { %v11640_v39 = vpop.f32.mrb[3].mxu0  ;;  %v11705_v7 = vadd.f32 %v11704_v17, %v11703_v6 }
 0x919   :  { %v11641_v2 = vadd.f32 %v11640_v39, %v11639_v31  ;;  %v8728_v55 = vadd.f32 %v11702_v13, %v11638_v24 }
 0x91b   :  { %v19001_v46 = vadd.f32 %v8728_v55, %v18953_v60  ;;  %v8731_v28 = vadd.f32 %v11705_v7, %v11641_v2 }
 0x91d   :  { %v19004_v30 = vadd.f32 %v8731_v28, %v18956_v40 }
 0x921   :  { %v11642_v62 = vpop.f32.mrb[4].mxu0 }
 0x922   :  { %v11643_v37 = vpop.f32.mrb[5].mxu0 }
 0x923   :  { %v11644_v57 = vadd.f32 %v11643_v37, %v11642_v62  ;;  %v11645_v63 = vpop.f32.mrb[6].mxu0 }
 0x924   :  { %v11646_v21 = vpop.f32.mrb[7].mxu0 }
 0x925   :  { %v11706_v35 = vpop.f32.mrb[4].mxu1  ;;  %v11647_v25 = vadd.f32 %v11646_v21, %v11645_v63 }
 0x926   :  { %v11707_v8 = vpop.f32.mrb[5].mxu1 }
 0x927   :  { %v11708_v38 = vadd.f32 %v11707_v8, %v11706_v35  ;;  %v11709_v20 = vpop.f32.mrb[6].mxu1 }
 0x928   :  { %v11710_v52 = vpop.f32.mrb[7].mxu1 }
 0x929   :  { %v8736_v12 = vadd.f32 %v11708_v38, %v11644_v57  ;;  %v11711_v29 = vadd.f32 %v11710_v52, %v11709_v20  ;;  %v11648_v47 = vpop.f32.mrb[8].mxu0 }
 0x92a   :  { %v11649_v61 = vpop.f32.mrb[9].mxu0 }
 0x92b   :  { %v19007_v60 = vadd.f32 %v8736_v12, %v18959_v59  ;;  %v8739_v27 = vadd.f32 %v11711_v29, %v11647_v25  ;;  %v11650_v50 = vadd.f32 %v11649_v61, %v11648_v47  ;;  %v11651_v53 = vpop.f32.mrb[10].mxu0 }
 0x92c   :  { %v11652_v42 = vpop.f32.mrb[11].mxu0 }
 0x92d   :  { %v19010_v40 = vadd.f32 %v8739_v27, %v18962_v54  ;;  %v11712_v33 = vpop.f32.mrb[8].mxu1  ;;  %v11653_v10 = vadd.f32 %v11652_v42, %v11651_v53 }
 0x92e   :  { %v11713_v11 = vpop.f32.mrb[9].mxu1 }
 0x92f   :  { %v11714_v9 = vadd.f32 %v11713_v11, %v11712_v33  ;;  %v11715_v44 = vpop.f32.mrb[10].mxu1 }
 0x930   :  { %v11716_v56 = vpop.f32.mrb[11].mxu1 }
 0x931   :  { %v8744_v48 = vadd.f32 %v11714_v9, %v11650_v50  ;;  %v11717_v5 = vadd.f32 %v11716_v56, %v11715_v44 }
 0x933   :  { %v19013_v59 = vadd.f32 %v8744_v48, %v18965_v14  ;;  %v8747_v4 = vadd.f32 %v11717_v5, %v11653_v10 }
 0x935   :  { %v19016_v54 = vadd.f32 %v8747_v4, %v18968_v34 }
 0x936   :  { %v11654_v22 = vpop.f32.mrb[12].mxu0 }
 0x937   :  { %v11655_v58 = vpop.f32.mrb[13].mxu0 }
 0x938   :  { %v11656_v36 = vadd.f32 %v11655_v58, %v11654_v22  ;;  %v11657_v41 = vpop.f32.mrb[14].mxu0 }
 0x939   :  { %v11658_v3 = vpop.f32.mrb[15].mxu0 }
 0x93a   :  { %v11659_v31 = vadd.f32 %v11658_v3, %v11657_v41 }
 0x93b   :  { %v11718_v23 = vpop.f32.mrb[12].mxu1 }
 0x93c   :  { %v11719_v24 = vpop.f32.mrb[13].mxu1 }
 0x93d   :  { %v11720_v16 = vadd.f32 %v11719_v24, %v11718_v23  ;;  %v11721_v39 = vpop.f32.mrb[14].mxu1 }
 0x93e   :  { %v11722_v1 = vpop.f32.mrb[15].mxu1 }
 0x93f   :  { %v8752_v2 = vadd.f32 %v11720_v16, %v11656_v36  ;;  %v11723_v13 = vadd.f32 %v11722_v1, %v11721_v39 }
 0x941   :  { %v19019_v14 = vadd.f32 %v8752_v2, %v18971_v0  ;;  %v8755_v17 = vadd.f32 %v11723_v13, %v11659_v31 }
 0x942   :  { %v11660_v6 = vpop.f32.mrb[16].mxu0 }
 0x943   :  { %v11661_v55 = vpop.f32.mrb[17].mxu0  ;;  %v19022_v34 = vadd.f32 %v8755_v17, %v18974_v26  ;;  %v11724_v28 = vpop.f32.mrb[16].mxu1 }
 0x944   :  { %v11662_v7 = vadd.f32 %v11661_v55, %v11660_v6  ;;  %v11663_v62 = vpop.f32.mrb[18].mxu0  ;;  %v11725_v57 = vpop.f32.mrb[17].mxu1 }
 0x945   :  { %v11664_v37 = vpop.f32.mrb[19].mxu0  ;;  %v11726_v35 = vadd.f32 %v11725_v57, %v11724_v28  ;;  %v11727_v21 = vpop.f32.mrb[18].mxu1 }
 0x946   :  { %v11665_v63 = vadd.f32 %v11664_v37, %v11663_v62  ;;  %v11728_v8 = vpop.f32.mrb[19].mxu1 }
 0x947   :  { %v8760_v25 = vadd.f32 %v11726_v35, %v11662_v7  ;;  %v11729_v38 = vadd.f32 %v11728_v8, %v11727_v21 }
 0x949   :  { %v19025_v0 = vadd.f32 %v8760_v25, %v18977_v51  ;;  %v8763_v52 = vadd.f32 %v11729_v38, %v11665_v63 }
 0x94a   :  { %v11666_v20 = vpop.f32.mrb[20].mxu0 }
 0x94b   :  { %v11667_v12 = vpop.f32.mrb[21].mxu0  ;;  %v19028_v26 = vadd.f32 %v8763_v52, %v18980_v15 }
 0x94c   :  { %v11668_v29 = vadd.f32 %v11667_v12, %v11666_v20  ;;  %v11669_v47 = vpop.f32.mrb[22].mxu0 }
 0x94d   :  { %v11670_v61 = vpop.f32.mrb[23].mxu0 }
 0x94e   :  { %v11671_v53 = vadd.f32 %v11670_v61, %v11669_v47 }
 0x950   :  { %v11730_v27 = vpop.f32.mrb[20].mxu1 }
 0x951   :  { %v11731_v50 = vpop.f32.mrb[21].mxu1 }
 0x952   :  { %v11732_v33 = vadd.f32 %v11731_v50, %v11730_v27  ;;  %v11733_v42 = vpop.f32.mrb[22].mxu1 }
 0x953   :  { %v11734_v11 = vpop.f32.mrb[23].mxu1  ;;  %v11672_v44 = vpop.f32.mrb[24].mxu0 }
 0x954   :  { %v8768_v10 = vadd.f32 %v11732_v33, %v11668_v29  ;;  %v11735_v9 = vadd.f32 %v11734_v11, %v11733_v42  ;;  %v11673_v48 = vpop.f32.mrb[25].mxu0 }
 0x955   :  { %v11674_v5 = vadd.f32 %v11673_v48, %v11672_v44  ;;  %v11675_v22 = vpop.f32.mrb[26].mxu0 }
 0x956   :  { %v19031_v51 = vadd.f32 %v8768_v10, %v18983_v45  ;;  %v8771_v56 = vadd.f32 %v11735_v9, %v11671_v53  ;;  %v11676_v58 = vpop.f32.mrb[27].mxu0 }
 0x957   :  { %v11677_v41 = vadd.f32 %v11676_v58, %v11675_v22 }
 0x958   :  { %v19034_v15 = vadd.f32 %v8771_v56, %v18986_v19  ;;  %v11736_v4 = vpop.f32.mrb[24].mxu1 }
 0x959   :  { %v11737_v36 = vpop.f32.mrb[25].mxu1 }
 0x95a   :  { %v11738_v23 = vadd.f32 %v11737_v36, %v11736_v4  ;;  %v11739_v3 = vpop.f32.mrb[26].mxu1 }
 0x95b   :  { %v11740_v24 = vpop.f32.mrb[27].mxu1  ;;  %v11678_v39 = vpop.f32.mrb[28].mxu0 }
 0x95c   :  { %v8776_v31 = vadd.f32 %v11738_v23, %v11674_v5  ;;  %v11741_v16 = vadd.f32 %v11740_v24, %v11739_v3  ;;  %v11679_v2 = vpop.f32.mrb[29].mxu0 }
 0x95d   :  { %v11680_v13 = vadd.f32 %v11679_v2, %v11678_v39  ;;  %v11681_v6 = vpop.f32.mrb[30].mxu0 }
 0x95e   :  { %v19037_v45 = vadd.f32 %v8776_v31, %v18989_v18  ;;  %v8779_v1 = vadd.f32 %v11741_v16, %v11677_v41  ;;  %v11682_v55 = vpop.f32.mrb[31].mxu0 }
 0x95f   :  { %v11683_v62 = vadd.f32 %v11682_v55, %v11681_v6 }
 0x960   :  { %v19040_v19 = vadd.f32 %v8779_v1, %v18992_v43 }
 0x963   :  { %v11742_v17 = vpop.f32.mrb[28].mxu1  ;;  %v11764_v21 = vpop.f32.mrb[32].mxu0 }
 0x964   :  { %v11743_v7 = vpop.f32.mrb[29].mxu1  ;;  %v11765_v25 = vpop.f32.mrb[33].mxu0 }
 0x965   :  { %v11744_v28 = vadd.f32 %v11743_v7, %v11742_v17  ;;  %v11745_v37 = vpop.f32.mrb[30].mxu1  ;;  %v11766_v38 = vadd.f32 %v11765_v25, %v11764_v21  ;;  %v11767_v20 = vpop.f32.mrb[34].mxu0 }
 0x966   :  { %v11746_v57 = vpop.f32.mrb[31].mxu1  ;;  %v11768_v12 = vpop.f32.mrb[35].mxu0 }
 0x967   :  { %v8784_v63 = vadd.f32 %v11744_v28, %v11680_v13  ;;  %v11747_v35 = vadd.f32 %v11746_v57, %v11745_v37  ;;  %v11769_v47 = vadd.f32 %v11768_v12, %v11767_v20 }
 0x969   :  { %v19043_v18 = vadd.f32 %v8784_v63, %v18995_v49  ;;  %v8787_v8 = vadd.f32 %v11747_v35, %v11683_v62  ;;  %v19051_v49 = vld [vmem:[%s19140_s7] ss:$0 sm:$0xff] }
 0x96b   :  { %v19046_v43 = vadd.f32 %v8787_v8, %v18998_v32  ;;  %v11828_v52 = vpop.f32.mrb[32].mxu1 }
 0x96c   :  { %v11829_v29 = vpop.f32.mrb[33].mxu1 }
 0x96d   :  { %v11830_v27 = vadd.f32 %v11829_v29, %v11828_v52  ;;  %v11831_v61 = vpop.f32.mrb[34].mxu1 }
 0x96e   :  { %v11832_v50 = vpop.f32.mrb[35].mxu1 }
 0x96f   :  { %v9739_v53 = vadd.f32 %v11830_v27, %v11766_v38  ;;  %v11833_v33 = vadd.f32 %v11832_v50, %v11831_v61 }
 0x971   :  { %v9801_v11 = vadd.f32 %v9739_v53, %v19001_v46  ;;  %v9742_v10 = vadd.f32 %v11833_v33, %v11769_v47 }
 0x972   :  { %v11770_v42 = vpop.f32.mrb[36].mxu0 }
 0x973   :  { %v11771_v32 = vpop.f32.mrb[37].mxu0  ;;  %v9824_v56 = vadd.f32 %v19051_v49, %v9801_v11  ;;  %v9802_v48 = vadd.f32 %v9742_v10, %v19004_v30  ;;  %v11834_v5 = vpop.f32.mrb[36].mxu1 }
 0x974   :  { %v11772_v9 = vadd.f32 %v11771_v32, %v11770_v42  ;;  %v11773_v44 = vpop.f32.mrb[38].mxu0  ;;  %v11835_v4 = vpop.f32.mrb[37].mxu1 }
 0x975   :  { %v11774_v22 = vpop.f32.mrb[39].mxu0  ;;  %9840 = vst [vmem:[%s19141_s8] sm:$0xff] %v9824_v56  ;;  %v9825_v36 = vadd.f32 %v19051_v49, %v9802_v48  ;;  %v11836_v41 = vadd.f32 %v11835_v4, %v11834_v5  ;;  %v11837_v46 = vpop.f32.mrb[38].mxu1 }
 0x976   :  { %v11775_v58 = vadd.f32 %v11774_v22, %v11773_v44  ;;  %v11838_v23 = vpop.f32.mrb[39].mxu1 }
 0x977   :  { %9841 = vst [vmem:[%s19141_s8 + $0x8] sm:$0xff] %v9825_v36  ;;  %v9747_v3 = vadd.f32 %v11836_v41, %v11772_v9  ;;  %v11839_v24 = vadd.f32 %v11838_v23, %v11837_v46 }
 0x979   :  { %v9803_v31 = vadd.f32 %v9747_v3, %v19007_v60  ;;  %v9750_v16 = vadd.f32 %v11839_v24, %v11775_v58 }
 0x97a   :  { %v11776_v30 = vpop.f32.mrb[40].mxu0 }
 0x97b   :  { %v11777_v39 = vpop.f32.mrb[41].mxu0  ;;  %v9826_v13 = vadd.f32 %v19051_v49, %v9803_v31  ;;  %v9804_v6 = vadd.f32 %v9750_v16, %v19010_v40  ;;  %v11840_v17 = vpop.f32.mrb[40].mxu1 }
 0x97c   :  { %v11778_v1 = vadd.f32 %v11777_v39, %v11776_v30  ;;  %v11779_v2 = vpop.f32.mrb[42].mxu0  ;;  %v11841_v7 = vpop.f32.mrb[41].mxu1 }
 0x97d   :  { %v11780_v55 = vpop.f32.mrb[43].mxu0  ;;  %9842 = vst [vmem:[%s19141_s8 + $0x10] sm:$0xff] %v9826_v13  ;;  %v9827_v28 = vadd.f32 %v19051_v49, %v9804_v6  ;;  %v11842_v37 = vadd.f32 %v11841_v7, %v11840_v17  ;;  %v11843_v60 = vpop.f32.mrb[42].mxu1 }
 0x97e   :  { %v11781_v62 = vadd.f32 %v11780_v55, %v11779_v2  ;;  %v11844_v57 = vpop.f32.mrb[43].mxu1 }
 0x97f   :  { %9843 = vst [vmem:[%s19141_s8 + $0x18] sm:$0xff] %v9827_v28  ;;  %v9755_v63 = vadd.f32 %v11842_v37, %v11778_v1  ;;  %v11845_v35 = vadd.f32 %v11844_v57, %v11843_v60 }
 0x981   :  { %v9805_v21 = vadd.f32 %v9755_v63, %v19013_v59  ;;  %v9758_v8 = vadd.f32 %v11845_v35, %v11781_v62 }
 0x982   :  { %v11782_v40 = vpop.f32.mrb[44].mxu0 }
 0x983   :  { %v11783_v25 = vpop.f32.mrb[45].mxu0  ;;  %v9828_v52 = vadd.f32 %v19051_v49, %v9805_v21  ;;  %v9806_v12 = vadd.f32 %v9758_v8, %v19016_v54 }
 0x984   :  { %v11784_v38 = vadd.f32 %v11783_v25, %v11782_v40  ;;  %v11785_v20 = vpop.f32.mrb[46].mxu0 }
 0x985   :  { %v11846_v29 = vpop.f32.mrb[44].mxu1  ;;  %v11786_v47 = vpop.f32.mrb[47].mxu0  ;;  %9844 = vst [vmem:[%s19141_s8 + $0x20] sm:$0xff] %v9828_v52  ;;  %v9829_v50 = vadd.f32 %v19051_v49, %v9806_v12 }
 0x986   :  { %v11847_v27 = vpop.f32.mrb[45].mxu1  ;;  %v11787_v61 = vadd.f32 %v11786_v47, %v11785_v20 }
 0x987   :  { %v11848_v53 = vadd.f32 %v11847_v27, %v11846_v29  ;;  %v11849_v59 = vpop.f32.mrb[46].mxu1  ;;  %9845 = vst [vmem:[%s19141_s8 + $0x28] sm:$0xff] %v9829_v50 }
 0x988   :  { %v11850_v33 = vpop.f32.mrb[47].mxu1 }
 0x989   :  { %v9763_v42 = vadd.f32 %v11848_v53, %v11784_v38  ;;  %v11851_v11 = vadd.f32 %v11850_v33, %v11849_v59 }
 0x98a   :  { %v11788_v54 = vpop.f32.mrb[48].mxu0 }
 0x98b   :  { %v9807_v10 = vadd.f32 %v9763_v42, %v19019_v14  ;;  %v9766_v32 = vadd.f32 %v11851_v11, %v11787_v61  ;;  %v11789_v9 = vpop.f32.mrb[49].mxu0 }
 0x98c   :  { %v11790_v44 = vadd.f32 %v11789_v9, %v11788_v54  ;;  %v11791_v56 = vpop.f32.mrb[50].mxu0 }
 0x98d   :  { %v9830_v48 = vadd.f32 %v19051_v49, %v9807_v10  ;;  %v9808_v5 = vadd.f32 %v9766_v32, %v19022_v34  ;;  %v11852_v22 = vpop.f32.mrb[48].mxu1  ;;  %v11792_v4 = vpop.f32.mrb[51].mxu0 }
 0x98e   :  { %v11853_v58 = vpop.f32.mrb[49].mxu1  ;;  %v11793_v36 = vadd.f32 %v11792_v4, %v11791_v56 }
 0x98f   :  { %9846 = vst [vmem:[%s19141_s8 + $0x30] sm:$0xff] %v9830_v48  ;;  %v9831_v41 = vadd.f32 %v19051_v49, %v9808_v5  ;;  %v11854_v46 = vadd.f32 %v11853_v58, %v11852_v22  ;;  %v11855_v14 = vpop.f32.mrb[50].mxu1 }
 0x990   :  { %v11856_v23 = vpop.f32.mrb[51].mxu1 }
 0x991   :  { %9847 = vst [vmem:[%s19141_s8 + $0x38] sm:$0xff] %v9831_v41  ;;  %v9771_v3 = vadd.f32 %v11854_v46, %v11790_v44  ;;  %v11857_v24 = vadd.f32 %v11856_v23, %v11855_v14 }
 0x992   :  { %v11794_v34 = vpop.f32.mrb[52].mxu0 }
 0x993   :  { %v9809_v30 = vadd.f32 %v9771_v3, %v19025_v0  ;;  %v9774_v31 = vadd.f32 %v11857_v24, %v11793_v36  ;;  %v11795_v16 = vpop.f32.mrb[53].mxu0 }
 0x994   :  { %v11796_v39 = vadd.f32 %v11795_v16, %v11794_v34  ;;  %v11797_v1 = vpop.f32.mrb[54].mxu0 }
 0x995   :  { %v9832_v2 = vadd.f32 %v19051_v49, %v9809_v30  ;;  %v9810_v13 = vadd.f32 %v9774_v31, %v19028_v26  ;;  %v11858_v6 = vpop.f32.mrb[52].mxu1  ;;  %v11798_v17 = vpop.f32.mrb[55].mxu0 }
 0x996   :  { %v11859_v55 = vpop.f32.mrb[53].mxu1  ;;  %v11799_v7 = vadd.f32 %v11798_v17, %v11797_v1 }
 0x997   :  { %9848 = vst [vmem:[%s19141_s8 + $0x40] sm:$0xff] %v9832_v2  ;;  %v9833_v62 = vadd.f32 %v19051_v49, %v9810_v13  ;;  %v11860_v28 = vadd.f32 %v11859_v55, %v11858_v6  ;;  %v11861_v0 = vpop.f32.mrb[54].mxu1 }
 0x998   :  { %v11862_v37 = vpop.f32.mrb[55].mxu1 }
 0x999   :  { %9849 = vst [vmem:[%s19141_s8 + $0x48] sm:$0xff] %v9833_v62  ;;  %v9779_v60 = vadd.f32 %v11860_v28, %v11796_v39  ;;  %v11863_v57 = vadd.f32 %v11862_v37, %v11861_v0 }
 0x99a   :  { %v11800_v26 = vpop.f32.mrb[56].mxu0 }
 0x99b   :  { %v9811_v63 = vadd.f32 %v9779_v60, %v19031_v51  ;;  %v9782_v35 = vadd.f32 %v11863_v57, %v11799_v7  ;;  %v11801_v40 = vpop.f32.mrb[57].mxu0 }
 0x99c   :  { %v11802_v21 = vadd.f32 %v11801_v40, %v11800_v26  ;;  %v11803_v8 = vpop.f32.mrb[58].mxu0 }
 0x99d   :  { %v9834_v25 = vadd.f32 %v19051_v49, %v9811_v63  ;;  %v9812_v38 = vadd.f32 %v9782_v35, %v19034_v15  ;;  %v11864_v20 = vpop.f32.mrb[56].mxu1  ;;  %v11804_v52 = vpop.f32.mrb[59].mxu0 }
 0x99e   :  { %v11865_v12 = vpop.f32.mrb[57].mxu1  ;;  %v11805_v29 = vadd.f32 %v11804_v52, %v11803_v8 }
 0x99f   :  { %9850 = vst [vmem:[%s19141_s8 + $0x50] sm:$0xff] %v9834_v25  ;;  %v9835_v47 = vadd.f32 %v19051_v49, %v9812_v38  ;;  %v11866_v27 = vadd.f32 %v11865_v12, %v11864_v20  ;;  %v11867_v51 = vpop.f32.mrb[58].mxu1 }
 0x9a0   :  { %v11868_v61 = vpop.f32.mrb[59].mxu1 }
 0x9a1   :  { %9851 = vst [vmem:[%s19141_s8 + $0x58] sm:$0xff] %v9835_v47  ;;  %v9787_v50 = vadd.f32 %v11866_v27, %v11802_v21  ;;  %v11869_v53 = vadd.f32 %v11868_v61, %v11867_v51 }
 0x9a2   :  { %v11806_v15 = vpop.f32.mrb[60].mxu0 }
 0x9a3   :  { %v9813_v59 = vadd.f32 %v9787_v50, %v19037_v45  ;;  %v9790_v33 = vadd.f32 %v11869_v53, %v11805_v29  ;;  %v11807_v42 = vpop.f32.mrb[61].mxu0 }
 0x9a4   :  { %v11808_v11 = vadd.f32 %v11807_v42, %v11806_v15  ;;  %v11809_v54 = vpop.f32.mrb[62].mxu0 }
 0x9a5   :  { %v9836_v10 = vadd.f32 %v19051_v49, %v9813_v59  ;;  %v9814_v32 = vadd.f32 %v9790_v33, %v19040_v19  ;;  %v11870_v9 = vpop.f32.mrb[60].mxu1  ;;  %v11810_v44 = vpop.f32.mrb[63].mxu0 }
 0x9a6   :  { %v11871_v56 = vpop.f32.mrb[61].mxu1  ;;  %v11811_v48 = vadd.f32 %v11810_v44, %v11809_v54 }
 0x9a7   :  { %9852 = vst [vmem:[%s19141_s8 + $0x60] sm:$0xff] %v9836_v10  ;;  %v9837_v5 = vadd.f32 %v19051_v49, %v9814_v32  ;;  %v11872_v22 = vadd.f32 %v11871_v56, %v11870_v9  ;;  %v11873_v45 = vpop.f32.mrb[62].mxu1 }
 0x9a8   :  { %v11874_v4 = vpop.f32.mrb[63].mxu1 }
 0x9a9   :  { %9853 = vst [vmem:[%s19141_s8 + $0x68] sm:$0xff] %v9837_v5  ;;  %v9795_v58 = vadd.f32 %v11872_v22, %v11808_v11  ;;  %v11875_v36 = vadd.f32 %v11874_v4, %v11873_v45 }
 0x9ab   :  { %v9815_v19 = vadd.f32 %v9795_v58, %v19043_v18  ;;  %v9798_v41 = vadd.f32 %v11875_v36, %v11811_v48 }
 0x9ad   :  { %v9838_v46 = vadd.f32 %v19051_v49, %v9815_v19  ;;  %v9816_v14 = vadd.f32 %v9798_v41, %v19046_v43 }
 0x9af   :  { %9854 = vst [vmem:[%s19141_s8 + $0x70] sm:$0xff] %v9838_v46  ;;  %v9839_v23 = vadd.f32 %v19051_v49, %v9816_v14 }
 0x9b1   :  { %9855 = vst [vmem:[%s19141_s8 + $0x78] sm:$0xff] %v9839_v23 }

</bundles_post_ra>
